<compile_context>
chip_gen: v7x
topology: tpu7x:2x2x1
jax: 0.10.0
libtpu: 0.0.40
codegen_flags: <defaults>
</compile_context>

<pallas_src>
import functools

import numpy as np
import jax
import jax.numpy as jnp
from jax import lax
from jax.experimental import pallas as pl
from jax.experimental.pallas import tpu as pltpu

H_DIM, LATENT = 768, 32
IMG_H, IMG_W, IMG_C = 64, 48, 3      # NCHW H, W after torch's permute(0, 3, 2, 1)
MXU_DTYPE = jnp.bfloat16             # MXU operand dtype (accumulation stays f32)

# (name, kind, kh, kw, stride, pad, H_in, W_in)
_CONV_LAYERS = (
    ("c0", "conv", 4, 4, 2, 1, 64, 48),
    ("c1", "conv", 4, 4, 2, 1, 32, 24),
    ("c2", "conv", 4, 4, 2, 1, 16, 12),
    ("t0", "convT", 8, 6, 2, 0, 1, 1),
    ("t1", "convT", 4, 4, 2, 1, 8, 6),
    ("t2", "convT", 4, 4, 2, 1, 16, 12),
    ("t3", "convT", 4, 4, 2, 1, 32, 24),
)


# ----------------------------------------------------------------------------
# Host-side one-time weight preparation (pre-transpose / pre-fold at init)
# ----------------------------------------------------------------------------
def _build_conv_gemm(w, b, kind, H, W, stride, pad):
    """Fold a (transposed) conv into the two-GEMM form used by the kernel."""
    w = np.asarray(w, np.float32)
    if kind == "conv":
        Cout, Cin, kh, kw = w.shape
        wc = w                                            # (Cout, Cin, kh, kw)
        Ho = (H + 2 * pad - kh) // stride + 1
        Wo = (W + 2 * pad - kw) // stride + 1
    else:                                                 # ConvTranspose2d
        Cin, Cout, kh, kw = w.shape
        wc = np.transpose(w, (1, 0, 2, 3))                # (Cout, Cin, kh, kw)
        Ho = (H - 1) * stride - 2 * pad + kh
        Wo = (W - 1) * stride - 2 * pad + kw

    # M[(iw, ci), (ki, ow, co)] : width-tap gather fused with the weights.
    M = np.zeros((W * Cin, kh * Wo * Cout), np.float32)
    for kj in range(kw):
        if kind == "conv":
            pairs = [(stride * ow + kj - pad, ow) for ow in range(Wo)]
        else:
            pairs = [(iw, stride * iw + kj - pad) for iw in range(W)]
        for iw, ow in pairs:
            if 0 <= iw < W and 0 <= ow < Wo:
                for ki in range(kh):
                    col = (ki * Wo + ow) * Cout
                    M[iw * Cin:(iw + 1) * Cin, col:col + Cout] = wc[:, :, ki, kj].T

    # S[oh, (ki, h)] : height-tap gather (0/1 matrix), zero-padding folded in.
    S = np.zeros((Ho, kh * H), np.float32)
    for ki in range(kh):
        if kind == "conv":
            for oh in range(Ho):
                h = stride * oh + ki - pad
                if 0 <= h < H:
                    S[oh, ki * H + h] = 1.0
        else:
            for ih in range(H):
                oh = stride * ih + ki - pad
                if 0 <= oh < Ho:
                    S[oh, ki * H + ih] = 1.0

    bias = np.tile(np.asarray(b, np.float32), Wo)[None, :]   # (1, Wo*Cout)
    return (jnp.asarray(M, MXU_DTYPE), jnp.asarray(S, MXU_DTYPE),
            jnp.asarray(bias, jnp.float32), kh, Wo * Cout)


def prepare_params(params):
    """One-time conversion of torch-layout params to the fused kernel's operands."""
    arrays, meta = [], []
    for name, kind, kh, kw, s, p, H, W in _CONV_LAYERS[:3]:
        M, S, bias, kh_, wc = _build_conv_gemm(
            params[name + "_w"], params[name + "_b"], kind, H, W, s, p)
        arrays += [M, S, bias]
        meta.append((kh_, wc))

    # fc1 / fc2: permute the 768-dim input from torch's (c, h, w) flatten order
    # to this kernel's (h, w, c) layout, pre-split by output row h.
    f1 = np.asarray(params["fc1_w"], np.float32).reshape(LATENT, 16, 8, 6)
    f2 = np.asarray(params["fc2_w"], np.float32).reshape(LATENT, 16, 8, 6)
    f12 = np.concatenate([f1, f2], axis=0)                    # (64, c, h, w)
    f12 = np.transpose(f12, (2, 3, 1, 0)).reshape(8, 6 * 16, 2 * LATENT)
    b12 = np.concatenate([np.asarray(params["fc1_b"], np.float32),
                          np.asarray(params["fc2_b"], np.float32)])[None, :]
    f3 = np.asarray(params["fc3_w"], np.float32).T            # (latent, h_dim)
    b3 = np.asarray(params["fc3_b"], np.float32)[None, :]
    arrays += [jnp.asarray(f12, MXU_DTYPE), jnp.asarray(b12, jnp.float32),
               jnp.asarray(f3, MXU_DTYPE), jnp.asarray(b3, jnp.float32)]

    for name, kind, kh, kw, s, p, H, W in _CONV_LAYERS[3:]:
        M, S, bias, kh_, wc = _build_conv_gemm(
            params[name + "_w"], params[name + "_b"], kind, H, W, s, p)
        arrays += [M, S, bias]
        meta.append((kh_, wc))
    return arrays, tuple(meta)


# ----------------------------------------------------------------------------
# Fused Pallas kernel
# ----------------------------------------------------------------------------
def _leaky_relu(x):
    return jnp.where(x >= 0.0, x, 0.01 * x)     # PyTorch default slope 0.01


def _relu(x):
    return jnp.maximum(x, 0.0)


def _conv_gemm_block(x, m_ref, s_ref, b_ref, kh, wo_cout, act):
    """One Conv2d / ConvTranspose2d layer as two lane-dense GEMMs."""
    z = jnp.dot(x.astype(MXU_DTYPE), m_ref[...],
                preferred_element_type=jnp.float32)               # (H, kh*Wo*Cout)
    zc = jnp.concatenate(
        [z[:, k * wo_cout:(k + 1) * wo_cout] for k in range(kh)], axis=0)
    y = jnp.dot(s_ref[...], zc.astype(MXU_DTYPE),
                preferred_element_type=jnp.float32)               # (Ho, Wo*Cout)
    y = y + b_ref[...]
    return act(y)


def _vae_fused_kernel(*refs, meta):
    in_refs = refs[:-3]
    rec_ref, mu_ref, lv_ref = refs[-3:]
    x_ref, eps_ref = in_refs[0], in_refs[1]
    it = iter(in_refs[2:])

    # ---- encoder ---------------------------------------------------------
    a = x_ref[0]                                                  # (64, 48*3)
    for li in range(3):
        m, s, b = next(it), next(it), next(it)
        kh, wc = meta[li]
        a = _conv_gemm_block(a, m, s, b, kh, wc, _leaky_relu)     # -> (8, 96)

    # ---- bottleneck: fc1(tanh) / fc2(softplus) / reparameterize ----------
    f12, b12, f3, b3 = next(it), next(it), next(it), next(it)
    acc = jnp.zeros((1, 2 * LATENT), jnp.float32)
    for hh in range(8):                          # flatten(h, w, c) @ [W1 | W2]
        acc = acc + jnp.dot(a[hh:hh + 1, :].astype(MXU_DTYPE), f12[hh],
                            preferred_element_type=jnp.float32)
    acc = acc + b12[...]
    mu = jnp.tanh(acc[:, :LATENT])
    pre = acc[:, LATENT:]
    # PyTorch Softplus(beta=1, threshold=20)
    logvar = jnp.where(pre > 20.0, pre,
                       jnp.log1p(jnp.exp(jnp.minimum(pre, 20.0))))
    z = mu + jnp.exp(0.5 * logvar) * eps_ref[0]
    mu_ref[0] = mu
    lv_ref[0] = logvar

    # ---- decoder ---------------------------------------------------------
    d = jnp.dot(z.astype(MXU_DTYPE), f3[...],
                preferred_element_type=jnp.float32) + b3[...]     # fc3 -> (1, 768)
    for li in range(3, 7):
        m, s, b = next(it), next(it), next(it)
        kh, wc = meta[li]
        act = _relu if li == 6 else _leaky_relu
        d = _conv_gemm_block(d, m, s, b, kh, wc, act)             # -> (64, 48*4)
    rec_ref[0] = d


def vae_conv_forward(prep, meta, x, eps):
    """x: (N, 48, 64, 3) channel-last, eps: (N, 32) reparam noise.
    Returns (recon (N,4,64,48) NCHW, mu (N,32), logvar (N,32))."""
    N = x.shape[0]
    # single boundary relayout: permute(0,3,2,1) expressed in the kernel's
    # (H, W*C) matrix layout.
    xk = jnp.transpose(x, (0, 2, 1, 3)).reshape(N, IMG_H, IMG_W * IMG_C)
    xk = xk.astype(jnp.float32)
    epsk = eps.astype(jnp.float32).reshape(N, 1, LATENT)

    def batched_spec(shape):
        rank = len(shape)
        return pl.BlockSpec((1,) + tuple(shape[1:]),
                            lambda b, _r=rank: (b,) + (0,) * (_r - 1))

    def const_spec(a):
        return pl.BlockSpec(tuple(a.shape), lambda b, _r=a.ndim: (0,) * _r)

    out_shape = (jax.ShapeDtypeStruct((N, IMG_H, IMG_W * 4), jnp.float32),
                 jax.ShapeDtypeStruct((N, 1, LATENT), jnp.float32),
                 jax.ShapeDtypeStruct((N, 1, LATENT), jnp.float32))

    rec, mu, logvar = pl.pallas_call(
        functools.partial(_vae_fused_kernel, meta=meta),
        out_shape=out_shape,
        grid_spec=pltpu.PrefetchScalarGridSpec(
            num_scalar_prefetch=0,
            grid=(N,),
            in_specs=[batched_spec(xk.shape), batched_spec(epsk.shape)]
                     + [const_spec(a) for a in prep],
            out_specs=[batched_spec(s.shape) for s in out_shape]),
        compiler_params=pltpu.CompilerParams(
            dimension_semantics=("parallel",),
            vmem_limit_bytes=48 * 1024 * 1024,
            internal_scratch_in_bytes=4 * 1024 * 1024),
    )(xk, epsk, *prep)

    recon = jnp.transpose(rec.reshape(N, IMG_H, IMG_W, 4), (0, 3, 1, 2))
    return recon, mu.reshape(N, LATENT), logvar.reshape(N, LATENT)


# ----------------------------------------------------------------------------
# Params (torch layouts) and a pure-JAX reference of the torch module
# ----------------------------------------------------------------------------
def init_params(key):
    def w(key, shape, scale=0.05):
        return (scale * jax.random.normal(key, shape)).astype(jnp.float32)

    ks = jax.random.split(key, 20)
    return {
        "c0_w": w(ks[0], (16, 3, 4, 4)),   "c0_b": w(ks[1], (16,)),
        "c1_w": w(ks[2], (16, 16, 4, 4)),  "c1_b": w(ks[3], (16,)),
        "c2_w": w(ks[4], (16, 16, 4, 4)),  "c2_b": w(ks[5], (16,)),
        "fc1_w": w(ks[6], (LATENT, H_DIM)), "fc1_b": w(ks[7], (LATENT,)),
        "fc2_w": w(ks[8], (LATENT, H_DIM)), "fc2_b": w(ks[9], (LATENT,)),
        "fc3_w": w(ks[10], (H_DIM, LATENT)), "fc3_b": w(ks[11], (H_DIM,)),
        "t0_w": w(ks[12], (H_DIM, 16, 8, 6)), "t0_b": w(ks[13], (16,)),
        "t1_w": w(ks[14], (16, 16, 4, 4)),    "t1_b": w(ks[15], (16,)),
        "t2_w": w(ks[16], (16, 16, 4, 4)),    "t2_b": w(ks[17], (16,)),
        "t3_w": w(ks[18], (16, 4, 4, 4)),     "t3_b": w(ks[19], (4,)),
    }


def _reference_forward(params, x, eps):
    """Pure-JAX (XLA conv) reference, f32, matching the torch module."""
    def conv(h, w, b, s, p):
        y = lax.conv_general_dilated(h, w, (s, s), [(p, p), (p, p)],
                                     dimension_numbers=("NCHW", "OIHW", "NCHW"))
        return y + b.reshape(1, -1, 1, 1)

    def convT(h, w, b, s, p):
        kh, kw = w.shape[2], w.shape[3]
        wc = jnp.flip(jnp.transpose(w, (1, 0, 2, 3)), axis=(2, 3))
        y = lax.conv_general_dilated(h, wc, (1, 1),
                                     [(kh - 1 - p, kh - 1 - p),
                                      (kw - 1 - p, kw - 1 - p)],
                                     lhs_dilation=(s, s),
                                     dimension_numbers=("NCHW", "OIHW", "NCHW"))
        return y + b.reshape(1, -1, 1, 1)

    lrelu = lambda t: jnp.where(t >= 0.0, t, 0.01 * t)
    h = jnp.transpose(x, (0, 3, 2, 1))
    h = lrelu(conv(h, params["c0_w"], params["c0_b"], 2, 1))
    h = lrelu(conv(h, params["c1_w"], params["c1_b"], 2, 1))
    h = lrelu(conv(h, params["c2_w"], params["c2_b"], 2, 1))
    hf = h.reshape(h.shape[0], -1)
    mu = jnp.tanh(hf @ params["fc1_w"].T + params["fc1_b"])
    pre = hf @ params["fc2_w"].T + params["fc2_b"]
    logvar = jnp.where(pre > 20.0, pre, jnp.log1p(jnp.exp(jnp.minimum(pre, 20.0))))
    z = mu + jnp.exp(0.5 * logvar) * eps
    d = (z @ params["fc3_w"].T + params["fc3_b"]).reshape(-1, H_DIM, 1, 1)
    d = lrelu(convT(d, params["t0_w"], params["t0_b"], 2, 0))
    d = lrelu(convT(d, params["t1_w"], params["t1_b"], 2, 1))
    d = lrelu(convT(d, params["t2_w"], params["t2_b"], 2, 1))
    d = jnp.maximum(convT(d, params["t3_w"], params["t3_b"], 2, 1), 0.0)
    return d, mu, logvar


if __name__ == "__main__":
    key = jax.random.PRNGKey(0)
    k_param, k_x, k_eps = jax.random.split(key, 3)

    params = init_params(k_param)
    batch = 2
    x = jax.random.normal(k_x, (batch, 48, 64, 3), dtype=jnp.float32)
    # TODO(synk): torch.randn inside reparameterize has no in-kernel equivalent
    # tied to torch's RNG; deterministic noise is drawn here and passed in.
    eps = jax.random.normal(k_eps, (batch, LATENT), dtype=jnp.float32)

    prep, meta = prepare_params(params)                     # one-time weight prep
    fwd = jax.jit(vae_conv_forward, static_argnums=(1,))
    recon, mu, logvar = fwd(prep, meta, x, eps)
    jax.block_until_ready((recon, mu, logvar))

    # structural checks
    assert recon.shape == (batch, 4, 64, 48), recon.shape
    assert mu.shape == (batch, LATENT) and logvar.shape == (batch, LATENT)
    assert bool(jnp.all(jnp.isfinite(recon)))
    assert bool(jnp.all(recon >= 0.0))            # final ReLU
    assert bool(jnp.all(jnp.abs(mu) <= 1.0))      # tanh
    assert bool(jnp.all(logvar >= 0.0))           # softplus

    # numerical check against the pure-JAX reference (bf16 MXU operands -> loose tol)
    r_rec, r_mu, r_lv = jax.jit(_reference_forward)(params, x, eps)
    assert float(jnp.max(jnp.abs(recon - r_rec))) < 5e-2
    assert float(jnp.max(jnp.abs(mu - r_mu))) < 5e-2
    assert float(jnp.max(jnp.abs(logvar - r_lv))) < 5e-2

    print("KERNEL_OK")
</pallas_src>

<mosaic_0001>
module attributes {stable_mosaic.version = 11 : i64} {
  func.func @_vae_fused_kernel(%arg0: i32, %arg1: memref<1x64x144xf32, #tpu.memory_space<vmem>>, %arg2: memref<1x1x32xf32, #tpu.memory_space<vmem>>, %arg3: memref<144x1536xbf16, #tpu.memory_space<vmem>>, %arg4: memref<32x256xbf16, #tpu.memory_space<vmem>>, %arg5: memref<1x384xf32, #tpu.memory_space<vmem>>, %arg6: memref<384x768xbf16, #tpu.memory_space<vmem>>, %arg7: memref<16x128xbf16, #tpu.memory_space<vmem>>, %arg8: memref<1x192xf32, #tpu.memory_space<vmem>>, %arg9: memref<192x384xbf16, #tpu.memory_space<vmem>>, %arg10: memref<8x64xbf16, #tpu.memory_space<vmem>>, %arg11: memref<1x96xf32, #tpu.memory_space<vmem>>, %arg12: memref<8x96x64xbf16, #tpu.memory_space<vmem>>, %arg13: memref<1x64xf32, #tpu.memory_space<vmem>>, %arg14: memref<32x768xbf16, #tpu.memory_space<vmem>>, %arg15: memref<1x768xf32, #tpu.memory_space<vmem>>, %arg16: memref<768x768xbf16, #tpu.memory_space<vmem>>, %arg17: memref<8x8xbf16, #tpu.memory_space<vmem>>, %arg18: memref<1x96xf32, #tpu.memory_space<vmem>>, %arg19: memref<96x768xbf16, #tpu.memory_space<vmem>>, %arg20: memref<16x32xbf16, #tpu.memory_space<vmem>>, %arg21: memref<1x192xf32, #tpu.memory_space<vmem>>, %arg22: memref<192x1536xbf16, #tpu.memory_space<vmem>>, %arg23: memref<32x64xbf16, #tpu.memory_space<vmem>>, %arg24: memref<1x384xf32, #tpu.memory_space<vmem>>, %arg25: memref<384x768xbf16, #tpu.memory_space<vmem>>, %arg26: memref<64x128xbf16, #tpu.memory_space<vmem>>, %arg27: memref<1x192xf32, #tpu.memory_space<vmem>>, %arg28: memref<1x64x192xf32, #tpu.memory_space<vmem>>, %arg29: memref<1x1x32xf32, #tpu.memory_space<vmem>>, %arg30: memref<1x1x32xf32, #tpu.memory_space<vmem>>) attributes {dimension_semantics = [#tpu.dimension_semantics<parallel>], iteration_bounds = array<i64: 2>, scalar_prefetch = 0 : i64, scratch_operands = 0 : i64, tpu.core_type = #tpu.core_type<tc>, window_params = [{transform_indices = @transform_0, window_bounds = array<i64: 1, 64, 144>}, {transform_indices = @transform_1, window_bounds = array<i64: 1, 1, 32>}, {pipeline_mode = #tpu.pipeline_mode<synchronous>, transform_indices = @transform_2, window_bounds = array<i64: 144, 1536>}, {pipeline_mode = #tpu.pipeline_mode<synchronous>, transform_indices = @transform_3, window_bounds = array<i64: 32, 256>}, {pipeline_mode = #tpu.pipeline_mode<synchronous>, transform_indices = @transform_4, window_bounds = array<i64: 1, 384>}, {pipeline_mode = #tpu.pipeline_mode<synchronous>, transform_indices = @transform_5, window_bounds = array<i64: 384, 768>}, {pipeline_mode = #tpu.pipeline_mode<synchronous>, transform_indices = @transform_6, window_bounds = array<i64: 16, 128>}, {pipeline_mode = #tpu.pipeline_mode<synchronous>, transform_indices = @transform_7, window_bounds = array<i64: 1, 192>}, {pipeline_mode = #tpu.pipeline_mode<synchronous>, transform_indices = @transform_8, window_bounds = array<i64: 192, 384>}, {pipeline_mode = #tpu.pipeline_mode<synchronous>, transform_indices = @transform_9, window_bounds = array<i64: 8, 64>}, {pipeline_mode = #tpu.pipeline_mode<synchronous>, transform_indices = @transform_10, window_bounds = array<i64: 1, 96>}, {pipeline_mode = #tpu.pipeline_mode<synchronous>, transform_indices = @transform_11, window_bounds = array<i64: 8, 96, 64>}, {pipeline_mode = #tpu.pipeline_mode<synchronous>, transform_indices = @transform_12, window_bounds = array<i64: 1, 64>}, {pipeline_mode = #tpu.pipeline_mode<synchronous>, transform_indices = @transform_13, window_bounds = array<i64: 32, 768>}, {pipeline_mode = #tpu.pipeline_mode<synchronous>, transform_indices = @transform_14, window_bounds = array<i64: 1, 768>}, {pipeline_mode = #tpu.pipeline_mode<synchronous>, transform_indices = @transform_15, window_bounds = array<i64: 768, 768>}, {pipeline_mode = #tpu.pipeline_mode<synchronous>, transform_indices = @transform_16, window_bounds = array<i64: 8, 8>}, {pipeline_mode = #tpu.pipeline_mode<synchronous>, transform_indices = @transform_17, window_bounds = array<i64: 1, 96>}, {pipeline_mode = #tpu.pipeline_mode<synchronous>, transform_indices = @transform_18, window_bounds = array<i64: 96, 768>}, {pipeline_mode = #tpu.pipeline_mode<synchronous>, transform_indices = @transform_19, window_bounds = array<i64: 16, 32>}, {pipeline_mode = #tpu.pipeline_mode<synchronous>, transform_indices = @transform_20, window_bounds = array<i64: 1, 192>}, {pipeline_mode = #tpu.pipeline_mode<synchronous>, transform_indices = @transform_21, window_bounds = array<i64: 192, 1536>}, {pipeline_mode = #tpu.pipeline_mode<synchronous>, transform_indices = @transform_22, window_bounds = array<i64: 32, 64>}, {pipeline_mode = #tpu.pipeline_mode<synchronous>, transform_indices = @transform_23, window_bounds = array<i64: 1, 384>}, {pipeline_mode = #tpu.pipeline_mode<synchronous>, transform_indices = @transform_24, window_bounds = array<i64: 384, 768>}, {pipeline_mode = #tpu.pipeline_mode<synchronous>, transform_indices = @transform_25, window_bounds = array<i64: 64, 128>}, {pipeline_mode = #tpu.pipeline_mode<synchronous>, transform_indices = @transform_26, window_bounds = array<i64: 1, 192>}, {transform_indices = @transform_27, window_bounds = array<i64: 1, 64, 192>}, {transform_indices = @transform_28, window_bounds = array<i64: 1, 1, 32>}, {transform_indices = @transform_29, window_bounds = array<i64: 1, 1, 32>}]} {
    %c0 = arith.constant 0 : index
    %c0_0 = arith.constant 0 : index
    %c0_1 = arith.constant 0 : index
    %0 = vector.load %arg1[%c0, %c0_0, %c0_1] : memref<1x64x144xf32, #tpu.memory_space<vmem>>, vector<1x64x144xf32>
    %1 = vector.shape_cast %0 : vector<1x64x144xf32> to vector<64x144xf32>
    %2 = arith.truncf %1 : vector<64x144xf32> to vector<64x144xbf16>
    %c0_2 = arith.constant 0 : index
    %c0_3 = arith.constant 0 : index
    %3 = vector.load %arg3[%c0_2, %c0_3] : memref<144x1536xbf16, #tpu.memory_space<vmem>>, vector<144x1536xbf16>
    %cst = arith.constant dense<0.000000e+00> : vector<64x1536xf32>
    %4 = tpu.matmul %2, %3, %cst {dimension_numbers = #tpu.dot_dimension_numbers<[1], [0], [0], [1], [0, 0, 1, 1], [], []>} : vector<64x144xbf16>, vector<144x1536xbf16>, vector<64x1536xf32> -> vector<64x1536xf32>
    %5 = vector.extract_strided_slice %4 {offsets = [0, 0], sizes = [64, 384], strides = [1, 1]} : vector<64x1536xf32> to vector<64x384xf32>
    %6 = vector.extract_strided_slice %4 {offsets = [0, 384], sizes = [64, 384], strides = [1, 1]} : vector<64x1536xf32> to vector<64x384xf32>
    %7 = vector.extract_strided_slice %4 {offsets = [0, 768], sizes = [64, 384], strides = [1, 1]} : vector<64x1536xf32> to vector<64x384xf32>
    %8 = vector.extract_strided_slice %4 {offsets = [0, 1152], sizes = [64, 384], strides = [1, 1]} : vector<64x1536xf32> to vector<64x384xf32>
    %9 = tpu.concatenate %5, %6, %7, %8 in 0 : vector<64x384xf32>, vector<64x384xf32>, vector<64x384xf32>, vector<64x384xf32> -> vector<256x384xf32>
    %c0_4 = arith.constant 0 : index
    %c0_5 = arith.constant 0 : index
    %10 = vector.load %arg4[%c0_4, %c0_5] : memref<32x256xbf16, #tpu.memory_space<vmem>>, vector<32x256xbf16>
    %11 = arith.truncf %9 : vector<256x384xf32> to vector<256x384xbf16>
    %cst_6 = arith.constant dense<0.000000e+00> : vector<32x384xf32>
    %12 = tpu.matmul %10, %11, %cst_6 {dimension_numbers = #tpu.dot_dimension_numbers<[1], [0], [0], [1], [0, 0, 1, 1], [], []>} : vector<32x256xbf16>, vector<256x384xbf16>, vector<32x384xf32> -> vector<32x384xf32>
    %c0_7 = arith.constant 0 : index
    %c0_8 = arith.constant 0 : index
    %13 = vector.load %arg5[%c0_7, %c0_8] : memref<1x384xf32, #tpu.memory_space<vmem>>, vector<1x384xf32>
    %14 = vector.broadcast %13 : vector<1x384xf32> to vector<32x384xf32>
    %15 = arith.addf %12, %14 : vector<32x384xf32>
    %cst_9 = arith.constant 0.000000e+00 : f32
    %16 = vector.broadcast %cst_9 : f32 to vector<32x384xf32>
    %17 = arith.cmpf oge, %15, %16 : vector<32x384xf32>
    %cst_10 = arith.constant 0.00999999977 : f32
    %18 = vector.broadcast %cst_10 : f32 to vector<32x384xf32>
    %19 = arith.mulf %18, %15 : vector<32x384xf32>
    %20 = arith.select %17, %15, %19 : vector<32x384xi1>, vector<32x384xf32>
    %21 = arith.truncf %20 : vector<32x384xf32> to vector<32x384xbf16>
    %c0_11 = arith.constant 0 : index
    %c0_12 = arith.constant 0 : index
    %22 = vector.load %arg6[%c0_11, %c0_12] : memref<384x768xbf16, #tpu.memory_space<vmem>>, vector<384x768xbf16>
    %cst_13 = arith.constant dense<0.000000e+00> : vector<32x768xf32>
    %23 = tpu.matmul %21, %22, %cst_13 {dimension_numbers = #tpu.dot_dimension_numbers<[1], [0], [0], [1], [0, 0, 1, 1], [], []>} : vector<32x384xbf16>, vector<384x768xbf16>, vector<32x768xf32> -> vector<32x768xf32>
    %24 = vector.extract_strided_slice %23 {offsets = [0, 0], sizes = [32, 192], strides = [1, 1]} : vector<32x768xf32> to vector<32x192xf32>
    %25 = vector.extract_strided_slice %23 {offsets = [0, 192], sizes = [32, 192], strides = [1, 1]} : vector<32x768xf32> to vector<32x192xf32>
    %26 = vector.extract_strided_slice %23 {offsets = [0, 384], sizes = [32, 192], strides = [1, 1]} : vector<32x768xf32> to vector<32x192xf32>
    %27 = vector.extract_strided_slice %23 {offsets = [0, 576], sizes = [32, 192], strides = [1, 1]} : vector<32x768xf32> to vector<32x192xf32>
    %28 = tpu.concatenate %24, %25, %26, %27 in 0 : vector<32x192xf32>, vector<32x192xf32>, vector<32x192xf32>, vector<32x192xf32> -> vector<128x192xf32>
    %c0_14 = arith.constant 0 : index
    %c0_15 = arith.constant 0 : index
    %29 = vector.load %arg7[%c0_14, %c0_15] : memref<16x128xbf16, #tpu.memory_space<vmem>>, vector<16x128xbf16>
    %30 = arith.truncf %28 : vector<128x192xf32> to vector<128x192xbf16>
    %cst_16 = arith.constant dense<0.000000e+00> : vector<16x192xf32>
    %31 = tpu.matmul %29, %30, %cst_16 {dimension_numbers = #tpu.dot_dimension_numbers<[1], [0], [0], [1], [0, 0, 1, 1], [], []>} : vector<16x128xbf16>, vector<128x192xbf16>, vector<16x192xf32> -> vector<16x192xf32>
    %c0_17 = arith.constant 0 : index
    %c0_18 = arith.constant 0 : index
    %32 = vector.load %arg8[%c0_17, %c0_18] : memref<1x192xf32, #tpu.memory_space<vmem>>, vector<1x192xf32>
    %33 = vector.broadcast %32 : vector<1x192xf32> to vector<16x192xf32>
    %34 = arith.addf %31, %33 : vector<16x192xf32>
    %cst_19 = arith.constant 0.000000e+00 : f32
    %35 = vector.broadcast %cst_19 : f32 to vector<16x192xf32>
    %36 = arith.cmpf oge, %34, %35 : vector<16x192xf32>
    %cst_20 = arith.constant 0.00999999977 : f32
    %37 = vector.broadcast %cst_20 : f32 to vector<16x192xf32>
    %38 = arith.mulf %37, %34 : vector<16x192xf32>
    %39 = arith.select %36, %34, %38 : vector<16x192xi1>, vector<16x192xf32>
    %40 = arith.truncf %39 : vector<16x192xf32> to vector<16x192xbf16>
    %c0_21 = arith.constant 0 : index
    %c0_22 = arith.constant 0 : index
    %41 = vector.load %arg9[%c0_21, %c0_22] : memref<192x384xbf16, #tpu.memory_space<vmem>>, vector<192x384xbf16>
    %cst_23 = arith.constant dense<0.000000e+00> : vector<16x384xf32>
    %42 = tpu.matmul %40, %41, %cst_23 {dimension_numbers = #tpu.dot_dimension_numbers<[1], [0], [0], [1], [0, 0, 1, 1], [], []>} : vector<16x192xbf16>, vector<192x384xbf16>, vector<16x384xf32> -> vector<16x384xf32>
    %43 = vector.extract_strided_slice %42 {offsets = [0, 0], sizes = [16, 96], strides = [1, 1]} : vector<16x384xf32> to vector<16x96xf32>
    %44 = vector.extract_strided_slice %42 {offsets = [0, 96], sizes = [16, 96], strides = [1, 1]} : vector<16x384xf32> to vector<16x96xf32>
    %45 = vector.extract_strided_slice %42 {offsets = [0, 192], sizes = [16, 96], strides = [1, 1]} : vector<16x384xf32> to vector<16x96xf32>
    %46 = vector.extract_strided_slice %42 {offsets = [0, 288], sizes = [16, 96], strides = [1, 1]} : vector<16x384xf32> to vector<16x96xf32>
    %47 = tpu.concatenate %43, %44, %45, %46 in 0 : vector<16x96xf32>, vector<16x96xf32>, vector<16x96xf32>, vector<16x96xf32> -> vector<64x96xf32>
    %c0_24 = arith.constant 0 : index
    %c0_25 = arith.constant 0 : index
    %48 = vector.load %arg10[%c0_24, %c0_25] : memref<8x64xbf16, #tpu.memory_space<vmem>>, vector<8x64xbf16>
    %49 = arith.truncf %47 : vector<64x96xf32> to vector<64x96xbf16>
    %cst_26 = arith.constant dense<0.000000e+00> : vector<8x96xf32>
    %50 = tpu.matmul %48, %49, %cst_26 {dimension_numbers = #tpu.dot_dimension_numbers<[1], [0], [0], [1], [0, 0, 1, 1], [], []>} : vector<8x64xbf16>, vector<64x96xbf16>, vector<8x96xf32> -> vector<8x96xf32>
    %c0_27 = arith.constant 0 : index
    %c0_28 = arith.constant 0 : index
    %51 = vector.load %arg11[%c0_27, %c0_28] : memref<1x96xf32, #tpu.memory_space<vmem>>, vector<1x96xf32>
    %52 = vector.broadcast %51 : vector<1x96xf32> to vector<8x96xf32>
    %53 = arith.addf %50, %52 : vector<8x96xf32>
    %cst_29 = arith.constant 0.000000e+00 : f32
    %54 = vector.broadcast %cst_29 : f32 to vector<8x96xf32>
    %55 = arith.cmpf oge, %53, %54 : vector<8x96xf32>
    %cst_30 = arith.constant 0.00999999977 : f32
    %56 = vector.broadcast %cst_30 : f32 to vector<8x96xf32>
    %57 = arith.mulf %56, %53 : vector<8x96xf32>
    %58 = arith.select %55, %53, %57 : vector<8x96xi1>, vector<8x96xf32>
    %cst_31 = arith.constant 0.000000e+00 : f32
    %59 = vector.broadcast %cst_31 : f32 to vector<1x64xf32>
    %60 = vector.extract_strided_slice %58 {offsets = [0, 0], sizes = [1, 96], strides = [1, 1]} : vector<8x96xf32> to vector<1x96xf32>
    %61 = arith.truncf %60 : vector<1x96xf32> to vector<1x96xbf16>
    %c0_32 = arith.constant 0 : index
    %c0_33 = arith.constant 0 : index
    %c0_34 = arith.constant 0 : index
    %62 = vector.load %arg12[%c0_32, %c0_33, %c0_34] : memref<8x96x64xbf16, #tpu.memory_space<vmem>>, vector<1x96x64xbf16>
    %63 = vector.shape_cast %62 : vector<1x96x64xbf16> to vector<96x64xbf16>
    %cst_35 = arith.constant dense<0.000000e+00> : vector<1x64xf32>
    %64 = tpu.matmul %61, %63, %cst_35 {dimension_numbers = #tpu.dot_dimension_numbers<[1], [0], [0], [1], [0, 0, 1, 1], [], []>} : vector<1x96xbf16>, vector<96x64xbf16>, vector<1x64xf32> -> vector<1x64xf32>
    %65 = arith.addf %59, %64 : vector<1x64xf32>
    %66 = vector.extract_strided_slice %58 {offsets = [1, 0], sizes = [1, 96], strides = [1, 1]} : vector<8x96xf32> to vector<1x96xf32>
    %67 = arith.truncf %66 : vector<1x96xf32> to vector<1x96xbf16>
    %c1 = arith.constant 1 : index
    %c0_36 = arith.constant 0 : index
    %c0_37 = arith.constant 0 : index
    %68 = vector.load %arg12[%c1, %c0_36, %c0_37] : memref<8x96x64xbf16, #tpu.memory_space<vmem>>, vector<1x96x64xbf16>
    %69 = vector.shape_cast %68 : vector<1x96x64xbf16> to vector<96x64xbf16>
    %cst_38 = arith.constant dense<0.000000e+00> : vector<1x64xf32>
    %70 = tpu.matmul %67, %69, %cst_38 {dimension_numbers = #tpu.dot_dimension_numbers<[1], [0], [0], [1], [0, 0, 1, 1], [], []>} : vector<1x96xbf16>, vector<96x64xbf16>, vector<1x64xf32> -> vector<1x64xf32>
    %71 = arith.addf %65, %70 : vector<1x64xf32>
    %72 = vector.extract_strided_slice %58 {offsets = [2, 0], sizes = [1, 96], strides = [1, 1]} : vector<8x96xf32> to vector<1x96xf32>
    %73 = arith.truncf %72 : vector<1x96xf32> to vector<1x96xbf16>
    %c2 = arith.constant 2 : index
    %c0_39 = arith.constant 0 : index
    %c0_40 = arith.constant 0 : index
    %74 = vector.load %arg12[%c2, %c0_39, %c0_40] : memref<8x96x64xbf16, #tpu.memory_space<vmem>>, vector<1x96x64xbf16>
    %75 = vector.shape_cast %74 : vector<1x96x64xbf16> to vector<96x64xbf16>
    %cst_41 = arith.constant dense<0.000000e+00> : vector<1x64xf32>
    %76 = tpu.matmul %73, %75, %cst_41 {dimension_numbers = #tpu.dot_dimension_numbers<[1], [0], [0], [1], [0, 0, 1, 1], [], []>} : vector<1x96xbf16>, vector<96x64xbf16>, vector<1x64xf32> -> vector<1x64xf32>
    %77 = arith.addf %71, %76 : vector<1x64xf32>
    %78 = vector.extract_strided_slice %58 {offsets = [3, 0], sizes = [1, 96], strides = [1, 1]} : vector<8x96xf32> to vector<1x96xf32>
    %79 = arith.truncf %78 : vector<1x96xf32> to vector<1x96xbf16>
    %c3 = arith.constant 3 : index
    %c0_42 = arith.constant 0 : index
    %c0_43 = arith.constant 0 : index
    %80 = vector.load %arg12[%c3, %c0_42, %c0_43] : memref<8x96x64xbf16, #tpu.memory_space<vmem>>, vector<1x96x64xbf16>
    %81 = vector.shape_cast %80 : vector<1x96x64xbf16> to vector<96x64xbf16>
    %cst_44 = arith.constant dense<0.000000e+00> : vector<1x64xf32>
    %82 = tpu.matmul %79, %81, %cst_44 {dimension_numbers = #tpu.dot_dimension_numbers<[1], [0], [0], [1], [0, 0, 1, 1], [], []>} : vector<1x96xbf16>, vector<96x64xbf16>, vector<1x64xf32> -> vector<1x64xf32>
    %83 = arith.addf %77, %82 : vector<1x64xf32>
    %84 = vector.extract_strided_slice %58 {offsets = [4, 0], sizes = [1, 96], strides = [1, 1]} : vector<8x96xf32> to vector<1x96xf32>
    %85 = arith.truncf %84 : vector<1x96xf32> to vector<1x96xbf16>
    %c4 = arith.constant 4 : index
    %c0_45 = arith.constant 0 : index
    %c0_46 = arith.constant 0 : index
    %86 = vector.load %arg12[%c4, %c0_45, %c0_46] : memref<8x96x64xbf16, #tpu.memory_space<vmem>>, vector<1x96x64xbf16>
    %87 = vector.shape_cast %86 : vector<1x96x64xbf16> to vector<96x64xbf16>
    %cst_47 = arith.constant dense<0.000000e+00> : vector<1x64xf32>
    %88 = tpu.matmul %85, %87, %cst_47 {dimension_numbers = #tpu.dot_dimension_numbers<[1], [0], [0], [1], [0, 0, 1, 1], [], []>} : vector<1x96xbf16>, vector<96x64xbf16>, vector<1x64xf32> -> vector<1x64xf32>
    %89 = arith.addf %83, %88 : vector<1x64xf32>
    %90 = vector.extract_strided_slice %58 {offsets = [5, 0], sizes = [1, 96], strides = [1, 1]} : vector<8x96xf32> to vector<1x96xf32>
    %91 = arith.truncf %90 : vector<1x96xf32> to vector<1x96xbf16>
    %c5 = arith.constant 5 : index
    %c0_48 = arith.constant 0 : index
    %c0_49 = arith.constant 0 : index
    %92 = vector.load %arg12[%c5, %c0_48, %c0_49] : memref<8x96x64xbf16, #tpu.memory_space<vmem>>, vector<1x96x64xbf16>
    %93 = vector.shape_cast %92 : vector<1x96x64xbf16> to vector<96x64xbf16>
    %cst_50 = arith.constant dense<0.000000e+00> : vector<1x64xf32>
    %94 = tpu.matmul %91, %93, %cst_50 {dimension_numbers = #tpu.dot_dimension_numbers<[1], [0], [0], [1], [0, 0, 1, 1], [], []>} : vector<1x96xbf16>, vector<96x64xbf16>, vector<1x64xf32> -> vector<1x64xf32>
    %95 = arith.addf %89, %94 : vector<1x64xf32>
    %96 = vector.extract_strided_slice %58 {offsets = [6, 0], sizes = [1, 96], strides = [1, 1]} : vector<8x96xf32> to vector<1x96xf32>
    %97 = arith.truncf %96 : vector<1x96xf32> to vector<1x96xbf16>
    %c6 = arith.constant 6 : index
    %c0_51 = arith.constant 0 : index
    %c0_52 = arith.constant 0 : index
    %98 = vector.load %arg12[%c6, %c0_51, %c0_52] : memref<8x96x64xbf16, #tpu.memory_space<vmem>>, vector<1x96x64xbf16>
    %99 = vector.shape_cast %98 : vector<1x96x64xbf16> to vector<96x64xbf16>
    %cst_53 = arith.constant dense<0.000000e+00> : vector<1x64xf32>
    %100 = tpu.matmul %97, %99, %cst_53 {dimension_numbers = #tpu.dot_dimension_numbers<[1], [0], [0], [1], [0, 0, 1, 1], [], []>} : vector<1x96xbf16>, vector<96x64xbf16>, vector<1x64xf32> -> vector<1x64xf32>
    %101 = arith.addf %95, %100 : vector<1x64xf32>
    %102 = vector.extract_strided_slice %58 {offsets = [7, 0], sizes = [1, 96], strides = [1, 1]} : vector<8x96xf32> to vector<1x96xf32>
    %103 = arith.truncf %102 : vector<1x96xf32> to vector<1x96xbf16>
    %c7 = arith.constant 7 : index
    %c0_54 = arith.constant 0 : index
    %c0_55 = arith.constant 0 : index
    %104 = vector.load %arg12[%c7, %c0_54, %c0_55] : memref<8x96x64xbf16, #tpu.memory_space<vmem>>, vector<1x96x64xbf16>
    %105 = vector.shape_cast %104 : vector<1x96x64xbf16> to vector<96x64xbf16>
    %cst_56 = arith.constant dense<0.000000e+00> : vector<1x64xf32>
    %106 = tpu.matmul %103, %105, %cst_56 {dimension_numbers = #tpu.dot_dimension_numbers<[1], [0], [0], [1], [0, 0, 1, 1], [], []>} : vector<1x96xbf16>, vector<96x64xbf16>, vector<1x64xf32> -> vector<1x64xf32>
    %107 = arith.addf %101, %106 : vector<1x64xf32>
    %c0_57 = arith.constant 0 : index
    %c0_58 = arith.constant 0 : index
    %108 = vector.load %arg13[%c0_57, %c0_58] : memref<1x64xf32, #tpu.memory_space<vmem>>, vector<1x64xf32>
    %109 = arith.addf %107, %108 : vector<1x64xf32>
    %110 = vector.extract_strided_slice %109 {offsets = [0, 0], sizes = [1, 32], strides = [1, 1]} : vector<1x64xf32> to vector<1x32xf32>
    %111 = math.tanh %110 : vector<1x32xf32>
    %112 = vector.extract_strided_slice %109 {offsets = [0, 32], sizes = [1, 32], strides = [1, 1]} : vector<1x64xf32> to vector<1x32xf32>
    %cst_59 = arith.constant 2.000000e+01 : f32
    %113 = vector.broadcast %cst_59 : f32 to vector<1x32xf32>
    %114 = arith.cmpf ogt, %112, %113 : vector<1x32xf32>
    %cst_60 = arith.constant 2.000000e+01 : f32
    %115 = vector.broadcast %cst_60 : f32 to vector<1x32xf32>
    %116 = arith.minimumf %112, %115 : vector<1x32xf32>
    %117 = math.exp %116 : vector<1x32xf32>
    %118 = math.log1p %117 : vector<1x32xf32>
    %119 = arith.select %114, %112, %118 : vector<1x32xi1>, vector<1x32xf32>
    %cst_61 = arith.constant 5.000000e-01 : f32
    %120 = vector.broadcast %cst_61 : f32 to vector<1x32xf32>
    %121 = arith.mulf %120, %119 : vector<1x32xf32>
    %122 = math.exp %121 : vector<1x32xf32>
    %c0_62 = arith.constant 0 : index
    %c0_63 = arith.constant 0 : index
    %c0_64 = arith.constant 0 : index
    %123 = vector.load %arg2[%c0_62, %c0_63, %c0_64] : memref<1x1x32xf32, #tpu.memory_space<vmem>>, vector<1x1x32xf32>
    %124 = vector.shape_cast %123 : vector<1x1x32xf32> to vector<1x32xf32>
    %125 = arith.mulf %122, %124 : vector<1x32xf32>
    %126 = arith.addf %111, %125 : vector<1x32xf32>
    %c0_65 = arith.constant 0 : index
    %c0_66 = arith.constant 0 : index
    %c0_67 = arith.constant 0 : index
    %127 = vector.load %arg29[%c0_65, %c0_66, %c0_67] : memref<1x1x32xf32, #tpu.memory_space<vmem>>, vector<1x1x32xf32>
    %128 = vector.shape_cast %127 : vector<1x1x32xf32> to vector<1x32xf32>
    %129 = vector.shape_cast %111 : vector<1x32xf32> to vector<1x1x32xf32>
    tpu.vector_store %arg29[%c0_65, %c0_66, %c0_67], %129 {strides = array<i32>} : memref<1x1x32xf32, #tpu.memory_space<vmem>>, vector<1x1x32xf32>,
    %c0_68 = arith.constant 0 : index
    %c0_69 = arith.constant 0 : index
    %c0_70 = arith.constant 0 : index
    %130 = vector.load %arg30[%c0_68, %c0_69, %c0_70] : memref<1x1x32xf32, #tpu.memory_space<vmem>>, vector<1x1x32xf32>
    %131 = vector.shape_cast %130 : vector<1x1x32xf32> to vector<1x32xf32>
    %132 = vector.shape_cast %119 : vector<1x32xf32> to vector<1x1x32xf32>
    tpu.vector_store %arg30[%c0_68, %c0_69, %c0_70], %132 {strides = array<i32>} : memref<1x1x32xf32, #tpu.memory_space<vmem>>, vector<1x1x32xf32>,
    %133 = arith.truncf %126 : vector<1x32xf32> to vector<1x32xbf16>
    %c0_71 = arith.constant 0 : index
    %c0_72 = arith.constant 0 : index
    %134 = vector.load %arg14[%c0_71, %c0_72] : memref<32x768xbf16, #tpu.memory_space<vmem>>, vector<32x768xbf16>
    %cst_73 = arith.constant dense<0.000000e+00> : vector<1x768xf32>
    %135 = tpu.matmul %133, %134, %cst_73 {dimension_numbers = #tpu.dot_dimension_numbers<[1], [0], [0], [1], [0, 0, 1, 1], [], []>} : vector<1x32xbf16>, vector<32x768xbf16>, vector<1x768xf32> -> vector<1x768xf32>
    %c0_74 = arith.constant 0 : index
    %c0_75 = arith.constant 0 : index
    %136 = vector.load %arg15[%c0_74, %c0_75] : memref<1x768xf32, #tpu.memory_space<vmem>>, vector<1x768xf32>
    %137 = arith.addf %135, %136 : vector<1x768xf32>
    %138 = arith.truncf %137 : vector<1x768xf32> to vector<1x768xbf16>
    %c0_76 = arith.constant 0 : index
    %c0_77 = arith.constant 0 : index
    %139 = vector.load %arg16[%c0_76, %c0_77] : memref<768x768xbf16, #tpu.memory_space<vmem>>, vector<768x768xbf16>
    %cst_78 = arith.constant dense<0.000000e+00> : vector<1x768xf32>
    %140 = tpu.matmul %138, %139, %cst_78 {dimension_numbers = #tpu.dot_dimension_numbers<[1], [0], [0], [1], [0, 0, 1, 1], [], []>} : vector<1x768xbf16>, vector<768x768xbf16>, vector<1x768xf32> -> vector<1x768xf32>
    %141 = vector.extract_strided_slice %140 {offsets = [0, 0], sizes = [1, 96], strides = [1, 1]} : vector<1x768xf32> to vector<1x96xf32>
    %142 = vector.extract_strided_slice %140 {offsets = [0, 96], sizes = [1, 96], strides = [1, 1]} : vector<1x768xf32> to vector<1x96xf32>
    %143 = vector.extract_strided_slice %140 {offsets = [0, 192], sizes = [1, 96], strides = [1, 1]} : vector<1x768xf32> to vector<1x96xf32>
    %144 = vector.extract_strided_slice %140 {offsets = [0, 288], sizes = [1, 96], strides = [1, 1]} : vector<1x768xf32> to vector<1x96xf32>
    %145 = vector.extract_strided_slice %140 {offsets = [0, 384], sizes = [1, 96], strides = [1, 1]} : vector<1x768xf32> to vector<1x96xf32>
    %146 = vector.extract_strided_slice %140 {offsets = [0, 480], sizes = [1, 96], strides = [1, 1]} : vector<1x768xf32> to vector<1x96xf32>
    %147 = vector.extract_strided_slice %140 {offsets = [0, 576], sizes = [1, 96], strides = [1, 1]} : vector<1x768xf32> to vector<1x96xf32>
    %148 = vector.extract_strided_slice %140 {offsets = [0, 672], sizes = [1, 96], strides = [1, 1]} : vector<1x768xf32> to vector<1x96xf32>
    %149 = tpu.concatenate %141, %142, %143, %144, %145, %146, %147, %148 in 0 : vector<1x96xf32>, vector<1x96xf32>, vector<1x96xf32>, vector<1x96xf32>, vector<1x96xf32>, vector<1x96xf32>, vector<1x96xf32>, vector<1x96xf32> -> vector<8x96xf32>
    %c0_79 = arith.constant 0 : index
    %c0_80 = arith.constant 0 : index
    %150 = vector.load %arg17[%c0_79, %c0_80] : memref<8x8xbf16, #tpu.memory_space<vmem>>, vector<8x8xbf16>
    %151 = arith.truncf %149 : vector<8x96xf32> to vector<8x96xbf16>
    %cst_81 = arith.constant dense<0.000000e+00> : vector<8x96xf32>
    %152 = tpu.matmul %150, %151, %cst_81 {dimension_numbers = #tpu.dot_dimension_numbers<[1], [0], [0], [1], [0, 0, 1, 1], [], []>} : vector<8x8xbf16>, vector<8x96xbf16>, vector<8x96xf32> -> vector<8x96xf32>
    %c0_82 = arith.constant 0 : index
    %c0_83 = arith.constant 0 : index
    %153 = vector.load %arg18[%c0_82, %c0_83] : memref<1x96xf32, #tpu.memory_space<vmem>>, vector<1x96xf32>
    %154 = vector.broadcast %153 : vector<1x96xf32> to vector<8x96xf32>
    %155 = arith.addf %152, %154 : vector<8x96xf32>
    %cst_84 = arith.constant 0.000000e+00 : f32
    %156 = vector.broadcast %cst_84 : f32 to vector<8x96xf32>
    %157 = arith.cmpf oge, %155, %156 : vector<8x96xf32>
    %cst_85 = arith.constant 0.00999999977 : f32
    %158 = vector.broadcast %cst_85 : f32 to vector<8x96xf32>
    %159 = arith.mulf %158, %155 : vector<8x96xf32>
    %160 = arith.select %157, %155, %159 : vector<8x96xi1>, vector<8x96xf32>
    %161 = arith.truncf %160 : vector<8x96xf32> to vector<8x96xbf16>
    %c0_86 = arith.constant 0 : index
    %c0_87 = arith.constant 0 : index
    %162 = vector.load %arg19[%c0_86, %c0_87] : memref<96x768xbf16, #tpu.memory_space<vmem>>, vector<96x768xbf16>
    %cst_88 = arith.constant dense<0.000000e+00> : vector<8x768xf32>
    %163 = tpu.matmul %161, %162, %cst_88 {dimension_numbers = #tpu.dot_dimension_numbers<[1], [0], [0], [1], [0, 0, 1, 1], [], []>} : vector<8x96xbf16>, vector<96x768xbf16>, vector<8x768xf32> -> vector<8x768xf32>
    %164 = vector.extract_strided_slice %163 {offsets = [0, 0], sizes = [8, 192], strides = [1, 1]} : vector<8x768xf32> to vector<8x192xf32>
    %165 = vector.extract_strided_slice %163 {offsets = [0, 192], sizes = [8, 192], strides = [1, 1]} : vector<8x768xf32> to vector<8x192xf32>
    %166 = vector.extract_strided_slice %163 {offsets = [0, 384], sizes = [8, 192], strides = [1, 1]} : vector<8x768xf32> to vector<8x192xf32>
    %167 = vector.extract_strided_slice %163 {offsets = [0, 576], sizes = [8, 192], strides = [1, 1]} : vector<8x768xf32> to vector<8x192xf32>
    %168 = tpu.concatenate %164, %165, %166, %167 in 0 : vector<8x192xf32>, vector<8x192xf32>, vector<8x192xf32>, vector<8x192xf32> -> vector<32x192xf32>
    %c0_89 = arith.constant 0 : index
    %c0_90 = arith.constant 0 : index
    %169 = vector.load %arg20[%c0_89, %c0_90] : memref<16x32xbf16, #tpu.memory_space<vmem>>, vector<16x32xbf16>
    %170 = arith.truncf %168 : vector<32x192xf32> to vector<32x192xbf16>
    %cst_91 = arith.constant dense<0.000000e+00> : vector<16x192xf32>
    %171 = tpu.matmul %169, %170, %cst_91 {dimension_numbers = #tpu.dot_dimension_numbers<[1], [0], [0], [1], [0, 0, 1, 1], [], []>} : vector<16x32xbf16>, vector<32x192xbf16>, vector<16x192xf32> -> vector<16x192xf32>
    %c0_92 = arith.constant 0 : index
    %c0_93 = arith.constant 0 : index
    %172 = vector.load %arg21[%c0_92, %c0_93] : memref<1x192xf32, #tpu.memory_space<vmem>>, vector<1x192xf32>
    %173 = vector.broadcast %172 : vector<1x192xf32> to vector<16x192xf32>
    %174 = arith.addf %171, %173 : vector<16x192xf32>
    %cst_94 = arith.constant 0.000000e+00 : f32
    %175 = vector.broadcast %cst_94 : f32 to vector<16x192xf32>
    %176 = arith.cmpf oge, %174, %175 : vector<16x192xf32>
    %cst_95 = arith.constant 0.00999999977 : f32
    %177 = vector.broadcast %cst_95 : f32 to vector<16x192xf32>
    %178 = arith.mulf %177, %174 : vector<16x192xf32>
    %179 = arith.select %176, %174, %178 : vector<16x192xi1>, vector<16x192xf32>
    %180 = arith.truncf %179 : vector<16x192xf32> to vector<16x192xbf16>
    %c0_96 = arith.constant 0 : index
    %c0_97 = arith.constant 0 : index
    %181 = vector.load %arg22[%c0_96, %c0_97] : memref<192x1536xbf16, #tpu.memory_space<vmem>>, vector<192x1536xbf16>
    %cst_98 = arith.constant dense<0.000000e+00> : vector<16x1536xf32>
    %182 = tpu.matmul %180, %181, %cst_98 {dimension_numbers = #tpu.dot_dimension_numbers<[1], [0], [0], [1], [0, 0, 1, 1], [], []>} : vector<16x192xbf16>, vector<192x1536xbf16>, vector<16x1536xf32> -> vector<16x1536xf32>
    %183 = vector.extract_strided_slice %182 {offsets = [0, 0], sizes = [16, 384], strides = [1, 1]} : vector<16x1536xf32> to vector<16x384xf32>
    %184 = vector.extract_strided_slice %182 {offsets = [0, 384], sizes = [16, 384], strides = [1, 1]} : vector<16x1536xf32> to vector<16x384xf32>
    %185 = vector.extract_strided_slice %182 {offsets = [0, 768], sizes = [16, 384], strides = [1, 1]} : vector<16x1536xf32> to vector<16x384xf32>
    %186 = vector.extract_strided_slice %182 {offsets = [0, 1152], sizes = [16, 384], strides = [1, 1]} : vector<16x1536xf32> to vector<16x384xf32>
    %187 = tpu.concatenate %183, %184, %185, %186 in 0 : vector<16x384xf32>, vector<16x384xf32>, vector<16x384xf32>, vector<16x384xf32> -> vector<64x384xf32>
    %c0_99 = arith.constant 0 : index
    %c0_100 = arith.constant 0 : index
    %188 = vector.load %arg23[%c0_99, %c0_100] : memref<32x64xbf16, #tpu.memory_space<vmem>>, vector<32x64xbf16>
    %189 = arith.truncf %187 : vector<64x384xf32> to vector<64x384xbf16>
    %cst_101 = arith.constant dense<0.000000e+00> : vector<32x384xf32>
    %190 = tpu.matmul %188, %189, %cst_101 {dimension_numbers = #tpu.dot_dimension_numbers<[1], [0], [0], [1], [0, 0, 1, 1], [], []>} : vector<32x64xbf16>, vector<64x384xbf16>, vector<32x384xf32> -> vector<32x384xf32>
    %c0_102 = arith.constant 0 : index
    %c0_103 = arith.constant 0 : index
    %191 = vector.load %arg24[%c0_102, %c0_103] : memref<1x384xf32, #tpu.memory_space<vmem>>, vector<1x384xf32>
    %192 = vector.broadcast %191 : vector<1x384xf32> to vector<32x384xf32>
    %193 = arith.addf %190, %192 : vector<32x384xf32>
    %cst_104 = arith.constant 0.000000e+00 : f32
    %194 = vector.broadcast %cst_104 : f32 to vector<32x384xf32>
    %195 = arith.cmpf oge, %193, %194 : vector<32x384xf32>
    %cst_105 = arith.constant 0.00999999977 : f32
    %196 = vector.broadcast %cst_105 : f32 to vector<32x384xf32>
    %197 = arith.mulf %196, %193 : vector<32x384xf32>
    %198 = arith.select %195, %193, %197 : vector<32x384xi1>, vector<32x384xf32>
    %199 = arith.truncf %198 : vector<32x384xf32> to vector<32x384xbf16>
    %c0_106 = arith.constant 0 : index
    %c0_107 = arith.constant 0 : index
    %200 = vector.load %arg25[%c0_106, %c0_107] : memref<384x768xbf16, #tpu.memory_space<vmem>>, vector<384x768xbf16>
    %cst_108 = arith.constant dense<0.000000e+00> : vector<32x768xf32>
    %201 = tpu.matmul %199, %200, %cst_108 {dimension_numbers = #tpu.dot_dimension_numbers<[1], [0], [0], [1], [0, 0, 1, 1], [], []>} : vector<32x384xbf16>, vector<384x768xbf16>, vector<32x768xf32> -> vector<32x768xf32>
    %202 = vector.extract_strided_slice %201 {offsets = [0, 0], sizes = [32, 192], strides = [1, 1]} : vector<32x768xf32> to vector<32x192xf32>
    %203 = vector.extract_strided_slice %201 {offsets = [0, 192], sizes = [32, 192], strides = [1, 1]} : vector<32x768xf32> to vector<32x192xf32>
    %204 = vector.extract_strided_slice %201 {offsets = [0, 384], sizes = [32, 192], strides = [1, 1]} : vector<32x768xf32> to vector<32x192xf32>
    %205 = vector.extract_strided_slice %201 {offsets = [0, 576], sizes = [32, 192], strides = [1, 1]} : vector<32x768xf32> to vector<32x192xf32>
    %206 = tpu.concatenate %202, %203, %204, %205 in 0 : vector<32x192xf32>, vector<32x192xf32>, vector<32x192xf32>, vector<32x192xf32> -> vector<128x192xf32>
    %c0_109 = arith.constant 0 : index
    %c0_110 = arith.constant 0 : index
    %207 = vector.load %arg26[%c0_109, %c0_110] : memref<64x128xbf16, #tpu.memory_space<vmem>>, vector<64x128xbf16>
    %208 = arith.truncf %206 : vector<128x192xf32> to vector<128x192xbf16>
    %cst_111 = arith.constant dense<0.000000e+00> : vector<64x192xf32>
    %209 = tpu.matmul %207, %208, %cst_111 {dimension_numbers = #tpu.dot_dimension_numbers<[1], [0], [0], [1], [0, 0, 1, 1], [], []>} : vector<64x128xbf16>, vector<128x192xbf16>, vector<64x192xf32> -> vector<64x192xf32>
    %c0_112 = arith.constant 0 : index
    %c0_113 = arith.constant 0 : index
    %210 = vector.load %arg27[%c0_112, %c0_113] : memref<1x192xf32, #tpu.memory_space<vmem>>, vector<1x192xf32>
    %211 = vector.broadcast %210 : vector<1x192xf32> to vector<64x192xf32>
    %212 = arith.addf %209, %211 : vector<64x192xf32>
    %cst_114 = arith.constant 0.000000e+00 : f32
    %213 = vector.broadcast %cst_114 : f32 to vector<64x192xf32>
    %214 = arith.maximumf %212, %213 : vector<64x192xf32>
    %c0_115 = arith.constant 0 : index
    %c0_116 = arith.constant 0 : index
    %c0_117 = arith.constant 0 : index
    %215 = vector.load %arg28[%c0_115, %c0_116, %c0_117] : memref<1x64x192xf32, #tpu.memory_space<vmem>>, vector<1x64x192xf32>
    %216 = vector.shape_cast %215 : vector<1x64x192xf32> to vector<64x192xf32>
    %217 = vector.shape_cast %214 : vector<64x192xf32> to vector<1x64x192xf32>
    tpu.vector_store %arg28[%c0_115, %c0_116, %c0_117], %217 {strides = array<i32>} : memref<1x64x192xf32, #tpu.memory_space<vmem>>, vector<1x64x192xf32>,
    return
  }
  func.func @transform_0(%arg0: i32) -> (i32, i32, i32) {
    %c0_i32 = arith.constant 0 : i32
    %c0_i32_0 = arith.constant 0 : i32
    %c0_i32_1 = arith.constant 0 : i32
    return %arg0, %c0_i32, %c0_i32_0 : i32, i32, i32
  }
  func.func @transform_1(%arg0: i32) -> (i32, i32, i32) {
    %c0_i32 = arith.constant 0 : i32
    %c0_i32_0 = arith.constant 0 : i32
    %c0_i32_1 = arith.constant 0 : i32
    return %arg0, %c0_i32, %c0_i32_0 : i32, i32, i32
  }
  func.func @transform_2(%arg0: i32) -> (i32, i32) {
    %c0_i32 = arith.constant 0 : i32
    %c0_i32_0 = arith.constant 0 : i32
    %c0_i32_1 = arith.constant 0 : i32
    return %c0_i32, %c0_i32_0 : i32, i32
  }
  func.func @transform_3(%arg0: i32) -> (i32, i32) {
    %c0_i32 = arith.constant 0 : i32
    %c0_i32_0 = arith.constant 0 : i32
    %c0_i32_1 = arith.constant 0 : i32
    return %c0_i32, %c0_i32_0 : i32, i32
  }
  func.func @transform_4(%arg0: i32) -> (i32, i32) {
    %c0_i32 = arith.constant 0 : i32
    %c0_i32_0 = arith.constant 0 : i32
    %c0_i32_1 = arith.constant 0 : i32
    return %c0_i32, %c0_i32_0 : i32, i32
  }
  func.func @transform_5(%arg0: i32) -> (i32, i32) {
    %c0_i32 = arith.constant 0 : i32
    %c0_i32_0 = arith.constant 0 : i32
    %c0_i32_1 = arith.constant 0 : i32
    return %c0_i32, %c0_i32_0 : i32, i32
  }
  func.func @transform_6(%arg0: i32) -> (i32, i32) {
    %c0_i32 = arith.constant 0 : i32
    %c0_i32_0 = arith.constant 0 : i32
    %c0_i32_1 = arith.constant 0 : i32
    return %c0_i32, %c0_i32_0 : i32, i32
  }
  func.func @transform_7(%arg0: i32) -> (i32, i32) {
    %c0_i32 = arith.constant 0 : i32
    %c0_i32_0 = arith.constant 0 : i32
    %c0_i32_1 = arith.constant 0 : i32
    return %c0_i32, %c0_i32_0 : i32, i32
  }
  func.func @transform_8(%arg0: i32) -> (i32, i32) {
    %c0_i32 = arith.constant 0 : i32
    %c0_i32_0 = arith.constant 0 : i32
    %c0_i32_1 = arith.constant 0 : i32
    return %c0_i32, %c0_i32_0 : i32, i32
  }
  func.func @transform_9(%arg0: i32) -> (i32, i32) {
    %c0_i32 = arith.constant 0 : i32
    %c0_i32_0 = arith.constant 0 : i32
    %c0_i32_1 = arith.constant 0 : i32
    return %c0_i32, %c0_i32_0 : i32, i32
  }
  func.func @transform_10(%arg0: i32) -> (i32, i32) {
    %c0_i32 = arith.constant 0 : i32
    %c0_i32_0 = arith.constant 0 : i32
    %c0_i32_1 = arith.constant 0 : i32
    return %c0_i32, %c0_i32_0 : i32, i32
  }
  func.func @transform_11(%arg0: i32) -> (i32, i32, i32) {
    %c0_i32 = arith.constant 0 : i32
    %c0_i32_0 = arith.constant 0 : i32
    %c0_i32_1 = arith.constant 0 : i32
    %c0_i32_2 = arith.constant 0 : i32
    return %c0_i32, %c0_i32_0, %c0_i32_1 : i32, i32, i32
  }
  func.func @transform_12(%arg0: i32) -> (i32, i32) {
    %c0_i32 = arith.constant 0 : i32
    %c0_i32_0 = arith.constant 0 : i32
    %c0_i32_1 = arith.constant 0 : i32
    return %c0_i32, %c0_i32_0 : i32, i32
  }
  func.func @transform_13(%arg0: i32) -> (i32, i32) {
    %c0_i32 = arith.constant 0 : i32
    %c0_i32_0 = arith.constant 0 : i32
    %c0_i32_1 = arith.constant 0 : i32
    return %c0_i32, %c0_i32_0 : i32, i32
  }
  func.func @transform_14(%arg0: i32) -> (i32, i32) {
    %c0_i32 = arith.constant 0 : i32
    %c0_i32_0 = arith.constant 0 : i32
    %c0_i32_1 = arith.constant 0 : i32
    return %c0_i32, %c0_i32_0 : i32, i32
  }
  func.func @transform_15(%arg0: i32) -> (i32, i32) {
    %c0_i32 = arith.constant 0 : i32
    %c0_i32_0 = arith.constant 0 : i32
    %c0_i32_1 = arith.constant 0 : i32
    return %c0_i32, %c0_i32_0 : i32, i32
  }
  func.func @transform_16(%arg0: i32) -> (i32, i32) {
    %c0_i32 = arith.constant 0 : i32
    %c0_i32_0 = arith.constant 0 : i32
    %c0_i32_1 = arith.constant 0 : i32
    return %c0_i32, %c0_i32_0 : i32, i32
  }
  func.func @transform_17(%arg0: i32) -> (i32, i32) {
    %c0_i32 = arith.constant 0 : i32
    %c0_i32_0 = arith.constant 0 : i32
    %c0_i32_1 = arith.constant 0 : i32
    return %c0_i32, %c0_i32_0 : i32, i32
  }
  func.func @transform_18(%arg0: i32) -> (i32, i32) {
    %c0_i32 = arith.constant 0 : i32
    %c0_i32_0 = arith.constant 0 : i32
    %c0_i32_1 = arith.constant 0 : i32
    return %c0_i32, %c0_i32_0 : i32, i32
  }
  func.func @transform_19(%arg0: i32) -> (i32, i32) {
    %c0_i32 = arith.constant 0 : i32
    %c0_i32_0 = arith.constant 0 : i32
    %c0_i32_1 = arith.constant 0 : i32
    return %c0_i32, %c0_i32_0 : i32, i32
  }
  func.func @transform_20(%arg0: i32) -> (i32, i32) {
    %c0_i32 = arith.constant 0 : i32
    %c0_i32_0 = arith.constant 0 : i32
    %c0_i32_1 = arith.constant 0 : i32
    return %c0_i32, %c0_i32_0 : i32, i32
  }
  func.func @transform_21(%arg0: i32) -> (i32, i32) {
    %c0_i32 = arith.constant 0 : i32
    %c0_i32_0 = arith.constant 0 : i32
    %c0_i32_1 = arith.constant 0 : i32
    return %c0_i32, %c0_i32_0 : i32, i32
  }
  func.func @transform_22(%arg0: i32) -> (i32, i32) {
    %c0_i32 = arith.constant 0 : i32
    %c0_i32_0 = arith.constant 0 : i32
    %c0_i32_1 = arith.constant 0 : i32
    return %c0_i32, %c0_i32_0 : i32, i32
  }
  func.func @transform_23(%arg0: i32) -> (i32, i32) {
    %c0_i32 = arith.constant 0 : i32
    %c0_i32_0 = arith.constant 0 : i32
    %c0_i32_1 = arith.constant 0 : i32
    return %c0_i32, %c0_i32_0 : i32, i32
  }
  func.func @transform_24(%arg0: i32) -> (i32, i32) {
    %c0_i32 = arith.constant 0 : i32
    %c0_i32_0 = arith.constant 0 : i32
    %c0_i32_1 = arith.constant 0 : i32
    return %c0_i32, %c0_i32_0 : i32, i32
  }
  func.func @transform_25(%arg0: i32) -> (i32, i32) {
    %c0_i32 = arith.constant 0 : i32
    %c0_i32_0 = arith.constant 0 : i32
    %c0_i32_1 = arith.constant 0 : i32
    return %c0_i32, %c0_i32_0 : i32, i32
  }
  func.func @transform_26(%arg0: i32) -> (i32, i32) {
    %c0_i32 = arith.constant 0 : i32
    %c0_i32_0 = arith.constant 0 : i32
    %c0_i32_1 = arith.constant 0 : i32
    return %c0_i32, %c0_i32_0 : i32, i32
  }
  func.func @transform_27(%arg0: i32) -> (i32, i32, i32) {
    %c0_i32 = arith.constant 0 : i32
    %c0_i32_0 = arith.constant 0 : i32
    %c0_i32_1 = arith.constant 0 : i32
    return %arg0, %c0_i32, %c0_i32_0 : i32, i32, i32
  }
  func.func @transform_28(%arg0: i32) -> (i32, i32, i32) {
    %c0_i32 = arith.constant 0 : i32
    %c0_i32_0 = arith.constant 0 : i32
    %c0_i32_1 = arith.constant 0 : i32
    return %arg0, %c0_i32, %c0_i32_0 : i32, i32, i32
  }
  func.func @transform_29(%arg0: i32) -> (i32, i32, i32) {
    %c0_i32 = arith.constant 0 : i32
    %c0_i32_0 = arith.constant 0 : i32
    %c0_i32_1 = arith.constant 0 : i32
    return %arg0, %c0_i32, %c0_i32_0 : i32, i32, i32
  }
}

</mosaic_0001>

<bundles_post_ra>
// kernel: vae_conv_forward.1
= control target key start
LH: loop header
LB: loop body
LE: loop exit
PB: predicated region body
PF: predicated region fallthrough
CT: control target
= control target key end

     0   :  { %s15455_s6 = smov 1   ;;  %s15456_s10 = smov 2   ;;  %s17096_s0 = inlined_call_operand.smem [shape: u32[30], index: -1, kind: input, shape index: {}] }
   0x1   :  { %s15534_s5 = sld [smem:[%s17096_s0]]   ;;  %s15457_s14 = smov 3  }
   0x2   :  { %s15539_s9 = sld [smem:[%s17096_s0 + %s15455_s6]]   ;;  %s15458_s18 = smov 4  }
   0x3   :  { %s15544_s13 = sld [smem:[%s17096_s0 + %s15456_s10]]   ;;  %s15459_s22 = smov 5  }
   0x4   :  { %s15549_s17 = sld [smem:[%s17096_s0 + %s15457_s14]]   ;;  %s15460_s26 = smov 6  }
   0x5   :  { %s15554_s21 = sld [smem:[%s17096_s0 + %s15458_s18]]   ;;  %s15461_s30 = smov 7  }
   0x6   :  { %s15559_s25 = sld [smem:[%s17096_s0 + %s15459_s22]]   ;;  %s15462_s4 = smov 8  }
   0x7   :  { %17146 = sst [smem:[#allocation58_spill]] %s15534_s5  ;;  %s15463_s10 = smov 9  }
   0x8   :  { %17147 = sst [smem:[#allocation59_spill]] %s15539_s9  ;;  %s15464_s15 = smov 10  }
   0x9   :  { %17148 = sst [smem:[#allocation60_spill]] %s15544_s13  ;;  %s15465_s20 = smov 11  }
   0xa   :  { %17149 = sst [smem:[#allocation61_spill]] %s15549_s17  ;;  %s15467_s1 = smov 13  }
   0xb   :  { %s15564_s29 = sld [smem:[%s17096_s0 + %s15460_s26]]   ;;  %s15466_s26 = smov 12  }
   0xc   :  { %17150 = sst [smem:[#allocation62_spill]] %s15559_s25  ;;  %s15468_s7 = smov 14  }
   0xd   :  { %s15569_s3 = sld [smem:[%s17096_s0 + %s15461_s30]]   ;;  %s15470_s22 = smov 16  }
   0xe   :  { %s15574_s8 = sld [smem:[%s17096_s0 + %s15462_s4]]   ;;  %s15471_s28 = smov 17  }
   0xf   :  { %s15579_s14 = sld [smem:[%s17096_s0 + %s15463_s10]]  }
  0x10   :  { %s15584_s19 = sld [smem:[%s17096_s0 + %s15464_s15]]   ;;  %s15469_s15 = smov 15  }
  0x11   :  { %s15589_s24 = sld [smem:[%s17096_s0 + %s15465_s20]]  }
  0x12   :  { %s15594_s30 = sld [smem:[%s17096_s0 + %s15466_s26]]  }
  0x13   :  { %17151 = sst [smem:[#allocation63_spill]] %s15569_s3 }
  0x14   :  { %17152 = sst [smem:[#allocation64_spill]] %s15574_s8 }
  0x15   :  { %17153 = sst [smem:[#allocation65_spill]] %s15579_s14 }
  0x16   :  { %17154 = sst [smem:[#allocation66_spill]] %s15584_s19 }
  0x17   :  { %17155 = sst [smem:[#allocation67_spill]] %s15589_s24 }
  0x18   :  { %s15599_s6 = sld [smem:[%s17096_s0 + %s15467_s1]]  }
  0x19   :  { %s15604_s12 = sld [smem:[%s17096_s0 + %s15468_s7]]   ;;  %s15472_s7 = smov 18  }
  0x1a   :  { %s15609_s20 = sld [smem:[%s17096_s0 + %s15469_s15]]   ;;  %s15473_s15 = smov 19  }
  0x1b   :  { %s15614_s27 = sld [smem:[%s17096_s0 + %s15470_s22]]   ;;  %s15474_s22 = smov 20  }
  0x1c   :  { %s15619_s4 = sld [smem:[%s17096_s0 + %s15471_s28]]   ;;  %s15475_s28 = smov 21  }
  0x1d   :  { %s15624_s24 = sld [smem:[%s17096_s0 + %s15472_s7]]   ;;  %s15476_s7 = smov 22  }
  0x1e   :  { %17156 = sst [smem:[#allocation68_spill]] %s15599_s6 }
  0x1f   :  { %17157 = sst [smem:[#allocation69_spill]] %s15604_s12 }
  0x20   :  { %17158 = sst [smem:[#allocation70_spill]] %s15609_s20 }
  0x21   :  { %s15629_s25 = sld [smem:[%s17096_s0 + %s15473_s15]]   ;;  %s15477_s15 = smov 23  }
  0x22   :  { %17159 = sst [smem:[#allocation71_spill]] %s15619_s4 }
  0x23   :  { %s15634_s5 = sld [smem:[%s17096_s0 + %s15474_s22]]   ;;  %s15478_s22 = smov 24  }
  0x24   :  { %s15639_s9 = sld [smem:[%s17096_s0 + %s15475_s28]]   ;;  %s15479_s28 = smov 25  }
  0x25   :  { %s15644_s4 = sld [smem:[%s17096_s0 + %s15476_s7]]   ;;  %s15480_s7 = smov 26  }
  0x26   :  { %s15654_s20 = sld [smem:[%s17096_s0 + %s15478_s22]]   ;;  %s15482_s22 = smov 28  }
  0x27   :  { %17160 = sst [smem:[#allocation72_spill]] %s15629_s25 }
  0x28   :  { %s15649_s25 = sld [smem:[%s17096_s0 + %s15477_s15]]   ;;  %s15481_s15 = smov 27  }
  0x29   :  { %17161 = sst [smem:[#allocation73_spill]] %s15634_s5 }
  0x2a   :  { %17162 = sst [smem:[#allocation74_spill]] %s15639_s9 }
  0x2b   :  { %17163 = sst [smem:[#allocation75_spill]] %s15644_s4 }
  0x2c   :  { %17165 = sst [smem:[#allocation77_spill]] %s15654_s20 }
  0x2d   :  { %s15659_s9 = sld [smem:[%s17096_s0 + %s15479_s28]]   ;;  %s15483_s28 = smov 29  }
  0x2e   :  { %17164 = sst [smem:[#allocation76_spill]] %s15649_s25 }
  0x2f   :  { %s15664_s6 = sld [smem:[%s17096_s0 + %s15480_s7]]  }
  0x30   :  { %s15669_s25 = sld [smem:[%s17096_s0 + %s15481_s15]]  }
  0x31   :  { %s15674_s19 = sld [smem:[%s17096_s0 + %s15482_s22]]  }
  0x33   :  { %17166 = sst [smem:[#allocation78_spill]] %s15659_s9 }
  0x34   :  { %s15679_s9 = sld [smem:[%s17096_s0 + %s15483_s28]]  }
  0x35   :  { %17167 = sst [smem:[#allocation79_spill]] %s15664_s6 }
  0x36   :  { %17168 = sst [smem:[#allocation80_spill]] %s15669_s25 }
  0x37   :  { %17169 = sst [smem:[#allocation81_spill]] %s15674_s19 }
  0x3a   :  { %17170 = sst [smem:[#allocation82_spill]] %s15679_s9 }
  0x3b   :  { %65 = vsyncpa [#allocation3], 0 }
  0x3c   :  { %67 = vsyncpa [#allocation3 + $0x1], 0 }
  0x3d   :  { %68 = vsyncpa [#allocation6], 0 }
  0x3e   :  { %69 = vsyncpa [#allocation9], 0 }
  0x3f   :  { %70 = vsyncpa [#allocation12], 0 }
  0x40   :  { %71 = vsyncpa [#allocation15], 0 }
  0x41   :  { %72 = vsyncpa [#allocation18], 0 }
  0x42   :  { %73 = vsyncpa [#allocation21], 0 }
  0x43   :  { %74 = vsyncpa [#allocation24], 0 }
  0x44   :  { %75 = vsyncpa [#allocation27], 0 }
  0x45   :  { %76 = vsyncpa [#allocation30], 0 }
  0x46   :  { %77 = vsyncpa [#allocation33], 0 }
  0x47   :  { %78 = vsyncpa [#allocation36], 0 }
  0x48   :  { %79 = vsyncpa [#allocation39], 0 }
  0x49   :  { %80 = vsyncpa [#allocation4], 0 }
  0x4a   :  { %82 = vsyncpa [#allocation4 + $0x1], 0 }
  0x4b   :  { %83 = vsyncpa [#allocation42], 0 }
  0x4c   :  { %85 = vsyncpa [#allocation42 + $0x1], 0  ;;  %s15681_s0 = smov 0   ;;  %s15683_s7 = smov 0  }
  0x4d   :  { %s15685_s10 = smov 0   ;;  %s15687_s11 = smov 0  }
  0x4e LB: > { %s17171_s20 = sld [smem:[#allocation77_spill]]  ;;  %s17173_s6 = sld [smem:[#allocation79_spill]]  ;;  %s15445_s7 = sphi %s15683_s7, %s17241_s7   ;;  %s15441_s0 = sphi %s15681_s0, %s17240_s0   ;;  %s15453_s11 = sphi %s15687_s11, %s17243_s11   ;;  %s15449_s10 = sphi %s15685_s10, %s17242_s10  }
  0x4f   : > { %s17172_s17 = sld [smem:[#allocation61_spill]]  ;;  %s17174_s14 = sld [smem:[#allocation65_spill]] }
  0x50   : > { %s17175_s8 = sld [smem:[#allocation64_spill]]  ;;  %s17176_s13 = sld [smem:[#allocation60_spill]] }
  0x51   : > { %s17177_s12 = sld [smem:[#allocation69_spill]]  ;;  %s17178_s5 = sld [smem:[#allocation73_spill]] }
  0x52   : > { %s17179_s4 = sld [smem:[#allocation75_spill]]  ;;  %s17180_s3 = sld [smem:[#allocation63_spill]] }
  0x53   : > { %s15484_s15 = smov [#allocation5]   ;;  %s15702_s18 = sadd.s32 4294967295, %s15453_s11  }
  0x54   : > { %s763_s16 = sshll.u32 %s15484_s15, 4  ;;  %p11240_p0 = scmp.ge.s32.totalorder %s15453_s11, 1  ;;  %s15707_s16 = int_to_ptr.vmem [resolvable:$true] %s763_s16 }
  0x55   : > { %p17108_p1 = scmp.eq.s32.totalorder %s15702_s18, 0  ;;  %p751_p2 = scmp.lt.s32.totalorder %s15453_s11, 3 }
  0x56   : > { %s15485_s23 = smov [#allocation8]   ;;  %s15486_s1 = smov [#allocation11]  }
  0x57   : > { %p15709_p3 = pnand %p11240_p0, %p751_p2  ;;  %s790_s26 = sshll.u32 %s15485_s23, 4  ;;  %s15722_s26 = int_to_ptr.vmem [resolvable:$true] %s790_s26 }
  0x58   : > { %s817_s2 = sshll.u32 %s15486_s1, 4  ;;  %s14633_s15 = scalar_lea.hbm %s17176_s13, 13824  ;;  %s15724_s2 = int_to_ptr.vmem [resolvable:$true] %s817_s2 }
  0x59   : > { %s17181_s22 = scalar_select %p15709_p3, 1, 0 }
  0x5a   : > { %p12837_p5 = pneg %p15709_p3  ;;  %p14634_p7 = scmp.ne.s32.totalorder %s17176_s13, %s14633_s15 }
  0x5b   : > { %p14640_p11 = scmp.lt.u32.totalorder %s14633_s15, %s17176_s13 }
  0x5c   : > { %p15718_p6 = pnand %p12837_p5, %p17108_p1 }
  0x5e   : > { %p15730_p8 = pneg %p15718_p6 }
  0x60   : > { %p14636_p9 = pnand %p15730_p8, %p14634_p7 }
  0x62   : > { %p14637_p10 = pneg %p14636_p9 }
  0x64   : > { %p14642_p12 = pnand %p14640_p11, %p14637_p10 }
  0x66   : > { %14645 = shalt.err (!%p14642_p12)
}
  0x67   : > { %s14646_s23 = scalar_lea.vmem %s15707_s16, 13824  ;;  %p14654_p5 = scmp.lt.s32.totalorder %s15707_s16, %s15707_s16 }
  0x68   : > { %p14647_p13 = scmp.ne.s32.totalorder %s15707_s16, %s14646_s23  ;;  %p14655_p4 = scmp.lt.s32.totalorder %s14646_s23, %s14646_s23 }
  0x6a   : > { %p14649_p0 = pnand %p14647_p13, %p15730_p8  ;;  %p14656_p1 = por %p14655_p4, %p14654_p5 }
  0x6c   : > { %p14650_p2 = pneg %p14649_p0 }
  0x6e   : > { %p14657_p3 = pnand %p14656_p1, %p14650_p2 }
  0x70   : > { %14660 = shalt.err (!%p14657_p3)
}
  0x71   : > { %s17112_s1 = smov 768   ;;  %s17113_s15 = smov 48  }
  0x72   : > { %12840 = dma.hbm_to_vmem [thread:$0]  (!%p15718_p6), %s17176_s13, 13824, %s15707_s16, [#allocation6], %s17112_s1, %s17112_s1, %s17113_s15  }
  0x73   : > { %s14661_s9 = scalar_lea.hbm %s15554_s21, 48 }
  0x74   : > { %p14662_p7 = scmp.ne.s32.totalorder %s15554_s21, %s14661_s9  ;;  %p14668_p3 = scmp.lt.u32.totalorder %s14661_s9, %s15554_s21 }
  0x76   : > { %p14664_p4 = pnand %p14662_p7, %p15730_p8 }
  0x78   : > { %p14665_p1 = pneg %p14664_p4 }
  0x7a   : > { %p14670_p9 = pnand %p14668_p3, %p14665_p1 }
  0x7c   : > { %14673 = shalt.err (!%p14670_p9)
}
  0x7d   : > { %s14674_s23 = scalar_lea.vmem %s15722_s26, 48  ;;  %s14681_s19 = scalar_lea.vmem %s15722_s26, 64 }
  0x7e   : > { %p14675_p10 = scmp.ne.s32.totalorder %s15722_s26, %s14674_s23  ;;  %p14682_p13 = scmp.lt.s32.totalorder %s15722_s26, %s15722_s26 }
  0x7f   : > { %p14683_p0 = scmp.lt.s32.totalorder %s14681_s19, %s14674_s23 }
  0x80   : > { %p14677_p11 = pnand %p14675_p10, %p15730_p8 }
  0x81   : > { %p14684_p2 = por %p14683_p0, %p14682_p13 }
  0x82   : > { %p14678_p12 = pneg %p14677_p11 }
  0x84   : > { %p14685_p5 = pnand %p14684_p2, %p14678_p12 }
  0x86   : > { %14688 = shalt.err (!%p14685_p5)
}
  0x87   : > { %12846 = dma.hbm_to_vmem [thread:$0]  (!%p15718_p6), %s15554_s21, 48, %s15722_s26, [#allocation9]  }
  0x88   : > { %s14689_s9 = scalar_lea.hbm %s17180_s3, 32 }
  0x89   : > { %p14690_p7 = scmp.ne.s32.totalorder %s17180_s3, %s14689_s9  ;;  %p14696_p3 = scmp.lt.u32.totalorder %s14689_s9, %s17180_s3 }
  0x8b   : > { %p14692_p4 = pnand %p14690_p7, %p15730_p8 }
  0x8d   : > { %p14693_p1 = pneg %p14692_p4 }
  0x8f   : > { %p14698_p9 = pnand %p14696_p3, %p14693_p1 }
  0x91   : > { %14701 = shalt.err (!%p14698_p9)
}
  0x92   : > { %s14702_s19 = scalar_lea.vmem %s15724_s2, 32  ;;  %p14710_p13 = scmp.lt.s32.totalorder %s15724_s2, %s15724_s2 }
  0x93   : > { %p14703_p10 = scmp.ne.s32.totalorder %s15724_s2, %s14702_s19  ;;  %p14711_p0 = scmp.lt.s32.totalorder %s14702_s19, %s14702_s19 }
  0x95   : > { %p14705_p11 = pnand %p14703_p10, %p15730_p8  ;;  %p14712_p2 = por %p14711_p0, %p14710_p13 }
  0x97   : > { %p14706_p12 = pneg %p14705_p11 }
  0x99   : > { %p14713_p5 = pnand %p14712_p2, %p14706_p12 }
  0x9b   : > { %14716 = shalt.err (!%p14713_p5)
}
  0x9c   : > { %12852 = dma.hbm_to_vmem [thread:$0]  (!%p15718_p6), %s17180_s3, 32, %s15724_s2, [#allocation12]  }
  0x9d   : > { %s15489_s16 = smov [#allocation14]   ;;  %s15490_s23 = smov [#allocation17]  }
  0x9e   : > { %s841_s26 = sshll.u32 %s15489_s16, 4  ;;  %s866_s9 = sshll.u32 %s15490_s23, 4  ;;  %s842_s26 = int_to_ptr.vmem [resolvable:$true] %s841_s26  ;;  %s867_s9 = int_to_ptr.vmem [resolvable:$true] %s866_s9 }
  0x9f   : > { %s14717_s1 = scalar_lea.hbm %s17174_s14, 64 }
  0xa0   : > { %p14718_p7 = scmp.ne.s32.totalorder %s17174_s14, %s14717_s1  ;;  %p14724_p3 = scmp.lt.u32.totalorder %s14717_s1, %s17174_s14 }
  0xa2   : > { %p14720_p4 = pnand %p14718_p7, %p15730_p8 }
  0xa4   : > { %p14721_p1 = pneg %p14720_p4 }
  0xa6   : > { %p14726_p9 = pnand %p14724_p3, %p14721_p1 }
  0xa8   : > { %14729 = shalt.err (!%p14726_p9)
}
  0xa9   : > { %s14730_s19 = scalar_lea.vmem %s842_s26, 64  ;;  %p14738_p13 = scmp.lt.s32.totalorder %s842_s26, %s842_s26 }
  0xaa   : > { %p14731_p10 = scmp.ne.s32.totalorder %s842_s26, %s14730_s19  ;;  %p14739_p0 = scmp.lt.s32.totalorder %s14730_s19, %s14730_s19 }
  0xac   : > { %p14733_p11 = pnand %p14731_p10, %p15730_p8  ;;  %p14740_p2 = por %p14739_p0, %p14738_p13 }
  0xae   : > { %p14734_p12 = pneg %p14733_p11 }
  0xb0   : > { %p14741_p5 = pnand %p14740_p2, %p14734_p12 }
  0xb2   : > { %14744 = shalt.err (!%p14741_p5)
}
  0xb3   : > { %12858 = dma.hbm_to_vmem [thread:$0]  (!%p15718_p6), %s17174_s14, 64, %s842_s26, [#allocation15]  }
  0xb4   : > { %s14745_s2 = scalar_lea.hbm %s15594_s30, 16 }
  0xb5   : > { %p14746_p7 = scmp.ne.s32.totalorder %s15594_s30, %s14745_s2  ;;  %p14752_p3 = scmp.lt.u32.totalorder %s14745_s2, %s15594_s30 }
  0xb7   : > { %p14748_p4 = pnand %p14746_p7, %p15730_p8 }
  0xb9   : > { %p14749_p1 = pneg %p14748_p4 }
  0xbb   : > { %p14754_p9 = pnand %p14752_p3, %p14749_p1 }
  0xbd   : > { %14757 = shalt.err (!%p14754_p9)
}
  0xbe   : > { %s14758_s1 = scalar_lea.vmem %s867_s9, 16  ;;  %s14765_s16 = scalar_lea.vmem %s867_s9, 32 }
  0xbf   : > { %p14759_p10 = scmp.ne.s32.totalorder %s867_s9, %s14758_s1  ;;  %p14766_p13 = scmp.lt.s32.totalorder %s867_s9, %s867_s9 }
  0xc0   : > { %p14767_p0 = scmp.lt.s32.totalorder %s14765_s16, %s14758_s1 }
  0xc1   : > { %p14761_p11 = pnand %p14759_p10, %p15730_p8 }
  0xc2   : > { %p14768_p2 = por %p14767_p0, %p14766_p13 }
  0xc3   : > { %p14762_p12 = pneg %p14761_p11 }
  0xc5   : > { %p14769_p5 = pnand %p14768_p2, %p14762_p12 }
  0xc7   : > { %14772 = shalt.err (!%p14769_p5)
}
  0xc8   : > { %12864 = dma.hbm_to_vmem [thread:$0]  (!%p15718_p6), %s15594_s30, 16, %s867_s9, [#allocation18]  }
  0xc9   : > { %s15491_s26 = smov [#allocation20]   ;;  %s15492_s19 = smov [#allocation23]  }
  0xca   : > { %s890_s23 = sshll.u32 %s15491_s26, 4  ;;  %s914_s2 = sshll.u32 %s15492_s19, 4  ;;  %s891_s23 = int_to_ptr.vmem [resolvable:$true] %s890_s23  ;;  %s915_s2 = int_to_ptr.vmem [resolvable:$true] %s914_s2 }
  0xcb   : > { %s14773_s15 = scalar_lea.hbm %s17177_s12, 96 }
  0xcc   : > { %p14774_p7 = scmp.ne.s32.totalorder %s17177_s12, %s14773_s15  ;;  %p14780_p3 = scmp.lt.u32.totalorder %s14773_s15, %s17177_s12 }
  0xce   : > { %p14776_p4 = pnand %p14774_p7, %p15730_p8 }
  0xd0   : > { %p14777_p1 = pneg %p14776_p4 }
  0xd2   : > { %p14782_p9 = pnand %p14780_p3, %p14777_p1 }
  0xd4   : > { %14785 = shalt.err (!%p14782_p9)
}
  0xd5   : > { %s14786_s1 = scalar_lea.vmem %s891_s23, 96  ;;  %p14794_p13 = scmp.lt.s32.totalorder %s891_s23, %s891_s23 }
  0xd6   : > { %p14787_p10 = scmp.ne.s32.totalorder %s891_s23, %s14786_s1  ;;  %p14795_p0 = scmp.lt.s32.totalorder %s14786_s1, %s14786_s1 }
  0xd8   : > { %p14789_p11 = pnand %p14787_p10, %p15730_p8  ;;  %p14796_p2 = por %p14795_p0, %p14794_p13 }
  0xda   : > { %p14790_p12 = pneg %p14789_p11 }
  0xdc   : > { %p14797_p5 = pnand %p14796_p2, %p14790_p12 }
  0xde   : > { %14800 = shalt.err (!%p14797_p5)
}
  0xdf   : > { %12870 = dma.hbm_to_vmem [thread:$0]  (!%p15718_p6), %s17177_s12, 96, %s891_s23, [#allocation21]  }
  0xe0   : > { %s14801_s15 = scalar_lea.hbm %s15614_s27, 64 }
  0xe1   : > { %p14802_p7 = scmp.ne.s32.totalorder %s15614_s27, %s14801_s15  ;;  %p14808_p3 = scmp.lt.u32.totalorder %s14801_s15, %s15614_s27 }
  0xe3   : > { %p14804_p4 = pnand %p14802_p7, %p15730_p8 }
  0xe5   : > { %p14805_p1 = pneg %p14804_p4 }
  0xe7   : > { %p14810_p9 = pnand %p14808_p3, %p14805_p1 }
  0xe9   : > { %14813 = shalt.err (!%p14810_p9)
}
  0xea   : > { %s14814_s9 = scalar_lea.vmem %s915_s2, 64  ;;  %p14822_p13 = scmp.lt.s32.totalorder %s915_s2, %s915_s2 }
  0xeb   : > { %p14815_p10 = scmp.ne.s32.totalorder %s915_s2, %s14814_s9  ;;  %p14823_p0 = scmp.lt.s32.totalorder %s14814_s9, %s14814_s9 }
  0xed   : > { %p14817_p11 = pnand %p14815_p10, %p15730_p8  ;;  %p14824_p2 = por %p14823_p0, %p14822_p13 }
  0xef   : > { %p14818_p12 = pneg %p14817_p11 }
  0xf1   : > { %p14825_p5 = pnand %p14824_p2, %p14818_p12 }
  0xf3   : > { %14828 = shalt.err (!%p14825_p5)
}
  0xf4   : > { %12876 = dma.hbm_to_vmem [thread:$0]  (!%p15718_p6), %s15614_s27, 64, %s915_s2, [#allocation24]  }
  0xf5   : > { %s15493_s16 = smov [#allocation26]   ;;  %s15494_s23 = smov [#allocation29]  }
  0xf6   : > { %s935_s26 = sshll.u32 %s15493_s16, 4  ;;  %s962_s19 = sshll.u32 %s15494_s23, 4  ;;  %s936_s26 = int_to_ptr.vmem [resolvable:$true] %s935_s26  ;;  %s963_s19 = int_to_ptr.vmem [resolvable:$true] %s962_s19 }
  0xf7   : > { %s14829_s1 = scalar_lea.hbm %s15624_s24, 4608 }
  0xf8   : > { %p14830_p7 = scmp.ne.s32.totalorder %s15624_s24, %s14829_s1  ;;  %p14836_p3 = scmp.lt.u32.totalorder %s14829_s1, %s15624_s24 }
  0xfa   : > { %p14832_p4 = pnand %p14830_p7, %p15730_p8 }
  0xfc   : > { %p14833_p1 = pneg %p14832_p4 }
  0xfe   : > { %p14838_p9 = pnand %p14836_p3, %p14833_p1 }
 0x100   : > { %14841 = shalt.err (!%p14838_p9)
}
 0x101   : > { %s14842_s15 = scalar_lea.vmem %s936_s26, 4608  ;;  %p14850_p13 = scmp.lt.s32.totalorder %s936_s26, %s936_s26 }
 0x102   : > { %p14843_p10 = scmp.ne.s32.totalorder %s936_s26, %s14842_s15  ;;  %p14851_p0 = scmp.lt.s32.totalorder %s14842_s15, %s14842_s15 }
 0x104   : > { %p14845_p11 = pnand %p14843_p10, %p15730_p8  ;;  %p14852_p2 = por %p14851_p0, %p14850_p13 }
 0x106   : > { %p14846_p12 = pneg %p14845_p11 }
 0x108   : > { %p14853_p5 = pnand %p14852_p2, %p14846_p12 }
 0x10a   : > { %14856 = shalt.err (!%p14853_p5)
}
 0x10b   : > { %s17114_s2 = smov 384   ;;  %s17118_s9 = smov 24  }
 0x10c   : > { %12882 = dma.hbm_to_vmem [thread:$0]  (!%p15718_p6), %s15624_s24, 4608, %s936_s26, [#allocation27], %s17114_s2, %s17114_s2, %s17118_s9  }
 0x10d   : > { %s14857_s16 = scalar_lea.hbm %s17178_s5, 32 }
 0x10e   : > { %p14858_p7 = scmp.ne.s32.totalorder %s17178_s5, %s14857_s16  ;;  %p14864_p3 = scmp.lt.u32.totalorder %s14857_s16, %s17178_s5 }
 0x110   : > { %p14860_p4 = pnand %p14858_p7, %p15730_p8 }
 0x112   : > { %p14861_p1 = pneg %p14860_p4 }
 0x114   : > { %p14866_p9 = pnand %p14864_p3, %p14861_p1 }
 0x116   : > { %14869 = shalt.err (!%p14866_p9)
}
 0x117   : > { %s14870_s23 = scalar_lea.vmem %s963_s19, 32  ;;  %p14878_p13 = scmp.lt.s32.totalorder %s963_s19, %s963_s19 }
 0x118   : > { %p14871_p10 = scmp.ne.s32.totalorder %s963_s19, %s14870_s23  ;;  %p14879_p0 = scmp.lt.s32.totalorder %s14870_s23, %s14870_s23 }
 0x11a   : > { %p14873_p11 = pnand %p14871_p10, %p15730_p8  ;;  %p14880_p2 = por %p14879_p0, %p14878_p13 }
 0x11c   : > { %p14874_p12 = pneg %p14873_p11 }
 0x11e   : > { %p14881_p5 = pnand %p14880_p2, %p14874_p12 }
 0x120   : > { %14884 = shalt.err (!%p14881_p5)
}
 0x121   : > { %12888 = dma.hbm_to_vmem [thread:$0]  (!%p15718_p6), %s17178_s5, 32, %s963_s19, [#allocation30]  }
 0x122   : > { %s15497_s26 = smov [#allocation32]   ;;  %s15498_s15 = smov [#allocation35]  }
 0x123   : > { %s985_s1 = sshll.u32 %s15497_s26, 4  ;;  %s1009_s16 = sshll.u32 %s15498_s15, 4  ;;  %s986_s1 = int_to_ptr.vmem [resolvable:$true] %s985_s1  ;;  %s1010_s16 = int_to_ptr.vmem [resolvable:$true] %s1009_s16 }
 0x124   : > { %s14885_s2 = scalar_lea.hbm %s17179_s4, 256 }
 0x125   : > { %p14886_p7 = scmp.ne.s32.totalorder %s17179_s4, %s14885_s2  ;;  %p14892_p3 = scmp.lt.u32.totalorder %s14885_s2, %s17179_s4 }
 0x127   : > { %p14888_p4 = pnand %p14886_p7, %p15730_p8 }
 0x129   : > { %p14889_p1 = pneg %p14888_p4 }
 0x12b   : > { %p14894_p9 = pnand %p14892_p3, %p14889_p1 }
 0x12d   : > { %14897 = shalt.err (!%p14894_p9)
}
 0x12e   : > { %s14898_s23 = scalar_lea.vmem %s986_s1, 256  ;;  %p14906_p13 = scmp.lt.s32.totalorder %s986_s1, %s986_s1 }
 0x12f   : > { %p14899_p10 = scmp.ne.s32.totalorder %s986_s1, %s14898_s23  ;;  %p14907_p0 = scmp.lt.s32.totalorder %s14898_s23, %s14898_s23 }
 0x131   : > { %p14901_p11 = pnand %p14899_p10, %p15730_p8  ;;  %p14908_p2 = por %p14907_p0, %p14906_p13 }
 0x133   : > { %p14902_p12 = pneg %p14901_p11 }
 0x135   : > { %p14909_p5 = pnand %p14908_p2, %p14902_p12 }
 0x137   : > { %14912 = shalt.err (!%p14909_p5)
}
 0x138   : > { %s17116_s19 = smov 64   ;;  %s17120_s2 = smov 4  }
 0x139   : > { %12894 = dma.hbm_to_vmem [thread:$0]  (!%p15718_p6), %s17179_s4, 256, %s986_s1, [#allocation33], %s17116_s19, %s17116_s19, %s17120_s2  }
 0x13a   : > { %s14913_s26 = scalar_lea.hbm %s17171_s20, 18432 }
 0x13b   : > { %p14914_p7 = scmp.ne.s32.totalorder %s17171_s20, %s14913_s26  ;;  %p14920_p3 = scmp.lt.u32.totalorder %s14913_s26, %s17171_s20 }
 0x13d   : > { %p14916_p4 = pnand %p14914_p7, %p15730_p8 }
 0x13f   : > { %p14917_p1 = pneg %p14916_p4 }
 0x141   : > { %p14922_p9 = pnand %p14920_p3, %p14917_p1 }
 0x143   : > { %14925 = shalt.err (!%p14922_p9)
}
 0x144   : > { %s14926_s15 = scalar_lea.vmem %s1010_s16, 18432  ;;  %p14934_p13 = scmp.lt.s32.totalorder %s1010_s16, %s1010_s16 }
 0x145   : > { %p14927_p10 = scmp.ne.s32.totalorder %s1010_s16, %s14926_s15  ;;  %p14935_p0 = scmp.lt.s32.totalorder %s14926_s15, %s14926_s15 }
 0x147   : > { %p14929_p11 = pnand %p14927_p10, %p15730_p8  ;;  %p14936_p2 = por %p14935_p0, %p14934_p13 }
 0x149   : > { %p14930_p12 = pneg %p14929_p11 }
 0x14b   : > { %p14937_p5 = pnand %p14936_p2, %p14930_p12 }
 0x14d   : > { %14940 = shalt.err (!%p14937_p5)
}
 0x14e   : > { %s17184_s1 = smov 384   ;;  %s15501_s23 = smov [#allocation7]  }
 0x14f   : > { %12900 = dma.hbm_to_vmem [thread:$0]  (!%p15718_p6), %s17171_s20, 18432, %s1010_s16, [#allocation36], %s17184_s1, %s17184_s1, %s17118_s9  }
 0x150   : > { %s776_s26 = sshll.u32 %s15501_s23, 4  ;;  %s14941_s19 = scalar_lea.hbm %s17172_s17, 512  ;;  %s777_s26 = int_to_ptr.vmem [resolvable:$true] %s776_s26 }
 0x151   : > { %p14942_p7 = scmp.ne.s32.totalorder %s17172_s17, %s14941_s19  ;;  %p14948_p3 = scmp.lt.u32.totalorder %s14941_s19, %s17172_s17 }
 0x153   : > { %p14944_p4 = pnand %p14942_p7, %p15730_p8 }
 0x155   : > { %p14945_p1 = pneg %p14944_p4 }
 0x157   : > { %p14950_p9 = pnand %p14948_p3, %p14945_p1 }
 0x159   : > { %14953 = shalt.err (!%p14950_p9)
}
 0x15a   : > { %s14954_s15 = scalar_lea.vmem %s777_s26, 512  ;;  %p14962_p13 = scmp.lt.s32.totalorder %s777_s26, %s777_s26 }
 0x15b   : > { %p14955_p10 = scmp.ne.s32.totalorder %s777_s26, %s14954_s15  ;;  %p14963_p0 = scmp.lt.s32.totalorder %s14954_s15, %s14954_s15 }
 0x15d   : > { %p14957_p11 = pnand %p14955_p10, %p15730_p8  ;;  %p14964_p2 = por %p14963_p0, %p14962_p13 }
 0x15f   : > { %p14958_p12 = pneg %p14957_p11 }
 0x161   : > { %p14965_p5 = pnand %p14964_p2, %p14958_p12 }
 0x163   : > { %14968 = shalt.err (!%p14965_p5)
}
 0x164   : > { %s15502_s16 = smov 128   ;;  %s15503_s19 = smov 8  }
 0x165   : > { %12843 = dma.hbm_to_vmem [thread:$0]  (!%p15718_p6), %s17172_s17, 512, %s777_s26, [#allocation6], %s15502_s16, %s15502_s16, %s15503_s19  }
 0x166   : > { %s15504_s23 = smov [#allocation10]   ;;  %s15505_s2 = smov [#allocation13]  }
 0x167   : > { %s803_s9 = sshll.u32 %s15504_s23, 4  ;;  %s827_s3 = sshll.u32 %s15505_s2, 4  ;;  %s804_s9 = int_to_ptr.vmem [resolvable:$true] %s803_s9  ;;  %s15880_s3 = int_to_ptr.vmem [resolvable:$true] %s827_s3 }
 0x168   : > { %s14969_s15 = scalar_lea.hbm %s15564_s29, 128 }
 0x169   : > { %p14970_p7 = scmp.ne.s32.totalorder %s15564_s29, %s14969_s15  ;;  %p14976_p3 = scmp.lt.u32.totalorder %s14969_s15, %s15564_s29 }
 0x16b   : > { %p14972_p4 = pnand %p14970_p7, %p15730_p8 }
 0x16d   : > { %p14973_p1 = pneg %p14972_p4 }
 0x16f   : > { %p14978_p9 = pnand %p14976_p3, %p14973_p1 }
 0x171   : > { %14981 = shalt.err (!%p14978_p9)
}
 0x172   : > { %s14982_s4 = scalar_lea.vmem %s804_s9, 128  ;;  %p14990_p13 = scmp.lt.s32.totalorder %s804_s9, %s804_s9 }
 0x173   : > { %p14983_p10 = scmp.ne.s32.totalorder %s804_s9, %s14982_s4  ;;  %p14991_p0 = scmp.lt.s32.totalorder %s14982_s4, %s14982_s4 }
 0x175   : > { %p14985_p11 = pnand %p14983_p10, %p15730_p8  ;;  %p14992_p2 = por %p14991_p0, %p14990_p13 }
 0x177   : > { %p14986_p12 = pneg %p14985_p11 }
 0x179   : > { %p14993_p5 = pnand %p14992_p2, %p14986_p12 }
 0x17b   : > { %14996 = shalt.err (!%p14993_p5)
}
 0x17c   : > { %s17185_s2 = smov 4   ;;  %s17186_s26 = smov 64  }
 0x17d   : > { %12849 = dma.hbm_to_vmem [thread:$0]  (!%p15718_p6), %s15564_s29, 128, %s804_s9, [#allocation9], %s17186_s26, %s17186_s26, %s17185_s2  }
 0x17e   : > { %s14997_s16 = scalar_lea.hbm %s17175_s8, 4608 }
 0x17f   : > { %p14998_p7 = scmp.ne.s32.totalorder %s17175_s8, %s14997_s16  ;;  %p15004_p3 = scmp.lt.u32.totalorder %s14997_s16, %s17175_s8 }
 0x181   : > { %p15000_p4 = pnand %p14998_p7, %p15730_p8 }
 0x183   : > { %p15001_p1 = pneg %p15000_p4 }
 0x185   : > { %p15006_p9 = pnand %p15004_p3, %p15001_p1 }
 0x187   : > { %15009 = shalt.err (!%p15006_p9)
}
 0x188   : > { %s15010_s4 = scalar_lea.vmem %s15880_s3, 4608  ;;  %p15018_p13 = scmp.lt.s32.totalorder %s15880_s3, %s15880_s3 }
 0x189   : > { %p15011_p10 = scmp.ne.s32.totalorder %s15880_s3, %s15010_s4  ;;  %p15019_p0 = scmp.lt.s32.totalorder %s15010_s4, %s15010_s4 }
 0x18b   : > { %p15013_p11 = pnand %p15011_p10, %p15730_p8  ;;  %p15020_p2 = por %p15019_p0, %p15018_p13 }
 0x18d   : > { %p15014_p12 = pneg %p15013_p11 }
 0x18f   : > { %p15021_p5 = pnand %p15020_p2, %p15014_p12 }
 0x191   : > { %15024 = shalt.err (!%p15021_p5)
}
 0x192   : > { %s15506_s9 = smov 192   ;;  %s17187_s19 = sld [smem:[#allocation66_spill]] }
 0x193   : > { %s15507_s23 = smov 12   ;;  %s15508_s15 = smov [#allocation16]  }
 0x194   : > { %12855 = dma.hbm_to_vmem [thread:$0]  (!%p15718_p6), %s17175_s8, 4608, %s15880_s3, [#allocation12], %s15506_s9, %s15506_s9, %s15507_s23  }
 0x195   : > { %s852_s16 = sshll.u32 %s15508_s15, 4  ;;  %s15509_s5 = smov [#allocation19]   ;;  %s853_s16 = int_to_ptr.vmem [resolvable:$true] %s852_s16 }
 0x196   : > { %s876_s12 = sshll.u32 %s15509_s5, 4  ;;  %s15910_s12 = int_to_ptr.vmem [resolvable:$true] %s876_s12 }
 0x198   : > { %s15025_s4 = scalar_lea.hbm %s17187_s19, 16 }
 0x199   : > { %p15026_p7 = scmp.ne.s32.totalorder %s17187_s19, %s15025_s4  ;;  %p15032_p3 = scmp.lt.u32.totalorder %s15025_s4, %s17187_s19 }
 0x19b   : > { %p15028_p4 = pnand %p15026_p7, %p15730_p8 }
 0x19d   : > { %p15029_p1 = pneg %p15028_p4 }
 0x19f   : > { %p15034_p9 = pnand %p15032_p3, %p15029_p1 }
 0x1a1   : > { %15037 = shalt.err (!%p15034_p9)
}
 0x1a2   : > { %s15038_s13 = scalar_lea.vmem %s853_s16, 16  ;;  %s15045_s3 = scalar_lea.vmem %s853_s16, 32 }
 0x1a3   : > { %p15039_p10 = scmp.ne.s32.totalorder %s853_s16, %s15038_s13  ;;  %p15046_p13 = scmp.lt.s32.totalorder %s853_s16, %s853_s16 }
 0x1a4   : > { %p15047_p0 = scmp.lt.s32.totalorder %s15045_s3, %s15038_s13 }
 0x1a5   : > { %p15041_p11 = pnand %p15039_p10, %p15730_p8 }
 0x1a6   : > { %p15048_p2 = por %p15047_p0, %p15046_p13 }
 0x1a7   : > { %p15042_p12 = pneg %p15041_p11 }
 0x1a9   : > { %p15049_p5 = pnand %p15048_p2, %p15042_p12 }
 0x1ab   : > { %15052 = shalt.err (!%p15049_p5)
}
 0x1ac   : > { %s17188_s5 = sld [smem:[#allocation68_spill]] }
 0x1ad   : > { %12861 = dma.hbm_to_vmem [thread:$0]  (!%p15718_p6), %s17187_s19, 16, %s853_s16, [#allocation15]  }
 0x1b2   : > { %s15053_s9 = scalar_lea.hbm %s17188_s5, 1536 }
 0x1b3   : > { %p15054_p7 = scmp.ne.s32.totalorder %s17188_s5, %s15053_s9  ;;  %p15060_p3 = scmp.lt.u32.totalorder %s15053_s9, %s17188_s5 }
 0x1b5   : > { %p15056_p4 = pnand %p15054_p7, %p15730_p8 }
 0x1b7   : > { %p15057_p1 = pneg %p15056_p4 }
 0x1b9   : > { %p15062_p9 = pnand %p15060_p3, %p15057_p1 }
 0x1bb   : > { %15065 = shalt.err (!%p15062_p9)
}
 0x1bc   : > { %s15066_s13 = scalar_lea.vmem %s15910_s12, 1536  ;;  %p15074_p13 = scmp.lt.s32.totalorder %s15910_s12, %s15910_s12 }
 0x1bd   : > { %p15067_p10 = scmp.ne.s32.totalorder %s15910_s12, %s15066_s13  ;;  %p15075_p0 = scmp.lt.s32.totalorder %s15066_s13, %s15066_s13 }
 0x1bf   : > { %p15069_p11 = pnand %p15067_p10, %p15730_p8  ;;  %p15076_p2 = por %p15075_p0, %p15074_p13 }
 0x1c1   : > { %p15070_p12 = pneg %p15069_p11 }
 0x1c3   : > { %p15077_p5 = pnand %p15076_p2, %p15070_p12 }
 0x1c5   : > { %15080 = shalt.err (!%p15077_p5)
}
 0x1c6   : > { %s17189_s23 = smov 24   ;;  %s17190_s15 = sld [smem:[#allocation70_spill]] }
 0x1c7   : > { %12867 = dma.hbm_to_vmem [thread:$0]  (!%p15718_p6), %s17188_s5, 1536, %s15910_s12, [#allocation18], %s17184_s1, %s17184_s1, %s17189_s23  }
 0x1c8   : > { %s15510_s16 = smov [#allocation22]   ;;  %s15511_s3 = smov [#allocation25]  }
 0x1c9   : > { %s900_s4 = sshll.u32 %s15510_s16, 4  ;;  %s925_s9 = sshll.u32 %s15511_s3, 4  ;;  %s901_s4 = int_to_ptr.vmem [resolvable:$true] %s900_s4  ;;  %s15940_s9 = int_to_ptr.vmem [resolvable:$true] %s925_s9 }
 0x1cc   : > { %s15081_s13 = scalar_lea.hbm %s17190_s15, 36864 }
 0x1cd   : > { %p15082_p7 = scmp.ne.s32.totalorder %s17190_s15, %s15081_s13  ;;  %p15088_p3 = scmp.lt.u32.totalorder %s15081_s13, %s17190_s15 }
 0x1cf   : > { %p15084_p4 = pnand %p15082_p7, %p15730_p8 }
 0x1d1   : > { %p15085_p1 = pneg %p15084_p4 }
 0x1d3   : > { %p15090_p9 = pnand %p15088_p3, %p15085_p1 }
 0x1d5   : > { %15093 = shalt.err (!%p15090_p9)
}
 0x1d6   : > { %s15094_s8 = scalar_lea.vmem %s901_s4, 36864  ;;  %p15102_p13 = scmp.lt.s32.totalorder %s901_s4, %s901_s4 }
 0x1d7   : > { %p15095_p10 = scmp.ne.s32.totalorder %s901_s4, %s15094_s8  ;;  %p15103_p0 = scmp.lt.s32.totalorder %s15094_s8, %s15094_s8 }
 0x1d9   : > { %p15097_p11 = pnand %p15095_p10, %p15730_p8  ;;  %p15104_p2 = por %p15103_p0, %p15102_p13 }
 0x1db   : > { %p15098_p12 = pneg %p15097_p11 }
 0x1dd   : > { %p15105_p5 = pnand %p15104_p2, %p15098_p12 }
 0x1df   : > { %15108 = shalt.err (!%p15105_p5)
}
 0x1e0   : > { %s17191_s12 = sld [smem:[#allocation71_spill]] }
 0x1e1   : > { %12873 = dma.hbm_to_vmem [thread:$0]  (!%p15718_p6), %s17190_s15, 36864, %s901_s4, [#allocation21], %s17184_s1, %s17184_s1, %s17189_s23  }
 0x1e6   : > { %s15109_s16 = scalar_lea.hbm %s17191_s12, 16 }
 0x1e7   : > { %p15110_p7 = scmp.ne.s32.totalorder %s17191_s12, %s15109_s16  ;;  %p15116_p3 = scmp.lt.u32.totalorder %s15109_s16, %s17191_s12 }
 0x1e9   : > { %p15112_p4 = pnand %p15110_p7, %p15730_p8 }
 0x1eb   : > { %p15113_p1 = pneg %p15112_p4 }
 0x1ed   : > { %p15118_p9 = pnand %p15116_p3, %p15113_p1 }
 0x1ef   : > { %15121 = shalt.err (!%p15118_p9)
}
 0x1f0   : > { %s15122_s8 = scalar_lea.vmem %s15940_s9, 16  ;;  %s15129_s3 = scalar_lea.vmem %s15940_s9, 32 }
 0x1f1   : > { %p15123_p10 = scmp.ne.s32.totalorder %s15940_s9, %s15122_s8  ;;  %p15130_p13 = scmp.lt.s32.totalorder %s15940_s9, %s15940_s9 }
 0x1f2   : > { %p15131_p0 = scmp.lt.s32.totalorder %s15129_s3, %s15122_s8 }
 0x1f3   : > { %p15125_p11 = pnand %p15123_p10, %p15730_p8 }
 0x1f4   : > { %p15132_p2 = por %p15131_p0, %p15130_p13 }
 0x1f5   : > { %p15126_p12 = pneg %p15125_p11 }
 0x1f7   : > { %p15133_p5 = pnand %p15132_p2, %p15126_p12 }
 0x1f9   : > { %15136 = shalt.err (!%p15133_p5)
}
 0x1fa   : > { %s17192_s1 = sld [smem:[#allocation72_spill]]  ;;  %s15512_s23 = smov [#allocation28]  }
 0x1fb   : > { %12879 = dma.hbm_to_vmem [thread:$0]  (!%p15718_p6), %s17191_s12, 16, %s15940_s9, [#allocation24]  }
 0x1fc   : > { %s948_s4 = sshll.u32 %s15512_s23, 4  ;;  %s15513_s13 = smov [#allocation31]   ;;  %s949_s4 = int_to_ptr.vmem [resolvable:$true] %s948_s4 }
 0x1fd   : > { %s972_s16 = sshll.u32 %s15513_s13, 4  ;;  %s15971_s16 = int_to_ptr.vmem [resolvable:$true] %s972_s16 }
 0x200   : > { %s15137_s8 = scalar_lea.hbm %s17192_s1, 128 }
 0x201   : > { %p15138_p7 = scmp.ne.s32.totalorder %s17192_s1, %s15137_s8  ;;  %p15144_p3 = scmp.lt.u32.totalorder %s15137_s8, %s17192_s1 }
 0x203   : > { %p15140_p4 = pnand %p15138_p7, %p15730_p8 }
 0x205   : > { %p15141_p1 = pneg %p15140_p4 }
 0x207   : > { %p15146_p9 = pnand %p15144_p3, %p15141_p1 }
 0x209   : > { %15149 = shalt.err (!%p15146_p9)
}
 0x20a   : > { %s15150_s3 = scalar_lea.vmem %s949_s4, 128  ;;  %p15158_p13 = scmp.lt.s32.totalorder %s949_s4, %s949_s4 }
 0x20b   : > { %p15151_p10 = scmp.ne.s32.totalorder %s949_s4, %s15150_s3  ;;  %p15159_p0 = scmp.lt.s32.totalorder %s15150_s3, %s15150_s3 }
 0x20d   : > { %p15153_p11 = pnand %p15151_p10, %p15730_p8  ;;  %p15160_p2 = por %p15159_p0, %p15158_p13 }
 0x20f   : > { %p15154_p12 = pneg %p15153_p11 }
 0x211   : > { %p15161_p5 = pnand %p15160_p2, %p15154_p12 }
 0x213   : > { %15164 = shalt.err (!%p15161_p5)
}
 0x214   : > { %s17193_s9 = sld [smem:[#allocation74_spill]] }
 0x215   : > { %12885 = dma.hbm_to_vmem [thread:$0]  (!%p15718_p6), %s17192_s1, 128, %s949_s4, [#allocation27], %s17186_s26, %s17186_s26, %s17185_s2  }
 0x21a   : > { %s15165_s23 = scalar_lea.hbm %s17193_s9, 18432 }
 0x21b   : > { %p15166_p7 = scmp.ne.s32.totalorder %s17193_s9, %s15165_s23  ;;  %p15172_p3 = scmp.lt.u32.totalorder %s15165_s23, %s17193_s9 }
 0x21d   : > { %p15168_p4 = pnand %p15166_p7, %p15730_p8 }
 0x21f   : > { %p15169_p1 = pneg %p15168_p4 }
 0x221   : > { %p15174_p9 = pnand %p15172_p3, %p15169_p1 }
 0x223   : > { %15177 = shalt.err (!%p15174_p9)
}
 0x224   : > { %s15178_s13 = scalar_lea.vmem %s15971_s16, 18432  ;;  %p15186_p13 = scmp.lt.s32.totalorder %s15971_s16, %s15971_s16 }
 0x225   : > { %p15179_p10 = scmp.ne.s32.totalorder %s15971_s16, %s15178_s13  ;;  %p15187_p0 = scmp.lt.s32.totalorder %s15178_s13, %s15178_s13 }
 0x227   : > { %p15181_p11 = pnand %p15179_p10, %p15730_p8  ;;  %p15188_p2 = por %p15187_p0, %p15186_p13 }
 0x229   : > { %p15182_p12 = pneg %p15181_p11 }
 0x22b   : > { %p15189_p5 = pnand %p15188_p2, %p15182_p12 }
 0x22d   : > { %15192 = shalt.err (!%p15189_p5)
}
 0x22e   : > { %s17194_s4 = smov 48   ;;  %s17195_s8 = smov 768  }
 0x22f   : > { %s17196_s3 = sld [smem:[#allocation76_spill]]  ;;  %s15514_s23 = smov [#allocation34]  }
 0x230   : > { %12891 = dma.hbm_to_vmem [thread:$0]  (!%p15718_p6), %s17193_s9, 18432, %s15971_s16, [#allocation30], %s17195_s8, %s17195_s8, %s17194_s4  }
 0x231   : > { %s999_s1 = sshll.u32 %s15514_s23, 4  ;;  %s15515_s5 = smov [#allocation37]   ;;  %s1000_s1 = int_to_ptr.vmem [resolvable:$true] %s999_s1 }
 0x232   : > { %s1022_s12 = sshll.u32 %s15515_s5, 4  ;;  %s16004_s12 = int_to_ptr.vmem [resolvable:$true] %s1022_s12 }
 0x235   : > { %s15193_s13 = scalar_lea.hbm %s17196_s3, 48 }
 0x236   : > { %p15194_p7 = scmp.ne.s32.totalorder %s17196_s3, %s15193_s13  ;;  %p15200_p3 = scmp.lt.u32.totalorder %s15193_s13, %s17196_s3 }
 0x238   : > { %p15196_p4 = pnand %p15194_p7, %p15730_p8 }
 0x23a   : > { %p15197_p1 = pneg %p15196_p4 }
 0x23c   : > { %p15202_p9 = pnand %p15200_p3, %p15197_p1 }
 0x23e   : > { %15205 = shalt.err (!%p15202_p9)
}
 0x23f   : > { %s15206_s14 = scalar_lea.vmem %s1000_s1, 48  ;;  %s15213_s16 = scalar_lea.vmem %s1000_s1, 64 }
 0x240   : > { %p15207_p10 = scmp.ne.s32.totalorder %s1000_s1, %s15206_s14  ;;  %p15214_p13 = scmp.lt.s32.totalorder %s1000_s1, %s1000_s1 }
 0x241   : > { %p15215_p0 = scmp.lt.s32.totalorder %s15213_s16, %s15206_s14 }
 0x242   : > { %p15209_p11 = pnand %p15207_p10, %p15730_p8 }
 0x243   : > { %p15216_p2 = por %p15215_p0, %p15214_p13 }
 0x244   : > { %p15210_p12 = pneg %p15209_p11 }
 0x246   : > { %p15217_p5 = pnand %p15216_p2, %p15210_p12 }
 0x248   : > { %15220 = shalt.err (!%p15217_p5)
}
 0x249   : > { %s17197_s5 = sld [smem:[#allocation78_spill]] }
 0x24a   : > { %12897 = dma.hbm_to_vmem [thread:$0]  (!%p15718_p6), %s17196_s3, 48, %s1000_s1, [#allocation33]  }
 0x24f   : > { %s15221_s4 = scalar_lea.hbm %s17197_s5, 512 }
 0x250   : > { %p15222_p7 = scmp.ne.s32.totalorder %s17197_s5, %s15221_s4  ;;  %p15228_p3 = scmp.lt.u32.totalorder %s15221_s4, %s17197_s5 }
 0x252   : > { %p15224_p4 = pnand %p15222_p7, %p15730_p8 }
 0x254   : > { %p15225_p1 = pneg %p15224_p4 }
 0x256   : > { %p15230_p9 = pnand %p15228_p3, %p15225_p1 }
 0x258   : > { %15233 = shalt.err (!%p15230_p9)
}
 0x259   : > { %s15234_s14 = scalar_lea.vmem %s16004_s12, 512  ;;  %p15242_p13 = scmp.lt.s32.totalorder %s16004_s12, %s16004_s12 }
 0x25a   : > { %p15235_p10 = scmp.ne.s32.totalorder %s16004_s12, %s15234_s14  ;;  %p15243_p0 = scmp.lt.s32.totalorder %s15234_s14, %s15234_s14 }
 0x25c   : > { %p15237_p11 = pnand %p15235_p10, %p15730_p8  ;;  %p15244_p2 = por %p15243_p0, %p15242_p13 }
 0x25e   : > { %p15238_p12 = pneg %p15237_p11 }
 0x260   : > { %p15245_p5 = pnand %p15244_p2, %p15238_p12 }
 0x262   : > { %15248 = shalt.err (!%p15245_p5)
}
 0x263   : > { %12903 = dma.hbm_to_vmem [thread:$0]  (!%p15718_p6), %s17197_s5, 512, %s16004_s12, [#allocation36], %s17186_s26, %s17186_s26, %s17185_s2  }
 0x264   : > { %s15516_s1 = smov [#allocation38]   ;;  %s15249_s23 = scalar_lea.hbm %s17173_s6, 32 }
 0x265   : > { %s1036_s8 = sshll.u32 %s15516_s1, 4  ;;  %p15250_p7 = scmp.ne.s32.totalorder %s17173_s6, %s15249_s23  ;;  %s1037_s8 = int_to_ptr.vmem [resolvable:$true] %s1036_s8 }
 0x266   : > { %p15256_p3 = scmp.lt.u32.totalorder %s15249_s23, %s17173_s6 }
 0x267   : > { %p15252_p4 = pnand %p15250_p7, %p15730_p8 }
 0x269   : > { %p15253_p1 = pneg %p15252_p4 }
 0x26b   : > { %p15258_p9 = pnand %p15256_p3, %p15253_p1 }
 0x26d   : > { %15261 = shalt.err (!%p15258_p9)
}
 0x26e   : > { %s15262_s13 = scalar_lea.vmem %s1037_s8, 32  ;;  %p15270_p13 = scmp.lt.s32.totalorder %s1037_s8, %s1037_s8 }
 0x26f   : > { %p15263_p10 = scmp.ne.s32.totalorder %s1037_s8, %s15262_s13  ;;  %p15271_p0 = scmp.lt.s32.totalorder %s15262_s13, %s15262_s13 }
 0x271   : > { %p15265_p11 = pnand %p15263_p10, %p15730_p8  ;;  %p15272_p2 = por %p15271_p0, %p15270_p13 }
 0x273   : > { %p15266_p12 = pneg %p15265_p11 }
 0x275   : > { %p15273_p5 = pnand %p15272_p2, %p15266_p12 }
 0x277   : > { %15276 = shalt.err (!%p15273_p5)
}
 0x278   : > { %12906 = dma.hbm_to_vmem [thread:$0]  (!%p15718_p6), %s17173_s6, 32, %s1037_s8, [#allocation39]  }
 0x279   : > { %s11239_s25 = sadd.s32 4294967294, %s15453_s11   ;;  %s16046_s2 = sadd.s32 1, %s15453_s11  }
 0x27a   : > { %s124_s28 = sadd.s32 1, %s15449_s10  ;;  %s17198_s26 = sld [smem:[#allocation59_spill]] }
 0x27b   : > { %s121_s12 = ssub.s32 %s15453_s11, %s16046_s2  ;;  %p131_p8 = scmp.ne.s32.totalorder %s15449_s10, %s15445_s7 }
 0x27c   : > { %p122_p7 = scmp.eq.s32.totalorder %s121_s12, 0  ;;  %p132_p4 = scmp.eq.s32.totalorder %s15453_s11, 0 }
 0x27d   : > { %p137_p1 = scmp.ne.s32.totalorder %s15445_s7, %s15441_s0  ;;  %p712_p3 = scmp.eq.s32.totalorder %s15702_s18, 1 }
 0x27e   : > { %s16058_s16 = scalar_select %p122_p7, %s15449_s10, %s124_s28  }
 0x27f   : > { %p133_p9 = por %p132_p4, %p131_p8  ;;  %p17199_p10 = scmp.eq.s32.totalorder %s15702_s18, 0 }
 0x280   : > { %p16066_p6 = por %p712_p3, %p131_p8  ;;  %p718_p12 = scmp.eq.s32.totalorder %s11239_s25, 1 }
 0x281   : > { %p16062_p11 = por %p17199_p10, %p137_p1  ;;  %p12941_p13 = scmp.lt.s32.totalorder %s15453_s11, 2 }
 0x282   : > { %s17201_s14 = scalar_select %p16066_p6, 1, 0 }
 0x283   : > { %s17200_s4 = scalar_select %p16062_p11, 1, 0 }
 0x284   : > { %s1055_s1 = sand.u32 1, %s15449_s10   ;;  %p16072_p0 = por %p718_p12, %p137_p1 }
 0x285   : > { %s11265_s23 = sshll.u32 %s15453_s11, 4  ;;  %s1058_s28 = scalar_lea.vmem [#allocation2], %s1055_s1 }
 0x286   : > { %s17202_s8 = scalar_select %p16072_p0, 1, 0 }
 0x287   : > { %s16078_s13 = scalar_lea.hbm %s17198_s26, %s11265_s23  ;;  %s1065_s12 = sshll.u32 %s1058_s28, 4  ;;  %s16080_s12 = int_to_ptr.vmem [resolvable:$true] %s1065_s12 }
 0x288   : > { %p16082_p2 = pnand %p12941_p13, %p133_p9  ;;  %s1056_s3 = scalar_lea.sflag [#allocation3], %s1055_s1 }
 0x289   : > { %s15277_s5 = scalar_lea.hbm %s16078_s13, 16  ;;  %s15282_s23 = scalar_lea.hbm %s17198_s26, 32 }
 0x28a   : > { %p15278_p5 = scmp.ne.s32.totalorder %s16078_s13, %s15277_s5  ;;  %p15279_p8 = pneg %p16082_p2 }
 0x28b   : > { %p15283_p1 = scmp.lt.u32.totalorder %s16078_s13, %s17198_s26  ;;  %p15284_p3 = scmp.lt.u32.totalorder %s15282_s23, %s15277_s5 }
 0x28c   : > { %p15280_p7 = pnand %p15279_p8, %p15278_p5  ;;  %p15286_p12 = scmp.lt.u32.totalorder %s15277_s5, %s16078_s13 }
 0x28d   : > { %p15285_p10 = por %p15284_p3, %p15283_p1 }
 0x28e   : > { %p15281_p4 = pneg %p15280_p7 }
 0x28f   : > { %p15287_p9 = por %p15286_p12, %p15285_p10 }
 0x291   : > { %p15288_p13 = pnand %p15287_p9, %p15281_p4 }
 0x293   : > { %15291 = shalt.err (!%p15288_p13)
}
 0x294   : > { %s15292_s1 = scalar_lea.vmem %s16080_s12, 16  ;;  %s15517_s28 = smov [#allocation2]  }
 0x295   : > { %p15293_p0 = scmp.ne.s32.totalorder %s16080_s12, %s15292_s1  ;;  %s15297_s6 = sshll.u32 %s15517_s28, 4  ;;  %s15298_s6 = int_to_ptr.vmem [resolvable:$false] %s15297_s6 }
 0x296   : > { %s15299_s9 = scalar_lea.vmem %s15298_s6, 32  ;;  %p15300_p5 = scmp.lt.s32.totalorder %s16080_s12, %s15298_s6 }
 0x297   : > { %p15295_p6 = pnand %p15293_p0, %p15279_p8  ;;  %p15301_p7 = scmp.lt.s32.totalorder %s15299_s9, %s15292_s1 }
 0x299   : > { %p15296_p11 = pneg %p15295_p6  ;;  %p15302_p1 = por %p15301_p7, %p15300_p5 }
 0x29b   : > { %p15303_p3 = pnand %p15302_p1, %p15296_p11 }
 0x29d   : > { %15306 = shalt.err (!%p15303_p3)
}
 0x29e   : > { %12910 = dma.hbm_to_vmem [thread:$0]  (!%p16082_p2), %s16078_s13, 16, %s16080_s12, %s1056_s3  }
 0x29f   : > { %p17204_p4 = scmp.ne.s32.totalorder %s17181_s22, 0 }
 0x2a0   : > { %s16110_s5 = sand.u32 (!%p17204_p4), 1, %s15445_s7   ;;  %p17205_p6 = scmp.ne.s32.totalorder (!%p17204_p4), %s17200_s4, 0 }
 0x2a1   : > { %1074 = sbr.rel (%p17204_p4) target bundleno = 6058 (0x17aa), region = 128  ;;  %s1077_s23 = scalar_lea.sflag (!%p17204_p4), [#allocation3], %s16110_s5 }
 0x2a2   : > { %s1079_s6 = scalar_lea.vmem (!%p17204_p4), [#allocation2], %s16110_s5 }
 0x2a8   : > { %15380 = dma.done.wait (%p17205_p6), %s1077_s23, 16  }
 0x2a9   : > { %15382 = vsyncadd (%p17205_p6), %s1077_s23, 4294967280  ;;  %p17206_p11 = scmp.eq.s32.totalorder %s15702_s18, 0 }
 0x2ab   : > { %15384 = dma.done.wait (%p17206_p11), [#allocation6], 14336   ;;  %p17207_p0 = pmov %p17206_p11 }
 0x2ad   : > { %15386 = vsyncadd (%p17207_p0), [#allocation6], 4294952960  ;;  %p17208_p2 = pmov %p17207_p0 }
 0x2ae   : > { %p17209_p8 = pmov %p17207_p0 }
 0x2af   : > { %15388 = dma.done.wait (%p17208_p2), [#allocation9], 176  }
 0x2b0   : > { %15390 = vsyncadd (%p17209_p8), [#allocation9], 4294967120  ;;  %p17210_p10 = pmov %p17207_p0 }
 0x2b1   : > { %p17211_p12 = pmov %p17207_p0 }
 0x2b2   : > { %15392 = dma.done.wait (%p17210_p10), [#allocation12], 4640  }
 0x2b3   : > { %15394 = vsyncadd (%p17211_p12), [#allocation12], 4294962656  ;;  %p17212_p9 = pmov %p17207_p0 }
 0x2b4   : > { %p17213_p13 = pmov %p17207_p0 }
 0x2b5   : > { %15396 = dma.done.wait (%p17212_p9), [#allocation15], 80  }
 0x2b6   : > { %15398 = vsyncadd (%p17213_p13), [#allocation15], 4294967216  ;;  %p17214_p5 = pmov %p17207_p0 }
 0x2b7   : > { %p17215_p7 = pmov %p17207_p0 }
 0x2b8   : > { %15400 = dma.done.wait (%p17214_p5), [#allocation18], 1552  }
 0x2b9   : > { %15402 = vsyncadd (%p17215_p7), [#allocation18], 4294965744  ;;  %p17216_p1 = pmov %p17207_p0 }
 0x2ba   : > { %p17217_p3 = pmov %p17207_p0 }
 0x2bb   : > { %15404 = dma.done.wait (%p17216_p1), [#allocation21], 36960  }
 0x2bc   : > { %15406 = vsyncadd (%p17217_p3), [#allocation21], 4294930336  ;;  %p17218_p4 = pmov %p17207_p0 }
 0x2bd   : > { %p17219_p6 = pmov %p17207_p0 }
 0x2be   : > { %15408 = dma.done.wait (%p17218_p4), [#allocation24], 80  }
 0x2bf   : > { %15410 = vsyncadd (%p17219_p6), [#allocation24], 4294967216  ;;  %p17220_p11 = pmov %p17207_p0 }
 0x2c1   : > { %15412 = dma.done.wait (%p17220_p11), [#allocation27], 4736  }
 0x2c2   : > { %15414 = vsyncadd (%p17207_p0), [#allocation27], 4294962560  ;;  %p17221_p2 = pmov %p17207_p0 }
 0x2c3   : > { %p17222_p8 = pmov %p17207_p0 }
 0x2c4   : > { %15416 = dma.done.wait (%p17221_p2), [#allocation30], 18464  }
 0x2c5   : > { %15418 = vsyncadd (%p17222_p8), [#allocation30], 4294948832  ;;  %p17223_p10 = pmov %p17207_p0 }
 0x2c6   : > { %p17224_p12 = pmov %p17207_p0 }
 0x2c7   : > { %15420 = dma.done.wait (%p17223_p10), [#allocation33], 304  }
 0x2c8   : > { %15422 = vsyncadd (%p17224_p12), [#allocation33], 4294966992  ;;  %p17225_p9 = pmov %p17207_p0 }
 0x2c9   : > { %p17226_p13 = pmov %p17207_p0 }
 0x2ca   : > { %15424 = dma.done.wait (%p17225_p9), [#allocation36], 18944  }
 0x2cb   : > { %15426 = vsyncadd (%p17226_p13), [#allocation36], 4294948352  ;;  %p17227_p5 = pmov %p17207_p0 }
 0x2cc   : > { %p17228_p7 = pmov %p17207_p0 }
 0x2cd   : > { %15428 = dma.done.wait (%p17227_p5), [#allocation39], 32  }
 0x2ce   : > { %15430 = vsyncadd (%p17228_p7), [#allocation39], 4294967264  ;;  %v13201_v0 = vld [vmem:[#allocation5 + $0x4] ss:$48 sps:$4 sm:$0xff]   ;;  %v13203_v1 = vld [vmem:[#allocation5 + $0xc] ss:$48 sps:$4 sm:$0xff]  }
 0x2cf   : > { %1954 = vmatprep.subr.bf16.mxu0 %v13201_v0  ;;  %v13205_v2 = vld [vmem:[#allocation5] ss:$48 sps:$4 sm:$0xff]   ;;  %v13206_v3 = vld [vmem:[#allocation5 + $0x8] ss:$48 sps:$4 sm:$0xff]   ;;  %2027 = vmatprep.subr.bf16.mxu1 %v13203_v1  ;;  %v13207_v4 = vld [vmem:[#allocation5 + $0x64] ss:$48 sps:$4 sm:$0xff]  }
 0x2d0   : > { %1955 = vmatpush1.bf16.msra.mxu0 %v13205_v2  ;;  %2028 = vmatpush1.bf16.msra.mxu1 %v13206_v3  ;;  %v13209_v5 = vld [vmem:[#allocation5 + $0x6c] ss:$48 sps:$4 sm:$0xff]   ;;  %v13211_v6 = vld [vmem:[#allocation5 + $0x60] ss:$48 sps:$4 sm:$0xff]   ;;  %v13212_v7 = vld [vmem:[#allocation5 + $0x68] ss:$48 sps:$4 sm:$0xff]  }
 0x2d1   : > { %1956 = vmatprep.subr.bf16.mxu0 %v13207_v4  ;;  %2029 = vmatprep.subr.bf16.mxu1 %v13209_v5  ;;  %v13213_v8 = vld [vmem:[#allocation5 + $0xc4] ss:$48 sps:$4 sm:$0xff]   ;;  %v13215_v9 = vld [vmem:[#allocation5 + $0xcc] ss:$48 sps:$4 sm:$0xff]   ;;  %v13217_v10 = vld [vmem:[#allocation5 + $0xc0] ss:$48 sps:$4 sm:$0xff]  }
 0x2d2   : > { %v13218_v11 = vld [vmem:[#allocation5 + $0xc8] ss:$48 sps:$4 sm:$0xff]   ;;  %v13219_v12 = vld [vmem:[#allocation5 + $0x124] ss:$48 sps:$4 sm:$0xff]   ;;  %v13221_v13 = vld [vmem:[#allocation5 + $0x12c] ss:$48 sps:$4 sm:$0xff]  }
 0x2d3   : > { %p1258_p1 = scmp.lt.s32.totalorder %s15702_s18, 1  ;;  %v13223_v14 = vld [vmem:[#allocation5 + $0x120] ss:$48 sps:$4 sm:$0xff]   ;;  %v13224_v15 = vld [vmem:[#allocation5 + $0x128] ss:$48 sps:$4 sm:$0xff]   ;;  %s17229_s9 = sld [smem:[#allocation58_spill]] }
 0x2d4   : > { %1957 = vmatpush1.bf16.msra.mxu0 %v13211_v6  ;;  %2030 = vmatpush1.bf16.msra.mxu1 %v13212_v7  ;;  %v13225_v16 = vld [vmem:[#allocation5 + $0x184] ss:$48 sps:$4 sm:$0xff]   ;;  %v13227_v17 = vld [vmem:[#allocation5 + $0x18c] ss:$48 sps:$4 sm:$0xff]   ;;  %v13229_v18 = vld [vmem:[#allocation5 + $0x180] ss:$48 sps:$4 sm:$0xff]  }
 0x2d5   : > { %1958 = vmatprep.subr.bf16.mxu0 %v13213_v8  ;;  %2031 = vmatprep.subr.bf16.mxu1 %v13215_v9  ;;  %s16168_s22 = scalar_select %p1258_p1, %s15702_s18, 1  ;;  %v13230_v19 = vld [vmem:[#allocation5 + $0x188] ss:$48 sps:$4 sm:$0xff]   ;;  %v13231_v20 = vld [vmem:[#allocation5 + $0x1e4] ss:$48 sps:$4 sm:$0xff]   ;;  %vm1941_vm0 = vcmask 130048  }
 0x2d6   : > { %v13233_v21 = vld [vmem:[#allocation5 + $0x1ec] ss:$48 sps:$4 sm:$0xff]   ;;  %v13235_v22 = vld [vmem:[#allocation5 + $0x1e0] ss:$48 sps:$4 sm:$0xff]   ;;  %v13236_v23 = vld [vmem:[#allocation5 + $0x1e8] ss:$48 sps:$4 sm:$0xff]  }
 0x2d7   : > { %s17138_s3 = sshll.u32 %s16168_s22, 7  ;;  %v13237_v24 = vld [vmem:[#allocation5 + $0x244] ss:$48 sps:$4 sm:$0xff]   ;;  %v13239_v25 = vld [vmem:[#allocation5 + $0x24c] ss:$48 sps:$4 sm:$0xff]   ;;  %s17230_s13 = sld [smem:[#allocation62_spill]] }
 0x2d8   : > { %1959 = vmatpush1.bf16.msra.mxu0 %v13217_v10  ;;  %2032 = vmatpush1.bf16.msra.mxu1 %v13218_v11  ;;  %v13241_v26 = vld [vmem:[#allocation5 + $0x240] ss:$48 sps:$4 sm:$0xff]   ;;  %v13242_v27 = vld [vmem:[#allocation5 + $0x248] ss:$48 sps:$4 sm:$0xff]   ;;  %v13243_v28 = vld [vmem:[#allocation5 + $0x2a4] ss:$48 sps:$4 sm:$0xff]  }
 0x2d9   : > { %1960 = vmatprep.subr.bf16.mxu0 %v13219_v12  ;;  %2033 = vmatprep.subr.bf16.mxu1 %v13221_v13  ;;  %s16174_s4 = scalar_lea.vmem %s17229_s9, %s17138_s3  ;;  %v13245_v31 = vld [vmem:[#allocation5 + $0x2ac] ss:$48 sps:$4 sm:$0xff]   ;;  %v13247_v33 = vld [vmem:[#allocation5 + $0x2a0] ss:$48 sps:$4 sm:$0xff]   ;;  %v13248_v34 = vld [vmem:[#allocation5 + $0x2a8] ss:$48 sps:$4 sm:$0xff]  }
 0x2da   : > { %v1270_v29 = vld [vmem:[%s16174_s4 + $0x8] sm:$0xff]  ;;  %v1272_v30 = vld [vmem:[%s16174_s4 + $0x18] sm:$0xff]  ;;  %v13253_v37 = vld [vmem:[#allocation5 + $0x300] ss:$48 sps:$4 sm:$0xff]   ;;  %s15519_s12 = smov 64   ;;  %vm3831_vm13 = vcmask 523264  }
 0x2db   : > { %v16178_v32 = vpack.c.bf16 %v1272_v30, %v1270_v29  ;;  %v13249_v35 = vld [vmem:[#allocation5 + $0x304] ss:$48 sps:$4 sm:$0xff]   ;;  %v13251_v36 = vld [vmem:[#allocation5 + $0x30c] ss:$48 sps:$4 sm:$0xff]   ;;  %v13254_v38 = vld [vmem:[#allocation5 + $0x308] ss:$48 sps:$4 sm:$0xff]  }
 0x2dc   : > { %1961 = vmatpush1.bf16.msra.mxu0 %v13223_v14  ;;  %2034 = vmatpush1.bf16.msra.mxu1 %v13224_v15  ;;  %v1269_v39 = vld [vmem:[%s16174_s4] sm:$0xff]  ;;  %v1271_v40 = vld [vmem:[%s16174_s4 + $0x10] sm:$0xff]  ;;  %v1274_v45 = vld [vmem:[%s16174_s4 + $0x28] sm:$0xff]  ;;  %s17231_s25 = sld [smem:[#allocation67_spill]]  ;;  %s15521_s1 = smov 32  }
 0x2dd   : > { %1962 = vmatprep.subr.bf16.mxu0 %v13225_v16  ;;  %2035 = vmatprep.subr.bf16.mxu1 %v13227_v17  ;;  %v13257_v41 = vld [vmem:[#allocation5 + $0x14] ss:$48 sps:$4 sm:$0xff]   ;;  %v13260_v42 = vld [vmem:[#allocation5 + $0x1c] ss:$48 sps:$4 sm:$0xff]   ;;  %v13255_v43 = vld [vmem:[#allocation5 + $0x10] ss:$48 sps:$4 sm:$0xff]   ;;  %v16186_v44 = vpack.c.bf16 %v1271_v40, %v1269_v39 }
 0x2de   : > { %11402 = vmatprep.mubr.msk.bf16.mxu0 %vm1941_vm0, %v16178_v32  ;;  %11406 = vmatprep.mubr.msk.bf16.mxu1 %vm1941_vm0, %v16178_v32  ;;  %v1276_v46 = vld [vmem:[%s16174_s4 + $0x38] sm:$0xff]  ;;  %v13261_v50 = vld [vmem:[#allocation5 + $0x70] ss:$48 sps:$4 sm:$0xff]   ;;  %v1278_v58 = vld [vmem:[%s16174_s4 + $0x48] sm:$0xff]  ;;  %s15523_s28 = smov 96   ;;  %s1251_s23 = scalar_lea.vmem [#allocation40], %s16110_s5 }
 0x2df   : > { %v13258_v47 = vld [vmem:[#allocation5 + $0x18] ss:$48 sps:$4 sm:$0xff]   ;;  %v13263_v48 = vld [vmem:[#allocation5 + $0x74] ss:$48 sps:$4 sm:$0xff]   ;;  %v13266_v49 = vld [vmem:[#allocation5 + $0x7c] ss:$48 sps:$4 sm:$0xff]   ;;  %v16190_v51 = vpack.c.bf16 %v1276_v46, %v1274_v45 }
 0x2e0   : > { %1963 = vmatpush1.bf16.msra.mxu0 %v13229_v18  ;;  %2036 = vmatpush1.bf16.msra.mxu1 %v13230_v19  ;;  %v13264_v52 = vld [vmem:[#allocation5 + $0x78] ss:$48 sps:$4 sm:$0xff]   ;;  %v13269_v53 = vld [vmem:[#allocation5 + $0xd4] ss:$48 sps:$4 sm:$0xff]   ;;  %v13272_v56 = vld [vmem:[#allocation5 + $0xdc] ss:$48 sps:$4 sm:$0xff]  }
 0x2e1   : > { %1964 = vmatprep.subr.bf16.mxu0 %v13231_v20  ;;  %2037 = vmatprep.subr.bf16.mxu1 %v13233_v21  ;;  %v1273_v54 = vld [vmem:[%s16174_s4 + $0x20] sm:$0xff]  ;;  %v1275_v55 = vld [vmem:[%s16174_s4 + $0x30] sm:$0xff]  ;;  %v1280_v59 = vld [vmem:[%s16174_s4 + $0x58] sm:$0xff]  ;;  %s17232_s9 = sld [smem:[#allocation81_spill]]  ;;  %p17233_p4 = scmp.ne.s32.totalorder %s17201_s14, 0 }
 0x2e2   : > { %v16200_v57 = vpack.c.bf16 %v1275_v55, %v1273_v54  ;;  %v13267_v60 = vld [vmem:[#allocation5 + $0xd0] ss:$48 sps:$4 sm:$0xff]   ;;  %v13270_v61 = vld [vmem:[#allocation5 + $0xd8] ss:$48 sps:$4 sm:$0xff]   ;;  %v13275_v62 = vld [vmem:[#allocation5 + $0x134] ss:$48 sps:$4 sm:$0xff]   ;;  %v16204_v1 = vpack.c.bf16 %v1280_v59, %v1278_v58 }
 0x2e3   : > { %v13278_v63 = vld [vmem:[#allocation5 + $0x13c] ss:$48 sps:$4 sm:$0xff]   ;;  %v13273_v0 = vld [vmem:[#allocation5 + $0x130] ss:$48 sps:$4 sm:$0xff]   ;;  %v13276_v2 = vld [vmem:[#allocation5 + $0x138] ss:$48 sps:$4 sm:$0xff]  }
 0x2e4   : > { %1965 = vmatpush1.bf16.msra.mxu0 %v13235_v22  ;;  %2038 = vmatpush1.bf16.msra.mxu1 %v13236_v23  ;;  %v13281_v3 = vld [vmem:[#allocation5 + $0x194] ss:$48 sps:$4 sm:$0xff]   ;;  %v13284_v6 = vld [vmem:[#allocation5 + $0x19c] ss:$48 sps:$4 sm:$0xff]   ;;  %v13279_v7 = vld [vmem:[#allocation5 + $0x190] ss:$48 sps:$4 sm:$0xff]  }
 0x2e5   : > { %1966 = vmatprep.subr.bf16.mxu0 %v13237_v24  ;;  %2039 = vmatprep.subr.bf16.mxu1 %v13239_v25  ;;  %v1277_v4 = vld [vmem:[%s16174_s4 + $0x40] sm:$0xff]  ;;  %v1279_v5 = vld [vmem:[%s16174_s4 + $0x50] sm:$0xff]  ;;  %v13282_v8 = vld [vmem:[#allocation5 + $0x198] ss:$48 sps:$4 sm:$0xff]  }
 0x2e6   : > { %v16214_v9 = vpack.c.bf16 %v1279_v5, %v1277_v4  ;;  %v1282_v10 = vld [vmem:[%s16174_s4 + $0x68] sm:$0xff]  ;;  %v1284_v11 = vld [vmem:[%s16174_s4 + $0x78] sm:$0xff]  ;;  %v13285_v14 = vld [vmem:[#allocation5 + $0x1f0] ss:$48 sps:$4 sm:$0xff]  }
 0x2e7   : > { %v13287_v12 = vld [vmem:[#allocation5 + $0x1f4] ss:$48 sps:$4 sm:$0xff]   ;;  %v13290_v13 = vld [vmem:[#allocation5 + $0x1fc] ss:$48 sps:$4 sm:$0xff]   ;;  %v13288_v15 = vld [vmem:[#allocation5 + $0x1f8] ss:$48 sps:$4 sm:$0xff]   ;;  %v16218_v16 = vpack.c.bf16 %v1284_v11, %v1282_v10 }
 0x2e8   : > { %1967 = vmatpush1.bf16.msra.mxu0 %v13241_v26  ;;  %2040 = vmatpush1.bf16.msra.mxu1 %v13242_v27  ;;  %v13293_v17 = vld [vmem:[#allocation5 + $0x254] ss:$48 sps:$4 sm:$0xff]   ;;  %v13296_v20 = vld [vmem:[#allocation5 + $0x25c] ss:$48 sps:$4 sm:$0xff]   ;;  %v13291_v21 = vld [vmem:[#allocation5 + $0x250] ss:$48 sps:$4 sm:$0xff]  }
 0x2e9   : > { %1968 = vmatprep.subr.bf16.mxu0 %v13243_v28  ;;  %2041 = vmatprep.subr.bf16.mxu1 %v13245_v31  ;;  %v1281_v18 = vld [vmem:[%s16174_s4 + $0x60] sm:$0xff]  ;;  %v1283_v19 = vld [vmem:[%s16174_s4 + $0x70] sm:$0xff]  ;;  %v13294_v22 = vld [vmem:[#allocation5 + $0x258] ss:$48 sps:$4 sm:$0xff]   ;;  %s12406_s4 = sshll.u32 %s15702_s18, 4 }
 0x2ea   : > { %v16228_v23 = vpack.c.bf16 %v1283_v19, %v1281_v18  ;;  %v13299_v24 = vld [vmem:[#allocation5 + $0x2b4] ss:$48 sps:$4 sm:$0xff]   ;;  %v13302_v25 = vld [vmem:[#allocation5 + $0x2bc] ss:$48 sps:$4 sm:$0xff]   ;;  %v13297_v26 = vld [vmem:[#allocation5 + $0x2b0] ss:$48 sps:$4 sm:$0xff]  }
 0x2eb   : > { %v13300_v27 = vld [vmem:[#allocation5 + $0x2b8] ss:$48 sps:$4 sm:$0xff]   ;;  %v13305_v28 = vld [vmem:[#allocation5 + $0x314] ss:$48 sps:$4 sm:$0xff]   ;;  %v13308_v29 = vld [vmem:[#allocation5 + $0x31c] ss:$48 sps:$4 sm:$0xff]  }
 0x2ec   : > { %1969 = vmatpush1.bf16.msra.mxu0 %v13247_v33  ;;  %2042 = vmatpush1.bf16.msra.mxu1 %v13248_v34  ;;  %v13303_v30 = vld [vmem:[#allocation5 + $0x310] ss:$48 sps:$4 sm:$0xff]   ;;  %v13306_v31 = vld [vmem:[#allocation5 + $0x318] ss:$48 sps:$4 sm:$0xff]   ;;  %v13311_v33 = vld [vmem:[#allocation5 + $0x24] ss:$48 sps:$4 sm:$0xff]  }
 0x2ed   : > { %1970 = vmatprep.subr.bf16.mxu0 %v13249_v35  ;;  %2043 = vmatprep.subr.bf16.mxu1 %v13251_v36  ;;  %v13314_v34 = vld [vmem:[#allocation5 + $0x2c] ss:$48 sps:$4 sm:$0xff]   ;;  %v13309_v35 = vld [vmem:[#allocation5 + $0x20] ss:$48 sps:$4 sm:$0xff]   ;;  %v13312_v36 = vld [vmem:[#allocation5 + $0x28] ss:$48 sps:$4 sm:$0xff]  }
 0x2ee   : > { %v13315_v39 = vld [vmem:[#allocation5 + $0x80] ss:$48 sps:$4 sm:$0xff]   ;;  %v13318_v40 = vld [vmem:[#allocation5 + $0x88] ss:$48 sps:$4 sm:$0xff]   ;;  %v13329_v46 = vld [vmem:[#allocation5 + $0x144] ss:$48 sps:$4 sm:$0xff]  }
 0x2ef   : > { %v13324_v45 = vld [vmem:[#allocation5 + $0xe8] ss:$48 sps:$4 sm:$0xff]   ;;  %v13341_v55 = vld [vmem:[#allocation5 + $0x204] ss:$48 sps:$4 sm:$0xff]   ;;  %v13339_v58 = vld [vmem:[#allocation5 + $0x200] ss:$48 sps:$4 sm:$0xff]  }
 0x2f0   : > { %1971 = vmatpush1.bf16.msra.mxu0 %v13253_v37  ;;  %2044 = vmatpush1.bf16.msra.mxu1 %v13254_v38  ;;  %v13317_v37 = vld [vmem:[#allocation5 + $0x84] ss:$48 sps:$4 sm:$0xff]   ;;  %v13320_v38 = vld [vmem:[#allocation5 + $0x8c] ss:$48 sps:$4 sm:$0xff]   ;;  %v13336_v54 = vld [vmem:[#allocation5 + $0x1a8] ss:$48 sps:$4 sm:$0xff]  }
 0x2f1   : > { %2100 = vmatprep.subr.bf16.mxu0 %v13257_v41  ;;  %2173 = vmatprep.subr.bf16.mxu1 %v13260_v42  ;;  %v13323_v41 = vld [vmem:[#allocation5 + $0xe4] ss:$48 sps:$4 sm:$0xff]   ;;  %v13326_v42 = vld [vmem:[#allocation5 + $0xec] ss:$48 sps:$4 sm:$0xff]   ;;  %v13342_v59 = vld [vmem:[#allocation5 + $0x208] ss:$48 sps:$4 sm:$0xff]  }
 0x2f2   : > { %v13354_v4 = vld [vmem:[#allocation5 + $0x2c8] ss:$48 sps:$4 sm:$0xff]   ;;  %v13359_v5 = vld [vmem:[#allocation5 + $0x324] ss:$48 sps:$4 sm:$0xff]  }
 0x2f3   : > { %1987 = vmatmul.mubr.bf16.vlgmr.msra.gmra.mrb[0].mxu0 %v16186_v44  ;;  %2060 = vmatmul.mubr.bf16.vlgmr.msra.gmra.mrb[0].mxu1 %v16186_v44 }
 0x2f4   : > { %2101 = vmatpush1.bf16.msra.mxu0 %v13255_v43  ;;  %2174 = vmatpush1.bf16.msra.mxu1 %v13258_v47  ;;  %v13321_v43 = vld [vmem:[#allocation5 + $0xe0] ss:$48 sps:$4 sm:$0xff]   ;;  %v13332_v47 = vld [vmem:[#allocation5 + $0x14c] ss:$48 sps:$4 sm:$0xff]  }
 0x2f5   : > { %2102 = vmatprep.subr.bf16.mxu0 %v13263_v48  ;;  %2175 = vmatprep.subr.bf16.mxu1 %v13266_v49  ;;  %v13327_v48 = vld [vmem:[#allocation5 + $0x140] ss:$48 sps:$4 sm:$0xff]   ;;  %v13330_v49 = vld [vmem:[#allocation5 + $0x148] ss:$48 sps:$4 sm:$0xff]  }
 0x2f6   : > { %11403 = vmatprep.mubr.msk.bf16.mxu0 %vm1941_vm0, %v16190_v51  ;;  %11407 = vmatprep.mubr.msk.bf16.mxu1 %vm1941_vm0, %v16190_v51 }
 0x2f8   : > { %2103 = vmatpush1.bf16.msra.mxu0 %v13261_v50  ;;  %2176 = vmatpush1.bf16.msra.mxu1 %v13264_v52  ;;  %v13335_v50 = vld [vmem:[#allocation5 + $0x1a4] ss:$48 sps:$4 sm:$0xff]   ;;  %v13338_v52 = vld [vmem:[#allocation5 + $0x1ac] ss:$48 sps:$4 sm:$0xff]  }
 0x2f9   : > { %2104 = vmatprep.subr.bf16.mxu0 %v13269_v53  ;;  %2177 = vmatprep.subr.bf16.mxu1 %v13272_v56  ;;  %v13333_v53 = vld [vmem:[#allocation5 + $0x1a0] ss:$48 sps:$4 sm:$0xff]   ;;  %v13344_v56 = vld [vmem:[#allocation5 + $0x20c] ss:$48 sps:$4 sm:$0xff]  }
 0x2fb   : > { %1997 = vmatmul.mubr.bf16.gmra.mrb[4].mxu0 %v16200_v57  ;;  %2070 = vmatmul.mubr.bf16.gmra.mrb[4].mxu1 %v16200_v57 }
 0x2fc   : > { %2105 = vmatpush1.bf16.msra.mxu0 %v13267_v60  ;;  %2178 = vmatpush1.bf16.msra.mxu1 %v13270_v61  ;;  %v13347_v60 = vld [vmem:[#allocation5 + $0x264] ss:$48 sps:$4 sm:$0xff]   ;;  %v13350_v61 = vld [vmem:[#allocation5 + $0x26c] ss:$48 sps:$4 sm:$0xff]  }
 0x2fd   : > { %2106 = vmatprep.subr.bf16.mxu0 %v13275_v62  ;;  %2179 = vmatprep.subr.bf16.mxu1 %v13278_v63  ;;  %v13345_v62 = vld [vmem:[#allocation5 + $0x260] ss:$48 sps:$4 sm:$0xff]   ;;  %v13348_v63 = vld [vmem:[#allocation5 + $0x268] ss:$48 sps:$4 sm:$0xff]  }
 0x2fe   : > { %11404 = vmatprep.mubr.msk.bf16.mxu0 %vm1941_vm0, %v16204_v1  ;;  %11408 = vmatprep.mubr.msk.bf16.mxu1 %vm1941_vm0, %v16204_v1 }
 0x300   : > { %2107 = vmatpush1.bf16.msra.mxu0 %v13273_v0  ;;  %2180 = vmatpush1.bf16.msra.mxu1 %v13276_v2  ;;  %v13353_v0 = vld [vmem:[#allocation5 + $0x2c4] ss:$48 sps:$4 sm:$0xff]   ;;  %v13356_v2 = vld [vmem:[#allocation5 + $0x2cc] ss:$48 sps:$4 sm:$0xff]  }
 0x301   : > { %2108 = vmatprep.subr.bf16.mxu0 %v13281_v3  ;;  %2181 = vmatprep.subr.bf16.mxu1 %v13284_v6  ;;  %v13351_v3 = vld [vmem:[#allocation5 + $0x2c0] ss:$48 sps:$4 sm:$0xff]   ;;  %v13362_v6 = vld [vmem:[#allocation5 + $0x32c] ss:$48 sps:$4 sm:$0xff]  }
 0x303   : > { %2007 = vmatmul.mubr.bf16.gmra.mrb[8].mxu0 %v16214_v9  ;;  %2080 = vmatmul.mubr.bf16.gmra.mrb[8].mxu1 %v16214_v9 }
 0x304   : > { %2109 = vmatpush1.bf16.msra.mxu0 %v13279_v7  ;;  %2182 = vmatpush1.bf16.msra.mxu1 %v13282_v8  ;;  %v13357_v7 = vld [vmem:[#allocation5 + $0x320] ss:$48 sps:$4 sm:$0xff]   ;;  %v13360_v8 = vld [vmem:[#allocation5 + $0x328] ss:$48 sps:$4 sm:$0xff]  }
 0x305   : > { %2110 = vmatprep.subr.bf16.mxu0 %v13287_v12  ;;  %2183 = vmatprep.subr.bf16.mxu1 %v13290_v13 }
 0x306   : > { %11405 = vmatprep.mubr.msk.bf16.mxu0 %vm1941_vm0, %v16218_v16  ;;  %11409 = vmatprep.mubr.msk.bf16.mxu1 %vm1941_vm0, %v16218_v16 }
 0x308   : > { %2111 = vmatpush1.bf16.msra.mxu0 %v13285_v14  ;;  %2184 = vmatpush1.bf16.msra.mxu1 %v13288_v15 }
 0x309   : > { %2112 = vmatprep.subr.bf16.mxu0 %v13293_v17  ;;  %2185 = vmatprep.subr.bf16.mxu1 %v13296_v20 }
 0x30b   : > { %2017 = vmatmul.mubr.bf16.gmra.mrb[12].mxu0 %v16228_v23  ;;  %2090 = vmatmul.mubr.bf16.gmra.mrb[12].mxu1 %v16228_v23 }
 0x30c   : > { %2113 = vmatpush1.bf16.msra.mxu0 %v13291_v21  ;;  %2186 = vmatpush1.bf16.msra.mxu1 %v13294_v22 }
 0x30d   : > { %2114 = vmatprep.subr.bf16.mxu0 %v13299_v24  ;;  %2187 = vmatprep.subr.bf16.mxu1 %v13302_v25 }
 0x30e   : > { %11410 = vmatprep.mubr.msk.bf16.mxu0 %vm1941_vm0, %v16178_v32  ;;  %11414 = vmatprep.mubr.msk.bf16.mxu1 %vm1941_vm0, %v16178_v32 }
 0x310   : > { %2115 = vmatpush1.bf16.msra.mxu0 %v13297_v26  ;;  %2188 = vmatpush1.bf16.msra.mxu1 %v13300_v27 }
 0x311   : > { %2116 = vmatprep.subr.bf16.mxu0 %v13305_v28  ;;  %2189 = vmatprep.subr.bf16.mxu1 %v13308_v29 }
 0x314   : > { %2117 = vmatpush1.bf16.msra.mxu0 %v13303_v30  ;;  %2190 = vmatpush1.bf16.msra.mxu1 %v13306_v31 }
 0x315   : > { %2246 = vmatprep.subr.bf16.mxu0 %v13311_v33  ;;  %2319 = vmatprep.subr.bf16.mxu1 %v13314_v34 }
 0x317   : > { %2133 = vmatmul.mubr.bf16.vlgmr.msra.gmra.mrb[16].mxu0 %v16186_v44  ;;  %2206 = vmatmul.mubr.bf16.vlgmr.msra.gmra.mrb[16].mxu1 %v16186_v44 }
 0x318   : > { %2247 = vmatpush1.bf16.msra.mxu0 %v13309_v35  ;;  %2320 = vmatpush1.bf16.msra.mxu1 %v13312_v36 }
 0x319   : > { %2248 = vmatprep.subr.bf16.mxu0 %v13317_v37  ;;  %2321 = vmatprep.subr.bf16.mxu1 %v13320_v38 }
 0x31a   : > { %11411 = vmatprep.mubr.msk.bf16.mxu0 %vm1941_vm0, %v16190_v51  ;;  %11415 = vmatprep.mubr.msk.bf16.mxu1 %vm1941_vm0, %v16190_v51 }
 0x31c   : > { %2249 = vmatpush1.bf16.msra.mxu0 %v13315_v39  ;;  %2322 = vmatpush1.bf16.msra.mxu1 %v13318_v40 }
 0x31d   : > { %2250 = vmatprep.subr.bf16.mxu0 %v13323_v41  ;;  %2323 = vmatprep.subr.bf16.mxu1 %v13326_v42 }
 0x31f   : > { %2143 = vmatmul.mubr.bf16.gmra.mrb[20].mxu0 %v16200_v57  ;;  %2216 = vmatmul.mubr.bf16.gmra.mrb[20].mxu1 %v16200_v57 }
 0x320   : > { %2251 = vmatpush1.bf16.msra.mxu0 %v13321_v43  ;;  %2324 = vmatpush1.bf16.msra.mxu1 %v13324_v45 }
 0x321   : > { %2252 = vmatprep.subr.bf16.mxu0 %v13329_v46  ;;  %2325 = vmatprep.subr.bf16.mxu1 %v13332_v47 }
 0x322   : > { %11412 = vmatprep.mubr.msk.bf16.mxu0 %vm1941_vm0, %v16204_v1  ;;  %11416 = vmatprep.mubr.msk.bf16.mxu1 %vm1941_vm0, %v16204_v1 }
 0x324   : > { %2253 = vmatpush1.bf16.msra.mxu0 %v13327_v48  ;;  %2326 = vmatpush1.bf16.msra.mxu1 %v13330_v49 }
 0x325   : > { %2254 = vmatprep.subr.bf16.mxu0 %v13335_v50  ;;  %2327 = vmatprep.subr.bf16.mxu1 %v13338_v52 }
 0x327   : > { %2153 = vmatmul.mubr.bf16.gmra.mrb[24].mxu0 %v16214_v9  ;;  %2226 = vmatmul.mubr.bf16.gmra.mrb[24].mxu1 %v16214_v9 }
 0x328   : > { %2255 = vmatpush1.bf16.msra.mxu0 %v13333_v53  ;;  %2328 = vmatpush1.bf16.msra.mxu1 %v13336_v54 }
 0x329   : > { %2256 = vmatprep.subr.bf16.mxu0 %v13341_v55  ;;  %2329 = vmatprep.subr.bf16.mxu1 %v13344_v56 }
 0x32a   : > { %11413 = vmatprep.mubr.msk.bf16.mxu0 %vm1941_vm0, %v16218_v16  ;;  %11417 = vmatprep.mubr.msk.bf16.mxu1 %vm1941_vm0, %v16218_v16 }
 0x32c   : > { %2257 = vmatpush1.bf16.msra.mxu0 %v13339_v58  ;;  %2330 = vmatpush1.bf16.msra.mxu1 %v13342_v59 }
 0x32d   : > { %2258 = vmatprep.subr.bf16.mxu0 %v13347_v60  ;;  %2331 = vmatprep.subr.bf16.mxu1 %v13350_v61 }
 0x32f   : > { %2163 = vmatmul.mubr.bf16.gmra.mrb[28].mxu0 %v16228_v23  ;;  %2236 = vmatmul.mubr.bf16.gmra.mrb[28].mxu1 %v16228_v23 }
 0x330   : > { %2259 = vmatpush1.bf16.msra.mxu0 %v13345_v62  ;;  %2332 = vmatpush1.bf16.msra.mxu1 %v13348_v63 }
 0x331   : > { %2260 = vmatprep.subr.bf16.mxu0 %v13353_v0  ;;  %2333 = vmatprep.subr.bf16.mxu1 %v13356_v2 }
 0x332   : > { %11418 = vmatprep.mubr.msk.bf16.mxu0 %vm1941_vm0, %v16178_v32  ;;  %11422 = vmatprep.mubr.msk.bf16.mxu1 %vm1941_vm0, %v16178_v32  ;;  %v13365_v32 = vld [vmem:[#allocation7 + $0x4] ss:$8 sps:$4 sm:$0xff]  }
 0x334   : > { %2261 = vmatpush1.bf16.msra.mxu0 %v13351_v3  ;;  %2334 = vmatpush1.bf16.msra.mxu1 %v13354_v4 }
 0x335   : > { %2262 = vmatprep.subr.bf16.mxu0 %v13359_v5  ;;  %2335 = vmatprep.subr.bf16.mxu1 %v13362_v6 }
 0x338   : > { %2263 = vmatpush1.bf16.msra.mxu0 %v13357_v7  ;;  %2336 = vmatpush1.bf16.msra.mxu1 %v13360_v8 }
 0x33b   : > { %2279 = vmatmul.mubr.bf16.vlgmr.msra.gmra.mrb[32].mxu0 %v16186_v44  ;;  %2352 = vmatmul.mubr.bf16.vlgmr.msra.gmra.mrb[32].mxu1 %v16186_v44 }
 0x33c   : > { %11419 = vmatprep.mubr.msk.bf16.mxu0 %vm1941_vm0, %v16190_v51  ;;  %11423 = vmatprep.mubr.msk.bf16.mxu1 %vm1941_vm0, %v16190_v51 }
 0x343   : > { %2289 = vmatmul.mubr.bf16.gmra.mrb[36].mxu0 %v16200_v57  ;;  %2362 = vmatmul.mubr.bf16.gmra.mrb[36].mxu1 %v16200_v57 }
 0x344   : > { %11420 = vmatprep.mubr.msk.bf16.mxu0 %vm1941_vm0, %v16204_v1  ;;  %11424 = vmatprep.mubr.msk.bf16.mxu1 %vm1941_vm0, %v16204_v1 }
 0x34b   : > { %2299 = vmatmul.mubr.bf16.gmra.mrb[40].mxu0 %v16214_v9  ;;  %2372 = vmatmul.mubr.bf16.gmra.mrb[40].mxu1 %v16214_v9 }
 0x34c   : > { %11421 = vmatprep.mubr.msk.bf16.mxu0 %vm1941_vm0, %v16218_v16  ;;  %11425 = vmatprep.mubr.msk.bf16.mxu1 %vm1941_vm0, %v16218_v16 }
 0x353   : > { %2309 = vmatmul.mubr.bf16.gmra.mrb[44].mxu0 %v16228_v23  ;;  %2382 = vmatmul.mubr.bf16.gmra.mrb[44].mxu1 %v16228_v23 }
 0x354   : > { %2513 = vmatprep.mubr.bf16.mxu0 %v13365_v32  ;;  %2566 = vmatprep.mubr.bf16.mxu1 %v13365_v32 }
 0x3c6   : > { %v1988_v44 = vpop.f32.mrb[0].mxu0  ;;  %v16280_v51 = vpop.f32.mrb[0].mxu1 }
 0x3c7   : > { %v1990_v57 = vpop.f32.mrb[1].mxu0  ;;  %v16282_v1 = vpop.f32.mrb[1].mxu1 }
 0x3c8   : > { %v1992_v9 = vpop.f32.mrb[2].mxu0  ;;  %v16284_v10 = vpop.f32.mrb[2].mxu1 }
 0x3c9   : > { %v2396_v11 = vpack.c.bf16 %v1992_v9, %v1988_v44  ;;  %v2398_v12 = vpack.c.bf16 %v16284_v10, %v16280_v51  ;;  %v1994_v13 = vpop.f32.mrb[3].mxu0  ;;  %v2067_v14 = vpop.f32.mrb[3].mxu1 }
 0x3ca   : > { %v2397_v15 = vpack.c.bf16 %v1994_v13, %v1990_v57  ;;  %v2408_v16 = vpack.c.bf16 %v2067_v14, %v16282_v1 }
 0x3cc   : > { %2481 = vmatprep.subr.bf16.mxu0 %v2397_v15 }
 0x3cd   : > { %2482 = vmatpush1.bf16.msra.mxu0 %v2396_v11 }
 0x3ce   : > { %v1998_v17 = vpop.f32.mrb[4].mxu0  ;;  %v16289_v18 = vpop.f32.mrb[4].mxu1 }
 0x3cf   : > { %v2000_v19 = vpop.f32.mrb[5].mxu0  ;;  %v16291_v20 = vpop.f32.mrb[5].mxu1 }
 0x3d0   : > { %v2002_v21 = vpop.f32.mrb[6].mxu0  ;;  %v16293_v22 = vpop.f32.mrb[6].mxu1 }
 0x3d1   : > { %v2399_v23 = vpack.c.bf16 %v2002_v21, %v1998_v17  ;;  %v2004_v24 = vpop.f32.mrb[7].mxu0  ;;  %v2401_v25 = vpack.c.bf16 %v16293_v22, %v16289_v18  ;;  %v2077_v26 = vpop.f32.mrb[7].mxu1 }
 0x3d2   : > { %v2400_v27 = vpack.c.bf16 %v2004_v24, %v2000_v19  ;;  %v2411_v28 = vpack.c.bf16 %v2077_v26, %v16291_v20 }
 0x3d4   : > { %2483 = vmatprep.subr.bf16.mxu0 %v2400_v27 }
 0x3d5   : > { %2484 = vmatpush1.bf16.msra.mxu0 %v2399_v23 }
 0x3d6   : > { %v2008_v29 = vpop.f32.mrb[8].mxu0  ;;  %v16298_v30 = vpop.f32.mrb[8].mxu1 }
 0x3d7   : > { %v2010_v31 = vpop.f32.mrb[9].mxu0  ;;  %v16300_v33 = vpop.f32.mrb[9].mxu1 }
 0x3d8   : > { %v2012_v34 = vpop.f32.mrb[10].mxu0  ;;  %v16302_v35 = vpop.f32.mrb[10].mxu1 }
 0x3d9   : > { %v2402_v36 = vpack.c.bf16 %v2012_v34, %v2008_v29  ;;  %v2014_v37 = vpop.f32.mrb[11].mxu0  ;;  %v2404_v38 = vpack.c.bf16 %v16302_v35, %v16298_v30  ;;  %v2087_v39 = vpop.f32.mrb[11].mxu1  ;;  %v13366_v30 = vld [vmem:[#allocation7 + $0x14] ss:$8 sps:$4 sm:$0xff]  }
 0x3da   : > { %v2403_v40 = vpack.c.bf16 %v2014_v37, %v2010_v31  ;;  %v2414_v41 = vpack.c.bf16 %v2087_v39, %v16300_v33  ;;  %v13372_v35 = vld [vmem:[%s17230_s13 + $0x8] ss:$24 sps:$4 sm:$0xff]  }
 0x3dc   : > { %2485 = vmatprep.subr.bf16.mxu0 %v2403_v40 }
 0x3dd   : > { %2486 = vmatpush1.bf16.msra.mxu0 %v2402_v36 }
 0x3de   : > { %v2018_v42 = vpop.f32.mrb[12].mxu0  ;;  %v16307_v43 = vpop.f32.mrb[12].mxu1 }
 0x3df   : > { %v2020_v45 = vpop.f32.mrb[13].mxu0  ;;  %v16309_v46 = vpop.f32.mrb[13].mxu1 }
 0x3e0   : > { %v2022_v47 = vpop.f32.mrb[14].mxu0  ;;  %v16311_v48 = vpop.f32.mrb[14].mxu1 }
 0x3e1   : > { %v2405_v49 = vpack.c.bf16 %v2022_v47, %v2018_v42  ;;  %v2024_v50 = vpop.f32.mrb[15].mxu0  ;;  %v2407_v52 = vpack.c.bf16 %v16311_v48, %v16307_v43  ;;  %v2097_v53 = vpop.f32.mrb[15].mxu1  ;;  %v13384_v43 = vld [vmem:[%s17230_s13 + $0x68] ss:$24 sps:$4 sm:$0xff]   ;;  %v13392_v48 = vld [vmem:[%s17230_s13 + $0x9c] ss:$24 sps:$4 sm:$0xff]  }
 0x3e2   : > { %v2406_v54 = vpack.c.bf16 %v2024_v50, %v2020_v45  ;;  %v2417_v55 = vpack.c.bf16 %v2097_v53, %v16309_v46 }
 0x3e4   : > { %2487 = vmatprep.subr.bf16.mxu0 %v2406_v54 }
 0x3e5   : > { %2488 = vmatpush1.bf16.msra.mxu0 %v2405_v49 }
 0x3ea   : > { %v2134_v56 = vpop.f32.mrb[16].mxu0  ;;  %v2207_v58 = vpop.f32.mrb[16].mxu1 }
 0x3eb   : > { %v16316_v59 = vpop.f32.mrb[17].mxu0  ;;  %v2209_v60 = vpop.f32.mrb[17].mxu1 }
 0x3ec   : > { %v2138_v61 = vpop.f32.mrb[18].mxu0  ;;  %v2211_v62 = vpop.f32.mrb[18].mxu1 }
 0x3ed   : > { %v2409_v63 = vpack.c.bf16 %v2138_v61, %v2134_v56  ;;  %v2420_v0 = vpack.c.bf16 %v2211_v62, %v2207_v58  ;;  %v16318_v2 = vpop.f32.mrb[19].mxu0  ;;  %v2213_v3 = vpop.f32.mrb[19].mxu1 }
 0x3ee   : > { %v2410_v4 = vpack.c.bf16 %v16318_v2, %v16316_v59  ;;  %v2421_v5 = vpack.c.bf16 %v2213_v3, %v2209_v60  ;;  %v13390_v59 = vld [vmem:[%s17230_s13 + $0x98] ss:$24 sps:$4 sm:$0xff]   ;;  %v13398_v2 = vld [vmem:[%s17230_s13 + $0xcc] ss:$24 sps:$4 sm:$0xff]  }
 0x3ef   : > { %2489 = vmatprep.subr.bf16.mxu0 %v2409_v63 }
 0x3f0   : > { %2490 = vmatpush1.bf16.msra.mxu0 %v2408_v16 }
 0x3f2   : > { %v2144_v6 = vpop.f32.mrb[20].mxu0  ;;  %v2217_v7 = vpop.f32.mrb[20].mxu1 }
 0x3f3   : > { %v16322_v8 = vpop.f32.mrb[21].mxu0  ;;  %v2219_v32 = vpop.f32.mrb[21].mxu1 }
 0x3f4   : > { %v2148_v44 = vpop.f32.mrb[22].mxu0  ;;  %v2221_v57 = vpop.f32.mrb[22].mxu1 }
 0x3f5   : > { %v2412_v1 = vpack.c.bf16 %v2148_v44, %v2144_v6  ;;  %v2423_v9 = vpack.c.bf16 %v2221_v57, %v2217_v7  ;;  %v16324_v11 = vpop.f32.mrb[23].mxu0  ;;  %v2223_v13 = vpop.f32.mrb[23].mxu1 }
 0x3f6   : > { %v2413_v14 = vpack.c.bf16 %v16324_v11, %v16322_v8  ;;  %v2424_v15 = vpack.c.bf16 %v2223_v13, %v2219_v32  ;;  %v13377_v8 = vld [vmem:[%s17230_s13 + $0x34] ss:$24 sps:$4 sm:$0xff]   ;;  %v13396_v11 = vld [vmem:[%s17230_s13 + $0xc8] ss:$24 sps:$4 sm:$0xff]  }
 0x3f7   : > { %2491 = vmatprep.subr.bf16.mxu0 %v2412_v1 }
 0x3f8   : > { %2492 = vmatpush1.bf16.msra.mxu0 %v2411_v28 }
 0x3fa   : > { %v2154_v17 = vpop.f32.mrb[24].mxu0  ;;  %v2227_v16 = vpop.f32.mrb[24].mxu1 }
 0x3fb   : > { %v16328_v19 = vpop.f32.mrb[25].mxu0  ;;  %v2229_v20 = vpop.f32.mrb[25].mxu1 }
 0x3fc   : > { %v2158_v21 = vpop.f32.mrb[26].mxu0  ;;  %v2231_v23 = vpop.f32.mrb[26].mxu1 }
 0x3fd   : > { %v2415_v24 = vpack.c.bf16 %v2158_v21, %v2154_v17  ;;  %v2426_v26 = vpack.c.bf16 %v2231_v23, %v2227_v16  ;;  %v16330_v27 = vpop.f32.mrb[27].mxu0  ;;  %v2233_v29 = vpop.f32.mrb[27].mxu1 }
 0x3fe   : > { %v2416_v31 = vpack.c.bf16 %v16330_v27, %v16328_v19  ;;  %v2427_v33 = vpack.c.bf16 %v2233_v29, %v2229_v20  ;;  %v13375_v19 = vld [vmem:[%s17230_s13 + $0x30] ss:$24 sps:$4 sm:$0xff]   ;;  %v13383_v27 = vld [vmem:[%s17230_s13 + $0x64] ss:$24 sps:$4 sm:$0xff]  }
 0x3ff   : > { %2493 = vmatprep.subr.bf16.mxu0 %v2415_v24 }
 0x400   : > { %2494 = vmatpush1.bf16.msra.mxu0 %v2414_v41 }
 0x402   : > { %v2164_v34 = vpop.f32.mrb[28].mxu0  ;;  %v2237_v28 = vpop.f32.mrb[28].mxu1 }
 0x403   : > { %v16334_v36 = vpop.f32.mrb[29].mxu0  ;;  %v2239_v37 = vpop.f32.mrb[29].mxu1 }
 0x404   : > { %v2168_v39 = vpop.f32.mrb[30].mxu0  ;;  %v2241_v40 = vpop.f32.mrb[30].mxu1 }
 0x405   : > { %v2418_v42 = vpack.c.bf16 %v2168_v39, %v2164_v34  ;;  %v2429_v45 = vpack.c.bf16 %v2241_v40, %v2237_v28  ;;  %v16336_v46 = vpop.f32.mrb[31].mxu0  ;;  %v2243_v47 = vpop.f32.mrb[31].mxu1  ;;  %v13374_v39 = vld [vmem:[%s17230_s13 + $0xc] ss:$24 sps:$4 sm:$0xff]  }
 0x406   : > { %v2419_v49 = vpack.c.bf16 %v16336_v46, %v16334_v36  ;;  %v2430_v50 = vpack.c.bf16 %v2243_v47, %v2239_v37  ;;  %v13381_v36 = vld [vmem:[%s17230_s13 + $0x60] ss:$24 sps:$4 sm:$0xff]   ;;  %v13389_v46 = vld [vmem:[%s17230_s13 + $0x94] ss:$24 sps:$4 sm:$0xff]  }
 0x407   : > { %2495 = vmatprep.subr.bf16.mxu0 %v2418_v42 }
 0x408   : > { %2496 = vmatpush1.bf16.msra.mxu0 %v2417_v55 }
 0x409   : > { %2497 = vmatprep.subr.bf16.mxu0 %v2421_v5 }
 0x40c   : > { %2498 = vmatpush1.bf16.msra.mxu0 %v2420_v0 }
 0x40d   : > { %2499 = vmatprep.subr.bf16.mxu0 %v2424_v15 }
 0x40e   : > { %v2280_v41 = vpop.f32.mrb[32].mxu0  ;;  %v2353_v53 = vpop.f32.mrb[32].mxu1 }
 0x40f   : > { %v2282_v54 = vpop.f32.mrb[33].mxu0  ;;  %v16340_v56 = vpop.f32.mrb[33].mxu1 }
 0x410   : > { %v2284_v58 = vpop.f32.mrb[34].mxu0  ;;  %v2357_v60 = vpop.f32.mrb[34].mxu1  ;;  %2500 = vmatpush1.bf16.msra.mxu0 %v2423_v9 }
 0x411   : > { %v2422_v61 = vpack.c.bf16 %v2284_v58, %v2280_v41  ;;  %v2433_v62 = vpack.c.bf16 %v2357_v60, %v2353_v53  ;;  %v2286_v63 = vpop.f32.mrb[35].mxu0  ;;  %v16342_v3 = vpop.f32.mrb[35].mxu1  ;;  %2501 = vmatprep.subr.bf16.mxu0 %v2427_v33  ;;  %v13363_v53 = vld [vmem:[#allocation7] ss:$8 sps:$4 sm:$0xff]   ;;  %v13378_v58 = vld [vmem:[%s17230_s13 + $0x38] ss:$24 sps:$4 sm:$0xff]  }
 0x412   : > { %v2432_v6 = vpack.c.bf16 %v2286_v63, %v2282_v54  ;;  %v2434_v55 = vpack.c.bf16 %v16342_v3, %v16340_v56  ;;  %v13386_v60 = vld [vmem:[%s17230_s13 + $0x6c] ss:$24 sps:$4 sm:$0xff]   ;;  %v13416_v63 = vld [vmem:[%s17230_s13 + $0x15c] ss:$24 sps:$4 sm:$0xff]   ;;  %v13387_v3 = vld [vmem:[%s17230_s13 + $0x90] ss:$24 sps:$4 sm:$0xff]  }
 0x413   : > { %12412 = vmatprep.subr.bf16.mxu1 %v2422_v61  ;;  %v13368_v61 = vld [vmem:[#allocation7 + $0x10] ss:$8 sps:$4 sm:$0xff]  }
 0x414   : > { %2502 = vmatpush1.bf16.msra.mxu0 %v2426_v26  ;;  %12413 = vmatpush3.bf16.msra.mxu1 %v2398_v12 }
 0x415   : > { %2503 = vmatprep.subr.bf16.mxu0 %v2430_v50 }
 0x416   : > { %v2290_v0 = vpop.f32.mrb[36].mxu0  ;;  %v2363_v5 = vpop.f32.mrb[36].mxu1 }
 0x417   : > { %v2292_v7 = vpop.f32.mrb[37].mxu0  ;;  %v2365_v32 = vpop.f32.mrb[37].mxu1 }
 0x418   : > { %v2294_v44 = vpop.f32.mrb[38].mxu0  ;;  %v2367_v57 = vpop.f32.mrb[38].mxu1  ;;  %2504 = vmatpush1.bf16.msra.mxu0 %v2429_v45 }
 0x419   : > { %v2425_v1 = vpack.c.bf16 %v2294_v44, %v2290_v0  ;;  %v2436_v9 = vpack.c.bf16 %v2367_v57, %v2363_v5  ;;  %v2296_v13 = vpop.f32.mrb[39].mxu0  ;;  %v2369_v15 = vpop.f32.mrb[39].mxu1  ;;  %2505 = vmatprep.subr.bf16.mxu0 %v2433_v62  ;;  %v13410_v62 = vld [vmem:[%s17230_s13 + $0x12c] ss:$24 sps:$4 sm:$0xff]   ;;  %v13393_v5 = vld [vmem:[%s17230_s13 + $0xc0] ss:$24 sps:$4 sm:$0xff]  }
 0x41a   : > { %v2435_v17 = vpack.c.bf16 %v2296_v13, %v2292_v7  ;;  %v2437_v16 = vpack.c.bf16 %v2369_v15, %v2365_v32  ;;  %v13422_v0 = vld [vmem:[%s17230_s13 + $0x18c] ss:$24 sps:$4 sm:$0xff]   ;;  %v13420_v32 = vld [vmem:[%s17230_s13 + $0x188] ss:$24 sps:$4 sm:$0xff]   ;;  %v13428_v44 = vld [vmem:[%s17230_s13 + $0x1bc] ss:$24 sps:$4 sm:$0xff]  }
 0x41b   : > { %12414 = vmatprep.subr.bf16.mxu1 %v2425_v1  ;;  %v13401_v7 = vld [vmem:[%s17230_s13 + $0xf4] ss:$24 sps:$4 sm:$0xff]   ;;  %v13399_v57 = vld [vmem:[%s17230_s13 + $0xf0] ss:$24 sps:$4 sm:$0xff]   ;;  %v13407_v1 = vld [vmem:[%s17230_s13 + $0x124] ss:$24 sps:$4 sm:$0xff]  }
 0x41c   : > { %2506 = vmatpush1.bf16.msra.mxu0 %v2432_v6  ;;  %12415 = vmatpush3.bf16.msra.mxu1 %v2401_v25  ;;  %v13395_v6 = vld [vmem:[%s17230_s13 + $0xc4] ss:$24 sps:$4 sm:$0xff]   ;;  %v13405_v15 = vld [vmem:[%s17230_s13 + $0x120] ss:$24 sps:$4 sm:$0xff]  }
 0x41d   : > { %2507 = vmatprep.subr.bf16.mxu0 %v2436_v9  ;;  %v13426_v9 = vld [vmem:[%s17230_s13 + $0x1b8] ss:$24 sps:$4 sm:$0xff]   ;;  %v13434_v13 = vld [vmem:[%s17230_s13 + $0x1ec] ss:$24 sps:$4 sm:$0xff]  }
 0x41e   : > { %v2300_v51 = vpop.f32.mrb[40].mxu0  ;;  %v2373_v10 = vpop.f32.mrb[40].mxu1 }
 0x41f   : > { %v2302_v12 = vpop.f32.mrb[41].mxu0  ;;  %v2375_v20 = vpop.f32.mrb[41].mxu1 }
 0x420   : > { %v2304_v21 = vpop.f32.mrb[42].mxu0  ;;  %v2377_v23 = vpop.f32.mrb[42].mxu1  ;;  %2508 = vmatpush1.bf16.msra.mxu0 %v2435_v17  ;;  %v13413_v17 = vld [vmem:[%s17230_s13 + $0x154] ss:$24 sps:$4 sm:$0xff]  }
 0x421   : > { %v2428_v24 = vpack.c.bf16 %v2304_v21, %v2300_v51  ;;  %v2439_v26 = vpack.c.bf16 %v2377_v23, %v2373_v10  ;;  %v2306_v29 = vpop.f32.mrb[43].mxu0  ;;  %v2379_v33 = vpop.f32.mrb[43].mxu1  ;;  %v13440_v51 = vld [vmem:[%s17230_s13 + $0x21c] ss:$24 sps:$4 sm:$0xff]   ;;  %v13411_v10 = vld [vmem:[%s17230_s13 + $0x150] ss:$24 sps:$4 sm:$0xff]  }
 0x422   : > { %v2438_v34 = vpack.c.bf16 %v2306_v29, %v2302_v12  ;;  %v2440_v28 = vpack.c.bf16 %v2379_v33, %v2375_v20  ;;  %v13419_v12 = vld [vmem:[%s17230_s13 + $0x184] ss:$24 sps:$4 sm:$0xff]   ;;  %v13438_v20 = vld [vmem:[%s17230_s13 + $0x218] ss:$24 sps:$4 sm:$0xff]  }
 0x423   : > { %2509 = vmatprep.subr.bf16.mxu0 %v2439_v26  ;;  %12416 = vmatprep.subr.bf16.mxu1 %v2428_v24  ;;  %v13446_v21 = vld [vmem:[%s17230_s13 + $0x24c] ss:$24 sps:$4 sm:$0xff]   ;;  %v13417_v23 = vld [vmem:[%s17230_s13 + $0x180] ss:$24 sps:$4 sm:$0xff]   ;;  %v13452_v29 = vld [vmem:[%s17230_s13 + $0x27c] ss:$24 sps:$4 sm:$0xff]  }
 0x424   : > { %2510 = vmatpush1.bf16.msra.mxu0 %v2438_v34  ;;  %12417 = vmatpush3.bf16.msra.mxu1 %v2404_v38  ;;  %v13380_v38 = vld [vmem:[%s17230_s13 + $0x3c] ss:$24 sps:$4 sm:$0xff]   ;;  %v13444_v26 = vld [vmem:[%s17230_s13 + $0x248] ss:$24 sps:$4 sm:$0xff]  }
 0x425   : > { %v13425_v24 = vld [vmem:[%s17230_s13 + $0x1b4] ss:$24 sps:$4 sm:$0xff]   ;;  %v13423_v33 = vld [vmem:[%s17230_s13 + $0x1b0] ss:$24 sps:$4 sm:$0xff]   ;;  %v13431_v34 = vld [vmem:[%s17230_s13 + $0x1e4] ss:$24 sps:$4 sm:$0xff]  }
 0x426   : > { %v2310_v18 = vpop.f32.mrb[44].mxu0  ;;  %v2383_v22 = vpop.f32.mrb[44].mxu1 }
 0x427   : > { %v2312_v25 = vpop.f32.mrb[45].mxu0  ;;  %v2385_v37 = vpop.f32.mrb[45].mxu1 }
 0x428   : > { %v2314_v40 = vpop.f32.mrb[46].mxu0  ;;  %v2387_v42 = vpop.f32.mrb[46].mxu1 }
 0x429   : > { %v2431_v45 = vpack.c.bf16 %v2314_v40, %v2310_v18  ;;  %v2442_v47 = vpack.c.bf16 %v2387_v42, %v2383_v22  ;;  %v2316_v50 = vpop.f32.mrb[47].mxu0  ;;  %v2389_v41 = vpop.f32.mrb[47].mxu1  ;;  %v13429_v18 = vld [vmem:[%s17230_s13 + $0x1e0] ss:$24 sps:$4 sm:$0xff]   ;;  %v13437_v22 = vld [vmem:[%s17230_s13 + $0x214] ss:$24 sps:$4 sm:$0xff]  }
 0x42a   : > { %v2441_v54 = vpack.c.bf16 %v2316_v50, %v2312_v25  ;;  %v2443_v56 = vpack.c.bf16 %v2389_v41, %v2385_v37  ;;  %v13435_v25 = vld [vmem:[%s17230_s13 + $0x210] ss:$24 sps:$4 sm:$0xff]   ;;  %v13443_v37 = vld [vmem:[%s17230_s13 + $0x244] ss:$24 sps:$4 sm:$0xff]   ;;  %v13449_v40 = vld [vmem:[%s17230_s13 + $0x274] ss:$24 sps:$4 sm:$0xff]  }
 0x42b   : > { %2511 = vmatprep.subr.bf16.mxu0 %v2442_v47  ;;  %12418 = vmatprep.subr.bf16.mxu1 %v2431_v45  ;;  %v13447_v42 = vld [vmem:[%s17230_s13 + $0x270] ss:$24 sps:$4 sm:$0xff]   ;;  %v13455_v45 = vld [vmem:[%s17230_s13 + $0x2a4] ss:$24 sps:$4 sm:$0xff]   ;;  %v13453_v50 = vld [vmem:[%s17230_s13 + $0x2a0] ss:$24 sps:$4 sm:$0xff]  }
 0x42c   : > { %2512 = vmatpush1.bf16.msra.mxu0 %v2441_v54  ;;  %12419 = vmatpush3.bf16.msra.mxu1 %v2407_v52  ;;  %v13371_v52 = vld [vmem:[%s17230_s13 + $0x4] ss:$24 sps:$4 sm:$0xff]   ;;  %v13456_v41 = vld [vmem:[%s17230_s13 + $0x2a8] ss:$24 sps:$4 sm:$0xff]  }
 0x42d   : > { %12420 = vmatprep.subr.bf16.mxu1 %v2434_v55  ;;  %3595 = vmatprep.subr.bf16.mxu0 %v13374_v39  ;;  %v13414_v55 = vld [vmem:[%s17230_s13 + $0x158] ss:$24 sps:$4 sm:$0xff]   ;;  %v13458_v47 = vld [vmem:[%s17230_s13 + $0x2ac] ss:$24 sps:$4 sm:$0xff]   ;;  %v13464_v54 = vld [vmem:[%s17230_s13 + $0x2dc] ss:$24 sps:$4 sm:$0xff]  }
 0x42e   : > { %v13441_v39 = vld [vmem:[%s17230_s13 + $0x240] ss:$24 sps:$4 sm:$0xff]  }
 0x42f   : > { %2514 = vmatmul.mubr.bf16.vlgmr.msra.gmra.mrb[48].mxu0 %v13363_v53 }
 0x430   : > { %12421 = vmatpush3.bf16.msra.mxu1 %v2410_v4  ;;  %2523 = vmatprep.mubr.bf16.mxu0 %v13366_v30  ;;  %v13369_v4 = vld [vmem:[%s17230_s13] ss:$24 sps:$4 sm:$0xff]  }
 0x431   : > { %12422 = vmatprep.subr.bf16.mxu1 %v2437_v16  ;;  %3596 = vmatpush1.bf16.msra.mxu0 %v13372_v35  ;;  %v13432_v16 = vld [vmem:[%s17230_s13 + $0x1e8] ss:$24 sps:$4 sm:$0xff]   ;;  %v13467_v35 = vld [vmem:[%s17230_s13 + $0x304] ss:$24 sps:$4 sm:$0xff]  }
 0x432   : > { %3597 = vmatprep.subr.bf16.mxu0 %v13380_v38  ;;  %v13470_v38 = vld [vmem:[%s17230_s13 + $0x30c] ss:$24 sps:$4 sm:$0xff]  }
 0x434   : > { %12423 = vmatpush3.bf16.msra.mxu1 %v2413_v14  ;;  %v13404_v14 = vld [vmem:[%s17230_s13 + $0xfc] ss:$24 sps:$4 sm:$0xff]  }
 0x435   : > { %12424 = vmatprep.subr.bf16.mxu1 %v2440_v28  ;;  %3598 = vmatpush1.bf16.msra.mxu0 %v13378_v58  ;;  %v13450_v28 = vld [vmem:[%s17230_s13 + $0x278] ss:$24 sps:$4 sm:$0xff]   ;;  %v2446_v58 = vlaneseq }
 0x436   : > { %3599 = vmatprep.subr.bf16.mxu0 %v13386_v60 }
 0x437   : > { %2524 = vmatmul.mubr.bf16.gmra.mrb[52].mxu0 %v13368_v61  ;;  %v16436_v60 = vshrl.u32 %v2446_v58, 7  ;;  %v13483_v58 = vld [vmem:[%s17230_s13 + $0x390] ss:$24 sps:$4 sm:$0xff]  }
 0x438   : > { %12425 = vmatpush3.bf16.msra.mxu1 %v2416_v31  ;;  %v13402_v31 = vld [vmem:[%s17230_s13 + $0xf8] ss:$24 sps:$4 sm:$0xff]  }
 0x439   : > { %12426 = vmatprep.subr.bf16.mxu1 %v2443_v56  ;;  %3600 = vmatpush1.bf16.msra.mxu0 %v13384_v43  ;;  %v13459_v56 = vld [vmem:[%s17230_s13 + $0x2d0] ss:$24 sps:$4 sm:$0xff]   ;;  %v16441_v43 = vld [vmem:[#allocation8] sm:$0x7] }
 0x43a   : > { %3601 = vmatprep.subr.bf16.mxu0 %v13392_v48  ;;  %v16444_v48 = vsub.s32 1, %v16436_v60 }
 0x43c   : > { %12427 = vmatpush3.bf16.msra.mxu1 %v2419_v49  ;;  %v13408_v49 = vld [vmem:[%s17230_s13 + $0x128] ss:$24 sps:$4 sm:$0xff]  }
 0x43d   : > { %3489 = vmatprep.subr.bf16.mxu1 %v13371_v52  ;;  %3602 = vmatpush1.bf16.msra.mxu0 %v13390_v59  ;;  %v2453_v59 = vrot.slane %v16441_v43, %v16444_v48 }
 0x43e   : > { %3603 = vmatprep.subr.bf16.mxu0 %v13398_v2 }
 0x43f   : > { %2567 = vmatmul.mubr.bf16.vlgmr.msra.gmra.mrb[48].mxu1 %v13363_v53  ;;  %v13461_v53 = vld [vmem:[%s17230_s13 + $0x2d4] ss:$24 sps:$4 sm:$0xff]  }
 0x440   : > { %2574 = vmatprep.mubr.bf16.mxu1 %v13366_v30  ;;  %3490 = vmatpush1.bf16.msra.mxu1 %v13369_v4  ;;  %v13462_v30 = vld [vmem:[%s17230_s13 + $0x2d8] ss:$24 sps:$4 sm:$0xff]  }
 0x441   : > { %3491 = vmatprep.subr.bf16.mxu1 %v13377_v8  ;;  %3604 = vmatpush1.bf16.msra.mxu0 %v13396_v11 }
 0x442   : > { %3605 = vmatprep.subr.bf16.mxu0 %v13404_v14 }
 0x444   : > { %3492 = vmatpush1.bf16.msra.mxu1 %v13375_v19 }
 0x445   : > { %3493 = vmatprep.subr.bf16.mxu1 %v13383_v27  ;;  %3606 = vmatpush1.bf16.msra.mxu0 %v13402_v31 }
 0x446   : > { %3607 = vmatprep.subr.bf16.mxu0 %v13410_v62 }
 0x447   : > { %2575 = vmatmul.mubr.bf16.gmra.mrb[52].mxu1 %v13368_v61  ;;  %v16439_v61 = vsub.s32 0, %v16436_v60 }
 0x448   : > { %3494 = vmatpush1.bf16.msra.mxu1 %v13381_v36 }
 0x449   : > { %3495 = vmatprep.subr.bf16.mxu1 %v13389_v46  ;;  %3608 = vmatpush1.bf16.msra.mxu0 %v13408_v49  ;;  %v2449_v52 = vrot.slane %v16441_v43, %v16439_v61 }
 0x44a   : > { %3609 = vmatprep.subr.bf16.mxu0 %v13416_v63 }
 0x44c   : > { %3496 = vmatpush1.bf16.msra.mxu1 %v13387_v3 }
 0x44d   : > { %3497 = vmatprep.subr.bf16.mxu1 %v13395_v6  ;;  %3610 = vmatpush1.bf16.msra.mxu0 %v13414_v55 }
 0x44e   : > { %3611 = vmatprep.subr.bf16.mxu0 %v13422_v0 }
 0x450   : > { %3498 = vmatpush1.bf16.msra.mxu1 %v13393_v5 }
 0x451   : > { %3499 = vmatprep.subr.bf16.mxu1 %v13401_v7  ;;  %3612 = vmatpush1.bf16.msra.mxu0 %v13420_v32  ;;  %v13465_v32 = vld [vmem:[%s17230_s13 + $0x300] ss:$24 sps:$4 sm:$0xff]  }
 0x452   : > { %3613 = vmatprep.subr.bf16.mxu0 %v13428_v44  ;;  %v13468_v44 = vld [vmem:[%s17230_s13 + $0x308] ss:$24 sps:$4 sm:$0xff]  }
 0x454   : > { %3500 = vmatpush1.bf16.msra.mxu1 %v13399_v57 }
 0x455   : > { %3501 = vmatprep.subr.bf16.mxu1 %v13407_v1  ;;  %3614 = vmatpush1.bf16.msra.mxu0 %v13426_v9  ;;  %v13473_v9 = vld [vmem:[%s17230_s13 + $0x334] ss:$24 sps:$4 sm:$0xff]  }
 0x456   : > { %3615 = vmatprep.subr.bf16.mxu0 %v13434_v13  ;;  %v13476_v13 = vld [vmem:[%s17230_s13 + $0x33c] ss:$24 sps:$4 sm:$0xff]  }
 0x458   : > { %3502 = vmatpush1.bf16.msra.mxu1 %v13405_v15 }
 0x459   : > { %3503 = vmatprep.subr.bf16.mxu1 %v13413_v17  ;;  %3616 = vmatpush1.bf16.msra.mxu0 %v13432_v16  ;;  %v13471_v16 = vld [vmem:[%s17230_s13 + $0x330] ss:$24 sps:$4 sm:$0xff]  }
 0x45a   : > { %3617 = vmatprep.subr.bf16.mxu0 %v13440_v51 }
 0x45c   : > { %3504 = vmatpush1.bf16.msra.mxu1 %v13411_v10 }
 0x45d   : > { %3505 = vmatprep.subr.bf16.mxu1 %v13419_v12  ;;  %3618 = vmatpush1.bf16.msra.mxu0 %v13438_v20  ;;  %v13474_v20 = vld [vmem:[%s17230_s13 + $0x338] ss:$24 sps:$4 sm:$0xff]  }
 0x45e   : > { %3619 = vmatprep.subr.bf16.mxu0 %v13446_v21 }
 0x460   : > { %3506 = vmatpush1.bf16.msra.mxu1 %v13417_v23 }
 0x461   : > { %3507 = vmatprep.subr.bf16.mxu1 %v13425_v24  ;;  %3620 = vmatpush1.bf16.msra.mxu0 %v13444_v26  ;;  %v16465_v24 = vsub.s32 2, %v16436_v60  ;;  %v13479_v26 = vld [vmem:[%s17230_s13 + $0x364] ss:$24 sps:$4 sm:$0xff]  }
 0x462   : > { %3621 = vmatprep.subr.bf16.mxu0 %v13452_v29 }
 0x464   : > { %3508 = vmatpush1.bf16.msra.mxu1 %v13423_v33 }
 0x465   : > { %3509 = vmatprep.subr.bf16.mxu1 %v13431_v34  ;;  %3622 = vmatpush1.bf16.msra.mxu0 %v13450_v28  ;;  %v13482_v34 = vld [vmem:[%s17230_s13 + $0x36c] ss:$24 sps:$4 sm:$0xff]  }
 0x466   : > { %3623 = vmatprep.subr.bf16.mxu0 %v13458_v47 }
 0x468   : > { %3510 = vmatpush1.bf16.msra.mxu1 %v13429_v18 }
 0x469   : > { %3511 = vmatprep.subr.bf16.mxu1 %v13437_v22  ;;  %3624 = vmatpush1.bf16.msra.mxu0 %v13456_v41  ;;  %v13485_v41 = vld [vmem:[%s17230_s13 + $0x394] ss:$24 sps:$4 sm:$0xff]  }
 0x46a   : > { %3625 = vmatprep.subr.bf16.mxu0 %v13464_v54 }
 0x46c   : > { %3512 = vmatpush1.bf16.msra.mxu1 %v13435_v25 }
 0x46d   : > { %3513 = vmatprep.subr.bf16.mxu1 %v13443_v37  ;;  %3626 = vmatpush1.bf16.msra.mxu0 %v13462_v30  ;;  %v16472_v37 = vrot.slane %v16441_v43, %v16465_v24  ;;  %v13486_v43 = vld [vmem:[%s17230_s13 + $0x398] ss:$24 sps:$4 sm:$0xff]  }
 0x46e   : > { %3648 = vmatprep.subr.bf16.mxu0 %v13470_v38 }
 0x470   : > { %3514 = vmatpush1.bf16.msra.mxu1 %v13441_v39 }
 0x471   : > { %3515 = vmatprep.subr.bf16.mxu1 %v13449_v40 }
 0x474   : > { %3516 = vmatpush1.bf16.msra.mxu1 %v13447_v42  ;;  %v13477_v42 = vld [vmem:[%s17230_s13 + $0x360] ss:$24 sps:$4 sm:$0xff]  }
 0x475   : > { %3517 = vmatprep.subr.bf16.mxu1 %v13455_v45  ;;  %v13480_v45 = vld [vmem:[%s17230_s13 + $0x368] ss:$24 sps:$4 sm:$0xff]  }
 0x478   : > { %3518 = vmatpush1.bf16.msra.mxu1 %v13453_v50 }
 0x479   : > { %3519 = vmatprep.subr.bf16.mxu1 %v13461_v53  ;;  %v13488_v53 = vld [vmem:[%s17230_s13 + $0x39c] ss:$24 sps:$4 sm:$0xff]  }
 0x47c   : > { %3520 = vmatpush1.bf16.msra.mxu1 %v13459_v56 }
 0x47d   : > { %3542 = vmatprep.subr.bf16.mxu1 %v13467_v35 }
 0x502   : > { %v2515_v2 = vpop.f32.mrb[48].mxu0 }
 0x503   : > { %v2516_v4 = vadd.f32 %v2515_v2, %v2449_v52  ;;  %v2517_v8 = vpop.f32.mrb[49].mxu0  ;;  %v13494_v2 = vld [vmem:[%s17230_s13 + $0x3cc] ss:$24 sps:$4 sm:$0xff]  }
 0x504   : > { %v2518_v11 = vadd.f32 %v2517_v8, %v2453_v59  ;;  %v2519_v14 = vpop.f32.mrb[50].mxu0  ;;  %v15518_v8 = vmov 0  }
 0x505   : > { %v2595_v19 = vmul.f32 0.01, %v2516_v4  ;;  %v2520_v27 = vadd.f32 %v2519_v14, %v2449_v52  ;;  %v2521_v31 = vpop.f32.mrb[51].mxu0  ;;  %vm2583_vm1 = vcmp.ge.f32.partialorder %v2516_v4, 0.0 }
 0x506   : > { %v2596_v62 = vmul.f32 0.01, %v2518_v11  ;;  %v2522_v36 = vadd.f32 %v2521_v31, %v2453_v59  ;;  %vm2584_vm2 = vcmp.ge.f32.partialorder %v2518_v11, 0.0  ;;  %v13492_v31 = vld [vmem:[%s17230_s13 + $0x3c8] ss:$24 sps:$4 sm:$0xff]  }
 0x507   : > { %vm2586_vm3 = vcmp.ge.f32.partialorder %v2520_v27, 0.0  ;;  %v2598_v46 = vmul.f32 0.01, %v2520_v27  ;;  %v2607_v63 = vsel %vm2583_vm1, %v2516_v4, %v2595_v19 }
 0x508   : > { %vm2587_vm4 = vcmp.ge.f32.partialorder %v2522_v36, 0.0  ;;  %v2599_v49 = vmul.f32 0.01, %v2522_v36  ;;  %v2608_v55 = vsel %vm2584_vm2, %v2518_v11, %v2596_v62  ;;  %vm15522_vm2 = vmmov 0  }
 0x509   : > { %v2610_v3 = vsel %vm2586_vm3, %v2520_v27, %v2598_v46  ;;  %v13489_v27 = vld [vmem:[%s17230_s13 + $0x3c0] ss:$24 sps:$4 sm:$0xff]   ;;  %v13497_v46 = vld [vmem:[%s17230_s13 + $0x3f4] ss:$24 sps:$4 sm:$0xff]   ;;  %vm4312_vm3 = vcmask 261120  }
 0x50a   : > { %v16450_v6 = vpack.c.bf16 %v2610_v3, %v2607_v63  ;;  %v2611_v0 = vsel %vm2587_vm4, %v2522_v36, %v2599_v49  ;;  %v2525_v5 = vpop.f32.mrb[52].mxu0  ;;  %v13500_v49 = vld [vmem:[%s17230_s13 + $0x3fc] ss:$24 sps:$4 sm:$0xff]  }
 0x50b   : > { %v16452_v7 = vpack.c.bf16 %v2611_v0, %v2608_v55  ;;  %v2526_v57 = vadd.f32 %v2525_v5, %v2449_v52  ;;  %v2527_v1 = vpop.f32.mrb[53].mxu0 }
 0x50c   : > { %v2528_v15 = vadd.f32 %v2527_v1, %v2453_v59  ;;  %v2529_v17 = vpop.f32.mrb[54].mxu0  ;;  %v13503_v1 = vld [vmem:[%s17230_s13 + $0x424] ss:$24 sps:$4 sm:$0xff]  }
 0x50d   : > { %3521 = vmatprep.mubr.bf16.mxu1 %v16452_v7  ;;  %3627 = vmatprep.mubr.bf16.mxu0 %v16452_v7  ;;  %vm2589_vm5 = vcmp.ge.f32.partialorder %v2526_v57, 0.0  ;;  %v2601_v51 = vmul.f32 0.01, %v2526_v57  ;;  %v2530_v10 = vadd.f32 %v2529_v17, %v2449_v52  ;;  %v2531_v12 = vpop.f32.mrb[55].mxu0  ;;  %v13491_v52 = vld [vmem:[%s17230_s13 + $0x3c4] ss:$24 sps:$4 sm:$0xff]  }
 0x50e   : > { %3522 = vmatmul.mubr.bf16.vlgmr.msra.gmra.mrb[56].mxu1 %v16450_v6  ;;  %3628 = vmatmul.mubr.bf16.vlgmr.msra.gmra.mrb[56].mxu0 %v16450_v6  ;;  %vm2590_vm6 = vcmp.ge.f32.partialorder %v2528_v15, 0.0  ;;  %v2602_v21 = vmul.f32 0.01, %v2528_v15  ;;  %v2532_v23 = vadd.f32 %v2531_v12, %v2453_v59  ;;  %v13509_v12 = vld [vmem:[%s17230_s13 + $0x454] ss:$24 sps:$4 sm:$0xff]  }
 0x50f   : > { %3543 = vmatpush1.bf16.msra.mxu1 %v13465_v32  ;;  %3649 = vmatpush1.bf16.msra.mxu0 %v13468_v44  ;;  %vm2592_vm7 = vcmp.ge.f32.partialorder %v2530_v10, 0.0  ;;  %v2604_v29 = vmul.f32 0.01, %v2530_v10  ;;  %v2613_v33 = vsel %vm2589_vm5, %v2526_v57, %v2601_v51  ;;  %v13495_v44 = vld [vmem:[%s17230_s13 + $0x3f0] ss:$24 sps:$4 sm:$0xff]   ;;  %vm4460_vm5 = vcmask 785408  }
 0x510   : > { %3544 = vmatprep.subr.bf16.mxu1 %v13473_v9  ;;  %3650 = vmatprep.subr.bf16.mxu0 %v13476_v13  ;;  %vm2593_vm8 = vcmp.ge.f32.partialorder %v2532_v23, 0.0  ;;  %v2605_v28 = vmul.f32 0.01, %v2532_v23  ;;  %v2614_v18 = vsel %vm2590_vm6, %v2528_v15, %v2602_v21  ;;  %v13498_v57 = vld [vmem:[%s17230_s13 + $0x3f8] ss:$24 sps:$4 sm:$0xff]   ;;  %vm5182_vm6 = vcmask 253952  }
 0x511   : > { %v2616_v22 = vsel %vm2592_vm7, %v2530_v10, %v2604_v29  ;;  %v13506_v9 = vld [vmem:[%s17230_s13 + $0x42c] ss:$24 sps:$4 sm:$0xff]   ;;  %v13501_v51 = vld [vmem:[%s17230_s13 + $0x420] ss:$24 sps:$4 sm:$0xff]  }
 0x512   : > { %v12428_v25 = vpop.f32.mrb[48].mxu1  ;;  %v2617_v39 = vsel %vm2593_vm8, %v2532_v23, %v2605_v28  ;;  %v16474_v40 = vpack.c.bf16 %v2616_v22, %v2613_v33  ;;  %v13504_v10 = vld [vmem:[%s17230_s13 + $0x428] ss:$24 sps:$4 sm:$0xff]   ;;  %v13510_v29 = vld [vmem:[%s17230_s13 + $0x458] ss:$24 sps:$4 sm:$0xff]  }
 0x513   : > { %3545 = vmatpush1.bf16.msra.mxu1 %v13471_v16  ;;  %3651 = vmatpush1.bf16.msra.mxu0 %v13474_v20  ;;  %v12429_v47 = vpop.f32.mrb[49].mxu1  ;;  %v16478_v50 = vpack.c.bf16 %v2617_v39, %v2614_v18  ;;  %v13512_v20 = vld [vmem:[%s17230_s13 + $0x45c] ss:$24 sps:$4 sm:$0xff]   ;;  %v13516_v18 = vld [vmem:[%s17230_s13 + $0x40] ss:$24 sps:$4 sm:$0xff]  }
 0x514   : > { %3546 = vmatprep.subr.bf16.mxu1 %v13479_v26  ;;  %3652 = vmatprep.subr.bf16.mxu0 %v13482_v34  ;;  %v12430_v54 = vadd.f32 %v12429_v47, %v12428_v25  ;;  %v12431_v56 = vpop.f32.mrb[50].mxu1  ;;  %v13507_v26 = vld [vmem:[%s17230_s13 + $0x450] ss:$24 sps:$4 sm:$0xff]   ;;  %v13515_v33 = vld [vmem:[%s17230_s13 + $0x14] ss:$24 sps:$4 sm:$0xff]  }
 0x515   : > { %v12432_v30 = vpop.f32.mrb[51].mxu1  ;;  %3531 = vmatprep.mubr.bf16.mxu1 %v16478_v50  ;;  %3637 = vmatprep.mubr.bf16.mxu0 %v16478_v50  ;;  %v13513_v34 = vld [vmem:[%s17230_s13 + $0x10] ss:$24 sps:$4 sm:$0xff]   ;;  %v13518_v28 = vld [vmem:[%s17230_s13 + $0x44] ss:$24 sps:$4 sm:$0xff]  }
 0x516   : > { %v2569_v35 = vadd.f32 %v12430_v54, %v16472_v37  ;;  %v12433_v38 = vadd.f32 %v12432_v30, %v12431_v56  ;;  %3532 = vmatmul.mubr.bf16.gmra.mrb[60].mxu1 %v16474_v40  ;;  %3638 = vmatmul.mubr.bf16.gmra.mrb[60].mxu0 %v16474_v40  ;;  %v13521_v22 = vld [vmem:[%s17230_s13 + $0x74] ss:$24 sps:$4 sm:$0xff]   ;;  %v13519_v25 = vld [vmem:[%s17230_s13 + $0x70] ss:$24 sps:$4 sm:$0xff]   ;;  %v13522_v39 = vld [vmem:[%s17230_s13 + $0xa0] ss:$24 sps:$4 sm:$0xff]  }
 0x517   : > { %3547 = vmatpush1.bf16.msra.mxu1 %v13477_v42  ;;  %3653 = vmatpush1.bf16.msra.mxu0 %v13480_v45  ;;  %v13527_v42 = vld [vmem:[%s17230_s13 + $0xd4] ss:$24 sps:$4 sm:$0xff]   ;;  %v13525_v45 = vld [vmem:[%s17230_s13 + $0xd0] ss:$24 sps:$4 sm:$0xff]   ;;  %v13530_v47 = vld [vmem:[%s17230_s13 + $0x104] ss:$24 sps:$4 sm:$0xff]  }
 0x518   : > { %3548 = vmatprep.subr.bf16.mxu1 %v13485_v41  ;;  %3654 = vmatprep.subr.bf16.mxu0 %v13488_v53  ;;  %vm2585_vm9 = vcmp.ge.f32.partialorder %v2569_v35, 0.0  ;;  %v2597_v59 = vmul.f32 0.01, %v2569_v35  ;;  %v2572_v4 = vadd.f32 %v12433_v38, %v16472_v37  ;;  %v13528_v41 = vld [vmem:[%s17230_s13 + $0x100] ss:$24 sps:$4 sm:$0xff]  }
 0x519   : > { %3574 = vmatprep.mubr.bf16.mxu1 %v15518_v8  ;;  %3680 = vmatprep.mubr.bf16.mxu0 %v15518_v8  ;;  %v13533_v53 = vld [vmem:[%s17230_s13 + $0x134] ss:$24 sps:$4 sm:$0xff]   ;;  %v13536_v54 = vld [vmem:[%s17230_s13 + $0x164] ss:$24 sps:$4 sm:$0xff]   ;;  %v13534_v56 = vld [vmem:[%s17230_s13 + $0x160] ss:$24 sps:$4 sm:$0xff]  }
 0x51a   : > { %v2609_v11 = vsel %vm2585_vm9, %v2569_v35, %v2597_v59  ;;  %vm2588_vm10 = vcmp.ge.f32.partialorder %v2572_v4, 0.0  ;;  %v2600_v14 = vmul.f32 0.01, %v2572_v4  ;;  %v12434_v19 = vpop.f32.mrb[52].mxu1  ;;  %v13539_v30 = vld [vmem:[%s17230_s13 + $0x194] ss:$24 sps:$4 sm:$0xff]  }
 0x51b   : > { %3549 = vmatpush1.bf16.msra.mxu1 %v13483_v58  ;;  %3655 = vmatpush1.bf16.msra.mxu0 %v13486_v43  ;;  %v12435_v62 = vpop.f32.mrb[53].mxu1  ;;  %v13537_v35 = vld [vmem:[%s17230_s13 + $0x190] ss:$24 sps:$4 sm:$0xff]   ;;  %v13542_v38 = vld [vmem:[%s17230_s13 + $0x1c4] ss:$24 sps:$4 sm:$0xff]   ;;  %vm7571_vm9 = vcmask 1040384  }
 0x51c   : > { %3550 = vmatprep.subr.bf16.mxu1 %v13491_v52  ;;  %3656 = vmatprep.subr.bf16.mxu0 %v13494_v2  ;;  %v2612_v36 = vsel %vm2588_vm10, %v2572_v4, %v2600_v14  ;;  %v12436_v63 = vadd.f32 %v12435_v62, %v12434_v19  ;;  %v12437_v3 = vpop.f32.mrb[54].mxu1  ;;  %v13540_v58 = vld [vmem:[%s17230_s13 + $0x1c0] ss:$24 sps:$4 sm:$0xff]   ;;  %v13545_v43 = vld [vmem:[%s17230_s13 + $0x1f4] ss:$24 sps:$4 sm:$0xff]   ;;  %vm7573_vm10 = vcmask 1041408  }
 0x51d   : > { %v16498_v55 = vpack.c.bf16 %v2612_v36, %v2609_v11  ;;  %v12438_v0 = vpop.f32.mrb[55].mxu1  ;;  %v13543_v52 = vld [vmem:[%s17230_s13 + $0x1f0] ss:$24 sps:$4 sm:$0xff]   ;;  %v13548_v59 = vld [vmem:[%s17230_s13 + $0x224] ss:$24 sps:$4 sm:$0xff]  }
 0x51e   : > { %v2577_v5 = vadd.f32 %v12436_v63, %v16472_v37  ;;  %v12439_v32 = vadd.f32 %v12438_v0, %v12437_v3  ;;  %v13546_v2 = vld [vmem:[%s17230_s13 + $0x220] ss:$24 sps:$4 sm:$0xff]   ;;  %v13551_v4 = vld [vmem:[%s17230_s13 + $0x254] ss:$24 sps:$4 sm:$0xff]   ;;  %v13549_v11 = vld [vmem:[%s17230_s13 + $0x250] ss:$24 sps:$4 sm:$0xff]  }
 0x51f   : > { %3551 = vmatpush1.bf16.msra.mxu1 %v13489_v27  ;;  %3657 = vmatpush1.bf16.msra.mxu0 %v13492_v31  ;;  %v13554_v14 = vld [vmem:[%s17230_s13 + $0x284] ss:$24 sps:$4 sm:$0xff]   ;;  %v13552_v19 = vld [vmem:[%s17230_s13 + $0x280] ss:$24 sps:$4 sm:$0xff]   ;;  %v13557_v27 = vld [vmem:[%s17230_s13 + $0x2b4] ss:$24 sps:$4 sm:$0xff]  }
 0x520   : > { %3552 = vmatprep.subr.bf16.mxu1 %v13497_v46  ;;  %3658 = vmatprep.subr.bf16.mxu0 %v13500_v49  ;;  %vm2591_vm11 = vcmp.ge.f32.partialorder %v2577_v5, 0.0  ;;  %v2603_v13 = vmul.f32 0.01, %v2577_v5  ;;  %v2580_v15 = vadd.f32 %v12439_v32, %v16472_v37  ;;  %v13524_v37 = vld [vmem:[%s17230_s13 + $0xa4] ss:$24 sps:$4 sm:$0xff]  }
 0x521   : > { %v13555_v31 = vld [vmem:[%s17230_s13 + $0x2b0] ss:$24 sps:$4 sm:$0xff]   ;;  %v13560_v62 = vld [vmem:[%s17230_s13 + $0x2e4] ss:$24 sps:$4 sm:$0xff]   ;;  %v13558_v36 = vld [vmem:[%s17230_s13 + $0x2e0] ss:$24 sps:$4 sm:$0xff]  }
 0x522   : > { %vm2594_vm12 = vcmp.ge.f32.partialorder %v2580_v15, 0.0  ;;  %v2606_v17 = vmul.f32 0.01, %v2580_v15  ;;  %v2615_v16 = vsel %vm2591_vm11, %v2577_v5, %v2603_v13  ;;  %v13563_v46 = vld [vmem:[%s17230_s13 + $0x314] ss:$24 sps:$4 sm:$0xff]   ;;  %vm7575_vm11 = vcmask 1042432  }
 0x523   : > { %3553 = vmatpush1.bf16.msra.mxu1 %v13495_v44  ;;  %3659 = vmatpush1.bf16.msra.mxu0 %v13498_v57  ;;  %v13561_v49 = vld [vmem:[%s17230_s13 + $0x310] ss:$24 sps:$4 sm:$0xff]   ;;  %v13566_v63 = vld [vmem:[%s17230_s13 + $0x344] ss:$24 sps:$4 sm:$0xff]   ;;  %v13564_v3 = vld [vmem:[%s17230_s13 + $0x340] ss:$24 sps:$4 sm:$0xff]  }
 0x524   : > { %3554 = vmatprep.subr.bf16.mxu1 %v13503_v1  ;;  %3660 = vmatprep.subr.bf16.mxu0 %v13506_v9  ;;  %v2618_v21 = vsel %vm2594_vm12, %v2580_v15, %v2606_v17  ;;  %v13569_v0 = vld [vmem:[%s17230_s13 + $0x374] ss:$24 sps:$4 sm:$0xff]   ;;  %v13567_v5 = vld [vmem:[%s17230_s13 + $0x370] ss:$24 sps:$4 sm:$0xff]   ;;  %v13572_v32 = vld [vmem:[%s17230_s13 + $0x3a4] ss:$24 sps:$4 sm:$0xff]  }
 0x525   : > { %v16510_v23 = vpack.c.bf16 %v2618_v21, %v2615_v16  ;;  %v13573_v44 = vld [vmem:[%s17230_s13 + $0x3d0] ss:$24 sps:$4 sm:$0xff]   ;;  %v13578_v57 = vld [vmem:[%s17230_s13 + $0x404] ss:$24 sps:$4 sm:$0xff]   ;;  %v13576_v1 = vld [vmem:[%s17230_s13 + $0x400] ss:$24 sps:$4 sm:$0xff]  }
 0x526   : > { %v13581_v9 = vld [vmem:[%s17230_s13 + $0x434] ss:$24 sps:$4 sm:$0xff]   ;;  %v13579_v13 = vld [vmem:[%s17230_s13 + $0x430] ss:$24 sps:$4 sm:$0xff]   ;;  %v13582_v15 = vld [vmem:[%s17230_s13 + $0x460] ss:$24 sps:$4 sm:$0xff]  }
 0x527   : > { %3555 = vmatpush1.bf16.msra.mxu1 %v13501_v51  ;;  %3661 = vmatpush1.bf16.msra.mxu0 %v13504_v10  ;;  %vm7577_vm12 = vcmask 1043456  }
 0x528   : > { %3556 = vmatprep.subr.bf16.mxu1 %v13509_v12  ;;  %3662 = vmatprep.subr.bf16.mxu0 %v13512_v20 }
 0x52b   : > { %3557 = vmatpush1.bf16.msra.mxu1 %v13507_v26  ;;  %3663 = vmatpush1.bf16.msra.mxu0 %v13510_v29 }
 0x52c   : > { %3701 = vmatprep.subr.bf16.mxu1 %v13515_v33 }
 0x52e   : > { %3575 = vmatmul.mubr.bf16.vlgmr.msra.gmra.mrb[56].mxu1 %v16498_v55  ;;  %3681 = vmatmul.mubr.bf16.vlgmr.msra.gmra.mrb[56].mxu0 %v16498_v55 }
 0x52f   : > { %3702 = vmatpush1.bf16.msra.mxu1 %v13513_v34  ;;  %3584 = vmatprep.mubr.bf16.mxu1 %v15518_v8 }
 0x530   : > { %3703 = vmatprep.subr.bf16.mxu1 %v13518_v28  ;;  %3690 = vmatprep.mubr.bf16.mxu0 %v15518_v8 }
 0x533   : > { %3704 = vmatpush1.bf16.msra.mxu1 %v13516_v18 }
 0x534   : > { %3705 = vmatprep.subr.bf16.mxu1 %v13521_v22 }
 0x536   : > { %3585 = vmatmul.mubr.bf16.gmra.mrb[60].mxu1 %v16510_v23  ;;  %3691 = vmatmul.mubr.bf16.gmra.mrb[60].mxu0 %v16510_v23 }
 0x537   : > { %3706 = vmatpush1.bf16.msra.mxu1 %v13519_v25  ;;  %3733 = vmatprep.mubr.bf16.mxu1 %v16452_v7  ;;  %v13531_v7 = vld [vmem:[%s17230_s13 + $0x130] ss:$24 sps:$4 sm:$0xff]  }
 0x538   : > { %3707 = vmatprep.subr.bf16.mxu1 %v13524_v37  ;;  %3948 = vmatprep.mubr.bf16.mxu0 %v15518_v8 }
 0x53b   : > { %3708 = vmatpush1.bf16.msra.mxu1 %v13522_v39 }
 0x53c   : > { %3709 = vmatprep.subr.bf16.mxu1 %v13527_v42 }
 0x53f   : > { %3710 = vmatpush1.bf16.msra.mxu1 %v13525_v45 }
 0x540   : > { %3711 = vmatprep.subr.bf16.mxu1 %v13530_v47 }
 0x543   : > { %3712 = vmatpush1.bf16.msra.mxu1 %v13528_v41 }
 0x544   : > { %3713 = vmatprep.subr.bf16.mxu1 %v13533_v53 }
 0x547   : > { %3714 = vmatpush1.bf16.msra.mxu1 %v13531_v7 }
 0x548   : > { %3715 = vmatprep.subr.bf16.mxu1 %v13536_v54 }
 0x54b   : > { %3716 = vmatpush1.bf16.msra.mxu1 %v13534_v56 }
 0x54c   : > { %3717 = vmatprep.subr.bf16.mxu1 %v13539_v30 }
 0x54f   : > { %3718 = vmatpush1.bf16.msra.mxu1 %v13537_v35 }
 0x550   : > { %3719 = vmatprep.subr.bf16.mxu1 %v13542_v38 }
 0x553   : > { %3720 = vmatpush1.bf16.msra.mxu1 %v13540_v58 }
 0x554   : > { %3721 = vmatprep.subr.bf16.mxu1 %v13545_v43 }
 0x557   : > { %3722 = vmatpush1.bf16.msra.mxu1 %v13543_v52 }
 0x558   : > { %3723 = vmatprep.subr.bf16.mxu1 %v13548_v59 }
 0x55b   : > { %3724 = vmatpush1.bf16.msra.mxu1 %v13546_v2 }
 0x55c   : > { %3725 = vmatprep.subr.bf16.mxu1 %v13551_v4 }
 0x55f   : > { %3726 = vmatpush1.bf16.msra.mxu1 %v13549_v11 }
 0x560   : > { %3727 = vmatprep.subr.bf16.mxu1 %v13554_v14  ;;  %v13589_v14 = vld [vmem:[#allocation13 + $0x8] ss:$12 sps:$4 sm:$0xff]  }
 0x563   : > { %3728 = vmatpush1.bf16.msra.mxu1 %v13552_v19 }
 0x564   : > { %3729 = vmatprep.subr.bf16.mxu1 %v13557_v27 }
 0x567   : > { %3730 = vmatpush1.bf16.msra.mxu1 %v13555_v31 }
 0x568   : > { %3731 = vmatprep.subr.bf16.mxu1 %v13560_v62  ;;  %v13593_v62 = vld [vmem:[#allocation13 + $0x20] ss:$12 sps:$4 sm:$0xff]  }
 0x56b   : > { %3732 = vmatpush1.bf16.msra.mxu1 %v13558_v36  ;;  %v13597_v36 = vld [vmem:[#allocation13 + $0x38] ss:$12 sps:$4 sm:$0xff]  }
 0x56c   : > { %3754 = vmatprep.subr.bf16.mxu1 %v13563_v46 }
 0x56e   : > { %3734 = vmatmul.mubr.bf16.vlgmr.msra.gmra.mrb[64].mxu1 %v16450_v6  ;;  %v13570_v6 = vld [vmem:[%s17230_s13 + $0x3a0] ss:$24 sps:$4 sm:$0xff]  }
 0x56f   : > { %3743 = vmatprep.mubr.bf16.mxu1 %v16478_v50  ;;  %3755 = vmatpush1.bf16.msra.mxu1 %v13561_v49  ;;  %v13575_v50 = vld [vmem:[%s17230_s13 + $0x3d4] ss:$24 sps:$4 sm:$0xff]  }
 0x570   : > { %3756 = vmatprep.subr.bf16.mxu1 %v13566_v63  ;;  %v13601_v49 = vld [vmem:[#allocation13 + $0x50] ss:$12 sps:$4 sm:$0xff]  }
 0x573   : > { %3757 = vmatpush1.bf16.msra.mxu1 %v13564_v3 }
 0x574   : > { %3758 = vmatprep.subr.bf16.mxu1 %v13569_v0 }
 0x576   : > { %3744 = vmatmul.mubr.bf16.gmra.mrb[68].mxu1 %v16474_v40  ;;  %v13584_v40 = vld [vmem:[%s17230_s13 + $0x464] ss:$24 sps:$4 sm:$0xff]  }
 0x577   : > { %3759 = vmatpush1.bf16.msra.mxu1 %v13567_v5  ;;  %3786 = vmatprep.mubr.bf16.mxu1 %v15518_v8  ;;  %v13605_v5 = vld [vmem:[#allocation13 + $0x68] ss:$12 sps:$4 sm:$0xff]  }
 0x578   : > { %3760 = vmatprep.subr.bf16.mxu1 %v13572_v32 }
 0x57b   : > { %3761 = vmatpush1.bf16.msra.mxu1 %v13570_v6 }
 0x57c   : > { %3762 = vmatprep.subr.bf16.mxu1 %v13575_v50 }
 0x57f   : > { %3763 = vmatpush1.bf16.msra.mxu1 %v13573_v44 }
 0x580   : > { %3764 = vmatprep.subr.bf16.mxu1 %v13578_v57 }
 0x583   : > { %3765 = vmatpush1.bf16.msra.mxu1 %v13576_v1 }
 0x584   : > { %3766 = vmatprep.subr.bf16.mxu1 %v13581_v9 }
 0x587   : > { %3767 = vmatpush1.bf16.msra.mxu1 %v13579_v13  ;;  %v13609_v13 = vld [vmem:[#allocation13 + $0x80] ss:$12 sps:$4 sm:$0xff]  }
 0x588   : > { %3768 = vmatprep.subr.bf16.mxu1 %v13584_v40 }
 0x58b   : > { %3769 = vmatpush1.bf16.msra.mxu1 %v13582_v15 }
 0x58c   : > { %4259 = vmatprep.subr.bf16.mxu1 %v15518_v8 }
 0x58e   : > { %3787 = vmatmul.mubr.bf16.vlgmr.msra.gmra.mrb[64].mxu1 %v16498_v55 }
 0x58f   : > { %3796 = vmatprep.mubr.bf16.mxu1 %v15518_v8  ;;  %4260 = vmatpush1.bf16.msra.mxu1 %v13589_v14  ;;  %v13600_v14 = vld [vmem:[#allocation13 + $0x4c] ss:$12 sps:$4 sm:$0xff]  }
 0x590   : > { %4261 = vmatprep.subr.bf16.mxu1 %v15518_v8 }
 0x593   : > { %4262 = vmatpush1.bf16.msra.mxu1 %v13593_v62  ;;  %v13608_v62 = vld [vmem:[#allocation13 + $0x7c] ss:$12 sps:$4 sm:$0xff]  }
 0x594   : > { %4263 = vmatprep.subr.bf16.mxu1 %v15518_v8 }
 0x596   : > { %3797 = vmatmul.mubr.bf16.gmra.mrb[68].mxu1 %v16510_v23 }
 0x597   : > { %4264 = vmatpush1.bf16.msra.mxu1 %v13597_v36  ;;  %v13606_v36 = vld [vmem:[#allocation13 + $0x78] ss:$12 sps:$4 sm:$0xff]  }
 0x598   : > { %4265 = vmatprep.subr.bf16.mxu1 %v15518_v8 }
 0x59b   : > { %4266 = vmatpush1.bf16.msra.mxu1 %v13601_v49  ;;  %v13610_v49 = vld [vmem:[#allocation13 + $0x90] ss:$12 sps:$4 sm:$0xff]  }
 0x59c   : > { %4267 = vmatprep.subr.bf16.mxu1 %v15518_v8 }
 0x59f   : > { %4268 = vmatpush1.bf16.msra.mxu1 %v13605_v5  ;;  %v13618_v5 = vld [vmem:[#allocation13 + $0xc0] ss:$12 sps:$4 sm:$0xff]  }
 0x5a0   : > { %4269 = vmatprep.subr.bf16.mxu1 %v15518_v8 }
 0x5a3   : > { %4270 = vmatpush1.bf16.msra.mxu1 %v13609_v13  ;;  %v13630_v13 = vld [vmem:[#allocation13 + $0x108] ss:$12 sps:$4 sm:$0xff]  }
 0x5a4   : > { %4271 = vmatprep.subr.bf16.mxu1 %v15518_v8 }
 0x601   : > { %v3576_v17 = vpop.f32.mrb[56].mxu1  ;;  %v3682_v16 = vpop.f32.mrb[56].mxu0 }
 0x602   : > { %v3578_v51 = vpop.f32.mrb[57].mxu1  ;;  %v16578_v10 = vpop.f32.mrb[57].mxu0 }
 0x603   : > { %v3580_v12 = vpop.f32.mrb[58].mxu1  ;;  %v3686_v20 = vpop.f32.mrb[58].mxu0  ;;  %v13066_v21 = vpack.i.bf16 %v3682_v16, %v3578_v51  ;;  %v13613_v16 = vld [vmem:[#allocation13 + $0x98] ss:$12 sps:$4 sm:$0xff]  }
 0x604   : > { %v3882_v26 = vpack.c.bf16 %v3580_v12, %v3576_v17  ;;  %v3582_v29 = vpop.f32.mrb[59].mxu1  ;;  %v16580_v33 = vpop.f32.mrb[59].mxu0  ;;  %4272 = vmatpush1.bf16.msra.mxu1 %v13613_v16 }
 0x605   : > { %v13071_v34 = vpack.i.bf16 %v3686_v20, %v3582_v29  ;;  %v3883_v28 = vpack.c.bf16 %v3582_v29, %v3578_v51  ;;  %v3890_v55 = vpack.c.bf16 %v16580_v33, %v16578_v10  ;;  %13067 = vrot.lane.b32.xlu0 %v13066_v21, %s15519_s12  ;;  %4273 = vmatprep.subr.bf16.mxu1 %v15518_v8 }
 0x607   : > { %3916 = vmatprep.subr.bf16.mxu0 %v3883_v28  ;;  %v13621_v28 = vld [vmem:[#allocation13 + $0xc8] ss:$12 sps:$4 sm:$0xff]  }
 0x608   : > { %3917 = vmatpush1.bf16.msra.mxu0 %v3882_v26 }
 0x609   : > { %v3692_v23 = vpop.f32.mrb[60].mxu0  ;;  %13072 = vrot.lane.b32.xlu0 %v13071_v34, %s15519_s12  ;;  %v3586_v18 = vpop.f32.mrb[60].mxu1  ;;  %v13617_v34 = vld [vmem:[#allocation13 + $0xb0] ss:$12 sps:$4 sm:$0xff]  }
 0x60a   : > { %v3588_v22 = vpop.f32.mrb[61].mxu1  ;;  %v16586_v25 = vpop.f32.mrb[61].mxu0  ;;  %4274 = vmatpush1.bf16.msra.mxu1 %v13617_v34 }
 0x60b   : > { %v3590_v37 = vpop.f32.mrb[62].mxu1  ;;  %v3696_v39 = vpop.f32.mrb[62].mxu0  ;;  %v13076_v42 = vpack.i.bf16 %v3692_v23, %v3588_v22  ;;  %4275 = vmatprep.subr.bf16.mxu1 %v15518_v8 }
 0x60c   : > { %v3884_v45 = vpack.c.bf16 %v3590_v37, %v3586_v18  ;;  %v3592_v47 = vpop.f32.mrb[63].mxu1  ;;  %v16588_v41 = vpop.f32.mrb[63].mxu0 }
 0x60d   : > { %v13081_v53 = vpack.i.bf16 %v3696_v39, %v3592_v47  ;;  %v3885_v7 = vpack.c.bf16 %v3592_v47, %v3588_v22  ;;  %v3892_v54 = vpack.c.bf16 %v16588_v41, %v16586_v25  ;;  %13077 = vrot.lane.b32.xlu1 %v13076_v42, %s15519_s12 }
 0x60e   : > { %4276 = vmatpush1.bf16.msra.mxu1 %v13621_v28 }
 0x60f   : > { %3918 = vmatprep.subr.bf16.mxu0 %v3885_v7  ;;  %4277 = vmatprep.subr.bf16.mxu1 %v15518_v8 }
 0x610   : > { %3919 = vmatpush1.bf16.msra.mxu0 %v3884_v45 }
 0x611   : > { %13082 = vrot.lane.b32.xlu1 %v13081_v53, %s15519_s12 }
 0x661   : > { %v16594_v56 = vpop.f32.mrb[64].mxu1 }
 0x662   : > { %v3790_v30 = vpop.f32.mrb[65].mxu1 }
 0x663   : > { %v13086_v35 = vpack.i.bf16 %v3790_v30, %v16594_v56  ;;  %v16597_v38 = vpop.f32.mrb[66].mxu1 }
 0x664   : > { %v3891_v58 = vpack.c.bf16 %v16597_v38, %v16594_v56  ;;  %v3794_v43 = vpop.f32.mrb[67].mxu1 }
 0x665   : > { %v13091_v52 = vpack.i.bf16 %v3794_v43, %v16597_v38  ;;  %13087 = vrot.lane.b32.xlu0 %v13086_v35, %s15519_s12  ;;  %v13588_v38 = vld [vmem:[#allocation13 + $0x4] ss:$12 sps:$4 sm:$0xff]   ;;  %v13585_v43 = vld [vmem:[#allocation10] sm:$0xff]  }
 0x667   : > { %13092 = vrot.lane.b32.xlu1 %v13091_v52, %s15519_s12  ;;  %v13586_v52 = vld [vmem:[#allocation13] ss:$12 sps:$4 sm:$0xff]  }
 0x669   : > { %v3798_v59 = vpop.f32.mrb[68].mxu1 }
 0x66a   : > { %v3800_v2 = vpop.f32.mrb[69].mxu1 }
 0x66b   : > { %v13096_v4 = vpack.i.bf16 %v3800_v2, %v3798_v59  ;;  %v3802_v11 = vpop.f32.mrb[70].mxu1  ;;  %v13590_v2 = vld [vmem:[#allocation13 + $0x18] ss:$12 sps:$4 sm:$0xff]  }
 0x66c   : > { %v3893_v19 = vpack.c.bf16 %v3802_v11, %v3798_v59  ;;  %v3804_v27 = vpop.f32.mrb[71].mxu1  ;;  %v13592_v59 = vld [vmem:[#allocation13 + $0x1c] ss:$12 sps:$4 sm:$0xff]  }
 0x66d   : > { %v13101_v31 = vpack.i.bf16 %v3804_v27, %v3802_v11  ;;  %13097 = vrot.lane.b32.xlu0 %v13096_v4, %s15519_s12  ;;  %v13596_v4 = vld [vmem:[#allocation13 + $0x34] ss:$12 sps:$4 sm:$0xff]   ;;  %v13594_v11 = vld [vmem:[#allocation13 + $0x30] ss:$12 sps:$4 sm:$0xff]  }
 0x66e   : > { %v13604_v27 = vld [vmem:[#allocation13 + $0x64] ss:$12 sps:$4 sm:$0xff]  }
 0x66f   : > { %13102 = vrot.lane.b32.xlu1 %v13101_v31, %s15519_s12  ;;  %v13602_v31 = vld [vmem:[#allocation13 + $0x60] ss:$12 sps:$4 sm:$0xff]  }
 0x677   : > { %v13068_v46 = vpop.permute.xlu0 %13067 }
 0x678   : > { %v13070_v63 = vunpack.i.h.bf16 %v13068_v46  ;;  %v13069_v3 = vunpack.i.l.bf16 %v13068_v46  ;;  %v13612_v46 = vld [vmem:[#allocation13 + $0x94] ss:$12 sps:$4 sm:$0xff]  }
 0x67a   : > { %v3832_v50 = vsel %vm3831_vm13, %v13069_v3, %v13070_v63  ;;  %v13614_v3 = vld [vmem:[#allocation13 + $0xa8] ss:$12 sps:$4 sm:$0xff]  }
 0x67b   : > { %v13073_v0 = vpop.permute.xlu0 %13072 }
 0x67c   : > { %v13075_v32 = vunpack.i.h.bf16 %v13073_v0  ;;  %v13074_v6 = vunpack.i.l.bf16 %v13073_v0  ;;  %v13620_v0 = vld [vmem:[#allocation13 + $0xc4] ss:$12 sps:$4 sm:$0xff]  }
 0x67e   : > { %v3887_v44 = vpack.c.bf16 %v13075_v32, %v13070_v63  ;;  %v3833_v57 = vsel %vm3831_vm13, %v13074_v6, %v13075_v32  ;;  %v13616_v63 = vld [vmem:[#allocation13 + $0xac] ss:$12 sps:$4 sm:$0xff]   ;;  %v13624_v32 = vld [vmem:[#allocation13 + $0xdc] ss:$12 sps:$4 sm:$0xff]  }
 0x67f   : > { %v3886_v1 = vpack.c.bf16 %v3833_v57, %v3832_v50  ;;  %v13078_v9 = vpop.permute.xlu1 %13077  ;;  %v13622_v6 = vld [vmem:[#allocation13 + $0xd8] ss:$12 sps:$4 sm:$0xff]   ;;  %v13625_v50 = vld [vmem:[#allocation13 + $0xe0] ss:$12 sps:$4 sm:$0xff]   ;;  %v13626_v57 = vld [vmem:[#allocation13 + $0xf0] ss:$12 sps:$4 sm:$0xff]  }
 0x680   : > { %3920 = vmatprep.subr.bf16.mxu0 %v3887_v44  ;;  %v13080_v40 = vunpack.i.h.bf16 %v13078_v9  ;;  %v13079_v15 = vunpack.i.l.bf16 %v13078_v9  ;;  %4278 = vmatpush1.bf16.msra.mxu1 %v13625_v50  ;;  %v13628_v44 = vld [vmem:[#allocation13 + $0xf4] ss:$12 sps:$4 sm:$0xff]   ;;  %v13632_v9 = vld [vmem:[#allocation13 + $0x10c] ss:$12 sps:$4 sm:$0xff]  }
 0x681   : > { %3921 = vmatpush1.bf16.msra.mxu0 %v3886_v1  ;;  %4279 = vmatprep.subr.bf16.mxu1 %v15518_v8  ;;  %v13629_v1 = vld [vmem:[#allocation13 + $0xf8] ss:$12 sps:$4 sm:$0xff]  }
 0x682   : > { %v3834_v20 = vsel %vm3831_vm13, %v13079_v15, %v13080_v40  ;;  %v3898_v15 = vld [vmem:[#allocation11] sm:$0x3] }
 0x683   : > { %v13083_v17 = vpop.permute.xlu1 %13082  ;;  %v3907_v16 = vrot.slane %v3898_v15, %v16444_v48 }
 0x684   : > { %v13085_v51 = vunpack.i.h.bf16 %v13083_v17  ;;  %v13084_v12 = vunpack.i.l.bf16 %v13083_v17  ;;  %4280 = vmatpush1.bf16.msra.mxu1 %v13629_v1  ;;  %v3903_v17 = vrot.slane %v3898_v15, %v16439_v61 }
 0x685   : > { %4281 = vmatprep.subr.bf16.mxu1 %v15518_v8 }
 0x686   : > { %v3889_v21 = vpack.c.bf16 %v13085_v51, %v13080_v40  ;;  %v3835_v26 = vsel %vm3831_vm13, %v13084_v12, %v13085_v51  ;;  %v13633_v40 = vld [vmem:[#allocation13 + $0x110] ss:$12 sps:$4 sm:$0xff]  }
 0x687   : > { %v3888_v29 = vpack.c.bf16 %v3835_v26, %v3834_v20 }
 0x688   : > { %3922 = vmatprep.subr.bf16.mxu0 %v3889_v21  ;;  %4282 = vmatpush1.bf16.msra.mxu1 %v13633_v40 }
 0x689   : > { %3923 = vmatpush1.bf16.msra.mxu0 %v3888_v29 }
 0x68a   : > { %3924 = vmatprep.subr.bf16.mxu0 %v3891_v58 }
 0x68d   : > { %3925 = vmatpush1.bf16.msra.mxu0 %v3890_v55 }
 0x68e   : > { %3926 = vmatprep.subr.bf16.mxu0 %v3893_v19  ;;  %v13598_v19 = vld [vmem:[#allocation13 + $0x48] ss:$12 sps:$4 sm:$0xff]  }
 0x691   : > { %3927 = vmatpush1.bf16.msra.mxu0 %v3892_v54 }
 0x6d7   : > { %v13088_v23 = vpop.permute.xlu0 %13087 }
 0x6d8   : > { %v13090_v18 = vunpack.i.h.bf16 %v13088_v23  ;;  %v13089_v22 = vunpack.i.l.bf16 %v13088_v23 }
 0x6d9   : > { %v13093_v37 = vpop.permute.xlu1 %13092 }
 0x6da   : > { %v13095_v39 = vunpack.i.h.bf16 %v13093_v37  ;;  %v13094_v42 = vunpack.i.l.bf16 %v13093_v37  ;;  %v3868_v45 = vsel %vm3831_vm13, %v13089_v22, %v13090_v18 }
 0x6dc   : > { %v3895_v47 = vpack.c.bf16 %v13095_v39, %v13090_v18  ;;  %v3869_v10 = vsel %vm3831_vm13, %v13094_v42, %v13095_v39 }
 0x6dd   : > { %v3894_v33 = vpack.c.bf16 %v3869_v10, %v3868_v45 }
 0x6de   : > { %3928 = vmatprep.subr.bf16.mxu0 %v3895_v47 }
 0x6df   : > { %v13098_v55 = vpop.permute.xlu0 %13097  ;;  %3929 = vmatpush1.bf16.msra.mxu0 %v3894_v33 }
 0x6e0   : > { %v13100_v53 = vunpack.i.h.bf16 %v13098_v55  ;;  %v13099_v7 = vunpack.i.l.bf16 %v13098_v55  ;;  %v15520_v55 = vmov 0.0  }
 0x6e1   : > { %v13103_v56 = vpop.permute.xlu1 %13102  ;;  %12521 = vmatprep.subr.bf16.mxu1 %v15520_v55 }
 0x6e2   : > { %v13105_v25 = vunpack.i.h.bf16 %v13103_v56  ;;  %v13104_v41 = vunpack.i.l.bf16 %v13103_v56  ;;  %v3870_v54 = vsel %vm3831_vm13, %v13099_v7, %v13100_v53 }
 0x6e4   : > { %v3897_v30 = vpack.c.bf16 %v13105_v25, %v13100_v53  ;;  %v3871_v35 = vsel %vm3831_vm13, %v13104_v41, %v13105_v25 }
 0x6e5   : > { %v3896_v58 = vpack.c.bf16 %v3871_v35, %v3870_v54 }
 0x6e6   : > { %3930 = vmatprep.subr.bf16.mxu0 %v3897_v30 }
 0x6e7   : > { %3931 = vmatpush1.bf16.msra.mxu0 %v3896_v58 }
 0x6e8   : > { %4216 = vmatprep.subr.bf16.mxu0 %v13588_v38 }
 0x6ea   : > { %3949 = vmatmul.mubr.bf16.vlgmr.msra.gmra.mrb[64].mxu0 %v13585_v43 }
 0x6eb   : > { %4217 = vmatpush1.bf16.msra.mxu0 %v13586_v52 }
 0x6ec   : > { %4218 = vmatprep.subr.bf16.mxu0 %v13592_v59 }
 0x6ef   : > { %4219 = vmatpush1.bf16.msra.mxu0 %v13590_v2 }
 0x6f0   : > { %4220 = vmatprep.subr.bf16.mxu0 %v13596_v4  ;;  %v13634_v4 = vld [vmem:[%s17231_s25 + $0x30] sm:$0xff]  }
 0x6f3   : > { %4221 = vmatpush1.bf16.msra.mxu0 %v13594_v11  ;;  %v13636_v11 = vld [vmem:[%s17231_s25 + $0x38] sm:$0xff]  }
 0x6f4   : > { %4222 = vmatprep.subr.bf16.mxu0 %v13600_v14  ;;  %v13638_v14 = vld [vmem:[%s17231_s25 + $0x40] sm:$0xff]  }
 0x6f7   : > { %4223 = vmatpush1.bf16.msra.mxu0 %v13598_v19  ;;  %v13640_v19 = vld [vmem:[%s17231_s25 + $0x48] sm:$0xff]  }
 0x6f8   : > { %4224 = vmatprep.subr.bf16.mxu0 %v13604_v27 }
 0x6fb   : > { %4225 = vmatpush1.bf16.msra.mxu0 %v13602_v31 }
 0x6fc   : > { %4226 = vmatprep.subr.bf16.mxu0 %v13608_v62 }
 0x6ff   : > { %4227 = vmatpush1.bf16.msra.mxu0 %v13606_v36 }
 0x700   : > { %4228 = vmatprep.subr.bf16.mxu0 %v13612_v46 }
 0x703   : > { %4229 = vmatpush1.bf16.msra.mxu0 %v13610_v49 }
 0x704   : > { %4230 = vmatprep.subr.bf16.mxu0 %v13616_v63 }
 0x707   : > { %4231 = vmatpush1.bf16.msra.mxu0 %v13614_v3 }
 0x708   : > { %4232 = vmatprep.subr.bf16.mxu0 %v13620_v0 }
 0x70b   : > { %4233 = vmatpush1.bf16.msra.mxu0 %v13618_v5 }
 0x70c   : > { %4234 = vmatprep.subr.bf16.mxu0 %v13624_v32 }
 0x70f   : > { %4235 = vmatpush1.bf16.msra.mxu0 %v13622_v6 }
 0x710   : > { %4236 = vmatprep.subr.bf16.mxu0 %v13628_v44 }
 0x713   : > { %4237 = vmatpush1.bf16.msra.mxu0 %v13626_v57 }
 0x714   : > { %4238 = vmatprep.subr.bf16.mxu0 %v13632_v9 }
 0x717   : > { %4239 = vmatpush1.bf16.msra.mxu0 %v13630_v13 }
 0x718   : > { %12509 = vmatprep.subr.bf16.mxu0 %v15520_v55 }
 0x7bd   : > { %v3950_v51 = vpop.f32.mrb[64].mxu0 }
 0x7be   : > { %v3951_v12 = vadd.f32 %v3950_v51, %v3903_v17  ;;  %v3952_v20 = vpop.f32.mrb[65].mxu0  ;;  %v4337_v51 = vld [vmem:[#allocation14] sm:$0xf] }
 0x7bf   : > { %v3953_v21 = vadd.f32 %v3952_v20, %v3907_v16  ;;  %v3954_v26 = vpop.f32.mrb[66].mxu0  ;;  %v13637_v20 = vld [vmem:[%s17231_s25 + $0x68] sm:$0xff]  }
 0x7c0   : > { %v3963_v29 = vmul.f32 0.01, %v3951_v12  ;;  %v3955_v34 = vadd.f32 %v3954_v26, %v3903_v17  ;;  %v3956_v28 = vpop.f32.mrb[67].mxu0  ;;  %vm3959_vm14 = vcmp.ge.f32.partialorder %v3951_v12, 0.0  ;;  %v13641_v26 = vld [vmem:[%s17231_s25 + $0x78] sm:$0xff]  }
 0x7c1   : > { %v3964_v23 = vmul.f32 0.01, %v3953_v21  ;;  %v3957_v18 = vadd.f32 %v3956_v28, %v3907_v16  ;;  %vm3960_vm15 = vcmp.ge.f32.partialorder %v3953_v21, 0.0  ;;  %v13644_v28 = vld [vmem:[%s17231_s25 + $0x58] sm:$0xff]  }
 0x7c2   : > { %vm3961_vm0 = vcmp.ge.f32.partialorder %v3955_v34, 0.0  ;;  %v3965_v22 = vmul.f32 0.01, %v3955_v34  ;;  %v3967_v39 = vsel %vm3959_vm14, %v3951_v12, %v3963_v29  ;;  %v13635_v12 = vld [vmem:[%s17231_s25 + $0x60] sm:$0xff]   ;;  %v13642_v29 = vld [vmem:[%s17231_s25 + $0x50] sm:$0xff]   ;;  %vm7579_vm14 = vcmask 1044480  }
 0x7c3   : > { %vm3962_vm1 = vcmp.ge.f32.partialorder %v3957_v18, 0.0  ;;  %v3966_v37 = vmul.f32 0.01, %v3957_v18  ;;  %v3968_v45 = vsel %vm3960_vm15, %v3953_v21, %v3964_v23  ;;  %v13639_v21 = vld [vmem:[%s17231_s25 + $0x70] sm:$0xff]   ;;  %v13645_v23 = vld [vmem:[%s17231_s25 + $0x88] sm:$0xff]   ;;  %vm7581_vm15 = vcmask 1045504  }
 0x7c4   : > { %v3969_v42 = vsel %vm3961_vm0, %v3955_v34, %v3965_v22  ;;  %v13643_v34 = vld [vmem:[%s17231_s25 + $0x80] sm:$0xff]   ;;  %vm7583_vm0 = vcmask 1046528  }
 0x7c5   : > { %v3971_v47 = vpack.c.bf16 %v3969_v42, %v3967_v39  ;;  %v3970_v10 = vsel %vm3962_vm1, %v3957_v18, %v3966_v37  ;;  %v11613_v18 = vld [vmem:[#allocation16] ss:$0 sm:$0xff]  ;;  %vm7594_vm1 = vcmask 64512  }
 0x7c6   : > { %v3972_v33 = vpack.c.bf16 %v3970_v10, %v3968_v45 }
 0x7c8   : > { %11611 = vmatprep.mubr.msk.bf16.mxu0 %vm3831_vm13, %v3972_v33  ;;  %11612 = vmatprep.mubr.msk.bf16.mxu1 %vm3831_vm13, %v3972_v33 }
 0x7c9   : > { %4249 = vmatmul.mubr.bf16.vlgmr.msra.gmra.mrb[68].mxu0 %v3971_v47  ;;  %4292 = vmatmul.mubr.bf16.vlgmr.msra.gmra.mrb[72].mxu1 %v3971_v47 }
 0x7ca   : > { %12517 = vmatprep.mubr.msk.bf16.mxu0 %vm15522_vm2, %v15520_v55  ;;  %12533 = vmatprep.mubr.msk.bf16.mxu1 %vm15522_vm2, %v15520_v55 }
 0x7cb   : > { %12522 = vmatpush3.bf16.msra.mxu1 %v13634_v4  ;;  %v13658_v4 = vld [vmem:[%s17231_s25 + $0x90] sm:$0xff]  }
 0x7cc   : > { %12523 = vmatprep.subr.bf16.mxu1 %v15520_v55 }
 0x7cf   : > { %12524 = vmatpush3.bf16.msra.mxu1 %v13636_v11  ;;  %v13659_v11 = vld [vmem:[%s17231_s25 + $0x120] sm:$0xff]  }
 0x7d0   : > { %12525 = vmatprep.subr.bf16.mxu1 %v15520_v55 }
 0x7d3   : > { %12526 = vmatpush3.bf16.msra.mxu1 %v13638_v14 }
 0x7d4   : > { %12527 = vmatprep.subr.bf16.mxu1 %v15520_v55 }
 0x7d7   : > { %12528 = vmatpush3.bf16.msra.mxu1 %v13640_v19  ;;  %v13660_v19 = vld [vmem:[%s17231_s25 + $0x98] sm:$0xff]  }
 0x7d8   : > { %12529 = vmatprep.subr.bf16.mxu1 %v15520_v55 }
 0x7db   : > { %12530 = vmatpush3.bf16.msra.mxu1 %v13642_v29 }
 0x7dc   : > { %12531 = vmatprep.subr.bf16.mxu1 %v15520_v55 }
 0x7df   : > { %12532 = vmatpush3.bf16.msra.mxu1 %v13644_v28 }
 0x7e0   : > { %12537 = vmatprep.subr.bf16.mxu1 %v15520_v55 }
 0x89c   : > { %v4250_v53 = vpop.f32.mrb[68].mxu0  ;;  %v4293_v7 = vpop.f32.mrb[72].mxu1 }
 0x89d   : > { %v4252_v56 = vpop.f32.mrb[69].mxu0  ;;  %v4295_v25 = vpop.f32.mrb[73].mxu1 }
 0x89e   : > { %v13111_v41 = vpack.i.bf16 %v4293_v7, %v4252_v56  ;;  %v13106_v54 = vpack.i.bf16 %v4252_v56, %v4250_v53  ;;  %v4254_v30 = vpop.f32.mrb[70].mxu0  ;;  %v4296_v35 = vpop.f32.mrb[74].mxu1 }
 0x89f   : > { %v4338_v38 = vpack.c.bf16 %v4254_v30, %v4250_v53  ;;  %v13126_v58 = vpack.i.bf16 %v4296_v35, %v4293_v7  ;;  %v4256_v43 = vpop.f32.mrb[71].mxu0  ;;  %v4298_v52 = vpop.f32.mrb[75].mxu1  ;;  %v13646_v53 = vld [vmem:[%s17231_s25] sm:$0xff]  }
 0x8a0   : > { %v13121_v59 = vpack.i.bf16 %v4296_v35, %v4256_v43  ;;  %v13116_v2 = vpack.i.bf16 %v4256_v43, %v4254_v30  ;;  %13107 = vrot.lane.b32.xlu0 %v13106_v54, %s15521_s1  ;;  %v13647_v7 = vld [vmem:[%s17231_s25 + $0xc0] sm:$0xff]   ;;  %v13649_v54 = vld [vmem:[%s17231_s25 + $0xc8] sm:$0xff]   ;;  %v13650_v30 = vld [vmem:[%s17231_s25 + $0x10] sm:$0xff]  }
 0x8a1   : > { %12510 = vmatpush3.bf16.msra.mxu0 %v4338_v38  ;;  %v13651_v35 = vld [vmem:[%s17231_s25 + $0xd0] sm:$0xff]   ;;  %v13652_v38 = vld [vmem:[%s17231_s25 + $0x18] sm:$0xff]   ;;  %v13654_v43 = vld [vmem:[%s17231_s25 + $0x20] sm:$0xff]  }
 0x8a2   : > { %13117 = vrot.lane.b32.xlu1 %v13116_v2, %s15521_s1  ;;  %12511 = vmatprep.subr.bf16.mxu0 %v15520_v55  ;;  %v13655_v52 = vld [vmem:[%s17231_s25 + $0xe0] sm:$0xff]   ;;  %v13657_v2 = vld [vmem:[%s17231_s25 + $0xe8] sm:$0xff]  }
 0x8a4   : > { %13112 = vrot.lane.b32.xlu0 %v13111_v41, %s15519_s12  ;;  %v13648_v41 = vld [vmem:[%s17231_s25 + $0x8] sm:$0xff]  }
 0x8a6   : > { %13122 = vrot.lane.b32.xlu1 %v13121_v59, %s15519_s12  ;;  %v13656_v59 = vld [vmem:[%s17231_s25 + $0x28] sm:$0xff]  }
 0x8a8   : > { %13127 = vrot.lane.b32.xlu0 %v13126_v58, %s15523_s28  ;;  %v13653_v58 = vld [vmem:[%s17231_s25 + $0xd8] sm:$0xff]  }
 0x912   : > { %v13108_v27 = vpop.permute.xlu0 %13107 }
 0x913   : > { %v13110_v31 = vunpack.i.h.bf16 %v13108_v27  ;;  %v13109_v62 = vunpack.i.l.bf16 %v13108_v27  ;;  %v13661_v27 = vld [vmem:[%s17231_s25 + $0x128] sm:$0xff]  }
 0x914   : > { %v13118_v36 = vpop.permute.xlu1 %13117 }
 0x915   : > { %v13120_v46 = vunpack.i.h.bf16 %v13118_v36  ;;  %v13119_v49 = vunpack.i.l.bf16 %v13118_v36  ;;  %v4313_v3 = vsel %vm4312_vm3, %v13109_v62, %v13110_v31  ;;  %v13662_v31 = vld [vmem:[%s17231_s25 + $0xa0] sm:$0xff]   ;;  %v13663_v62 = vld [vmem:[%s17231_s25 + $0x130] sm:$0xff]   ;;  %v13664_v36 = vld [vmem:[%s17231_s25 + $0xa8] sm:$0xff]  }
 0x916   : > { %v13113_v63 = vpop.permute.xlu0 %13112 }
 0x917   : > { %v4314_v0 = vsel %vm4312_vm3, %v13119_v49, %v13120_v46  ;;  %v13115_v5 = vunpack.i.h.bf16 %v13113_v63  ;;  %v13114_v32 = vunpack.i.l.bf16 %v13113_v63  ;;  %v13665_v46 = vld [vmem:[%s17231_s25 + $0x138] sm:$0xff]   ;;  %v13666_v49 = vld [vmem:[%s17231_s25 + $0xb0] sm:$0xff]   ;;  %v13667_v63 = vld [vmem:[%s17231_s25 + $0x140] sm:$0xff]  }
 0x918   : > { %v4339_v6 = vpack.c.bf16 %v4314_v0, %v4313_v3  ;;  %v13123_v50 = vpop.permute.xlu1 %13122  ;;  %v13668_v3 = vld [vmem:[%s17231_s25 + $0xb8] sm:$0xff]   ;;  %v13669_v0 = vld [vmem:[%s17231_s25 + $0x148] sm:$0xff]  }
 0x919   : > { %v13125_v44 = vunpack.i.h.bf16 %v13123_v50  ;;  %v13124_v57 = vunpack.i.l.bf16 %v13123_v50  ;;  %v4327_v9 = vsel %vm3831_vm13, %v13114_v32, %v13115_v5  ;;  %v13670_v5 = vld [vmem:[%s17231_s25 + $0xf0] sm:$0xff]   ;;  %v13671_v50 = vld [vmem:[%s17231_s25 + $0xf8] sm:$0xff]  }
 0x91a   : > { %v13128_v1 = vpop.permute.xlu0 %13127  ;;  %12512 = vmatpush3.bf16.msra.mxu0 %v4339_v6 }
 0x91b   : > { %v4328_v13 = vsel %vm3831_vm13, %v13124_v57, %v13125_v44  ;;  %12513 = vmatprep.subr.bf16.mxu0 %v15520_v55  ;;  %v13130_v15 = vunpack.i.h.bf16 %v13128_v1  ;;  %v13129_v17 = vunpack.i.l.bf16 %v13128_v1  ;;  %v13672_v44 = vld [vmem:[%s17231_s25 + $0x100] sm:$0xff]   ;;  %v13673_v57 = vld [vmem:[%s17231_s25 + $0x108] sm:$0xff]   ;;  %v13674_v1 = vld [vmem:[%s17231_s25 + $0x110] sm:$0xff]  }
 0x91c   : > { %v4340_v40 = vpack.c.bf16 %v4328_v13, %v4327_v9  ;;  %v13675_v9 = vld [vmem:[%s17231_s25 + $0x118] sm:$0xff]   ;;  %v13676_v13 = vld [vmem:[%s17231_s25 + $0x150] sm:$0xff]  }
 0x91d   : > { %v4341_v16 = vpack.c.bf16 %v13130_v15, %v13129_v17  ;;  %v13677_v15 = vld [vmem:[%s17231_s25 + $0x158] sm:$0xff]   ;;  %v13678_v17 = vld [vmem:[%s17231_s25 + $0x160] sm:$0xff]  }
 0x91e   : > { %12514 = vmatpush3.bf16.msra.mxu0 %v4340_v40 }
 0x91f   : > { %12515 = vmatprep.subr.bf16.mxu0 %v15520_v55 }
 0x922   : > { %12516 = vmatpush3.bf16.msra.mxu0 %v4341_v16  ;;  %v13679_v16 = vld [vmem:[%s17231_s25 + $0x168] sm:$0xff]  }
 0x923   : > { %12553 = vmatprep.subr.bf16.mxu0 %v15520_v55 }
 0x925   : > { %12518 = vmatmul.mubr.msk.bf16.vlgmr.msra.gmra.mrb[72].mxu0 %vm3831_vm13, %v4337_v51  ;;  %v13680_v51 = vld [vmem:[%s17231_s25 + $0x170] sm:$0xff]  }
 0x926   : > { %12554 = vmatpush3.bf16.msra.mxu0 %v13635_v12  ;;  %12565 = vmatprep.mubr.msk.bf16.mxu0 %vm15522_vm2, %v15520_v55  ;;  %v13681_v12 = vld [vmem:[%s17231_s25 + $0x178] sm:$0xff]  }
 0x927   : > { %12555 = vmatprep.subr.bf16.mxu0 %v15520_v55 }
 0x92a   : > { %12556 = vmatpush3.bf16.msra.mxu0 %v13637_v20 }
 0x92b   : > { %12557 = vmatprep.subr.bf16.mxu0 %v15520_v55 }
 0x92e   : > { %12558 = vmatpush3.bf16.msra.mxu0 %v13639_v21  ;;  %v11755_v21 = vld [vmem:[%s1079_s6] ss:$0 sm:$0xff]  ;;  %s17139_s6 = scalar_lea.vmem [#allocation41], %s16110_s5 }
 0x92f   : > { %12559 = vmatprep.subr.bf16.mxu0 %v15520_v55  ;;  %5173 = vrot.lane.b32.xlu1 %v11755_v21, %s15521_s1 }
 0x932   : > { %12560 = vmatpush3.bf16.msra.mxu0 %v13641_v26 }
 0x933   : > { %12561 = vmatprep.subr.bf16.mxu0 %v15520_v55 }
 0x936   : > { %12562 = vmatpush3.bf16.msra.mxu0 %v13643_v34 }
 0x937   : > { %12563 = vmatprep.subr.bf16.mxu0 %v15520_v55 }
 0x93a   : > { %12564 = vmatpush3.bf16.msra.mxu0 %v13645_v23 }
 0x93b   : > { %12585 = vmatprep.subr.bf16.mxu0 %v15520_v55 }
 0x9f8   : > { %v4386_v22 = vpop.f32.mrb[72].mxu0 }
 0x9f9   : > { %v4387_v37 = vadd.f32 %v11613_v18, %v4386_v22  ;;  %v12519_v39 = vpop.f32.mrb[73].mxu0 }
 0x9fa   : > { %v4389_v42 = vpop.f32.mrb[74].mxu0  ;;  %v13682_v39 = vld [vmem:[#allocation19] ss:$24 sps:$4 sm:$0xff]  }
 0x9fb   : > { %vm4392_vm4 = vcmp.ge.f32.partialorder %v4387_v37, 0.0  ;;  %v4393_v45 = vmul.f32 0.01, %v4387_v37  ;;  %v12520_v47 = vpop.f32.mrb[75].mxu0  ;;  %v13684_v42 = vld [vmem:[#allocation19 + $0x4] ss:$24 sps:$4 sm:$0xff]  }
 0x9fd   : > { %v4394_v10 = vsel %vm4392_vm4, %v4387_v37, %v4393_v45 }
 0x9fe   : > { %v16681_v33 = vpack.c.bf16 %v4394_v10, %v4394_v10 }
 0xa00   : > { %v16686_v56 = vshrl.u32 %v16681_v33, 16  ;;  %v4596_v25 = vrot.slane %v16681_v33, 1  ;;  %v4784_v14 = vrot.slane %v16681_v33, 2  ;;  %v4972_v6 = vrot.slane %v16681_v33, 3 }
 0xa02   : > { %12534 = vmatmul.mubr.msk.bf16.vlgmr.msra.gmra.mrb[76].mxu1 %vm4460_vm5, %v16686_v56  ;;  %12566 = vmatmul.mubr.msk.bf16.vlgmr.msra.gmra.mrb[76].mxu0 %vm4460_vm5, %v4596_v25  ;;  %v4690_v32 = vrot.slane %v16686_v56, 1  ;;  %v4878_v40 = vrot.slane %v16686_v56, 2  ;;  %v5066_v20 = vrot.slane %v16686_v56, 3 }
 0xa03   : > { %12538 = vmatpush3.bf16.msra.mxu1 %v13646_v53  ;;  %12586 = vmatpush3.bf16.msra.mxu0 %v13647_v7 }
 0xa04   : > { %12539 = vmatprep.subr.bf16.mxu1 %v15520_v55  ;;  %12587 = vmatprep.subr.bf16.mxu0 %v15520_v55 }
 0xa05   : > { %12549 = vmatprep.mubr.msk.bf16.mxu1 %vm15522_vm2, %v15520_v55  ;;  %12597 = vmatprep.mubr.msk.bf16.mxu0 %vm15522_vm2, %v15520_v55 }
 0xa07   : > { %12540 = vmatpush3.bf16.msra.mxu1 %v13648_v41  ;;  %12588 = vmatpush3.bf16.msra.mxu0 %v13649_v54 }
 0xa08   : > { %12541 = vmatprep.subr.bf16.mxu1 %v15520_v55  ;;  %12589 = vmatprep.subr.bf16.mxu0 %v15520_v55 }
 0xa0b   : > { %12542 = vmatpush3.bf16.msra.mxu1 %v13650_v30  ;;  %12590 = vmatpush3.bf16.msra.mxu0 %v13651_v35 }
 0xa0c   : > { %12543 = vmatprep.subr.bf16.mxu1 %v15520_v55  ;;  %12591 = vmatprep.subr.bf16.mxu0 %v15520_v55 }
 0xa0f   : > { %12544 = vmatpush3.bf16.msra.mxu1 %v13652_v38  ;;  %12592 = vmatpush3.bf16.msra.mxu0 %v13653_v58 }
 0xa10   : > { %12545 = vmatprep.subr.bf16.mxu1 %v15520_v55  ;;  %12593 = vmatprep.subr.bf16.mxu0 %v15520_v55 }
 0xa13   : > { %12546 = vmatpush3.bf16.msra.mxu1 %v13654_v43  ;;  %12594 = vmatpush3.bf16.msra.mxu0 %v13655_v52 }
 0xa14   : > { %12547 = vmatprep.subr.bf16.mxu1 %v15520_v55  ;;  %12595 = vmatprep.subr.bf16.mxu0 %v15520_v55 }
 0xa17   : > { %12548 = vmatpush3.bf16.msra.mxu1 %v13656_v59  ;;  %12596 = vmatpush3.bf16.msra.mxu0 %v13657_v2 }
 0xa18   : > { %12569 = vmatprep.subr.bf16.mxu1 %v15520_v55  ;;  %12617 = vmatprep.subr.bf16.mxu0 %v15520_v55 }
 0xa1a   : > { %12550 = vmatmul.mubr.msk.bf16.vlgmr.msra.gmra.mrb[80].mxu1 %vm4460_vm5, %v16681_v33  ;;  %12598 = vmatmul.mubr.msk.bf16.vlgmr.msra.gmra.mrb[80].mxu0 %vm4460_vm5, %v4784_v14 }
 0xa1b   : > { %12570 = vmatpush3.bf16.msra.mxu1 %v13658_v4  ;;  %12618 = vmatpush3.bf16.msra.mxu0 %v13659_v11 }
 0xa1c   : > { %12571 = vmatprep.subr.bf16.mxu1 %v15520_v55  ;;  %12619 = vmatprep.subr.bf16.mxu0 %v15520_v55 }
 0xa1d   : > { %12581 = vmatprep.mubr.msk.bf16.mxu1 %vm15522_vm2, %v15520_v55  ;;  %12629 = vmatprep.mubr.msk.bf16.mxu0 %vm15522_vm2, %v15520_v55 }
 0xa1f   : > { %12572 = vmatpush3.bf16.msra.mxu1 %v13660_v19  ;;  %12620 = vmatpush3.bf16.msra.mxu0 %v13661_v27 }
 0xa20   : > { %12573 = vmatprep.subr.bf16.mxu1 %v15520_v55  ;;  %12621 = vmatprep.subr.bf16.mxu0 %v15520_v55 }
 0xa23   : > { %12574 = vmatpush3.bf16.msra.mxu1 %v13662_v31  ;;  %12622 = vmatpush3.bf16.msra.mxu0 %v13663_v62 }
 0xa24   : > { %12575 = vmatprep.subr.bf16.mxu1 %v15520_v55  ;;  %12623 = vmatprep.subr.bf16.mxu0 %v15520_v55 }
 0xa27   : > { %12576 = vmatpush3.bf16.msra.mxu1 %v13664_v36  ;;  %12624 = vmatpush3.bf16.msra.mxu0 %v13665_v46 }
 0xa28   : > { %12577 = vmatprep.subr.bf16.mxu1 %v15520_v55  ;;  %12625 = vmatprep.subr.bf16.mxu0 %v15520_v55 }
 0xa2b   : > { %12578 = vmatpush3.bf16.msra.mxu1 %v13666_v49  ;;  %12626 = vmatpush3.bf16.msra.mxu0 %v13667_v63  ;;  %v5147_v49 = vld [vmem:[#allocation17] sm:$0x1] }
 0xa2c   : > { %12579 = vmatprep.subr.bf16.mxu1 %v15520_v55  ;;  %12627 = vmatprep.subr.bf16.mxu0 %v15520_v55 }
 0xa2f   : > { %12580 = vmatpush3.bf16.msra.mxu1 %v13668_v3  ;;  %12628 = vmatpush3.bf16.msra.mxu0 %v13669_v0 }
 0xa30   : > { %12601 = vmatprep.subr.bf16.mxu1 %v15520_v55  ;;  %5297 = vmatprep.subr.bf16.mxu0 %v13684_v42  ;;  %v13706_v42 = vld [vmem:[#allocation22 + $0x30] ss:$24 sps:$4 sm:$0xff]  }
 0xa32   : > { %12582 = vmatmul.mubr.msk.bf16.vlgmr.msra.gmra.mrb[84].mxu1 %vm4460_vm5, %v4690_v32  ;;  %12630 = vmatmul.mubr.msk.bf16.vlgmr.msra.gmra.mrb[84].mxu0 %vm4460_vm5, %v4972_v6 }
 0xa33   : > { %12602 = vmatpush3.bf16.msra.mxu1 %v13670_v5  ;;  %12613 = vmatprep.mubr.msk.bf16.mxu1 %vm15522_vm2, %v15520_v55 }
 0xa34   : > { %12603 = vmatprep.subr.bf16.mxu1 %v15520_v55  ;;  %5329 = vmatprep.mubr.bf16.mxu0 %v15518_v8 }
 0xa35   : > { %5298 = vmatpush1.bf16.msra.mxu0 %v13682_v39  ;;  %v13708_v39 = vld [vmem:[#allocation22 + $0x34] ss:$24 sps:$4 sm:$0xff]  }
 0xa37   : > { %12604 = vmatpush3.bf16.msra.mxu1 %v13671_v50 }
 0xa38   : > { %12605 = vmatprep.subr.bf16.mxu1 %v15520_v55 }
 0xa3b   : > { %12606 = vmatpush3.bf16.msra.mxu1 %v13672_v44 }
 0xa3c   : > { %12607 = vmatprep.subr.bf16.mxu1 %v15520_v55 }
 0xa3f   : > { %12608 = vmatpush3.bf16.msra.mxu1 %v13673_v57 }
 0xa40   : > { %12609 = vmatprep.subr.bf16.mxu1 %v15520_v55 }
 0xa43   : > { %12610 = vmatpush3.bf16.msra.mxu1 %v13674_v1 }
 0xa44   : > { %12611 = vmatprep.subr.bf16.mxu1 %v15520_v55 }
 0xa47   : > { %12612 = vmatpush3.bf16.msra.mxu1 %v13675_v9 }
 0xa48   : > { %12633 = vmatprep.subr.bf16.mxu1 %v15520_v55 }
 0xa4a   : > { %12614 = vmatmul.mubr.msk.bf16.vlgmr.msra.gmra.mrb[88].mxu1 %vm4460_vm5, %v4878_v40 }
 0xa4b   : > { %12634 = vmatpush3.bf16.msra.mxu1 %v13676_v13  ;;  %12645 = vmatprep.mubr.msk.bf16.mxu1 %vm15522_vm2, %v15520_v55 }
 0xa4c   : > { %12635 = vmatprep.subr.bf16.mxu1 %v15520_v55 }
 0xa4f   : > { %12636 = vmatpush3.bf16.msra.mxu1 %v13677_v15 }
 0xa50   : > { %12637 = vmatprep.subr.bf16.mxu1 %v15520_v55 }
 0xa53   : > { %12638 = vmatpush3.bf16.msra.mxu1 %v13678_v17 }
 0xa54   : > { %12639 = vmatprep.subr.bf16.mxu1 %v15520_v55 }
 0xa57   : > { %12640 = vmatpush3.bf16.msra.mxu1 %v13679_v16 }
 0xa58   : > { %12641 = vmatprep.subr.bf16.mxu1 %v15520_v55 }
 0xa5b   : > { %12642 = vmatpush3.bf16.msra.mxu1 %v13680_v51 }
 0xa5c   : > { %12643 = vmatprep.subr.bf16.mxu1 %v15520_v55 }
 0xa5f   : > { %12644 = vmatpush3.bf16.msra.mxu1 %v13681_v12 }
 0xa62   : > { %12646 = vmatmul.mubr.msk.bf16.vlgmr.msra.gmra.mrb[92].mxu1 %vm4460_vm5, %v5066_v20 }
 0xad5   : > { %v4498_v26 = vpop.f32.mrb[76].mxu1  ;;  %v4670_v29 = vpop.f32.mrb[76].mxu0 }
 0xad6   : > { %v12535_v34 = vpop.f32.mrb[77].mxu1  ;;  %v12567_v28 = vpop.f32.mrb[77].mxu0 }
 0xad7   : > { %v4501_v23 = vpop.f32.mrb[78].mxu1  ;;  %v4673_v18 = vpop.f32.mrb[78].mxu0  ;;  %v13690_v34 = vld [vmem:[#allocation19 + $0xc] ss:$24 sps:$4 sm:$0xff]  }
 0xad8   : > { %v12536_v22 = vpop.f32.mrb[79].mxu1  ;;  %v12568_v37 = vpop.f32.mrb[79].mxu0 }
 0xad9   : > { %v5174_v28 = vpop.permute.xlu1 %5173  ;;  %v13700_v22 = vld [vmem:[#allocation22] ss:$24 sps:$4 sm:$0xff]   ;;  %v13702_v37 = vld [vmem:[#allocation22 + $0x4] ss:$24 sps:$4 sm:$0xff]  }
 0xada   : > { %7154 = vmatprep.subr.bf16.mxu1 %v13702_v37  ;;  %v13759_v37 = vld [vmem:[#allocation22 + $0x1bc] ss:$24 sps:$4 sm:$0xff]  }
 0xadb   : > { %7155 = vmatpush1.bf16.msra.mxu1 %v13700_v22  ;;  %v13751_v22 = vld [vmem:[#allocation22 + $0x188] ss:$24 sps:$4 sm:$0xff]  }
 0xadc   : > { %7156 = vmatprep.subr.bf16.mxu1 %v13708_v39  ;;  %v13757_v39 = vld [vmem:[#allocation22 + $0x1b8] ss:$24 sps:$4 sm:$0xff]  }
 0xadf   : > { %7157 = vmatpush1.bf16.msra.mxu1 %v13706_v42  ;;  %v13765_v42 = vld [vmem:[#allocation22 + $0x1ec] ss:$24 sps:$4 sm:$0xff]  }
 0xaed   : > { %v4576_v45 = vpop.f32.mrb[80].mxu1  ;;  %v4858_v47 = vpop.f32.mrb[80].mxu0 }
 0xaee   : > { %v4577_v10 = vadd.f32 %v4576_v45, %v4498_v26  ;;  %v12551_v33 = vpop.f32.mrb[81].mxu1  ;;  %v12599_v53 = vpop.f32.mrb[81].mxu0  ;;  %v13687_v26 = vld [vmem:[#allocation19 + $0x34] ss:$24 sps:$4 sm:$0xff]  }
 0xaef   : > { %v4579_v7 = vpop.f32.mrb[82].mxu1  ;;  %v4861_v56 = vpop.f32.mrb[82].mxu0  ;;  %5299 = vmatprep.subr.bf16.mxu0 %v13687_v26  ;;  %v13714_v45 = vld [vmem:[#allocation22 + $0x64] ss:$24 sps:$4 sm:$0xff]   ;;  %v13718_v33 = vld [vmem:[#allocation22 + $0x90] ss:$24 sps:$4 sm:$0xff]  }
 0xaf0   : > { %v12552_v25 = vpop.f32.mrb[83].mxu1  ;;  %v12600_v41 = vpop.f32.mrb[83].mxu0  ;;  %v4676_v54 = vadd.f32 %v4670_v29, %v4577_v10  ;;  %v13685_v29 = vld [vmem:[#allocation19 + $0x30] ss:$24 sps:$4 sm:$0xff]   ;;  %7158 = vmatprep.subr.bf16.mxu1 %v13714_v45  ;;  %v13733_v26 = vld [vmem:[#allocation22 + $0xf8] ss:$24 sps:$4 sm:$0xff]  }
 0xaf1   : > { %5300 = vmatpush1.bf16.msra.mxu0 %v13685_v29  ;;  %v13720_v10 = vld [vmem:[#allocation22 + $0x94] ss:$24 sps:$4 sm:$0xff]   ;;  %v13726_v53 = vld [vmem:[#allocation22 + $0xc4] ss:$24 sps:$4 sm:$0xff]   ;;  %v13724_v7 = vld [vmem:[#allocation22 + $0xc0] ss:$24 sps:$4 sm:$0xff]  }
 0xaf2   : > { %5338 = vmatprep.subr.bf16.mxu0 %v13690_v34  ;;  %v13732_v56 = vld [vmem:[#allocation22 + $0xf4] ss:$24 sps:$4 sm:$0xff]   ;;  %v13730_v25 = vld [vmem:[#allocation22 + $0xf0] ss:$24 sps:$4 sm:$0xff]   ;;  %v13738_v41 = vld [vmem:[#allocation22 + $0x124] ss:$24 sps:$4 sm:$0xff]  }
 0xaf3   : > { %v13741_v29 = vld [vmem:[#allocation22 + $0x12c] ss:$24 sps:$4 sm:$0xff]   ;;  %v13739_v34 = vld [vmem:[#allocation22 + $0x128] ss:$24 sps:$4 sm:$0xff]  }
 0xaf4   : > { %v13763_v45 = vld [vmem:[#allocation22 + $0x1e8] ss:$24 sps:$4 sm:$0xff]  }
 0xb05   : > { %v4764_v30 = vpop.f32.mrb[84].mxu1  ;;  %v5046_v35 = vpop.f32.mrb[84].mxu0 }
 0xb06   : > { %v4770_v38 = vadd.f32 %v4764_v30, %v4676_v54  ;;  %v12583_v58 = vpop.f32.mrb[85].mxu1  ;;  %v12631_v43 = vpop.f32.mrb[85].mxu0  ;;  %v13736_v54 = vld [vmem:[#allocation22 + $0x120] ss:$24 sps:$4 sm:$0xff]   ;;  %v13744_v30 = vld [vmem:[#allocation22 + $0x154] ss:$24 sps:$4 sm:$0xff]  }
 0xb07   : > { %v4767_v52 = vpop.f32.mrb[86].mxu1  ;;  %v5049_v59 = vpop.f32.mrb[86].mxu0  ;;  %v13748_v58 = vld [vmem:[#allocation22 + $0x180] ss:$24 sps:$4 sm:$0xff]   ;;  %v13756_v43 = vld [vmem:[#allocation22 + $0x1b4] ss:$24 sps:$4 sm:$0xff]  }
 0xb08   : > { %v12584_v2 = vpop.f32.mrb[87].mxu1  ;;  %v12632_v4 = vpop.f32.mrb[87].mxu0  ;;  %v4864_v11 = vadd.f32 %v4858_v47, %v4770_v38  ;;  %v13712_v47 = vld [vmem:[#allocation22 + $0x60] ss:$24 sps:$4 sm:$0xff]   ;;  %v13750_v38 = vld [vmem:[#allocation22 + $0x184] ss:$24 sps:$4 sm:$0xff]  }
 0xb09   : > { %7159 = vmatpush1.bf16.msra.mxu1 %v13712_v47  ;;  %v13754_v52 = vld [vmem:[#allocation22 + $0x1b0] ss:$24 sps:$4 sm:$0xff]   ;;  %v13762_v59 = vld [vmem:[#allocation22 + $0x1e4] ss:$24 sps:$4 sm:$0xff]   ;;  %v13760_v2 = vld [vmem:[#allocation22 + $0x1e0] ss:$24 sps:$4 sm:$0xff]  }
 0xb0a   : > { %7160 = vmatprep.subr.bf16.mxu1 %v13720_v10  ;;  %v13768_v4 = vld [vmem:[#allocation22 + $0x214] ss:$24 sps:$4 sm:$0xff]   ;;  %v13769_v10 = vld [vmem:[#allocation22 + $0x218] ss:$24 sps:$4 sm:$0xff]  }
 0xb0b   : > { %v13771_v47 = vld [vmem:[#allocation22 + $0x21c] ss:$24 sps:$4 sm:$0xff]  }
 0xb0d   : > { %7161 = vmatpush1.bf16.msra.mxu1 %v13718_v33  ;;  %v13777_v33 = vld [vmem:[#allocation22 + $0x24c] ss:$24 sps:$4 sm:$0xff]  }
 0xb0e   : > { %7162 = vmatprep.subr.bf16.mxu1 %v13726_v53  ;;  %v13775_v53 = vld [vmem:[#allocation22 + $0x248] ss:$24 sps:$4 sm:$0xff]  }
 0xb11   : > { %7163 = vmatpush1.bf16.msra.mxu1 %v13724_v7  ;;  %v13783_v7 = vld [vmem:[#allocation22 + $0x27c] ss:$24 sps:$4 sm:$0xff]  }
 0xb12   : > { %7164 = vmatprep.subr.bf16.mxu1 %v13732_v56  ;;  %v13781_v56 = vld [vmem:[#allocation22 + $0x278] ss:$24 sps:$4 sm:$0xff]  }
 0xb15   : > { %7165 = vmatpush1.bf16.msra.mxu1 %v13730_v25  ;;  %v13789_v25 = vld [vmem:[#allocation22 + $0x2ac] ss:$24 sps:$4 sm:$0xff]  }
 0xb16   : > { %7166 = vmatprep.subr.bf16.mxu1 %v13738_v41  ;;  %v13787_v41 = vld [vmem:[#allocation22 + $0x2a8] ss:$24 sps:$4 sm:$0xff]  }
 0xb19   : > { %7167 = vmatpush1.bf16.msra.mxu1 %v13736_v54  ;;  %v13792_v54 = vld [vmem:[#allocation22 + $0x2d4] ss:$24 sps:$4 sm:$0xff]  }
 0xb1a   : > { %7168 = vmatprep.subr.bf16.mxu1 %v13744_v30  ;;  %v13795_v30 = vld [vmem:[#allocation22 + $0x2dc] ss:$24 sps:$4 sm:$0xff]  }
 0xb1d   : > { %v4952_v14 = vpop.f32.mrb[88].mxu1 }
 0xb1e   : > { %v4958_v19 = vadd.f32 %v4952_v14, %v4864_v11  ;;  %v12615_v27 = vpop.f32.mrb[89].mxu1  ;;  %v13766_v11 = vld [vmem:[#allocation22 + $0x210] ss:$24 sps:$4 sm:$0xff]   ;;  %v13774_v14 = vld [vmem:[#allocation22 + $0x244] ss:$24 sps:$4 sm:$0xff]  }
 0xb1f   : > { %v4955_v31 = vpop.f32.mrb[90].mxu1  ;;  %v13780_v27 = vld [vmem:[#allocation22 + $0x274] ss:$24 sps:$4 sm:$0xff]  }
 0xb20   : > { %v12616_v62 = vpop.f32.mrb[91].mxu1  ;;  %v5052_v36 = vadd.f32 %v5046_v35, %v4958_v19  ;;  %v13742_v35 = vld [vmem:[#allocation22 + $0x150] ss:$24 sps:$4 sm:$0xff]   ;;  %v13772_v19 = vld [vmem:[#allocation22 + $0x240] ss:$24 sps:$4 sm:$0xff]  }
 0xb21   : > { %7169 = vmatpush1.bf16.msra.mxu1 %v13742_v35  ;;  %v13778_v31 = vld [vmem:[#allocation22 + $0x270] ss:$24 sps:$4 sm:$0xff]   ;;  %v13786_v62 = vld [vmem:[#allocation22 + $0x2a4] ss:$24 sps:$4 sm:$0xff]  }
 0xb22   : > { %7170 = vmatprep.subr.bf16.mxu1 %v13750_v38  ;;  %v13790_v35 = vld [vmem:[#allocation22 + $0x2d0] ss:$24 sps:$4 sm:$0xff]  }
 0xb23   : > { %v13793_v38 = vld [vmem:[#allocation22 + $0x2d8] ss:$24 sps:$4 sm:$0xff]  }
 0xb25   : > { %7171 = vmatpush1.bf16.msra.mxu1 %v13748_v58  ;;  %v13798_v58 = vld [vmem:[#allocation22 + $0x304] ss:$24 sps:$4 sm:$0xff]  }
 0xb26   : > { %7172 = vmatprep.subr.bf16.mxu1 %v13756_v43  ;;  %v13801_v43 = vld [vmem:[#allocation22 + $0x30c] ss:$24 sps:$4 sm:$0xff]  }
 0xb29   : > { %7173 = vmatpush1.bf16.msra.mxu1 %v13754_v52  ;;  %v16805_v52 = vld [vmem:[#allocation20] sm:$0x3f] }
 0xb2a   : > { %7174 = vmatprep.subr.bf16.mxu1 %v13762_v59  ;;  %v5267_v59 = vrot.slane %v16805_v52, %v16439_v61 }
 0xb2d   : > { %7175 = vmatpush1.bf16.msra.mxu1 %v13760_v2  ;;  %v5271_v2 = vrot.slane %v16805_v52, %v16444_v48 }
 0xb2e   : > { %7176 = vmatprep.subr.bf16.mxu1 %v13768_v4 }
 0xb31   : > { %7177 = vmatpush1.bf16.msra.mxu1 %v13766_v11 }
 0xb32   : > { %7178 = vmatprep.subr.bf16.mxu1 %v13774_v14 }
 0xb35   : > { %v5140_v46 = vpop.f32.mrb[92].mxu1  ;;  %7179 = vmatpush1.bf16.msra.mxu1 %v13772_v19 }
 0xb36   : > { %v5146_v63 = vadd.f32 %v5140_v46, %v5052_v36  ;;  %v12647_v3 = vpop.f32.mrb[93].mxu1  ;;  %7180 = vmatprep.subr.bf16.mxu1 %v13780_v27  ;;  %v13784_v36 = vld [vmem:[#allocation22 + $0x2a0] ss:$24 sps:$4 sm:$0xff]  }
 0xb37   : > { %v5143_v0 = vpop.f32.mrb[94].mxu1 }
 0xb38   : > { %v5148_v5 = vadd.f32 %v5147_v49, %v5146_v63  ;;  %v12648_v32 = vpop.f32.mrb[95].mxu1  ;;  %v13688_v63 = vld [vmem:[#allocation19 + $0x8] ss:$24 sps:$4 sm:$0xff]   ;;  %v13693_v0 = vld [vmem:[#allocation19 + $0x3c] ss:$24 sps:$4 sm:$0xff]  }
 0xb39   : > { %7181 = vmatpush1.bf16.msra.mxu1 %v13778_v31  ;;  %v13696_v32 = vld [vmem:[#allocation19 + $0x14] ss:$24 sps:$4 sm:$0xff]   ;;  %v5278_v31 = vsub.s32 3, %v16436_v60 }
 0xb3a   : > { %14625 = vtanh.f32 %v5148_v5  ;;  %v5151_v6 = vmin.f32 %v5148_v5, 20.0  ;;  %vm5150_vm8 = vcmp.gt.f32.partialorder %v5148_v5, 20.0  ;;  %7182 = vmatprep.subr.bf16.mxu1 %v13786_v62 }
 0xb3c   : > { %v5152_v50 = vmul.f32 1.442695, %v5151_v6  ;;  %v13694_v6 = vld [vmem:[#allocation19 + $0x10] ss:$24 sps:$4 sm:$0xff]  }
 0xb3d   : > { %7183 = vmatpush1.bf16.msra.mxu1 %v13784_v36 }
 0xb3e   : > { %14627 = vpow2.f32 %v5152_v50  ;;  %v13699_v50 = vld [vmem:[#allocation19 + $0x44] ss:$24 sps:$4 sm:$0xff]   ;;  %7184 = vmatprep.subr.bf16.mxu1 %v13792_v54  ;;  %v13838_v54 = vld [vmem:[#allocation22 + $0x450] ss:$24 sps:$4 sm:$0xff]  }
 0xb41   : > { %7185 = vmatpush1.bf16.msra.mxu1 %v13790_v35  ;;  %v13846_v35 = vld [vmem:[#allocation22 + $0x484] ss:$24 sps:$4 sm:$0xff]  }
 0xb42   : > { %7195 = vmatprep.subr.bf16.mxu1 %v13798_v58  ;;  %v13844_v58 = vld [vmem:[#allocation22 + $0x480] ss:$24 sps:$4 sm:$0xff]  }
 0xb44   : > { %v16788_v44 = vpop.eup %14625 }
 0xb45   : > { %5183 = vst.msk [vmem:[%s1251_s23] sm:$0x1] %vm5182_vm6, %v16788_v44 }
 0xb48   : > { %v14628_v57 = vpop.eup %14627 }
 0xb49   : > { %v5154_v1 = vadd.f32 1.0, %v14628_v57  ;;  %v5157_v9 = vmul.f32 -0.5, %v14628_v57  ;;  %v5160_v40 = vand.u32 2147483647, %v14628_v57 }
 0xb4b   : > { %14629 = vlog2.f32 %v5154_v1  ;;  %v5158_v13 = vadd.f32 1.0, %v5157_v9  ;;  %vm5161_vm7 = vcmp.lt.f32.partialorder %v5160_v40, 0.0004427343  ;;  %v13703_v1 = vld [vmem:[#allocation22 + $0x8] ss:$24 sps:$4 sm:$0xff]  }
 0xb4c   : > { %v13711_v9 = vld [vmem:[#allocation22 + $0x3c] ss:$24 sps:$4 sm:$0xff]   ;;  %v13717_v40 = vld [vmem:[#allocation22 + $0x6c] ss:$24 sps:$4 sm:$0xff]  }
 0xb4d   : > { %v5159_v16 = vmul.f32 %v14628_v57, %v5158_v13  ;;  %v13697_v57 = vld [vmem:[#allocation19 + $0x40] ss:$24 sps:$4 sm:$0xff]  }
 0xb4e   : > { %v13709_v13 = vld [vmem:[#allocation22 + $0x38] ss:$24 sps:$4 sm:$0xff]  }
 0xb55   : > { %v14630_v15 = vpop.eup %14629 }
 0xb56   : > { %v5156_v17 = vmul.f32 0.6931472, %v14630_v15  ;;  %v13715_v15 = vld [vmem:[#allocation22 + $0x68] ss:$24 sps:$4 sm:$0xff]  }
 0xb58   : > { %v5162_v51 = vsel %vm5161_vm7, %v5159_v16, %v5156_v17  ;;  %v13723_v17 = vld [vmem:[#allocation22 + $0x9c] ss:$24 sps:$4 sm:$0xff]   ;;  %v13721_v16 = vld [vmem:[#allocation22 + $0x98] ss:$24 sps:$4 sm:$0xff]  }
 0xb59   : > { %v16795_v12 = vsel %vm5150_vm8, %v5148_v5, %v5162_v51  ;;  %v13691_v5 = vld [vmem:[#allocation19 + $0x38] ss:$24 sps:$4 sm:$0xff]  }
 0xb5a   : > { %v5164_v20 = vmul.f32 0.5, %v16795_v12  ;;  %v13729_v51 = vld [vmem:[#allocation22 + $0xcc] ss:$24 sps:$4 sm:$0xff]  }
 0xb5c   : > { %v5165_v21 = vmul.f32 1.442695, %v5164_v20  ;;  %v13727_v20 = vld [vmem:[#allocation22 + $0xc8] ss:$24 sps:$4 sm:$0xff]  }
 0xb5e   : > { %14631 = vpow2.f32 %v5165_v21  ;;  %v13735_v21 = vld [vmem:[#allocation22 + $0xfc] ss:$24 sps:$4 sm:$0xff]  }
 0xb68   : > { %v14632_v23 = vpop.eup %14631 }
 0xb69   : > { %v5176_v18 = vmul.f32 %v14632_v23, %v5174_v28  ;;  %v13747_v28 = vld [vmem:[#allocation22 + $0x15c] ss:$24 sps:$4 sm:$0xff]   ;;  %v13745_v23 = vld [vmem:[#allocation22 + $0x158] ss:$24 sps:$4 sm:$0xff]  }
 0xb6b   : > { %5178 = vrot.lane.b32.xlu0 %v5176_v18, %s15523_s28  ;;  %v13753_v18 = vld [vmem:[#allocation22 + $0x18c] ss:$24 sps:$4 sm:$0xff]  }
 0xbdd   : > { %v5179_v46 = vpop.permute.xlu0 %5178 }
 0xbde   : > { %v5181_v49 = vadd.f32 %v16788_v44, %v5179_v46  ;;  %v13705_v44 = vld [vmem:[#allocation22 + $0xc] ss:$24 sps:$4 sm:$0xff]   ;;  %v13796_v46 = vld [vmem:[#allocation22 + $0x300] ss:$24 sps:$4 sm:$0xff]  }
 0xbe0   : > { %v5189_v3 = vpack.c.bf16 %v5181_v49, %v5181_v49  ;;  %v13799_v49 = vld [vmem:[#allocation22 + $0x308] ss:$24 sps:$4 sm:$0xff]  }
 0xbe2   : > { %11768 = vmatmul.mubr.msk.bf16.vlgmr.msra.gmra.mrb[88].mxu0 %vm4312_vm3, %v5189_v3 }
 0xbe3   : > { %5339 = vmatpush1.bf16.msra.mxu0 %v13688_v63  ;;  %5370 = vmatprep.mubr.bf16.mxu0 %v15518_v8 }
 0xbe4   : > { %5340 = vmatprep.subr.bf16.mxu0 %v13693_v0  ;;  %v13807_v0 = vld [vmem:[#allocation22 + $0x33c] ss:$24 sps:$4 sm:$0xff]  }
 0xbe7   : > { %5341 = vmatpush1.bf16.msra.mxu0 %v13691_v5  ;;  %v5279_v5 = vrot.slane %v16805_v52, %v5278_v31  ;;  %v13859_v31 = vld [vmem:[#allocation22 + $0x4e8] ss:$24 sps:$4 sm:$0xff]  }
 0xbe8   : > { %5379 = vmatprep.subr.bf16.mxu0 %v13696_v32 }
 0xbea   : > { %11769 = vmatmul.mubr.msk.bf16.vlgmr.msra.gmra.mrb[92].mxu0 %vm4312_vm3, %v5189_v3 }
 0xbeb   : > { %5380 = vmatpush1.bf16.msra.mxu0 %v13694_v6  ;;  %5411 = vmatprep.mubr.bf16.mxu0 %v15518_v8  ;;  %v13802_v6 = vld [vmem:[#allocation22 + $0x330] ss:$24 sps:$4 sm:$0xff]  }
 0xbec   : > { %5381 = vmatprep.subr.bf16.mxu0 %v13699_v50  ;;  %v13805_v50 = vld [vmem:[#allocation22 + $0x338] ss:$24 sps:$4 sm:$0xff]  }
 0xbef   : > { %5382 = vmatpush1.bf16.msra.mxu0 %v13697_v57 }
 0xbf0   : > { %7277 = vmatprep.subr.bf16.mxu0 %v13705_v44  ;;  %v13810_v44 = vld [vmem:[#allocation22 + $0x364] ss:$24 sps:$4 sm:$0xff]  }
 0xbf2   : > { %11770 = vmatmul.mubr.msk.bf16.vlgmr.msra.gmra.mrb[96].mxu0 %vm4312_vm3, %v5189_v3  ;;  %v13804_v3 = vld [vmem:[#allocation22 + $0x334] ss:$24 sps:$4 sm:$0xff]  }
 0xbf3   : > { %7278 = vmatpush1.bf16.msra.mxu0 %v13703_v1  ;;  %v13813_v1 = vld [vmem:[#allocation22 + $0x36c] ss:$24 sps:$4 sm:$0xff]  }
 0xbf4   : > { %7279 = vmatprep.subr.bf16.mxu0 %v13711_v9 }
 0xbf7   : > { %7280 = vmatpush1.bf16.msra.mxu0 %v13709_v13 }
 0xbf8   : > { %7281 = vmatprep.subr.bf16.mxu0 %v13717_v40 }
 0xbfb   : > { %7282 = vmatpush1.bf16.msra.mxu0 %v13715_v15 }
 0xbfc   : > { %7283 = vmatprep.subr.bf16.mxu0 %v13723_v17  ;;  %v13808_v17 = vld [vmem:[#allocation22 + $0x360] ss:$24 sps:$4 sm:$0xff]  }
 0xbff   : > { %7284 = vmatpush1.bf16.msra.mxu0 %v13721_v16  ;;  %v13811_v16 = vld [vmem:[#allocation22 + $0x368] ss:$24 sps:$4 sm:$0xff]  }
 0xc00   : > { %7285 = vmatprep.subr.bf16.mxu0 %v13729_v51  ;;  %v13816_v51 = vld [vmem:[#allocation22 + $0x394] ss:$24 sps:$4 sm:$0xff]  }
 0xc03   : > { %7286 = vmatpush1.bf16.msra.mxu0 %v13727_v20  ;;  %v13819_v20 = vld [vmem:[#allocation22 + $0x39c] ss:$24 sps:$4 sm:$0xff]  }
 0xc04   : > { %7287 = vmatprep.subr.bf16.mxu0 %v13735_v21 }
 0xc07   : > { %7288 = vmatpush1.bf16.msra.mxu0 %v13733_v26  ;;  %v13814_v26 = vld [vmem:[#allocation22 + $0x390] ss:$24 sps:$4 sm:$0xff]  }
 0xc08   : > { %7289 = vmatprep.subr.bf16.mxu0 %v13741_v29  ;;  %v13817_v29 = vld [vmem:[#allocation22 + $0x398] ss:$24 sps:$4 sm:$0xff]  }
 0xc0b   : > { %7290 = vmatpush1.bf16.msra.mxu0 %v13739_v34 }
 0xc0c   : > { %7291 = vmatprep.subr.bf16.mxu0 %v13747_v28  ;;  %v13822_v28 = vld [vmem:[#allocation22 + $0x3c4] ss:$24 sps:$4 sm:$0xff]  }
 0xc0f   : > { %7292 = vmatpush1.bf16.msra.mxu0 %v13745_v23  ;;  %v13825_v23 = vld [vmem:[#allocation22 + $0x3cc] ss:$24 sps:$4 sm:$0xff]  }
 0xc10   : > { %7293 = vmatprep.subr.bf16.mxu0 %v13753_v18 }
 0xc13   : > { %7294 = vmatpush1.bf16.msra.mxu0 %v13751_v22 }
 0xc14   : > { %7295 = vmatprep.subr.bf16.mxu0 %v13759_v37  ;;  %v13820_v37 = vld [vmem:[#allocation22 + $0x3c0] ss:$24 sps:$4 sm:$0xff]  }
 0xc17   : > { %7296 = vmatpush1.bf16.msra.mxu0 %v13757_v39  ;;  %v13823_v39 = vld [vmem:[#allocation22 + $0x3c8] ss:$24 sps:$4 sm:$0xff]  }
 0xc18   : > { %7297 = vmatprep.subr.bf16.mxu0 %v13765_v42  ;;  %v13828_v42 = vld [vmem:[#allocation22 + $0x3f4] ss:$24 sps:$4 sm:$0xff]  }
 0xc1b   : > { %7298 = vmatpush1.bf16.msra.mxu0 %v13763_v45  ;;  %v13831_v45 = vld [vmem:[#allocation22 + $0x3fc] ss:$24 sps:$4 sm:$0xff]  }
 0xc1c   : > { %7299 = vmatprep.subr.bf16.mxu0 %v13771_v47  ;;  %v13826_v47 = vld [vmem:[#allocation22 + $0x3f0] ss:$24 sps:$4 sm:$0xff]  }
 0xc1f   : > { %7300 = vmatpush1.bf16.msra.mxu0 %v13769_v10  ;;  %v13829_v10 = vld [vmem:[#allocation22 + $0x3f8] ss:$24 sps:$4 sm:$0xff]  }
 0xc20   : > { %7301 = vmatprep.subr.bf16.mxu0 %v13777_v33  ;;  %v13834_v33 = vld [vmem:[#allocation22 + $0x424] ss:$24 sps:$4 sm:$0xff]  }
 0xc23   : > { %7302 = vmatpush1.bf16.msra.mxu0 %v13775_v53  ;;  %v13837_v53 = vld [vmem:[#allocation22 + $0x42c] ss:$24 sps:$4 sm:$0xff]  }
 0xc24   : > { %7303 = vmatprep.subr.bf16.mxu0 %v13783_v7  ;;  %v13832_v7 = vld [vmem:[#allocation22 + $0x420] ss:$24 sps:$4 sm:$0xff]  }
 0xc27   : > { %7304 = vmatpush1.bf16.msra.mxu0 %v13781_v56  ;;  %v13835_v56 = vld [vmem:[#allocation22 + $0x428] ss:$24 sps:$4 sm:$0xff]  }
 0xc28   : > { %7305 = vmatprep.subr.bf16.mxu0 %v13789_v25  ;;  %v13840_v25 = vld [vmem:[#allocation22 + $0x454] ss:$24 sps:$4 sm:$0xff]  }
 0xc2b   : > { %7306 = vmatpush1.bf16.msra.mxu0 %v13787_v41  ;;  %v13843_v41 = vld [vmem:[#allocation22 + $0x45c] ss:$24 sps:$4 sm:$0xff]  }
 0xc2c   : > { %7307 = vmatprep.subr.bf16.mxu0 %v13795_v30  ;;  %v13841_v30 = vld [vmem:[#allocation22 + $0x458] ss:$24 sps:$4 sm:$0xff]  }
 0xc2f   : > { %7308 = vmatpush1.bf16.msra.mxu0 %v13793_v38  ;;  %v13849_v38 = vld [vmem:[#allocation22 + $0x48c] ss:$24 sps:$4 sm:$0xff]  }
 0xc30   : > { %7318 = vmatprep.subr.bf16.mxu0 %v13801_v43  ;;  %v13847_v43 = vld [vmem:[#allocation22 + $0x488] ss:$24 sps:$4 sm:$0xff]  }
 0xcb5   : > { %v5331_v4 = vpop.f32.mrb[88].mxu0 }
 0xcb6   : > { %v5332_v11 = vadd.f32 %v5331_v4, %v5267_v59  ;;  %v5333_v14 = vpop.f32.mrb[89].mxu0  ;;  %v13852_v59 = vld [vmem:[#allocation22 + $0x4b4] ss:$24 sps:$4 sm:$0xff]   ;;  %v13850_v4 = vld [vmem:[#allocation22 + $0x4b0] ss:$24 sps:$4 sm:$0xff]  }
 0xcb7   : > { %v5334_v19 = vadd.f32 %v5333_v14, %v5271_v2  ;;  %v5335_v27 = vpop.f32.mrb[90].mxu0  ;;  %v13855_v2 = vld [vmem:[#allocation22 + $0x4bc] ss:$24 sps:$4 sm:$0xff]  }
 0xcb8   : > { %v5336_v62 = vpop.f32.mrb[91].mxu0  ;;  %v16814_v63 = vpack.c.bf16 %v5332_v11, %v5332_v11  ;;  %v13853_v11 = vld [vmem:[#allocation22 + $0x4b8] ss:$24 sps:$4 sm:$0xff]   ;;  %v13858_v14 = vld [vmem:[#allocation22 + $0x4e4] ss:$24 sps:$4 sm:$0xff]  }
 0xcb9   : > { %v16812_v36 = vpack.c.bf16 %v5334_v19, %v5334_v19  ;;  %v13861_v19 = vld [vmem:[#allocation22 + $0x4ec] ss:$24 sps:$4 sm:$0xff]   ;;  %v13856_v27 = vld [vmem:[#allocation22 + $0x4e0] ss:$24 sps:$4 sm:$0xff]  }
 0xcba   : > { %v13864_v62 = vld [vmem:[#allocation22 + $0x514] ss:$24 sps:$4 sm:$0xff]  }
 0xcbb   : > { %7186 = vmatprep.mubr.bf16.mxu1 %v16812_v36  ;;  %7309 = vmatprep.mubr.bf16.mxu0 %v16812_v36 }
 0xcbc   : > { %7187 = vmatmul.mubr.bf16.vlgmr.msra.gmra.mrb[96].mxu1 %v16814_v63  ;;  %7310 = vmatmul.mubr.bf16.vlgmr.msra.gmra.mrb[100].mxu0 %v16814_v63 }
 0xcbd   : > { %7196 = vmatpush1.bf16.msra.mxu1 %v13796_v46  ;;  %7319 = vmatpush1.bf16.msra.mxu0 %v13799_v49  ;;  %v16821_v32 = vpop.f32.mrb[92].mxu0  ;;  %v13867_v46 = vld [vmem:[#allocation22 + $0x51c] ss:$24 sps:$4 sm:$0xff]   ;;  %v13862_v49 = vld [vmem:[#allocation22 + $0x510] ss:$24 sps:$4 sm:$0xff]  }
 0xcbe   : > { %v5374_v57 = vpop.f32.mrb[93].mxu0  ;;  %7197 = vmatprep.subr.bf16.mxu1 %v13804_v3  ;;  %7320 = vmatprep.subr.bf16.mxu0 %v13807_v0  ;;  %v13865_v3 = vld [vmem:[#allocation22 + $0x518] ss:$24 sps:$4 sm:$0xff]   ;;  %v13870_v0 = vld [vmem:[#allocation22 + $0x544] ss:$24 sps:$4 sm:$0xff]  }
 0xcbf   : > { %v5375_v9 = vadd.f32 %v5374_v57, %v5279_v5  ;;  %v5376_v13 = vpop.f32.mrb[94].mxu0  ;;  %v13873_v5 = vld [vmem:[#allocation22 + $0x54c] ss:$24 sps:$4 sm:$0xff]  }
 0xcc0   : > { %v5377_v40 = vpop.f32.mrb[95].mxu0  ;;  %v13876_v57 = vld [vmem:[#allocation22 + $0x574] ss:$24 sps:$4 sm:$0xff]   ;;  %v13882_v13 = vld [vmem:[#allocation22 + $0x5a4] ss:$24 sps:$4 sm:$0xff]  }
 0xcc1   : > { %v16823_v15 = vpack.c.bf16 %v5375_v9, %v5375_v9  ;;  %7198 = vmatpush1.bf16.msra.mxu1 %v13802_v6  ;;  %7321 = vmatpush1.bf16.msra.mxu0 %v13805_v50  ;;  %v13868_v6 = vld [vmem:[#allocation22 + $0x540] ss:$24 sps:$4 sm:$0xff]   ;;  %v13885_v40 = vld [vmem:[#allocation22 + $0x5ac] ss:$24 sps:$4 sm:$0xff]  }
 0xcc2   : > { %7199 = vmatprep.subr.bf16.mxu1 %v13810_v44  ;;  %7322 = vmatprep.subr.bf16.mxu0 %v13813_v1  ;;  %v13871_v50 = vld [vmem:[#allocation22 + $0x548] ss:$24 sps:$4 sm:$0xff]   ;;  %v13879_v44 = vld [vmem:[#allocation22 + $0x57c] ss:$24 sps:$4 sm:$0xff]   ;;  %v13877_v9 = vld [vmem:[#allocation22 + $0x578] ss:$24 sps:$4 sm:$0xff]  }
 0xcc3   : > { %7227 = vmatprep.mubr.bf16.mxu1 %v16823_v15  ;;  %7350 = vmatprep.mubr.bf16.mxu0 %v16823_v15  ;;  %v13874_v1 = vld [vmem:[#allocation22 + $0x570] ss:$24 sps:$4 sm:$0xff]  }
 0xcc5   : > { %7200 = vmatpush1.bf16.msra.mxu1 %v13808_v17  ;;  %7323 = vmatpush1.bf16.msra.mxu0 %v13811_v16  ;;  %v16827_v21 = vpop.f32.mrb[96].mxu0  ;;  %v5286_v17 = vsub.s32 5, %v16436_v60  ;;  %v13880_v16 = vld [vmem:[#allocation22 + $0x5a0] ss:$24 sps:$4 sm:$0xff]  }
 0xcc6   : > { %v16829_v34 = vpop.f32.mrb[97].mxu0  ;;  %7201 = vmatprep.subr.bf16.mxu1 %v13816_v51  ;;  %7324 = vmatprep.subr.bf16.mxu0 %v13819_v20  ;;  %v13883_v51 = vld [vmem:[#allocation22 + $0x5a8] ss:$24 sps:$4 sm:$0xff]   ;;  %v5275_v20 = vrot.slane %v16805_v52, %v16465_v24 }
 0xcc7   : > { %v5417_v18 = vpop.f32.mrb[98].mxu0 }
 0xcc8   : > { %v5418_v22 = vpop.f32.mrb[99].mxu0  ;;  %v13889_v18 = vld [vmem:[#allocation22 + $0x5d8] ss:$24 sps:$4 sm:$0xff]  }
 0xcc9   : > { %7202 = vmatpush1.bf16.msra.mxu1 %v13814_v26  ;;  %7325 = vmatpush1.bf16.msra.mxu0 %v13817_v29  ;;  %v13888_v26 = vld [vmem:[#allocation22 + $0x5d4] ss:$24 sps:$4 sm:$0xff]   ;;  %v5373_v22 = vadd.f32 %v16821_v32, %v5275_v20  ;;  %v13898_v32 = vld [vmem:[#allocation22 + $0x630] ss:$24 sps:$4 sm:$0xff]   ;;  %v13952_v20 = vld [vmem:[#allocation22 + $0x7e0] ss:$24 sps:$4 sm:$0xff]  }
 0xcca   : > { %7203 = vmatprep.subr.bf16.mxu1 %v13822_v28  ;;  %7326 = vmatprep.subr.bf16.mxu0 %v13825_v23  ;;  %v13891_v29 = vld [vmem:[#allocation22 + $0x5dc] ss:$24 sps:$4 sm:$0xff]   ;;  %v5287_v28 = vrot.slane %v16805_v52, %v5286_v17  ;;  %v13886_v23 = vld [vmem:[#allocation22 + $0x5d0] ss:$24 sps:$4 sm:$0xff]  }
 0xccb   : > { %v13949_v17 = vld [vmem:[#allocation22 + $0x7b8] ss:$24 sps:$4 sm:$0xff]  }
 0xccd   : > { %7204 = vmatpush1.bf16.msra.mxu1 %v13820_v37  ;;  %7327 = vmatpush1.bf16.msra.mxu0 %v13823_v39  ;;  %v13894_v37 = vld [vmem:[#allocation22 + $0x604] ss:$24 sps:$4 sm:$0xff]  }
 0xcce   : > { %7205 = vmatprep.subr.bf16.mxu1 %v13828_v42  ;;  %7328 = vmatprep.subr.bf16.mxu0 %v13831_v45  ;;  %v13897_v39 = vld [vmem:[#allocation22 + $0x60c] ss:$24 sps:$4 sm:$0xff]   ;;  %v5416_v42 = vadd.f32 %v16829_v34, %v5287_v28  ;;  %v13892_v45 = vld [vmem:[#allocation22 + $0x600] ss:$24 sps:$4 sm:$0xff]   ;;  %v13963_v28 = vld [vmem:[#allocation22 + $0x81c] ss:$24 sps:$4 sm:$0xff]  }
 0xccf   : > { %v13901_v34 = vld [vmem:[#allocation22 + $0x638] ss:$24 sps:$4 sm:$0xff]  }
 0xcd1   : > { %7206 = vmatpush1.bf16.msra.mxu1 %v13826_v47  ;;  %7329 = vmatpush1.bf16.msra.mxu0 %v13829_v10  ;;  %v16837_v47 = vpack.c.bf16 %v5373_v22, %v5373_v22  ;;  %v13895_v10 = vld [vmem:[#allocation22 + $0x608] ss:$24 sps:$4 sm:$0xff]   ;;  %v13966_v22 = vld [vmem:[#allocation22 + $0x844] ss:$24 sps:$4 sm:$0xff]  }
 0xcd2   : > { %7207 = vmatprep.subr.bf16.mxu1 %v13834_v33  ;;  %7330 = vmatprep.subr.bf16.mxu0 %v13837_v53  ;;  %v16839_v33 = vpack.c.bf16 %v5416_v42, %v5416_v42  ;;  %v13900_v53 = vld [vmem:[#allocation22 + $0x634] ss:$24 sps:$4 sm:$0xff]   ;;  %v13967_v42 = vld [vmem:[#allocation22 + $0x848] ss:$24 sps:$4 sm:$0xff]  }
 0xcd5   : > { %7208 = vmatpush1.bf16.msra.mxu1 %v13832_v7  ;;  %7331 = vmatpush1.bf16.msra.mxu0 %v13835_v56  ;;  %v13903_v7 = vld [vmem:[#allocation22 + $0x63c] ss:$24 sps:$4 sm:$0xff]  }
 0xcd6   : > { %7209 = vmatprep.subr.bf16.mxu1 %v13840_v25  ;;  %7332 = vmatprep.subr.bf16.mxu0 %v13843_v41  ;;  %v13906_v56 = vld [vmem:[#allocation22 + $0x664] ss:$24 sps:$4 sm:$0xff]   ;;  %v13904_v41 = vld [vmem:[#allocation22 + $0x660] ss:$24 sps:$4 sm:$0xff]  }
 0xcd7   : > { %v13909_v25 = vld [vmem:[#allocation22 + $0x66c] ss:$24 sps:$4 sm:$0xff]  }
 0xcd9   : > { %7210 = vmatpush1.bf16.msra.mxu1 %v13838_v54  ;;  %7333 = vmatpush1.bf16.msra.mxu0 %v13841_v30  ;;  %v13907_v54 = vld [vmem:[#allocation22 + $0x668] ss:$24 sps:$4 sm:$0xff]   ;;  %v13912_v30 = vld [vmem:[#allocation22 + $0x694] ss:$24 sps:$4 sm:$0xff]  }
 0xcda   : > { %7211 = vmatprep.subr.bf16.mxu1 %v13846_v35  ;;  %7334 = vmatprep.subr.bf16.mxu0 %v13849_v38  ;;  %v13915_v35 = vld [vmem:[#allocation22 + $0x69c] ss:$24 sps:$4 sm:$0xff]   ;;  %v13910_v38 = vld [vmem:[#allocation22 + $0x690] ss:$24 sps:$4 sm:$0xff]  }
 0xcdd   : > { %7212 = vmatpush1.bf16.msra.mxu1 %v13844_v58  ;;  %7335 = vmatpush1.bf16.msra.mxu0 %v13847_v43  ;;  %v13913_v58 = vld [vmem:[#allocation22 + $0x698] ss:$24 sps:$4 sm:$0xff]   ;;  %v13918_v43 = vld [vmem:[#allocation22 + $0x6c4] ss:$24 sps:$4 sm:$0xff]  }
 0xcde   : > { %7213 = vmatprep.subr.bf16.mxu1 %v13852_v59  ;;  %7336 = vmatprep.subr.bf16.mxu0 %v13855_v2  ;;  %v13921_v59 = vld [vmem:[#allocation22 + $0x6cc] ss:$24 sps:$4 sm:$0xff]   ;;  %v13916_v2 = vld [vmem:[#allocation22 + $0x6c0] ss:$24 sps:$4 sm:$0xff]  }
 0xce1   : > { %7214 = vmatpush1.bf16.msra.mxu1 %v13850_v4  ;;  %7337 = vmatpush1.bf16.msra.mxu0 %v13853_v11  ;;  %v13919_v4 = vld [vmem:[#allocation22 + $0x6c8] ss:$24 sps:$4 sm:$0xff]   ;;  %v13924_v11 = vld [vmem:[#allocation22 + $0x6f4] ss:$24 sps:$4 sm:$0xff]  }
 0xce2   : > { %7215 = vmatprep.subr.bf16.mxu1 %v13858_v14  ;;  %7338 = vmatprep.subr.bf16.mxu0 %v13861_v19  ;;  %v13927_v14 = vld [vmem:[#allocation22 + $0x6fc] ss:$24 sps:$4 sm:$0xff]   ;;  %v13922_v19 = vld [vmem:[#allocation22 + $0x6f0] ss:$24 sps:$4 sm:$0xff]  }
 0xce5   : > { %7216 = vmatpush1.bf16.msra.mxu1 %v13856_v27  ;;  %7339 = vmatpush1.bf16.msra.mxu0 %v13859_v31  ;;  %v13925_v27 = vld [vmem:[#allocation22 + $0x6f8] ss:$24 sps:$4 sm:$0xff]   ;;  %v13930_v31 = vld [vmem:[#allocation22 + $0x724] ss:$24 sps:$4 sm:$0xff]  }
 0xce6   : > { %7217 = vmatprep.subr.bf16.mxu1 %v13864_v62  ;;  %7340 = vmatprep.subr.bf16.mxu0 %v13867_v46  ;;  %v13933_v62 = vld [vmem:[#allocation22 + $0x72c] ss:$24 sps:$4 sm:$0xff]   ;;  %v13928_v46 = vld [vmem:[#allocation22 + $0x720] ss:$24 sps:$4 sm:$0xff]  }
 0xce9   : > { %7218 = vmatpush1.bf16.msra.mxu1 %v13862_v49  ;;  %7341 = vmatpush1.bf16.msra.mxu0 %v13865_v3  ;;  %v13931_v49 = vld [vmem:[#allocation22 + $0x728] ss:$24 sps:$4 sm:$0xff]   ;;  %v13936_v3 = vld [vmem:[#allocation22 + $0x754] ss:$24 sps:$4 sm:$0xff]  }
 0xcea   : > { %7219 = vmatprep.subr.bf16.mxu1 %v13870_v0  ;;  %7342 = vmatprep.subr.bf16.mxu0 %v13873_v5  ;;  %v13939_v0 = vld [vmem:[#allocation22 + $0x75c] ss:$24 sps:$4 sm:$0xff]   ;;  %v13934_v5 = vld [vmem:[#allocation22 + $0x750] ss:$24 sps:$4 sm:$0xff]  }
 0xced   : > { %7220 = vmatpush1.bf16.msra.mxu1 %v13868_v6  ;;  %7343 = vmatpush1.bf16.msra.mxu0 %v13871_v50  ;;  %v13937_v6 = vld [vmem:[#allocation22 + $0x758] ss:$24 sps:$4 sm:$0xff]   ;;  %v13942_v50 = vld [vmem:[#allocation22 + $0x784] ss:$24 sps:$4 sm:$0xff]  }
 0xcee   : > { %7221 = vmatprep.subr.bf16.mxu1 %v13876_v57  ;;  %7344 = vmatprep.subr.bf16.mxu0 %v13879_v44  ;;  %v13945_v57 = vld [vmem:[#allocation22 + $0x78c] ss:$24 sps:$4 sm:$0xff]   ;;  %v13940_v44 = vld [vmem:[#allocation22 + $0x780] ss:$24 sps:$4 sm:$0xff]  }
 0xcf1   : > { %7222 = vmatpush1.bf16.msra.mxu1 %v13874_v1  ;;  %7345 = vmatpush1.bf16.msra.mxu0 %v13877_v9  ;;  %v13943_v1 = vld [vmem:[#allocation22 + $0x788] ss:$24 sps:$4 sm:$0xff]   ;;  %v13948_v9 = vld [vmem:[#allocation22 + $0x7b4] ss:$24 sps:$4 sm:$0xff]  }
 0xcf2   : > { %7223 = vmatprep.subr.bf16.mxu1 %v13882_v13  ;;  %7346 = vmatprep.subr.bf16.mxu0 %v13885_v40  ;;  %v13951_v13 = vld [vmem:[#allocation22 + $0x7bc] ss:$24 sps:$4 sm:$0xff]   ;;  %v13946_v40 = vld [vmem:[#allocation22 + $0x7b0] ss:$24 sps:$4 sm:$0xff]  }
 0xcf5   : > { %7224 = vmatpush1.bf16.msra.mxu1 %v13880_v16  ;;  %7347 = vmatpush1.bf16.msra.mxu0 %v13883_v51  ;;  %v13954_v16 = vld [vmem:[#allocation22 + $0x7e4] ss:$24 sps:$4 sm:$0xff]  }
 0xcf6   : > { %7225 = vmatprep.subr.bf16.mxu1 %v13888_v26  ;;  %7348 = vmatprep.subr.bf16.mxu0 %v13891_v29  ;;  %v13957_v51 = vld [vmem:[#allocation22 + $0x7ec] ss:$24 sps:$4 sm:$0xff]   ;;  %v13955_v26 = vld [vmem:[#allocation22 + $0x7e8] ss:$24 sps:$4 sm:$0xff]  }
 0xcf7   : > { %v13960_v29 = vld [vmem:[#allocation22 + $0x814] ss:$24 sps:$4 sm:$0xff]  }
 0xcf9   : > { %7226 = vmatpush1.bf16.msra.mxu1 %v13886_v23  ;;  %7349 = vmatpush1.bf16.msra.mxu0 %v13889_v18  ;;  %v13958_v23 = vld [vmem:[#allocation22 + $0x810] ss:$24 sps:$4 sm:$0xff]  }
 0xcfa   : > { %7236 = vmatprep.subr.bf16.mxu1 %v13894_v37  ;;  %7359 = vmatprep.subr.bf16.mxu0 %v13897_v39  ;;  %v13961_v18 = vld [vmem:[#allocation22 + $0x818] ss:$24 sps:$4 sm:$0xff]   ;;  %v13969_v37 = vld [vmem:[#allocation22 + $0x84c] ss:$24 sps:$4 sm:$0xff]  }
 0xcfb   : > { %v13964_v39 = vld [vmem:[#allocation22 + $0x840] ss:$24 sps:$4 sm:$0xff]  }
 0xcfc   : > { %7228 = vmatmul.mubr.bf16.vlgmr.msra.gmra.mrb[96].mxu1 %v16837_v47  ;;  %7351 = vmatmul.mubr.bf16.vlgmr.msra.gmra.mrb[100].mxu0 %v16837_v47 }
 0xcfd   : > { %7237 = vmatpush1.bf16.msra.mxu1 %v13892_v45  ;;  %7268 = vmatprep.mubr.bf16.mxu1 %v16839_v33  ;;  %v13972_v45 = vld [vmem:[#allocation22 + $0x874] ss:$24 sps:$4 sm:$0xff]  }
 0xcfe   : > { %7360 = vmatpush1.bf16.msra.mxu0 %v13895_v10  ;;  %7391 = vmatprep.mubr.bf16.mxu0 %v16839_v33  ;;  %v13975_v10 = vld [vmem:[#allocation22 + $0x87c] ss:$24 sps:$4 sm:$0xff]  }
 0xcff   : > { %7238 = vmatprep.subr.bf16.mxu1 %v13900_v53  ;;  %7361 = vmatprep.subr.bf16.mxu0 %v13903_v7  ;;  %v13970_v53 = vld [vmem:[#allocation22 + $0x870] ss:$24 sps:$4 sm:$0xff]   ;;  %v5282_v7 = vsub.s32 4, %v16436_v60 }
 0xd01   : > { %7239 = vmatpush1.bf16.msra.mxu1 %v13898_v32  ;;  %v13973_v32 = vld [vmem:[#allocation22 + $0x878] ss:$24 sps:$4 sm:$0xff]  }
 0xd02   : > { %7362 = vmatpush1.bf16.msra.mxu0 %v13901_v34  ;;  %7240 = vmatprep.subr.bf16.mxu1 %v13906_v56  ;;  %v13978_v34 = vld [vmem:[#allocation22 + $0x8a4] ss:$24 sps:$4 sm:$0xff]  }
 0xd03   : > { %7363 = vmatprep.subr.bf16.mxu0 %v13909_v25  ;;  %v13981_v56 = vld [vmem:[#allocation22 + $0x8ac] ss:$24 sps:$4 sm:$0xff]   ;;  %v13976_v25 = vld [vmem:[#allocation22 + $0x8a0] ss:$24 sps:$4 sm:$0xff]  }
 0xd05   : > { %7241 = vmatpush1.bf16.msra.mxu1 %v13904_v41  ;;  %v5283_v41 = vrot.slane %v16805_v52, %v5282_v7  ;;  %v13993_v52 = vld [vmem:[#allocation22 + $0x44] ss:$24 sps:$4 sm:$0xff]  }
 0xd06   : > { %7364 = vmatpush1.bf16.msra.mxu0 %v13907_v54  ;;  %7242 = vmatprep.subr.bf16.mxu1 %v13912_v30  ;;  %v13979_v54 = vld [vmem:[#allocation22 + $0x8a8] ss:$24 sps:$4 sm:$0xff]   ;;  %v13984_v30 = vld [vmem:[#allocation22 + $0x8d4] ss:$24 sps:$4 sm:$0xff]   ;;  %v14053_v7 = vld [vmem:[#allocation22 + $0x404] ss:$24 sps:$4 sm:$0xff]  }
 0xd07   : > { %7365 = vmatprep.subr.bf16.mxu0 %v13915_v35  ;;  %v13987_v35 = vld [vmem:[#allocation22 + $0x8dc] ss:$24 sps:$4 sm:$0xff]   ;;  %v5414_v60 = vadd.f32 %v16827_v21, %v5283_v41  ;;  %v13991_v21 = vld [vmem:[#allocation22 + $0x40] ss:$24 sps:$4 sm:$0xff]   ;;  %v14060_v41 = vld [vmem:[#allocation22 + $0x490] ss:$24 sps:$4 sm:$0xff]  }
 0xd09   : > { %7243 = vmatpush1.bf16.msra.mxu1 %v13910_v38  ;;  %v13982_v38 = vld [vmem:[#allocation22 + $0x8d0] ss:$24 sps:$4 sm:$0xff]  }
 0xd0a   : > { %7366 = vmatpush1.bf16.msra.mxu0 %v13913_v58  ;;  %7244 = vmatprep.subr.bf16.mxu1 %v13918_v43  ;;  %v13985_v58 = vld [vmem:[#allocation22 + $0x8d8] ss:$24 sps:$4 sm:$0xff]   ;;  %v13990_v43 = vld [vmem:[#allocation22 + $0x14] ss:$24 sps:$4 sm:$0xff]  }
 0xd0b   : > { %7367 = vmatprep.subr.bf16.mxu0 %v13921_v59  ;;  %v13988_v59 = vld [vmem:[#allocation22 + $0x10] ss:$24 sps:$4 sm:$0xff]  }
 0xd0d   : > { %7245 = vmatpush1.bf16.msra.mxu1 %v13916_v2  ;;  %v16848_v2 = vpack.c.bf16 %v5414_v60, %v5414_v60  ;;  %v14071_v60 = vld [vmem:[#allocation22 + $0x524] ss:$24 sps:$4 sm:$0xff]  }
 0xd0e   : > { %7368 = vmatpush1.bf16.msra.mxu0 %v13919_v4  ;;  %7246 = vmatprep.subr.bf16.mxu1 %v13924_v11  ;;  %v13996_v4 = vld [vmem:[#allocation22 + $0x74] ss:$24 sps:$4 sm:$0xff]   ;;  %v13994_v11 = vld [vmem:[#allocation22 + $0x70] ss:$24 sps:$4 sm:$0xff]  }
 0xd0f   : > { %7369 = vmatprep.subr.bf16.mxu0 %v13927_v14  ;;  %v13999_v14 = vld [vmem:[#allocation22 + $0xa4] ss:$24 sps:$4 sm:$0xff]  }
 0xd11   : > { %7247 = vmatpush1.bf16.msra.mxu1 %v13922_v19  ;;  %v13997_v19 = vld [vmem:[#allocation22 + $0xa0] ss:$24 sps:$4 sm:$0xff]  }
 0xd12   : > { %7370 = vmatpush1.bf16.msra.mxu0 %v13925_v27  ;;  %7248 = vmatprep.subr.bf16.mxu1 %v13930_v31  ;;  %v14002_v27 = vld [vmem:[#allocation22 + $0xd4] ss:$24 sps:$4 sm:$0xff]   ;;  %v14000_v31 = vld [vmem:[#allocation22 + $0xd0] ss:$24 sps:$4 sm:$0xff]  }
 0xd13   : > { %7371 = vmatprep.subr.bf16.mxu0 %v13933_v62  ;;  %v14005_v62 = vld [vmem:[#allocation22 + $0x104] ss:$24 sps:$4 sm:$0xff]  }
 0xd15   : > { %7249 = vmatpush1.bf16.msra.mxu1 %v13928_v46  ;;  %v14003_v46 = vld [vmem:[#allocation22 + $0x100] ss:$24 sps:$4 sm:$0xff]  }
 0xd16   : > { %7372 = vmatpush1.bf16.msra.mxu0 %v13931_v49  ;;  %7250 = vmatprep.subr.bf16.mxu1 %v13936_v3  ;;  %v14006_v49 = vld [vmem:[#allocation22 + $0x130] ss:$24 sps:$4 sm:$0xff]   ;;  %v14009_v3 = vld [vmem:[#allocation22 + $0x160] ss:$24 sps:$4 sm:$0xff]  }
 0xd17   : > { %7373 = vmatprep.subr.bf16.mxu0 %v13939_v0  ;;  %v14014_v0 = vld [vmem:[#allocation22 + $0x194] ss:$24 sps:$4 sm:$0xff]  }
 0xd19   : > { %7251 = vmatpush1.bf16.msra.mxu1 %v13934_v5  ;;  %v14012_v5 = vld [vmem:[#allocation22 + $0x190] ss:$24 sps:$4 sm:$0xff]  }
 0xd1a   : > { %7374 = vmatpush1.bf16.msra.mxu0 %v13937_v6  ;;  %7252 = vmatprep.subr.bf16.mxu1 %v13942_v50  ;;  %v14017_v6 = vld [vmem:[#allocation22 + $0x1c4] ss:$24 sps:$4 sm:$0xff]   ;;  %v14015_v50 = vld [vmem:[#allocation22 + $0x1c0] ss:$24 sps:$4 sm:$0xff]  }
 0xd1b   : > { %7375 = vmatprep.subr.bf16.mxu0 %v13945_v57  ;;  %v14020_v57 = vld [vmem:[#allocation22 + $0x1f4] ss:$24 sps:$4 sm:$0xff]  }
 0xd1d   : > { %7253 = vmatpush1.bf16.msra.mxu1 %v13940_v44  ;;  %v14018_v44 = vld [vmem:[#allocation22 + $0x1f0] ss:$24 sps:$4 sm:$0xff]  }
 0xd1e   : > { %7376 = vmatpush1.bf16.msra.mxu0 %v13943_v1  ;;  %7254 = vmatprep.subr.bf16.mxu1 %v13948_v9  ;;  %v14023_v1 = vld [vmem:[#allocation22 + $0x224] ss:$24 sps:$4 sm:$0xff]   ;;  %v14021_v9 = vld [vmem:[#allocation22 + $0x220] ss:$24 sps:$4 sm:$0xff]  }
 0xd1f   : > { %7377 = vmatprep.subr.bf16.mxu0 %v13951_v13  ;;  %v14026_v13 = vld [vmem:[#allocation22 + $0x254] ss:$24 sps:$4 sm:$0xff]  }
 0xd21   : > { %7255 = vmatpush1.bf16.msra.mxu1 %v13946_v40  ;;  %v14024_v40 = vld [vmem:[#allocation22 + $0x250] ss:$24 sps:$4 sm:$0xff]  }
 0xd22   : > { %7378 = vmatpush1.bf16.msra.mxu0 %v13949_v17  ;;  %7256 = vmatprep.subr.bf16.mxu1 %v13954_v16  ;;  %v14029_v17 = vld [vmem:[#allocation22 + $0x284] ss:$24 sps:$4 sm:$0xff]   ;;  %v14027_v16 = vld [vmem:[#allocation22 + $0x280] ss:$24 sps:$4 sm:$0xff]  }
 0xd23   : > { %7379 = vmatprep.subr.bf16.mxu0 %v13957_v51  ;;  %v14032_v51 = vld [vmem:[#allocation22 + $0x2b4] ss:$24 sps:$4 sm:$0xff]  }
 0xd25   : > { %7257 = vmatpush1.bf16.msra.mxu1 %v13952_v20  ;;  %v14030_v20 = vld [vmem:[#allocation22 + $0x2b0] ss:$24 sps:$4 sm:$0xff]  }
 0xd26   : > { %7380 = vmatpush1.bf16.msra.mxu0 %v13955_v26  ;;  %7258 = vmatprep.subr.bf16.mxu1 %v13960_v29  ;;  %v14035_v26 = vld [vmem:[#allocation22 + $0x2e4] ss:$24 sps:$4 sm:$0xff]   ;;  %v14033_v29 = vld [vmem:[#allocation22 + $0x2e0] ss:$24 sps:$4 sm:$0xff]  }
 0xd27   : > { %7381 = vmatprep.subr.bf16.mxu0 %v13963_v28  ;;  %v14038_v28 = vld [vmem:[#allocation22 + $0x314] ss:$24 sps:$4 sm:$0xff]  }
 0xd29   : > { %7259 = vmatpush1.bf16.msra.mxu1 %v13958_v23  ;;  %v14036_v23 = vld [vmem:[#allocation22 + $0x310] ss:$24 sps:$4 sm:$0xff]  }
 0xd2a   : > { %7382 = vmatpush1.bf16.msra.mxu0 %v13961_v18  ;;  %7260 = vmatprep.subr.bf16.mxu1 %v13966_v22  ;;  %v14041_v18 = vld [vmem:[#allocation22 + $0x344] ss:$24 sps:$4 sm:$0xff]   ;;  %v14039_v22 = vld [vmem:[#allocation22 + $0x340] ss:$24 sps:$4 sm:$0xff]  }
 0xd2b   : > { %7383 = vmatprep.subr.bf16.mxu0 %v13969_v37  ;;  %v14044_v37 = vld [vmem:[#allocation22 + $0x374] ss:$24 sps:$4 sm:$0xff]  }
 0xd2d   : > { %7261 = vmatpush1.bf16.msra.mxu1 %v13964_v39  ;;  %v14042_v39 = vld [vmem:[#allocation22 + $0x370] ss:$24 sps:$4 sm:$0xff]  }
 0xd2e   : > { %7384 = vmatpush1.bf16.msra.mxu0 %v13967_v42  ;;  %7262 = vmatprep.subr.bf16.mxu1 %v13972_v45  ;;  %v14047_v42 = vld [vmem:[#allocation22 + $0x3a4] ss:$24 sps:$4 sm:$0xff]   ;;  %v14045_v45 = vld [vmem:[#allocation22 + $0x3a0] ss:$24 sps:$4 sm:$0xff]  }
 0xd2f   : > { %7385 = vmatprep.subr.bf16.mxu0 %v13975_v10  ;;  %v14050_v10 = vld [vmem:[#allocation22 + $0x3d4] ss:$24 sps:$4 sm:$0xff]  }
 0xd31   : > { %7263 = vmatpush1.bf16.msra.mxu1 %v13970_v53  ;;  %v14048_v53 = vld [vmem:[#allocation22 + $0x3d0] ss:$24 sps:$4 sm:$0xff]  }
 0xd32   : > { %7386 = vmatpush1.bf16.msra.mxu0 %v13973_v32  ;;  %7264 = vmatprep.subr.bf16.mxu1 %v13978_v34  ;;  %v14056_v32 = vld [vmem:[#allocation22 + $0x434] ss:$24 sps:$4 sm:$0xff]   ;;  %v14059_v34 = vld [vmem:[#allocation22 + $0x464] ss:$24 sps:$4 sm:$0xff]  }
 0xd33   : > { %7387 = vmatprep.subr.bf16.mxu0 %v13981_v56  ;;  %v14057_v56 = vld [vmem:[#allocation22 + $0x460] ss:$24 sps:$4 sm:$0xff]  }
 0xd35   : > { %7265 = vmatpush1.bf16.msra.mxu1 %v13976_v25  ;;  %v14062_v25 = vld [vmem:[#allocation22 + $0x494] ss:$24 sps:$4 sm:$0xff]  }
 0xd36   : > { %7388 = vmatpush1.bf16.msra.mxu0 %v13979_v54  ;;  %7266 = vmatprep.subr.bf16.mxu1 %v13984_v30  ;;  %v14065_v54 = vld [vmem:[#allocation22 + $0x4c4] ss:$24 sps:$4 sm:$0xff]   ;;  %v14063_v30 = vld [vmem:[#allocation22 + $0x4c0] ss:$24 sps:$4 sm:$0xff]  }
 0xd37   : > { %7389 = vmatprep.subr.bf16.mxu0 %v13987_v35  ;;  %v14068_v35 = vld [vmem:[#allocation22 + $0x4f4] ss:$24 sps:$4 sm:$0xff]  }
 0xd39   : > { %7267 = vmatpush1.bf16.msra.mxu1 %v13982_v38  ;;  %v14066_v38 = vld [vmem:[#allocation22 + $0x4f0] ss:$24 sps:$4 sm:$0xff]  }
 0xd3a   : > { %7390 = vmatpush1.bf16.msra.mxu0 %v13985_v58  ;;  %7400 = vmatprep.subr.bf16.mxu1 %v13990_v43  ;;  %v14069_v58 = vld [vmem:[#allocation22 + $0x520] ss:$24 sps:$4 sm:$0xff]   ;;  %v14074_v43 = vld [vmem:[#allocation22 + $0x554] ss:$24 sps:$4 sm:$0xff]  }
 0xd3b   : > { %12649 = vmatprep.subr.bf16.mxu0 %v15520_v55 }
 0xd3c   : > { %7269 = vmatmul.mubr.bf16.vlgmr.msra.gmra.mrb[96].mxu1 %v16848_v2 }
 0xd3d   : > { %7392 = vmatmul.mubr.bf16.vlgmr.msra.gmra.mrb[100].mxu0 %v16848_v2  ;;  %7401 = vmatpush1.bf16.msra.mxu1 %v13988_v59  ;;  %v14072_v59 = vld [vmem:[#allocation22 + $0x550] ss:$24 sps:$4 sm:$0xff]  }
 0xd3e   : > { %7432 = vmatprep.mubr.bf16.mxu1 %v16812_v36  ;;  %7402 = vmatprep.subr.bf16.mxu1 %v13993_v52  ;;  %v14008_v36 = vld [vmem:[#allocation22 + $0x134] ss:$24 sps:$4 sm:$0xff]   ;;  %v14077_v52 = vld [vmem:[#allocation22 + $0x584] ss:$24 sps:$4 sm:$0xff]  }
 0xd3f   : > { %12651 = vmatprep.mubr.msk.bf16.mxu0 %vm15522_vm2, %v15520_v55  ;;  %v14011_v55 = vld [vmem:[#allocation22 + $0x164] ss:$24 sps:$4 sm:$0xff]  }
 0xd41   : > { %7403 = vmatpush1.bf16.msra.mxu1 %v13991_v21  ;;  %v14075_v21 = vld [vmem:[#allocation22 + $0x580] ss:$24 sps:$4 sm:$0xff]  }
 0xd42   : > { %7404 = vmatprep.subr.bf16.mxu1 %v13996_v4  ;;  %v14080_v4 = vld [vmem:[#allocation22 + $0x5b4] ss:$24 sps:$4 sm:$0xff]  }
 0xd45   : > { %7405 = vmatpush1.bf16.msra.mxu1 %v13994_v11  ;;  %v14078_v11 = vld [vmem:[#allocation22 + $0x5b0] ss:$24 sps:$4 sm:$0xff]  }
 0xd46   : > { %7406 = vmatprep.subr.bf16.mxu1 %v13999_v14  ;;  %v14083_v14 = vld [vmem:[#allocation22 + $0x5e4] ss:$24 sps:$4 sm:$0xff]  }
 0xd49   : > { %7407 = vmatpush1.bf16.msra.mxu1 %v13997_v19  ;;  %v14081_v19 = vld [vmem:[#allocation22 + $0x5e0] ss:$24 sps:$4 sm:$0xff]  }
 0xd4a   : > { %7408 = vmatprep.subr.bf16.mxu1 %v14002_v27  ;;  %v14086_v27 = vld [vmem:[#allocation22 + $0x614] ss:$24 sps:$4 sm:$0xff]  }
 0xd4d   : > { %7409 = vmatpush1.bf16.msra.mxu1 %v14000_v31  ;;  %v14084_v31 = vld [vmem:[#allocation22 + $0x610] ss:$24 sps:$4 sm:$0xff]  }
 0xd4e   : > { %7410 = vmatprep.subr.bf16.mxu1 %v14005_v62  ;;  %v14089_v62 = vld [vmem:[#allocation22 + $0x644] ss:$24 sps:$4 sm:$0xff]  }
 0xd51   : > { %7411 = vmatpush1.bf16.msra.mxu1 %v14003_v46  ;;  %v14087_v46 = vld [vmem:[#allocation22 + $0x640] ss:$24 sps:$4 sm:$0xff]  }
 0xd52   : > { %7412 = vmatprep.subr.bf16.mxu1 %v14008_v36  ;;  %v14092_v36 = vld [vmem:[#allocation22 + $0x674] ss:$24 sps:$4 sm:$0xff]  }
 0xd55   : > { %7413 = vmatpush1.bf16.msra.mxu1 %v14006_v49  ;;  %v14090_v49 = vld [vmem:[#allocation22 + $0x670] ss:$24 sps:$4 sm:$0xff]  }
 0xd56   : > { %7414 = vmatprep.subr.bf16.mxu1 %v14011_v55  ;;  %v14095_v55 = vld [vmem:[#allocation22 + $0x6a4] ss:$24 sps:$4 sm:$0xff]  }
 0xd59   : > { %7415 = vmatpush1.bf16.msra.mxu1 %v14009_v3  ;;  %v14093_v3 = vld [vmem:[#allocation22 + $0x6a0] ss:$24 sps:$4 sm:$0xff]  }
 0xd5a   : > { %7416 = vmatprep.subr.bf16.mxu1 %v14014_v0  ;;  %v14098_v0 = vld [vmem:[#allocation22 + $0x6d4] ss:$24 sps:$4 sm:$0xff]  }
 0xd5d   : > { %7417 = vmatpush1.bf16.msra.mxu1 %v14012_v5  ;;  %v14096_v5 = vld [vmem:[#allocation22 + $0x6d0] ss:$24 sps:$4 sm:$0xff]  }
 0xd5e   : > { %7418 = vmatprep.subr.bf16.mxu1 %v14017_v6  ;;  %v14101_v6 = vld [vmem:[#allocation22 + $0x704] ss:$24 sps:$4 sm:$0xff]  }
 0xd61   : > { %7419 = vmatpush1.bf16.msra.mxu1 %v14015_v50  ;;  %v14104_v50 = vld [vmem:[#allocation22 + $0x734] ss:$24 sps:$4 sm:$0xff]  }
 0xd62   : > { %7420 = vmatprep.subr.bf16.mxu1 %v14020_v57  ;;  %v14107_v57 = vld [vmem:[#allocation22 + $0x764] ss:$24 sps:$4 sm:$0xff]  }
 0xd65   : > { %7421 = vmatpush1.bf16.msra.mxu1 %v14018_v44  ;;  %v14105_v44 = vld [vmem:[#allocation22 + $0x760] ss:$24 sps:$4 sm:$0xff]  }
 0xd66   : > { %7422 = vmatprep.subr.bf16.mxu1 %v14023_v1  ;;  %v14110_v1 = vld [vmem:[#allocation22 + $0x794] ss:$24 sps:$4 sm:$0xff]  }
 0xd69   : > { %7423 = vmatpush1.bf16.msra.mxu1 %v14021_v9  ;;  %v14108_v9 = vld [vmem:[#allocation22 + $0x790] ss:$24 sps:$4 sm:$0xff]  }
 0xd6a   : > { %7424 = vmatprep.subr.bf16.mxu1 %v14026_v13  ;;  %v14113_v13 = vld [vmem:[#allocation22 + $0x7c4] ss:$24 sps:$4 sm:$0xff]  }
 0xd6d   : > { %7425 = vmatpush1.bf16.msra.mxu1 %v14024_v40  ;;  %v14111_v40 = vld [vmem:[#allocation22 + $0x7c0] ss:$24 sps:$4 sm:$0xff]  }
 0xd6e   : > { %7426 = vmatprep.subr.bf16.mxu1 %v14029_v17  ;;  %v14116_v17 = vld [vmem:[#allocation22 + $0x7f4] ss:$24 sps:$4 sm:$0xff]  }
 0xd71   : > { %7427 = vmatpush1.bf16.msra.mxu1 %v14027_v16  ;;  %v14114_v16 = vld [vmem:[#allocation22 + $0x7f0] ss:$24 sps:$4 sm:$0xff]  }
 0xd72   : > { %7428 = vmatprep.subr.bf16.mxu1 %v14032_v51  ;;  %v14119_v51 = vld [vmem:[#allocation22 + $0x824] ss:$24 sps:$4 sm:$0xff]  }
 0xd75   : > { %7429 = vmatpush1.bf16.msra.mxu1 %v14030_v20  ;;  %v14117_v20 = vld [vmem:[#allocation22 + $0x820] ss:$24 sps:$4 sm:$0xff]  }
 0xd76   : > { %7430 = vmatprep.subr.bf16.mxu1 %v14035_v26  ;;  %v14122_v26 = vld [vmem:[#allocation22 + $0x854] ss:$24 sps:$4 sm:$0xff]  }
 0xd79   : > { %7431 = vmatpush1.bf16.msra.mxu1 %v14033_v29  ;;  %v14120_v29 = vld [vmem:[#allocation22 + $0x850] ss:$24 sps:$4 sm:$0xff]  }
 0xd7a   : > { %7441 = vmatprep.subr.bf16.mxu1 %v14038_v28  ;;  %v14125_v28 = vld [vmem:[#allocation22 + $0x884] ss:$24 sps:$4 sm:$0xff]  }
 0xd7c   : > { %7433 = vmatmul.mubr.bf16.vlgmr.msra.gmra.mrb[100].mxu1 %v16814_v63  ;;  %v14051_v63 = vld [vmem:[#allocation22 + $0x400] ss:$24 sps:$4 sm:$0xff]  }
 0xd7d   : > { %7442 = vmatpush1.bf16.msra.mxu1 %v14036_v23  ;;  %7473 = vmatprep.mubr.bf16.mxu1 %v16823_v15  ;;  %v14054_v15 = vld [vmem:[#allocation22 + $0x430] ss:$24 sps:$4 sm:$0xff]   ;;  %v14123_v23 = vld [vmem:[#allocation22 + $0x880] ss:$24 sps:$4 sm:$0xff]  }
 0xd7e   : > { %7443 = vmatprep.subr.bf16.mxu1 %v14041_v18  ;;  %v14128_v18 = vld [vmem:[#allocation22 + $0x8b4] ss:$24 sps:$4 sm:$0xff]  }
 0xd81   : > { %7444 = vmatpush1.bf16.msra.mxu1 %v14039_v22  ;;  %v14126_v22 = vld [vmem:[#allocation22 + $0x8b0] ss:$24 sps:$4 sm:$0xff]  }
 0xd82   : > { %7445 = vmatprep.subr.bf16.mxu1 %v14044_v37  ;;  %v14131_v37 = vld [vmem:[#allocation22 + $0x8e4] ss:$24 sps:$4 sm:$0xff]  }
 0xd85   : > { %7446 = vmatpush1.bf16.msra.mxu1 %v14042_v39  ;;  %v14129_v39 = vld [vmem:[#allocation22 + $0x8e0] ss:$24 sps:$4 sm:$0xff]  }
 0xd86   : > { %7447 = vmatprep.subr.bf16.mxu1 %v14047_v42 }
 0xd89   : > { %7448 = vmatpush1.bf16.msra.mxu1 %v14045_v45 }
 0xd8a   : > { %7449 = vmatprep.subr.bf16.mxu1 %v14050_v10 }
 0xd8d   : > { %7450 = vmatpush1.bf16.msra.mxu1 %v14048_v53 }
 0xd8e   : > { %7451 = vmatprep.subr.bf16.mxu1 %v14053_v7 }
 0xd91   : > { %7452 = vmatpush1.bf16.msra.mxu1 %v14051_v63 }
 0xd92   : > { %7453 = vmatprep.subr.bf16.mxu1 %v14056_v32 }
 0xd95   : > { %7454 = vmatpush1.bf16.msra.mxu1 %v14054_v15 }
 0xd96   : > { %7455 = vmatprep.subr.bf16.mxu1 %v14059_v34 }
 0xd99   : > { %7456 = vmatpush1.bf16.msra.mxu1 %v14057_v56 }
 0xd9a   : > { %7457 = vmatprep.subr.bf16.mxu1 %v14062_v25 }
 0xd9d   : > { %7458 = vmatpush1.bf16.msra.mxu1 %v14060_v41 }
 0xd9e   : > { %7459 = vmatprep.subr.bf16.mxu1 %v14065_v54 }
 0xda1   : > { %7460 = vmatpush1.bf16.msra.mxu1 %v14063_v30 }
 0xda2   : > { %7461 = vmatprep.subr.bf16.mxu1 %v14068_v35 }
 0xda5   : > { %7462 = vmatpush1.bf16.msra.mxu1 %v14066_v38 }
 0xda6   : > { %7463 = vmatprep.subr.bf16.mxu1 %v14071_v60 }
 0xda9   : > { %7464 = vmatpush1.bf16.msra.mxu1 %v14069_v58 }
 0xdaa   : > { %7465 = vmatprep.subr.bf16.mxu1 %v14074_v43 }
 0xdad   : > { %7466 = vmatpush1.bf16.msra.mxu1 %v14072_v59 }
 0xdae   : > { %7467 = vmatprep.subr.bf16.mxu1 %v14077_v52 }
 0xdb1   : > { %7468 = vmatpush1.bf16.msra.mxu1 %v14075_v21 }
 0xdb2   : > { %7469 = vmatprep.subr.bf16.mxu1 %v14080_v4 }
 0xdb5   : > { %7470 = vmatpush1.bf16.msra.mxu1 %v14078_v11 }
 0xdb6   : > { %7471 = vmatprep.subr.bf16.mxu1 %v14083_v14 }
 0xdb9   : > { %7472 = vmatpush1.bf16.msra.mxu1 %v14081_v19 }
 0xdba   : > { %7482 = vmatprep.subr.bf16.mxu1 %v14086_v27 }
 0xdbc   : > { %7474 = vmatmul.mubr.bf16.vlgmr.msra.gmra.mrb[100].mxu1 %v16837_v47  ;;  %v14099_v47 = vld [vmem:[#allocation22 + $0x700] ss:$24 sps:$4 sm:$0xff]  }
 0xdbd   : > { %7483 = vmatpush1.bf16.msra.mxu1 %v14084_v31  ;;  %7514 = vmatprep.mubr.bf16.mxu1 %v16839_v33  ;;  %v14102_v33 = vld [vmem:[#allocation22 + $0x730] ss:$24 sps:$4 sm:$0xff]  }
 0xdbe   : > { %7484 = vmatprep.subr.bf16.mxu1 %v14089_v62 }
 0xdc1   : > { %7485 = vmatpush1.bf16.msra.mxu1 %v14087_v46 }
 0xdc2   : > { %7486 = vmatprep.subr.bf16.mxu1 %v14092_v36 }
 0xdc5   : > { %7487 = vmatpush1.bf16.msra.mxu1 %v14090_v49 }
 0xdc6   : > { %7488 = vmatprep.subr.bf16.mxu1 %v14095_v55 }
 0xdc9   : > { %7489 = vmatpush1.bf16.msra.mxu1 %v14093_v3 }
 0xdca   : > { %7490 = vmatprep.subr.bf16.mxu1 %v14098_v0 }
 0xdcd   : > { %7491 = vmatpush1.bf16.msra.mxu1 %v14096_v5 }
 0xdce   : > { %7492 = vmatprep.subr.bf16.mxu1 %v14101_v6 }
 0xdd1   : > { %7493 = vmatpush1.bf16.msra.mxu1 %v14099_v47 }
 0xdd2   : > { %7494 = vmatprep.subr.bf16.mxu1 %v14104_v50 }
 0xdd5   : > { %7495 = vmatpush1.bf16.msra.mxu1 %v14102_v33 }
 0xdd6   : > { %7496 = vmatprep.subr.bf16.mxu1 %v14107_v57 }
 0xdd9   : > { %7497 = vmatpush1.bf16.msra.mxu1 %v14105_v44 }
 0xdda   : > { %7498 = vmatprep.subr.bf16.mxu1 %v14110_v1 }
 0xddd   : > { %7499 = vmatpush1.bf16.msra.mxu1 %v14108_v9 }
 0xdde   : > { %7500 = vmatprep.subr.bf16.mxu1 %v14113_v13 }
 0xde1   : > { %7501 = vmatpush1.bf16.msra.mxu1 %v14111_v40 }
 0xde2   : > { %7502 = vmatprep.subr.bf16.mxu1 %v14116_v17 }
 0xde5   : > { %7503 = vmatpush1.bf16.msra.mxu1 %v14114_v16 }
 0xde6   : > { %7504 = vmatprep.subr.bf16.mxu1 %v14119_v51 }
 0xde9   : > { %7505 = vmatpush1.bf16.msra.mxu1 %v14117_v20 }
 0xdea   : > { %7506 = vmatprep.subr.bf16.mxu1 %v14122_v26 }
 0xded   : > { %7507 = vmatpush1.bf16.msra.mxu1 %v14120_v29 }
 0xdee   : > { %7508 = vmatprep.subr.bf16.mxu1 %v14125_v28  ;;  %v14134_v28 = vld [vmem:[#allocation26 + $0x4] ss:$24 sps:$4 sm:$0xff]  }
 0xdf1   : > { %7509 = vmatpush1.bf16.msra.mxu1 %v14123_v23 }
 0xdf2   : > { %7510 = vmatprep.subr.bf16.mxu1 %v14128_v18  ;;  %v7585_v18 = vld [vmem:[#allocation23] sm:$0xf] }
 0xdf5   : > { %7511 = vmatpush1.bf16.msra.mxu1 %v14126_v22  ;;  %v14132_v22 = vld [vmem:[#allocation26] ss:$24 sps:$4 sm:$0xff]  }
 0xdf6   : > { %7512 = vmatprep.subr.bf16.mxu1 %v14131_v37  ;;  %v14137_v37 = vld [vmem:[#allocation26 + $0x34] ss:$24 sps:$4 sm:$0xff]  }
 0xdf9   : > { %7513 = vmatpush1.bf16.msra.mxu1 %v14129_v39  ;;  %v14135_v39 = vld [vmem:[#allocation26 + $0x30] ss:$24 sps:$4 sm:$0xff]  }
 0xdfc   : > { %7515 = vmatmul.mubr.bf16.vlgmr.msra.gmra.mrb[100].mxu1 %v16848_v2 }
 0xe0f   : > { %v7270_v42 = vpop.f32.mrb[96].mxu1 }
 0xe10   : > { %v7525_v45 = vrot.slane %v7270_v42, 7  ;;  %v7393_v10 = vpop.f32.mrb[100].mxu0  ;;  %v7272_v53 = vpop.f32.mrb[97].mxu1 }
 0xe11   : > { %v7535_v7 = vrot.slane %v7393_v10, 6  ;;  %v7534_v63 = vrot.slane %v7272_v53, 6  ;;  %v7526_v32 = vrot.slane %v7272_v53, 7  ;;  %v7395_v15 = vpop.f32.mrb[101].mxu0  ;;  %v7274_v34 = vpop.f32.mrb[98].mxu1  ;;  %v7542_v35 = vrot.slane %v7393_v10, 5 }
 0xe12   : > { %v7397_v56 = vpop.f32.mrb[102].mxu0  ;;  %v7275_v25 = vpop.f32.mrb[99].mxu1  ;;  %v7547_v14 = vrot.slane %v7395_v15, 4  ;;  %v7550_v46 = vrot.slane %v7395_v15, 3  ;;  %v14143_v10 = vld [vmem:[#allocation26 + $0x94] ss:$24 sps:$4 sm:$0xff]  }
 0xe13   : > { %v13136_v41 = vpack.i.bf16 %v7535_v7, %v7534_v63  ;;  %v13131_v54 = vpack.i.bf16 %v7526_v32, %v7525_v45  ;;  %v7398_v30 = vpop.f32.mrb[103].mxu0  ;;  %v14138_v45 = vld [vmem:[#allocation26 + $0x60] ss:$24 sps:$4 sm:$0xff]   ;;  %v14141_v53 = vld [vmem:[#allocation26 + $0x90] ss:$24 sps:$4 sm:$0xff]  }
 0xe14   : > { %v14146_v7 = vld [vmem:[#allocation26 + $0xc4] ss:$24 sps:$4 sm:$0xff]   ;;  %v14144_v63 = vld [vmem:[#allocation26 + $0xc0] ss:$24 sps:$4 sm:$0xff]   ;;  %v14149_v32 = vld [vmem:[#allocation26 + $0xf4] ss:$24 sps:$4 sm:$0xff]  }
 0xe15   : > { %13137 = vrot.lane.b32.xlu0 %v13136_v41, %s15519_s12  ;;  %13132 = vrot.lane.b32.xlu1 %v13131_v54, %s15521_s1  ;;  %v14147_v15 = vld [vmem:[#allocation26 + $0xf0] ss:$24 sps:$4 sm:$0xff]   ;;  %v14152_v34 = vld [vmem:[#allocation26 + $0xc] ss:$24 sps:$4 sm:$0xff]   ;;  %v12059_v56 = vld [vmem:[#allocation25] ss:$0 sm:$0xff] }
 0xe19   : > { %7543 = vrot.lane.b32.xlu1 %v7542_v35, %s15523_s28 }
 0xe87   : > { %v13138_v2 = vpop.permute.xlu0 %13137  ;;  %v13133_v38 = vpop.permute.xlu1 %13132 }
 0xe88   : > { %v13140_v60 = vunpack.i.h.bf16 %v13138_v2  ;;  %v13139_v58 = vunpack.i.l.bf16 %v13138_v2  ;;  %v13135_v43 = vunpack.i.h.bf16 %v13133_v38  ;;  %v13134_v59 = vunpack.i.l.bf16 %v13133_v38 }
 0xe8a   : > { %v7531_v52 = vsel %vm4312_vm3, %v13134_v59, %v13135_v43  ;;  %v7540_v21 = vsel %vm3831_vm13, %v13139_v58, %v13140_v60  ;;  %v14150_v60 = vld [vmem:[#allocation26 + $0x8] ss:$24 sps:$4 sm:$0xff]   ;;  %v14155_v43 = vld [vmem:[#allocation26 + $0x3c] ss:$24 sps:$4 sm:$0xff]   ;;  %v14153_v59 = vld [vmem:[#allocation26 + $0x38] ss:$24 sps:$4 sm:$0xff]  }
 0xe8b   : > { %v7544_v4 = vpop.permute.xlu1 %7543  ;;  %v7572_v11 = vsel %vm7571_vm9, %v7270_v42, %v7531_v52  ;;  %v14140_v42 = vld [vmem:[#allocation26 + $0x64] ss:$24 sps:$4 sm:$0xff]  }
 0xe8c   : > { %v7574_v19 = vsel %vm7573_vm10, %v7572_v11, %v7540_v21  ;;  %v14158_v52 = vld [vmem:[#allocation26 + $0x6c] ss:$24 sps:$4 sm:$0xff]   ;;  %v14156_v21 = vld [vmem:[#allocation26 + $0x68] ss:$24 sps:$4 sm:$0xff]   ;;  %v14159_v11 = vld [vmem:[#allocation26 + $0x98] ss:$24 sps:$4 sm:$0xff]  }
 0xe8d   : > { %v7576_v27 = vsel %vm7575_vm11, %v7574_v19, %v7544_v4  ;;  %v14161_v4 = vld [vmem:[#allocation26 + $0x9c] ss:$24 sps:$4 sm:$0xff]   ;;  %v14162_v19 = vld [vmem:[#allocation26 + $0xc8] ss:$24 sps:$4 sm:$0xff]  }
 0xe8e   : > { %v7578_v31 = vsel %vm7577_vm12, %v7576_v27, %v7547_v14  ;;  %v14164_v14 = vld [vmem:[#allocation26 + $0xcc] ss:$24 sps:$4 sm:$0xff]   ;;  %v14167_v27 = vld [vmem:[#allocation26 + $0xfc] ss:$24 sps:$4 sm:$0xff]  }
 0xecf   : > { %v7516_v62 = vpop.f32.mrb[100].mxu1 }
 0xed0   : > { %v7551_v36 = vrot.slane %v7516_v62, 3  ;;  %v7559_v49 = vrot.slane %v7516_v62, 2  ;;  %v7518_v55 = vpop.f32.mrb[101].mxu1  ;;  %v14170_v62 = vld [vmem:[#allocation26 + $0x14] ss:$24 sps:$4 sm:$0xff]  }
 0xed1   : > { %v7560_v3 = vrot.slane %v7518_v55, 2  ;;  %v7520_v0 = vpop.f32.mrb[102].mxu1  ;;  %v7567_v50 = vrot.slane %v7518_v55, 1  ;;  %v14176_v55 = vld [vmem:[#allocation26 + $0x74] ss:$24 sps:$4 sm:$0xff]  }
 0xed2   : > { %v13141_v5 = vpack.i.bf16 %v7551_v36, %v7550_v46  ;;  %v7521_v6 = vpop.f32.mrb[103].mxu1  ;;  %v14168_v46 = vld [vmem:[#allocation26 + $0x10] ss:$24 sps:$4 sm:$0xff]   ;;  %v14173_v36 = vld [vmem:[#allocation26 + $0x44] ss:$24 sps:$4 sm:$0xff]  }
 0xed3   : > { %v13146_v47 = vpack.i.bf16 %v7560_v3, %v7559_v49  ;;  %v14171_v49 = vld [vmem:[#allocation26 + $0x40] ss:$24 sps:$4 sm:$0xff]   ;;  %v14174_v3 = vld [vmem:[#allocation26 + $0x70] ss:$24 sps:$4 sm:$0xff]   ;;  %v14179_v0 = vld [vmem:[#allocation26 + $0xa4] ss:$24 sps:$4 sm:$0xff]  }
 0xed4   : > { %13142 = vrot.lane.b32.xlu0 %v13141_v5, %s15521_s1  ;;  %v14177_v5 = vld [vmem:[#allocation26 + $0xa0] ss:$24 sps:$4 sm:$0xff]   ;;  %v14182_v6 = vld [vmem:[#allocation26 + $0xd4] ss:$24 sps:$4 sm:$0xff]   ;;  %s17010_s1 = scalar_lea.hbm %s17232_s9, %s12406_s4 }
 0xed5   : > { %13147 = vrot.lane.b32.xlu1 %v13146_v47, %s15519_s12  ;;  %v14180_v47 = vld [vmem:[#allocation26 + $0xd0] ss:$24 sps:$4 sm:$0xff]  }
 0xed8   : > { %7568 = vrot.lane.b32.xlu0 %v7567_v50, %s15523_s28  ;;  %v14185_v50 = vld [vmem:[#allocation26 + $0x104] ss:$24 sps:$4 sm:$0xff]  }
 0xf46   : > { %v13143_v33 = vpop.permute.xlu0 %13142 }
 0xf47   : > { %v13145_v57 = vunpack.i.h.bf16 %v13143_v33  ;;  %v13144_v44 = vunpack.i.l.bf16 %v13143_v33  ;;  %v13148_v1 = vpop.permute.xlu1 %13147  ;;  %v14183_v33 = vld [vmem:[#allocation26 + $0x100] ss:$24 sps:$4 sm:$0xff]  }
 0xf48   : > { %v13150_v9 = vunpack.i.h.bf16 %v13148_v1  ;;  %v13149_v13 = vunpack.i.l.bf16 %v13148_v1 }
 0xf49   : > { %v7556_v40 = vsel %vm4312_vm3, %v13144_v44, %v13145_v57 }
 0xf4a   : > { %v7580_v17 = vsel %vm7579_vm14, %v7578_v31, %v7556_v40  ;;  %v7569_v16 = vpop.permute.xlu0 %7568  ;;  %v7565_v51 = vsel %vm3831_vm13, %v13149_v13, %v13150_v9  ;;  %v14165_v31 = vld [vmem:[#allocation26 + $0xf8] ss:$24 sps:$4 sm:$0xff]  }
 0xf4b   : > { %v7582_v20 = vsel %vm7581_vm15, %v7580_v17, %v7565_v51 }
 0xf4c   : > { %v7584_v26 = vsel %vm7583_vm0, %v7582_v20, %v7569_v16  ;;  %v14190_v20 = vld [vmem:[#allocation31 + $0x18] ss:$48 sps:$4 sm:$0xff]  }
 0xf4d   : > { %v7586_v29 = vpack.c.bf16 %v7584_v26, %v7584_v26 }
 0xf4f   : > { %v7599_v23 = vsel %vm7577_vm12, %v7586_v29, 0  ;;  %v14192_v29 = vld [vmem:[#allocation31 + $0x1c] ss:$48 sps:$4 sm:$0xff]  }
 0xf50   : > { %12650 = vmatpush3.bf16.msra.mxu0 %v7599_v23  ;;  %9084 = vmatprep.subr.bf16.mxu1 %v14192_v29  ;;  %v14250_v29 = vld [vmem:[#allocation31 + $0x3d8] ss:$48 sps:$4 sm:$0xff]  }
 0xf51   : > { %7864 = vmatprep.subr.bf16.mxu0 %v14134_v28  ;;  %9085 = vmatpush1.bf16.msra.mxu1 %v14190_v20  ;;  %v14252_v20 = vld [vmem:[#allocation31 + $0x3dc] ss:$48 sps:$4 sm:$0xff]  }
 0xf53   : > { %12652 = vmatmul.mubr.msk.bf16.vlgmr.msra.gmra.mrb[104].mxu0 %vm7594_vm1, %v7585_v18 }
 0xf54   : > { %7865 = vmatpush1.bf16.msra.mxu0 %v14132_v22  ;;  %7896 = vmatprep.mubr.bf16.mxu0 %v15518_v8  ;;  %v14198_v22 = vld [vmem:[#allocation31 + $0x7c] ss:$48 sps:$4 sm:$0xff]  }
 0xf55   : > { %7866 = vmatprep.subr.bf16.mxu0 %v14137_v37  ;;  %9086 = vmatprep.subr.bf16.mxu1 %v14198_v22  ;;  %v14256_v22 = vld [vmem:[#allocation31 + $0x438] ss:$48 sps:$4 sm:$0xff]  }
 0xf58   : > { %7867 = vmatpush1.bf16.msra.mxu0 %v14135_v39  ;;  %v14196_v39 = vld [vmem:[#allocation31 + $0x78] ss:$48 sps:$4 sm:$0xff]  }
 0xf59   : > { %7868 = vmatprep.subr.bf16.mxu0 %v14140_v42  ;;  %v14204_v42 = vld [vmem:[#allocation31 + $0xdc] ss:$48 sps:$4 sm:$0xff]   ;;  %9087 = vmatpush1.bf16.msra.mxu1 %v14196_v39 }
 0xf5a   : > { %9088 = vmatprep.subr.bf16.mxu1 %v14204_v42  ;;  %v14264_v39 = vld [vmem:[#allocation31 + $0x2c] ss:$48 sps:$4 sm:$0xff]  }
 0xf5b   : > { %v8011_v42 = vld [vmem:[#allocation29] sm:$0x3] }
 0xf5c   : > { %7869 = vmatpush1.bf16.msra.mxu0 %v14138_v45  ;;  %v14202_v45 = vld [vmem:[#allocation31 + $0xd8] ss:$48 sps:$4 sm:$0xff]  }
 0xf5d   : > { %7870 = vmatprep.subr.bf16.mxu0 %v14143_v10  ;;  %v14210_v10 = vld [vmem:[#allocation31 + $0x13c] ss:$48 sps:$4 sm:$0xff]   ;;  %9089 = vmatpush1.bf16.msra.mxu1 %v14202_v45  ;;  %v8016_v45 = vrot.slane %v8011_v42, %v16439_v61 }
 0xf5e   : > { %9090 = vmatprep.subr.bf16.mxu1 %v14210_v10  ;;  %v8020_v10 = vrot.slane %v8011_v42, %v16444_v48  ;;  %v14321_v42 = vld [vmem:[#allocation31 + $0x3cc] ss:$48 sps:$4 sm:$0xff]  }
 0xf60   : > { %7871 = vmatpush1.bf16.msra.mxu0 %v14141_v53  ;;  %v14208_v53 = vld [vmem:[#allocation31 + $0x138] ss:$48 sps:$4 sm:$0xff]  }
 0xf61   : > { %7872 = vmatprep.subr.bf16.mxu0 %v14146_v7  ;;  %v14216_v7 = vld [vmem:[#allocation31 + $0x19c] ss:$48 sps:$4 sm:$0xff]   ;;  %9091 = vmatpush1.bf16.msra.mxu1 %v14208_v53 }
 0xf62   : > { %9092 = vmatprep.subr.bf16.mxu1 %v14216_v7 }
 0xf64   : > { %7873 = vmatpush1.bf16.msra.mxu0 %v14144_v63  ;;  %v14214_v63 = vld [vmem:[#allocation31 + $0x198] ss:$48 sps:$4 sm:$0xff]  }
 0xf65   : > { %7874 = vmatprep.subr.bf16.mxu0 %v14149_v32  ;;  %v14222_v32 = vld [vmem:[#allocation31 + $0x1fc] ss:$48 sps:$4 sm:$0xff]   ;;  %9093 = vmatpush1.bf16.msra.mxu1 %v14214_v63 }
 0xf66   : > { %9094 = vmatprep.subr.bf16.mxu1 %v14222_v32 }
 0xf68   : > { %7875 = vmatpush1.bf16.msra.mxu0 %v14147_v15  ;;  %v14220_v15 = vld [vmem:[#allocation31 + $0x1f8] ss:$48 sps:$4 sm:$0xff]  }
 0xf69   : > { %7905 = vmatprep.subr.bf16.mxu0 %v14152_v34  ;;  %v14228_v34 = vld [vmem:[#allocation31 + $0x25c] ss:$48 sps:$4 sm:$0xff]   ;;  %9095 = vmatpush1.bf16.msra.mxu1 %v14220_v15 }
 0xf6a   : > { %9096 = vmatprep.subr.bf16.mxu1 %v14228_v34 }
0x1026   : > { %v7635_v25 = vpop.f32.mrb[104].mxu0 }
0x1027   : > { %v7636_v41 = vadd.f32 %v12059_v56, %v7635_v25  ;;  %v12653_v54 = vpop.f32.mrb[105].mxu0  ;;  %v14226_v56 = vld [vmem:[#allocation31 + $0x258] ss:$48 sps:$4 sm:$0xff]   ;;  %v14234_v25 = vld [vmem:[#allocation31 + $0x2bc] ss:$48 sps:$4 sm:$0xff]  }
0x1028   : > { %v7638_v30 = vpop.f32.mrb[106].mxu0  ;;  %9097 = vmatpush1.bf16.msra.mxu1 %v14226_v56  ;;  %v14240_v54 = vld [vmem:[#allocation31 + $0x31c] ss:$48 sps:$4 sm:$0xff]  }
0x1029   : > { %vm7641_vm2 = vcmp.ge.f32.partialorder %v7636_v41, 0.0  ;;  %v7642_v35 = vmul.f32 0.01, %v7636_v41  ;;  %v12654_v2 = vpop.f32.mrb[107].mxu0  ;;  %9098 = vmatprep.subr.bf16.mxu1 %v14234_v25  ;;  %v14238_v30 = vld [vmem:[#allocation31 + $0x318] ss:$48 sps:$4 sm:$0xff]  }
0x102a   : > { %v14244_v2 = vld [vmem:[#allocation31 + $0x378] ss:$48 sps:$4 sm:$0xff]  }
0x102b   : > { %v7643_v38 = vsel %vm7641_vm2, %v7636_v41, %v7642_v35  ;;  %v14232_v41 = vld [vmem:[#allocation31 + $0x2b8] ss:$48 sps:$4 sm:$0xff]   ;;  %v14246_v35 = vld [vmem:[#allocation31 + $0x37c] ss:$48 sps:$4 sm:$0xff]  }
0x102c   : > { %v7644_v58 = vpack.c.bf16 %v7643_v38, %v7643_v38  ;;  %9099 = vmatpush1.bf16.msra.mxu1 %v14232_v41 }
0x102d   : > { %9100 = vmatprep.subr.bf16.mxu1 %v14240_v54 }
0x102e   : > { %12097 = vmatmul.mubr.msk.bf16.vlgmr.msra.gmra.mrb[108].mxu0 %vm4460_vm5, %v7644_v58 }
0x102f   : > { %7906 = vmatpush1.bf16.msra.mxu0 %v14150_v60  ;;  %7937 = vmatprep.mubr.bf16.mxu0 %v15518_v8 }
0x1030   : > { %7907 = vmatprep.subr.bf16.mxu0 %v14155_v43  ;;  %9101 = vmatpush1.bf16.msra.mxu1 %v14238_v30 }
0x1031   : > { %9102 = vmatprep.subr.bf16.mxu1 %v14246_v35 }
0x1033   : > { %7908 = vmatpush1.bf16.msra.mxu0 %v14153_v59 }
0x1034   : > { %7909 = vmatprep.subr.bf16.mxu0 %v14158_v52  ;;  %9103 = vmatpush1.bf16.msra.mxu1 %v14244_v2 }
0x1035   : > { %9104 = vmatprep.subr.bf16.mxu1 %v14252_v20  ;;  %v14304_v20 = vld [vmem:[#allocation31 + $0x2c8] ss:$48 sps:$4 sm:$0xff]  }
0x1037   : > { %7910 = vmatpush1.bf16.msra.mxu0 %v14156_v21 }
0x1038   : > { %7911 = vmatprep.subr.bf16.mxu0 %v14161_v4  ;;  %9105 = vmatpush1.bf16.msra.mxu1 %v14250_v29  ;;  %v14312_v29 = vld [vmem:[#allocation31 + $0x32c] ss:$48 sps:$4 sm:$0xff]  }
0x103b   : > { %7912 = vmatpush1.bf16.msra.mxu0 %v14159_v11 }
0x103c   : > { %7913 = vmatprep.subr.bf16.mxu0 %v14164_v14 }
0x103f   : > { %7914 = vmatpush1.bf16.msra.mxu0 %v14162_v19 }
0x1040   : > { %7915 = vmatprep.subr.bf16.mxu0 %v14167_v27  ;;  %v14189_v27 = vld [vmem:[#allocation31 + $0x4] ss:$48 sps:$4 sm:$0xff]  }
0x1043   : > { %7916 = vmatpush1.bf16.msra.mxu0 %v14165_v31 }
0x1044   : > { %7946 = vmatprep.subr.bf16.mxu0 %v14170_v62  ;;  %v14186_v62 = vld [vmem:[#allocation28] sm:$0xff]  }
0x1046   : > { %12098 = vmatmul.mubr.msk.bf16.vlgmr.msra.gmra.mrb[112].mxu0 %vm4460_vm5, %v7644_v58 }
0x1047   : > { %7947 = vmatpush1.bf16.msra.mxu0 %v14168_v46  ;;  %7978 = vmatprep.mubr.bf16.mxu0 %v15518_v8  ;;  %v14187_v46 = vld [vmem:[#allocation31] ss:$48 sps:$4 sm:$0xff]  }
0x1048   : > { %7948 = vmatprep.subr.bf16.mxu0 %v14173_v36  ;;  %v14195_v36 = vld [vmem:[#allocation31 + $0x64] ss:$48 sps:$4 sm:$0xff]  }
0x104b   : > { %7949 = vmatpush1.bf16.msra.mxu0 %v14171_v49  ;;  %v14193_v49 = vld [vmem:[#allocation31 + $0x60] ss:$48 sps:$4 sm:$0xff]  }
0x104c   : > { %7950 = vmatprep.subr.bf16.mxu0 %v14176_v55  ;;  %v14201_v55 = vld [vmem:[#allocation31 + $0xc4] ss:$48 sps:$4 sm:$0xff]  }
0x104f   : > { %7951 = vmatpush1.bf16.msra.mxu0 %v14174_v3  ;;  %v14199_v3 = vld [vmem:[#allocation31 + $0xc0] ss:$48 sps:$4 sm:$0xff]  }
0x1050   : > { %7952 = vmatprep.subr.bf16.mxu0 %v14179_v0  ;;  %v14207_v0 = vld [vmem:[#allocation31 + $0x124] ss:$48 sps:$4 sm:$0xff]  }
0x1053   : > { %7953 = vmatpush1.bf16.msra.mxu0 %v14177_v5  ;;  %v14205_v5 = vld [vmem:[#allocation31 + $0x120] ss:$48 sps:$4 sm:$0xff]  }
0x1054   : > { %7954 = vmatprep.subr.bf16.mxu0 %v14182_v6  ;;  %v14213_v6 = vld [vmem:[#allocation31 + $0x184] ss:$48 sps:$4 sm:$0xff]  }
0x1057   : > { %7955 = vmatpush1.bf16.msra.mxu0 %v14180_v47  ;;  %v14211_v47 = vld [vmem:[#allocation31 + $0x180] ss:$48 sps:$4 sm:$0xff]  }
0x1058   : > { %7956 = vmatprep.subr.bf16.mxu0 %v14185_v50  ;;  %v14219_v50 = vld [vmem:[#allocation31 + $0x1e4] ss:$48 sps:$4 sm:$0xff]  }
0x105b   : > { %7957 = vmatpush1.bf16.msra.mxu0 %v14183_v33  ;;  %v14217_v33 = vld [vmem:[#allocation31 + $0x1e0] ss:$48 sps:$4 sm:$0xff]  }
0x105e   : > { %12099 = vmatmul.mubr.msk.bf16.vlgmr.msra.gmra.mrb[116].mxu0 %vm4460_vm5, %v7644_v58 }
0x105f   : > { %8063 = vmatprep.mubr.bf16.mxu0 %v15518_v8 }
0x1101   : > { %v16880_v57 = vpop.f32.mrb[108].mxu0 }
0x1102   : > { %v7900_v44 = vpop.f32.mrb[109].mxu0 }
0x1103   : > { %v7902_v1 = vpop.f32.mrb[110].mxu0 }
0x1104   : > { %v7903_v9 = vpop.f32.mrb[111].mxu0  ;;  %v14231_v1 = vld [vmem:[#allocation31 + $0x2a4] ss:$48 sps:$4 sm:$0xff]  }
0x1105   : > { %v14229_v9 = vld [vmem:[#allocation31 + $0x2a0] ss:$48 sps:$4 sm:$0xff]  }
0x1119   : > { %v7939_v13 = vpop.f32.mrb[112].mxu0 }
0x111a   : > { %v13151_v40 = vpack.i.bf16 %v7939_v13, %v7900_v44  ;;  %v16882_v17 = vpop.f32.mrb[113].mxu0  ;;  %v14237_v13 = vld [vmem:[#allocation31 + $0x304] ss:$48 sps:$4 sm:$0xff]  }
0x111b   : > { %v7943_v16 = vpop.f32.mrb[114].mxu0 }
0x111c   : > { %13152 = vrot.lane.b32.xlu1 %v13151_v40, %s15519_s12  ;;  %v7944_v51 = vpop.f32.mrb[115].mxu0  ;;  %v14235_v40 = vld [vmem:[#allocation31 + $0x300] ss:$48 sps:$4 sm:$0xff]  }
0x111d   : > { %v14241_v16 = vld [vmem:[#allocation31 + $0x360] ss:$48 sps:$4 sm:$0xff]   ;;  %v14249_v51 = vld [vmem:[#allocation31 + $0x3c4] ss:$48 sps:$4 sm:$0xff]  }
0x1131   : > { %v7980_v26 = vpop.f32.mrb[116].mxu0 }
0x1132   : > { %v7982_v28 = vpop.f32.mrb[117].mxu0 }
0x1133   : > { %v13156_v23 = vpack.i.bf16 %v7982_v28, %v7980_v26  ;;  %v7984_v18 = vpop.f32.mrb[118].mxu0  ;;  %v14255_v28 = vld [vmem:[#allocation31 + $0x424] ss:$48 sps:$4 sm:$0xff]  }
0x1134   : > { %v7985_v37 = vpop.f32.mrb[119].mxu0  ;;  %v14253_v18 = vld [vmem:[#allocation31 + $0x420] ss:$48 sps:$4 sm:$0xff]  }
0x1135   : > { %13157 = vrot.lane.b32.xlu0 %v13156_v23, %s15519_s12  ;;  %v14258_v23 = vld [vmem:[#allocation31 + $0x43c] ss:$48 sps:$4 sm:$0xff]  }
0x1136   : > { %9106 = vmatprep.subr.bf16.mxu1 %v14258_v23  ;;  %v14261_v37 = vld [vmem:[#allocation31 + $0xc] ss:$48 sps:$4 sm:$0xff]   ;;  %v14310_v23 = vld [vmem:[#allocation31 + $0x328] ss:$48 sps:$4 sm:$0xff]  }
0x1137   : > { %9107 = vmatpush1.bf16.msra.mxu1 %v14256_v22  ;;  %v14318_v22 = vld [vmem:[#allocation31 + $0x38c] ss:$48 sps:$4 sm:$0xff]  }
0x1138   : > { %9170 = vmatprep.subr.bf16.mxu1 %v14264_v39  ;;  %v14316_v39 = vld [vmem:[#allocation31 + $0x388] ss:$48 sps:$4 sm:$0xff]  }
0x118e   : > { %v13153_v38 = vpop.permute.xlu1 %13152 }
0x118f   : > { %v13155_v60 = vunpack.i.h.bf16 %v13153_v38  ;;  %v13154_v58 = vunpack.i.l.bf16 %v13153_v38 }
0x1191   : > { %v8008_v43 = vpack.c.bf16 %v13155_v60, %v7900_v44  ;;  %v7993_v59 = vsel %vm3831_vm13, %v13154_v58, %v13155_v60  ;;  %v14223_v44 = vld [vmem:[#allocation31 + $0x240] ss:$48 sps:$4 sm:$0xff]  }
0x1192   : > { %v8007_v52 = vpack.c.bf16 %v7993_v59, %v16880_v57  ;;  %v14225_v57 = vld [vmem:[#allocation31 + $0x244] ss:$48 sps:$4 sm:$0xff]  }
0x1193   : > { %8031 = vmatprep.subr.bf16.mxu0 %v8008_v43 }
0x1194   : > { %8032 = vmatpush1.bf16.msra.mxu0 %v8007_v52  ;;  %v14259_v52 = vld [vmem:[#allocation31 + $0x8] ss:$48 sps:$4 sm:$0xff]  }
0x11a7   : > { %v13158_v21 = vpop.permute.xlu0 %13157 }
0x11a8   : > { %v13160_v4 = vunpack.i.h.bf16 %v13158_v21  ;;  %v13159_v11 = vunpack.i.l.bf16 %v13158_v21  ;;  %v14262_v21 = vld [vmem:[#allocation31 + $0x28] ss:$48 sps:$4 sm:$0xff]  }
0x11aa   : > { %v8010_v14 = vpack.c.bf16 %v13160_v4, %v7980_v26  ;;  %v8002_v19 = vsel %vm3831_vm13, %v13159_v11, %v13160_v4  ;;  %v14247_v26 = vld [vmem:[#allocation31 + $0x3c0] ss:$48 sps:$4 sm:$0xff]   ;;  %v14267_v4 = vld [vmem:[#allocation31 + $0x6c] ss:$48 sps:$4 sm:$0xff]  }
0x11ab   : > { %v8009_v31 = vpack.c.bf16 %v8002_v19, %v16882_v17  ;;  %v14243_v17 = vld [vmem:[#allocation31 + $0x364] ss:$48 sps:$4 sm:$0xff]   ;;  %v14270_v11 = vld [vmem:[#allocation31 + $0x8c] ss:$48 sps:$4 sm:$0xff]   ;;  %v14268_v19 = vld [vmem:[#allocation31 + $0x88] ss:$48 sps:$4 sm:$0xff]  }
0x11ac   : > { %8033 = vmatprep.subr.bf16.mxu0 %v8010_v14  ;;  %v14265_v14 = vld [vmem:[#allocation31 + $0x68] ss:$48 sps:$4 sm:$0xff]  }
0x11ad   : > { %8034 = vmatpush1.bf16.msra.mxu0 %v8009_v31  ;;  %v14276_v31 = vld [vmem:[#allocation31 + $0xec] ss:$48 sps:$4 sm:$0xff]  }
0x11ae   : > { %8955 = vmatprep.subr.bf16.mxu0 %v14189_v27  ;;  %v14273_v27 = vld [vmem:[#allocation31 + $0xcc] ss:$48 sps:$4 sm:$0xff]  }
0x11b0   : > { %12101 = vmatmul.mubr.msk.bf16.vlgmr.msra.gmra.mrb[120].mxu0 %vm4312_vm3, %v14186_v62  ;;  %v14271_v62 = vld [vmem:[#allocation31 + $0xc8] ss:$48 sps:$4 sm:$0xff]  }
0x11b1   : > { %8956 = vmatpush1.bf16.msra.mxu0 %v14187_v46  ;;  %v14274_v46 = vld [vmem:[#allocation31 + $0xe8] ss:$48 sps:$4 sm:$0xff]  }
0x11b2   : > { %8957 = vmatprep.subr.bf16.mxu0 %v14195_v36  ;;  %v14279_v36 = vld [vmem:[#allocation31 + $0x12c] ss:$48 sps:$4 sm:$0xff]  }
0x11b5   : > { %8958 = vmatpush1.bf16.msra.mxu0 %v14193_v49  ;;  %v14282_v49 = vld [vmem:[#allocation31 + $0x14c] ss:$48 sps:$4 sm:$0xff]  }
0x11b6   : > { %8959 = vmatprep.subr.bf16.mxu0 %v14201_v55  ;;  %v14277_v55 = vld [vmem:[#allocation31 + $0x128] ss:$48 sps:$4 sm:$0xff]  }
0x11b9   : > { %8960 = vmatpush1.bf16.msra.mxu0 %v14199_v3  ;;  %v14280_v3 = vld [vmem:[#allocation31 + $0x148] ss:$48 sps:$4 sm:$0xff]  }
0x11ba   : > { %8961 = vmatprep.subr.bf16.mxu0 %v14207_v0  ;;  %v14285_v0 = vld [vmem:[#allocation31 + $0x18c] ss:$48 sps:$4 sm:$0xff]  }
0x11bd   : > { %8962 = vmatpush1.bf16.msra.mxu0 %v14205_v5  ;;  %v14288_v5 = vld [vmem:[#allocation31 + $0x1ac] ss:$48 sps:$4 sm:$0xff]  }
0x11be   : > { %8963 = vmatprep.subr.bf16.mxu0 %v14213_v6  ;;  %v14283_v6 = vld [vmem:[#allocation31 + $0x188] ss:$48 sps:$4 sm:$0xff]  }
0x11c1   : > { %8964 = vmatpush1.bf16.msra.mxu0 %v14211_v47  ;;  %v14286_v47 = vld [vmem:[#allocation31 + $0x1a8] ss:$48 sps:$4 sm:$0xff]  }
0x11c2   : > { %8965 = vmatprep.subr.bf16.mxu0 %v14219_v50  ;;  %v14291_v50 = vld [vmem:[#allocation31 + $0x1ec] ss:$48 sps:$4 sm:$0xff]  }
0x11c5   : > { %8966 = vmatpush1.bf16.msra.mxu0 %v14217_v33  ;;  %v14294_v33 = vld [vmem:[#allocation31 + $0x20c] ss:$48 sps:$4 sm:$0xff]  }
0x11c6   : > { %8967 = vmatprep.subr.bf16.mxu0 %v14225_v57  ;;  %v14289_v57 = vld [vmem:[#allocation31 + $0x1e8] ss:$48 sps:$4 sm:$0xff]  }
0x11c9   : > { %8968 = vmatpush1.bf16.msra.mxu0 %v14223_v44  ;;  %v14292_v44 = vld [vmem:[#allocation31 + $0x208] ss:$48 sps:$4 sm:$0xff]  }
0x11ca   : > { %8969 = vmatprep.subr.bf16.mxu0 %v14231_v1  ;;  %v14297_v1 = vld [vmem:[#allocation31 + $0x24c] ss:$48 sps:$4 sm:$0xff]  }
0x11cd   : > { %8970 = vmatpush1.bf16.msra.mxu0 %v14229_v9  ;;  %v14300_v9 = vld [vmem:[#allocation31 + $0x26c] ss:$48 sps:$4 sm:$0xff]  }
0x11ce   : > { %8971 = vmatprep.subr.bf16.mxu0 %v14237_v13  ;;  %v14295_v13 = vld [vmem:[#allocation31 + $0x248] ss:$48 sps:$4 sm:$0xff]  }
0x11d1   : > { %8972 = vmatpush1.bf16.msra.mxu0 %v14235_v40  ;;  %v14298_v40 = vld [vmem:[#allocation31 + $0x268] ss:$48 sps:$4 sm:$0xff]  }
0x11d2   : > { %8973 = vmatprep.subr.bf16.mxu0 %v14243_v17  ;;  %v14303_v17 = vld [vmem:[#allocation31 + $0x2ac] ss:$48 sps:$4 sm:$0xff]  }
0x11d5   : > { %8974 = vmatpush1.bf16.msra.mxu0 %v14241_v16  ;;  %v14306_v16 = vld [vmem:[#allocation31 + $0x2cc] ss:$48 sps:$4 sm:$0xff]  }
0x11d6   : > { %8975 = vmatprep.subr.bf16.mxu0 %v14249_v51  ;;  %v14301_v51 = vld [vmem:[#allocation31 + $0x2a8] ss:$48 sps:$4 sm:$0xff]  }
0x11d9   : > { %8976 = vmatpush1.bf16.msra.mxu0 %v14247_v26  ;;  %v14309_v26 = vld [vmem:[#allocation31 + $0x30c] ss:$48 sps:$4 sm:$0xff]  }
0x11da   : > { %8977 = vmatprep.subr.bf16.mxu0 %v14255_v28  ;;  %v14307_v28 = vld [vmem:[#allocation31 + $0x308] ss:$48 sps:$4 sm:$0xff]  }
0x11dd   : > { %8978 = vmatpush1.bf16.msra.mxu0 %v14253_v18  ;;  %v14315_v18 = vld [vmem:[#allocation31 + $0x36c] ss:$48 sps:$4 sm:$0xff]  }
0x11de   : > { %8998 = vmatprep.subr.bf16.mxu0 %v14261_v37  ;;  %v14313_v37 = vld [vmem:[#allocation31 + $0x368] ss:$48 sps:$4 sm:$0xff]  }
0x1283   : > { %v8065_v53 = vpop.f32.mrb[120].mxu0 }
0x1284   : > { %v8066_v7 = vadd.f32 %v8065_v53, %v8016_v45  ;;  %v8067_v63 = vpop.f32.mrb[121].mxu0  ;;  %v14322_v53 = vld [vmem:[#allocation31 + $0x3e8] ss:$48 sps:$4 sm:$0xff]  }
0x1285   : > { %v8068_v32 = vadd.f32 %v8067_v63, %v8020_v10  ;;  %v8069_v15 = vpop.f32.mrb[122].mxu0  ;;  %v14330_v63 = vld [vmem:[#allocation31 + $0x44c] ss:$48 sps:$4 sm:$0xff]  }
0x1286   : > { %v8078_v34 = vmul.f32 0.01, %v8066_v7  ;;  %v8070_v56 = vadd.f32 %v8069_v15, %v8016_v45  ;;  %v8071_v25 = vpop.f32.mrb[123].mxu0  ;;  %vm8074_vm3 = vcmp.ge.f32.partialorder %v8066_v7, 0.0  ;;  %v14324_v45 = vld [vmem:[#allocation31 + $0x3ec] ss:$48 sps:$4 sm:$0xff]  }
0x1287   : > { %v8079_v41 = vmul.f32 0.01, %v8068_v32  ;;  %v8072_v54 = vadd.f32 %v8071_v25, %v8020_v10  ;;  %vm8075_vm4 = vcmp.ge.f32.partialorder %v8068_v32, 0.0  ;;  %v14319_v10 = vld [vmem:[#allocation31 + $0x3c8] ss:$48 sps:$4 sm:$0xff]  }
0x1288   : > { %vm8076_vm5 = vcmp.ge.f32.partialorder %v8070_v56, 0.0  ;;  %v8080_v30 = vmul.f32 0.01, %v8070_v56  ;;  %v8082_v2 = vsel %vm8074_vm3, %v8066_v7, %v8078_v34  ;;  %v14327_v7 = vld [vmem:[#allocation31 + $0x42c] ss:$48 sps:$4 sm:$0xff]  }
0x1289   : > { %vm8077_vm7 = vcmp.ge.f32.partialorder %v8072_v54, 0.0  ;;  %v8081_v35 = vmul.f32 0.01, %v8072_v54  ;;  %v8083_v60 = vsel %vm8075_vm4, %v8068_v32, %v8079_v41  ;;  %v14325_v32 = vld [vmem:[#allocation31 + $0x428] ss:$48 sps:$4 sm:$0xff]  }
0x128a   : > { %v8084_v38 = vsel %vm8076_vm5, %v8070_v56, %v8080_v30  ;;  %v14328_v15 = vld [vmem:[#allocation31 + $0x448] ss:$48 sps:$4 sm:$0xff]   ;;  %v14333_v34 = vld [vmem:[#allocation31 + $0x14] ss:$48 sps:$4 sm:$0xff]   ;;  %v14331_v56 = vld [vmem:[#allocation31 + $0x10] ss:$48 sps:$4 sm:$0xff]  }
0x128b   : > { %v16893_v58 = vpack.c.bf16 %v8084_v38, %v8082_v2  ;;  %v8085_v43 = vsel %vm8077_vm7, %v8072_v54, %v8081_v35  ;;  %v14336_v25 = vld [vmem:[#allocation31 + $0x74] ss:$48 sps:$4 sm:$0xff]   ;;  %v14334_v41 = vld [vmem:[#allocation31 + $0x70] ss:$48 sps:$4 sm:$0xff]  }
0x128c   : > { %v16895_v59 = vpack.c.bf16 %v8085_v43, %v8083_v60  ;;  %v14339_v54 = vld [vmem:[#allocation31 + $0xd4] ss:$48 sps:$4 sm:$0xff]   ;;  %v14337_v30 = vld [vmem:[#allocation31 + $0xd0] ss:$48 sps:$4 sm:$0xff]  }
0x128d   : > { %v14342_v35 = vld [vmem:[#allocation31 + $0x134] ss:$48 sps:$4 sm:$0xff]   ;;  %v14340_v2 = vld [vmem:[#allocation31 + $0x130] ss:$48 sps:$4 sm:$0xff]  }
0x128e   : > { %12246 = vmatprep.mubr.msk.bf16.mxu0 %vm3831_vm13, %v16895_v59  ;;  %12249 = vmatprep.mubr.msk.bf16.mxu1 %vm3831_vm13, %v16895_v59  ;;  %v14345_v38 = vld [vmem:[#allocation31 + $0x194] ss:$48 sps:$4 sm:$0xff]   ;;  %v14343_v60 = vld [vmem:[#allocation31 + $0x190] ss:$48 sps:$4 sm:$0xff]  }
0x128f   : > { %8988 = vmatmul.mubr.bf16.vlgmr.msra.gmra.mrb[124].mxu0 %v16893_v58  ;;  %9117 = vmatmul.mubr.bf16.vlgmr.msra.gmra.mrb[104].mxu1 %v16893_v58  ;;  %v14348_v43 = vld [vmem:[#allocation31 + $0x1f4] ss:$48 sps:$4 sm:$0xff]  }
0x1290   : > { %8999 = vmatpush1.bf16.msra.mxu0 %v14259_v52  ;;  %9171 = vmatpush1.bf16.msra.mxu1 %v14262_v21  ;;  %v14346_v52 = vld [vmem:[#allocation31 + $0x1f0] ss:$48 sps:$4 sm:$0xff]   ;;  %v14351_v21 = vld [vmem:[#allocation31 + $0x254] ss:$48 sps:$4 sm:$0xff]  }
0x1291   : > { %12247 = vmatprep.mubr.msk.bf16.mxu0 %vm3831_vm13, %v16895_v59  ;;  %12251 = vmatprep.mubr.msk.bf16.mxu1 %vm3831_vm13, %v16895_v59 }
0x1292   : > { %9000 = vmatprep.subr.bf16.mxu0 %v14267_v4  ;;  %9172 = vmatprep.subr.bf16.mxu1 %v14270_v11  ;;  %v14349_v4 = vld [vmem:[#allocation31 + $0x250] ss:$48 sps:$4 sm:$0xff]   ;;  %v14354_v11 = vld [vmem:[#allocation31 + $0x2b4] ss:$48 sps:$4 sm:$0xff]  }
0x1294   : > { %9001 = vmatpush1.bf16.msra.mxu0 %v14265_v14  ;;  %9173 = vmatpush1.bf16.msra.mxu1 %v14268_v19  ;;  %v14352_v14 = vld [vmem:[#allocation31 + $0x2b0] ss:$48 sps:$4 sm:$0xff]   ;;  %v14357_v19 = vld [vmem:[#allocation31 + $0x314] ss:$48 sps:$4 sm:$0xff]  }
0x1295   : > { %9002 = vmatprep.subr.bf16.mxu0 %v14273_v27  ;;  %9174 = vmatprep.subr.bf16.mxu1 %v14276_v31  ;;  %v14355_v27 = vld [vmem:[#allocation31 + $0x310] ss:$48 sps:$4 sm:$0xff]   ;;  %v14360_v31 = vld [vmem:[#allocation31 + $0x374] ss:$48 sps:$4 sm:$0xff]  }
0x1298   : > { %9003 = vmatpush1.bf16.msra.mxu0 %v14271_v62  ;;  %9175 = vmatpush1.bf16.msra.mxu1 %v14274_v46  ;;  %v14358_v62 = vld [vmem:[#allocation31 + $0x370] ss:$48 sps:$4 sm:$0xff]   ;;  %v14363_v46 = vld [vmem:[#allocation31 + $0x3d4] ss:$48 sps:$4 sm:$0xff]  }
0x1299   : > { %9004 = vmatprep.subr.bf16.mxu0 %v14279_v36  ;;  %9176 = vmatprep.subr.bf16.mxu1 %v14282_v49  ;;  %v14361_v36 = vld [vmem:[#allocation31 + $0x3d0] ss:$48 sps:$4 sm:$0xff]   ;;  %v14366_v49 = vld [vmem:[#allocation31 + $0x434] ss:$48 sps:$4 sm:$0xff]  }
0x129c   : > { %9005 = vmatpush1.bf16.msra.mxu0 %v14277_v55  ;;  %9177 = vmatpush1.bf16.msra.mxu1 %v14280_v3  ;;  %v14364_v55 = vld [vmem:[#allocation31 + $0x430] ss:$48 sps:$4 sm:$0xff]   ;;  %v14369_v3 = vld [vmem:[#allocation31 + $0x24] ss:$48 sps:$4 sm:$0xff]  }
0x129d   : > { %9006 = vmatprep.subr.bf16.mxu0 %v14285_v0  ;;  %9178 = vmatprep.subr.bf16.mxu1 %v14288_v5  ;;  %v14367_v0 = vld [vmem:[#allocation31 + $0x20] ss:$48 sps:$4 sm:$0xff]   ;;  %v14372_v5 = vld [vmem:[#allocation31 + $0x84] ss:$48 sps:$4 sm:$0xff]  }
0x12a0   : > { %9007 = vmatpush1.bf16.msra.mxu0 %v14283_v6  ;;  %9179 = vmatpush1.bf16.msra.mxu1 %v14286_v47  ;;  %v14370_v6 = vld [vmem:[#allocation31 + $0x80] ss:$48 sps:$4 sm:$0xff]   ;;  %v14375_v47 = vld [vmem:[#allocation31 + $0xe4] ss:$48 sps:$4 sm:$0xff]  }
0x12a1   : > { %9008 = vmatprep.subr.bf16.mxu0 %v14291_v50  ;;  %9180 = vmatprep.subr.bf16.mxu1 %v14294_v33  ;;  %v14373_v50 = vld [vmem:[#allocation31 + $0xe0] ss:$48 sps:$4 sm:$0xff]   ;;  %v14378_v33 = vld [vmem:[#allocation31 + $0x144] ss:$48 sps:$4 sm:$0xff]  }
0x12a4   : > { %9009 = vmatpush1.bf16.msra.mxu0 %v14289_v57  ;;  %9181 = vmatpush1.bf16.msra.mxu1 %v14292_v44  ;;  %v14376_v57 = vld [vmem:[#allocation31 + $0x140] ss:$48 sps:$4 sm:$0xff]   ;;  %v14381_v44 = vld [vmem:[#allocation31 + $0x1a4] ss:$48 sps:$4 sm:$0xff]  }
0x12a5   : > { %9010 = vmatprep.subr.bf16.mxu0 %v14297_v1  ;;  %9182 = vmatprep.subr.bf16.mxu1 %v14300_v9  ;;  %v14379_v1 = vld [vmem:[#allocation31 + $0x1a0] ss:$48 sps:$4 sm:$0xff]   ;;  %v14384_v9 = vld [vmem:[#allocation31 + $0x204] ss:$48 sps:$4 sm:$0xff]  }
0x12a8   : > { %9011 = vmatpush1.bf16.msra.mxu0 %v14295_v13  ;;  %9183 = vmatpush1.bf16.msra.mxu1 %v14298_v40  ;;  %v14382_v13 = vld [vmem:[#allocation31 + $0x200] ss:$48 sps:$4 sm:$0xff]   ;;  %v14387_v40 = vld [vmem:[#allocation31 + $0x264] ss:$48 sps:$4 sm:$0xff]  }
0x12a9   : > { %9012 = vmatprep.subr.bf16.mxu0 %v14303_v17  ;;  %9184 = vmatprep.subr.bf16.mxu1 %v14306_v16  ;;  %v14390_v17 = vld [vmem:[#allocation31 + $0x2c4] ss:$48 sps:$4 sm:$0xff]   ;;  %v14388_v16 = vld [vmem:[#allocation31 + $0x2c0] ss:$48 sps:$4 sm:$0xff]  }
0x12ac   : > { %9013 = vmatpush1.bf16.msra.mxu0 %v14301_v51  ;;  %9185 = vmatpush1.bf16.msra.mxu1 %v14304_v20  ;;  %v14393_v51 = vld [vmem:[#allocation31 + $0x324] ss:$48 sps:$4 sm:$0xff]   ;;  %v14391_v20 = vld [vmem:[#allocation31 + $0x320] ss:$48 sps:$4 sm:$0xff]  }
0x12ad   : > { %9014 = vmatprep.subr.bf16.mxu0 %v14309_v26  ;;  %9186 = vmatprep.subr.bf16.mxu1 %v14312_v29  ;;  %v14396_v26 = vld [vmem:[#allocation31 + $0x384] ss:$48 sps:$4 sm:$0xff]   ;;  %v14394_v29 = vld [vmem:[#allocation31 + $0x380] ss:$48 sps:$4 sm:$0xff]  }
0x12b0   : > { %9015 = vmatpush1.bf16.msra.mxu0 %v14307_v28  ;;  %9187 = vmatpush1.bf16.msra.mxu1 %v14310_v23  ;;  %v14399_v28 = vld [vmem:[#allocation31 + $0x3e4] ss:$48 sps:$4 sm:$0xff]   ;;  %v14397_v23 = vld [vmem:[#allocation31 + $0x3e0] ss:$48 sps:$4 sm:$0xff]  }
0x12b1   : > { %9016 = vmatprep.subr.bf16.mxu0 %v14315_v18  ;;  %9188 = vmatprep.subr.bf16.mxu1 %v14318_v22  ;;  %v14402_v18 = vld [vmem:[#allocation31 + $0x444] ss:$48 sps:$4 sm:$0xff]   ;;  %v14400_v22 = vld [vmem:[#allocation31 + $0x440] ss:$48 sps:$4 sm:$0xff]  }
0x12b4   : > { %9017 = vmatpush1.bf16.msra.mxu0 %v14313_v37  ;;  %9189 = vmatpush1.bf16.msra.mxu1 %v14316_v39 }
0x12b5   : > { %9018 = vmatprep.subr.bf16.mxu0 %v14321_v42  ;;  %9190 = vmatprep.subr.bf16.mxu1 %v14324_v45 }
0x12b8   : > { %9019 = vmatpush1.bf16.msra.mxu0 %v14319_v10  ;;  %9191 = vmatpush1.bf16.msra.mxu1 %v14322_v53 }
0x12b9   : > { %9020 = vmatprep.subr.bf16.mxu0 %v14327_v7  ;;  %9192 = vmatprep.subr.bf16.mxu1 %v14330_v63 }
0x12bc   : > { %9021 = vmatpush1.bf16.msra.mxu0 %v14325_v32  ;;  %9193 = vmatpush1.bf16.msra.mxu1 %v14328_v15 }
0x12bd   : > { %9041 = vmatprep.subr.bf16.mxu0 %v14333_v34 }
0x12bf   : > { %9031 = vmatmul.mubr.bf16.vlgmr.msra.gmra.mrb[128].mxu0 %v16893_v58  ;;  %9203 = vmatmul.mubr.bf16.vlgmr.msra.gmra.mrb[108].mxu1 %v16893_v58 }
0x12c0   : > { %9042 = vmatpush1.bf16.msra.mxu0 %v14331_v56  ;;  %12248 = vmatprep.mubr.msk.bf16.mxu0 %vm3831_vm13, %v16895_v59 }
0x12c1   : > { %9043 = vmatprep.subr.bf16.mxu0 %v14336_v25  ;;  %v14403_v25 = vld [vmem:[#allocation32] sm:$0xff]  }
0x12c2   : > { %12663 = vmatprep.mubr.msk.bf16.mxu1 %vm3831_vm13, %v14403_v25 }
0x12c4   : > { %9044 = vmatpush1.bf16.msra.mxu0 %v14334_v41 }
0x12c5   : > { %9045 = vmatprep.subr.bf16.mxu0 %v14339_v54 }
0x12c8   : > { %9046 = vmatpush1.bf16.msra.mxu0 %v14337_v30 }
0x12c9   : > { %9047 = vmatprep.subr.bf16.mxu0 %v14342_v35 }
0x12cc   : > { %9048 = vmatpush1.bf16.msra.mxu0 %v14340_v2 }
0x12cd   : > { %9049 = vmatprep.subr.bf16.mxu0 %v14345_v38 }
0x12d0   : > { %9050 = vmatpush1.bf16.msra.mxu0 %v14343_v60 }
0x12d1   : > { %9051 = vmatprep.subr.bf16.mxu0 %v14348_v43 }
0x12d4   : > { %9052 = vmatpush1.bf16.msra.mxu0 %v14346_v52 }
0x12d5   : > { %9053 = vmatprep.subr.bf16.mxu0 %v14351_v21 }
0x12d8   : > { %9054 = vmatpush1.bf16.msra.mxu0 %v14349_v4 }
0x12d9   : > { %9055 = vmatprep.subr.bf16.mxu0 %v14354_v11 }
0x12dc   : > { %9056 = vmatpush1.bf16.msra.mxu0 %v14352_v14 }
0x12dd   : > { %9057 = vmatprep.subr.bf16.mxu0 %v14357_v19 }
0x12e0   : > { %9058 = vmatpush1.bf16.msra.mxu0 %v14355_v27 }
0x12e1   : > { %9059 = vmatprep.subr.bf16.mxu0 %v14360_v31 }
0x12e4   : > { %9060 = vmatpush1.bf16.msra.mxu0 %v14358_v62 }
0x12e5   : > { %9061 = vmatprep.subr.bf16.mxu0 %v14363_v46 }
0x12e8   : > { %9062 = vmatpush1.bf16.msra.mxu0 %v14361_v36 }
0x12e9   : > { %9063 = vmatprep.subr.bf16.mxu0 %v14366_v49 }
0x12ec   : > { %9064 = vmatpush1.bf16.msra.mxu0 %v14364_v55 }
0x12ed   : > { %9127 = vmatprep.subr.bf16.mxu0 %v14369_v3 }
0x12ef   : > { %9074 = vmatmul.mubr.bf16.vlgmr.msra.gmra.mrb[132].mxu0 %v16893_v58 }
0x12f0   : > { %9128 = vmatpush1.bf16.msra.mxu0 %v14367_v0  ;;  %12250 = vmatprep.mubr.msk.bf16.mxu0 %vm3831_vm13, %v16895_v59  ;;  %v14385_v59 = vld [vmem:[#allocation31 + $0x260] ss:$48 sps:$4 sm:$0xff]  }
0x12f1   : > { %9129 = vmatprep.subr.bf16.mxu0 %v14372_v5  ;;  %v14407_v0 = vld [vmem:[#allocation35 + $0x4] ss:$24 sps:$4 sm:$0xff]  }
0x12f4   : > { %9130 = vmatpush1.bf16.msra.mxu0 %v14370_v6  ;;  %v14405_v6 = vld [vmem:[#allocation35] ss:$24 sps:$4 sm:$0xff]  }
0x12f5   : > { %9131 = vmatprep.subr.bf16.mxu0 %v14375_v47  ;;  %v14410_v47 = vld [vmem:[#allocation35 + $0xc] ss:$24 sps:$4 sm:$0xff]  }
0x12f8   : > { %9132 = vmatpush1.bf16.msra.mxu0 %v14373_v50  ;;  %v14413_v50 = vld [vmem:[#allocation35 + $0x34] ss:$24 sps:$4 sm:$0xff]  }
0x12f9   : > { %9133 = vmatprep.subr.bf16.mxu0 %v14378_v33  ;;  %v14408_v33 = vld [vmem:[#allocation35 + $0x8] ss:$24 sps:$4 sm:$0xff]  }
0x12fc   : > { %9134 = vmatpush1.bf16.msra.mxu0 %v14376_v57  ;;  %v14404_v57 = vld [vmem:[#allocation32 + $0x8] sm:$0xff]  }
0x12fd   : > { %9135 = vmatprep.subr.bf16.mxu0 %v14381_v44  ;;  %v14411_v44 = vld [vmem:[#allocation35 + $0x30] ss:$24 sps:$4 sm:$0xff]  }
0x1300   : > { %9136 = vmatpush1.bf16.msra.mxu0 %v14379_v1  ;;  %v14416_v1 = vld [vmem:[#allocation35 + $0x3c] ss:$24 sps:$4 sm:$0xff]  }
0x1301   : > { %9137 = vmatprep.subr.bf16.mxu0 %v14384_v9  ;;  %v14419_v9 = vld [vmem:[#allocation35 + $0x64] ss:$24 sps:$4 sm:$0xff]  }
0x1304   : > { %9138 = vmatpush1.bf16.msra.mxu0 %v14382_v13  ;;  %v14414_v13 = vld [vmem:[#allocation35 + $0x38] ss:$24 sps:$4 sm:$0xff]  }
0x1305   : > { %9139 = vmatprep.subr.bf16.mxu0 %v14387_v40  ;;  %v14417_v40 = vld [vmem:[#allocation35 + $0x60] ss:$24 sps:$4 sm:$0xff]  }
0x1308   : > { %9140 = vmatpush1.bf16.msra.mxu0 %v14385_v59  ;;  %v14422_v59 = vld [vmem:[#allocation35 + $0x6c] ss:$24 sps:$4 sm:$0xff]  }
0x1309   : > { %9141 = vmatprep.subr.bf16.mxu0 %v14390_v17  ;;  %v14425_v17 = vld [vmem:[#allocation35 + $0x94] ss:$24 sps:$4 sm:$0xff]  }
0x130c   : > { %9142 = vmatpush1.bf16.msra.mxu0 %v14388_v16  ;;  %v14420_v16 = vld [vmem:[#allocation35 + $0x68] ss:$24 sps:$4 sm:$0xff]  }
0x130d   : > { %9143 = vmatprep.subr.bf16.mxu0 %v14393_v51  ;;  %v14423_v51 = vld [vmem:[#allocation35 + $0x90] ss:$24 sps:$4 sm:$0xff]  }
0x1310   : > { %9144 = vmatpush1.bf16.msra.mxu0 %v14391_v20  ;;  %v14428_v20 = vld [vmem:[#allocation35 + $0x9c] ss:$24 sps:$4 sm:$0xff]  }
0x1311   : > { %9145 = vmatprep.subr.bf16.mxu0 %v14396_v26  ;;  %v14431_v26 = vld [vmem:[#allocation35 + $0xc4] ss:$24 sps:$4 sm:$0xff]  }
0x1314   : > { %9146 = vmatpush1.bf16.msra.mxu0 %v14394_v29  ;;  %v14426_v29 = vld [vmem:[#allocation35 + $0x98] ss:$24 sps:$4 sm:$0xff]  }
0x1315   : > { %9147 = vmatprep.subr.bf16.mxu0 %v14399_v28  ;;  %v14429_v28 = vld [vmem:[#allocation35 + $0xc0] ss:$24 sps:$4 sm:$0xff]  }
0x1318   : > { %9148 = vmatpush1.bf16.msra.mxu0 %v14397_v23  ;;  %v14434_v23 = vld [vmem:[#allocation35 + $0xcc] ss:$24 sps:$4 sm:$0xff]  }
0x1319   : > { %9149 = vmatprep.subr.bf16.mxu0 %v14402_v18  ;;  %v14437_v18 = vld [vmem:[#allocation35 + $0xf4] ss:$24 sps:$4 sm:$0xff]  }
0x131c   : > { %9150 = vmatpush1.bf16.msra.mxu0 %v14400_v22  ;;  %v14432_v22 = vld [vmem:[#allocation35 + $0xc8] ss:$24 sps:$4 sm:$0xff]  }
0x131f   : > { %9160 = vmatmul.mubr.bf16.vlgmr.msra.gmra.mrb[136].mxu0 %v16893_v58 }
0x1320   : > { %9294 = vmatprep.mubr.bf16.mxu0 %v15518_v8 }
0x1362   : > { %v8989_v37 = vpop.f32.mrb[124].mxu0  ;;  %v9118_v39 = vpop.f32.mrb[104].mxu1 }
0x1363   : > { %v8991_v42 = vpop.f32.mrb[125].mxu0  ;;  %v9120_v45 = vpop.f32.mrb[105].mxu1 }
0x1364   : > { %v8993_v10 = vpop.f32.mrb[126].mxu0  ;;  %v9122_v53 = vpop.f32.mrb[106].mxu1 }
0x1365   : > { %v9217_v7 = vpack.c.bf16 %v8993_v10, %v8989_v37  ;;  %v9223_v63 = vpack.c.bf16 %v9122_v53, %v9118_v39  ;;  %v8995_v32 = vpop.f32.mrb[127].mxu0  ;;  %v9124_v15 = vpop.f32.mrb[107].mxu1  ;;  %v14435_v37 = vld [vmem:[#allocation35 + $0xf0] ss:$24 sps:$4 sm:$0xff]   ;;  %v14440_v39 = vld [vmem:[#allocation35 + $0xfc] ss:$24 sps:$4 sm:$0xff]  }
0x1366   : > { %v9218_v34 = vpack.c.bf16 %v8995_v32, %v8991_v42  ;;  %v9224_v56 = vpack.c.bf16 %v9124_v15, %v9120_v45  ;;  %v14443_v42 = vld [vmem:[#allocation35 + $0x124] ss:$24 sps:$4 sm:$0xff]   ;;  %v14438_v45 = vld [vmem:[#allocation35 + $0xf8] ss:$24 sps:$4 sm:$0xff]  }
0x1367   : > { %v14441_v10 = vld [vmem:[#allocation35 + $0x120] ss:$24 sps:$4 sm:$0xff]   ;;  %v14446_v53 = vld [vmem:[#allocation35 + $0x12c] ss:$24 sps:$4 sm:$0xff]   ;;  %v14447_v32 = vld [vmem:[#allocation35 + $0x150] ss:$24 sps:$4 sm:$0xff]  }
0x1368   : > { %9262 = vmatprep.subr.bf16.mxu0 %v9218_v34  ;;  %v14452_v15 = vld [vmem:[#allocation35 + $0x15c] ss:$24 sps:$4 sm:$0xff]  }
0x1369   : > { %9263 = vmatpush1.bf16.msra.mxu0 %v9217_v7  ;;  %v14449_v7 = vld [vmem:[#allocation35 + $0x154] ss:$24 sps:$4 sm:$0xff]   ;;  %v14455_v34 = vld [vmem:[#allocation35 + $0x184] ss:$24 sps:$4 sm:$0xff]  }
0x1392   : > { %v9032_v58 = vpop.f32.mrb[128].mxu0  ;;  %v9204_v41 = vpop.f32.mrb[108].mxu1 }
0x1393   : > { %v9034_v54 = vpop.f32.mrb[129].mxu0  ;;  %v9206_v30 = vpop.f32.mrb[109].mxu1 }
0x1394   : > { %v9036_v35 = vpop.f32.mrb[130].mxu0  ;;  %v9208_v2 = vpop.f32.mrb[110].mxu1 }
0x1395   : > { %v9219_v38 = vpack.c.bf16 %v9036_v35, %v9032_v58  ;;  %v9227_v60 = vpack.c.bf16 %v9208_v2, %v9204_v41  ;;  %v9038_v43 = vpop.f32.mrb[131].mxu0  ;;  %v9210_v52 = vpop.f32.mrb[111].mxu1  ;;  %v14458_v58 = vld [vmem:[#allocation35 + $0x18c] ss:$24 sps:$4 sm:$0xff]   ;;  %v14464_v35 = vld [vmem:[#allocation35 + $0x1bc] ss:$24 sps:$4 sm:$0xff]  }
0x1396   : > { %v9220_v21 = vpack.c.bf16 %v9038_v43, %v9034_v54  ;;  %v9228_v4 = vpack.c.bf16 %v9210_v52, %v9206_v30  ;;  %v14461_v41 = vld [vmem:[#allocation35 + $0x1b4] ss:$24 sps:$4 sm:$0xff]   ;;  %v14456_v54 = vld [vmem:[#allocation35 + $0x188] ss:$24 sps:$4 sm:$0xff]   ;;  %v14467_v2 = vld [vmem:[#allocation35 + $0x1e4] ss:$24 sps:$4 sm:$0xff]  }
0x1397   : > { %12655 = vmatprep.subr.bf16.mxu1 %v9219_v38  ;;  %v14459_v30 = vld [vmem:[#allocation35 + $0x1b0] ss:$24 sps:$4 sm:$0xff]   ;;  %v14470_v43 = vld [vmem:[#allocation35 + $0x1ec] ss:$24 sps:$4 sm:$0xff]  }
0x1398   : > { %12656 = vmatpush3.bf16.msra.mxu1 %v9219_v38  ;;  %v14462_v38 = vld [vmem:[#allocation35 + $0x1b8] ss:$24 sps:$4 sm:$0xff]   ;;  %v14473_v52 = vld [vmem:[#allocation35 + $0x214] ss:$24 sps:$4 sm:$0xff]  }
0x13c2   : > { %v9075_v11 = vpop.f32.mrb[132].mxu0 }
0x13c3   : > { %v9077_v14 = vpop.f32.mrb[133].mxu0 }
0x13c4   : > { %v9079_v19 = vpop.f32.mrb[134].mxu0 }
0x13c5   : > { %v9221_v27 = vpack.c.bf16 %v9079_v19, %v9075_v11  ;;  %v9081_v31 = vpop.f32.mrb[135].mxu0  ;;  %v14476_v11 = vld [vmem:[#allocation35 + $0x21c] ss:$24 sps:$4 sm:$0xff]   ;;  %v14474_v19 = vld [vmem:[#allocation35 + $0x218] ss:$24 sps:$4 sm:$0xff]  }
0x13c6   : > { %v9222_v62 = vpack.c.bf16 %v9081_v31, %v9077_v14  ;;  %v14479_v14 = vld [vmem:[#allocation35 + $0x244] ss:$24 sps:$4 sm:$0xff]  }
0x13c7   : > { %9264 = vmatprep.subr.bf16.mxu0 %v9221_v27  ;;  %v14477_v27 = vld [vmem:[#allocation35 + $0x240] ss:$24 sps:$4 sm:$0xff]   ;;  %v14482_v31 = vld [vmem:[#allocation35 + $0x24c] ss:$24 sps:$4 sm:$0xff]  }
0x13c8   : > { %9265 = vmatpush1.bf16.msra.mxu0 %v9220_v21  ;;  %12657 = vmatprep.subr.bf16.mxu1 %v9222_v62  ;;  %v14468_v21 = vld [vmem:[#allocation35 + $0x1e8] ss:$24 sps:$4 sm:$0xff]  }
0x13c9   : > { %9266 = vmatprep.subr.bf16.mxu0 %v9224_v56  ;;  %12658 = vmatpush3.bf16.msra.mxu1 %v9222_v62  ;;  %v14450_v56 = vld [vmem:[#allocation35 + $0x158] ss:$24 sps:$4 sm:$0xff]   ;;  %v14485_v62 = vld [vmem:[#allocation35 + $0x274] ss:$24 sps:$4 sm:$0xff]  }
0x13cc   : > { %9267 = vmatpush1.bf16.msra.mxu0 %v9223_v63  ;;  %v14444_v63 = vld [vmem:[#allocation35 + $0x128] ss:$24 sps:$4 sm:$0xff]  }
0x13cd   : > { %9268 = vmatprep.subr.bf16.mxu0 %v9227_v60  ;;  %v14465_v60 = vld [vmem:[#allocation35 + $0x1e0] ss:$24 sps:$4 sm:$0xff]  }
0x13f2   : > { %v9161_v46 = vpop.f32.mrb[136].mxu0 }
0x13f3   : > { %v9163_v36 = vpop.f32.mrb[137].mxu0 }
0x13f4   : > { %v9165_v49 = vpop.f32.mrb[138].mxu0 }
0x13f5   : > { %v9225_v55 = vpack.c.bf16 %v9165_v49, %v9161_v46  ;;  %v9167_v3 = vpop.f32.mrb[139].mxu0  ;;  %v14480_v46 = vld [vmem:[#allocation35 + $0x248] ss:$24 sps:$4 sm:$0xff]   ;;  %v14488_v49 = vld [vmem:[#allocation35 + $0x27c] ss:$24 sps:$4 sm:$0xff]  }
0x13f6   : > { %v9226_v5 = vpack.c.bf16 %v9167_v3, %v9163_v36  ;;  %v14483_v36 = vld [vmem:[#allocation35 + $0x270] ss:$24 sps:$4 sm:$0xff]   ;;  %v14491_v3 = vld [vmem:[#allocation35 + $0x2a4] ss:$24 sps:$4 sm:$0xff]  }
0x13f7   : > { %12659 = vmatprep.subr.bf16.mxu1 %v9225_v55 }
0x13f8   : > { %9269 = vmatpush1.bf16.msra.mxu0 %v9226_v5  ;;  %12660 = vmatpush3.bf16.msra.mxu1 %v9225_v55  ;;  %v14486_v55 = vld [vmem:[#allocation35 + $0x278] ss:$24 sps:$4 sm:$0xff]  }
0x13f9   : > { %12661 = vmatprep.subr.bf16.mxu1 %v9228_v4  ;;  %10270 = vmatprep.subr.bf16.mxu0 %v14407_v0  ;;  %v14494_v0 = vld [vmem:[#allocation35 + $0x2ac] ss:$24 sps:$4 sm:$0xff]   ;;  %v14489_v5 = vld [vmem:[#allocation35 + $0x2a0] ss:$24 sps:$4 sm:$0xff]  }
0x13fb   : > { %12254 = vmatmul.mubr.msk.bf16.vlgmr.msra.gmra.mrb[140].mxu0 %vm3831_vm13, %v14403_v25  ;;  %v14453_v25 = vld [vmem:[#allocation35 + $0x180] ss:$24 sps:$4 sm:$0xff]  }
0x13fc   : > { %12662 = vmatpush3.bf16.msra.mxu1 %v9228_v4  ;;  %9304 = vmatprep.mubr.bf16.mxu0 %v15518_v8  ;;  %v14471_v4 = vld [vmem:[#allocation35 + $0x210] ss:$24 sps:$4 sm:$0xff]  }
0x13fd   : > { %10376 = vmatprep.subr.bf16.mxu1 %v14410_v47  ;;  %10271 = vmatpush1.bf16.msra.mxu0 %v14405_v6  ;;  %v14492_v6 = vld [vmem:[#allocation35 + $0x2a8] ss:$24 sps:$4 sm:$0xff]   ;;  %v14497_v47 = vld [vmem:[#allocation35 + $0x2d4] ss:$24 sps:$4 sm:$0xff]  }
0x13fe   : > { %10272 = vmatprep.subr.bf16.mxu0 %v14413_v50  ;;  %v14500_v50 = vld [vmem:[#allocation35 + $0x2dc] ss:$24 sps:$4 sm:$0xff]  }
0x13ff   : > { %12664 = vmatmul.mubr.msk.bf16.vlgmr.msra.gmra.mrb[112].mxu1 %vm3831_vm13, %v14404_v57 }
0x1400   : > { %10377 = vmatpush1.bf16.msra.mxu1 %v14408_v33  ;;  %v14495_v33 = vld [vmem:[#allocation35 + $0x2d0] ss:$24 sps:$4 sm:$0xff]  }
0x1401   : > { %10378 = vmatprep.subr.bf16.mxu1 %v14416_v1  ;;  %10273 = vmatpush1.bf16.msra.mxu0 %v14411_v44  ;;  %v14503_v44 = vld [vmem:[#allocation35 + $0x304] ss:$24 sps:$4 sm:$0xff]  }
0x1402   : > { %10274 = vmatprep.subr.bf16.mxu0 %v14419_v9  ;;  %v14506_v1 = vld [vmem:[#allocation35 + $0x30c] ss:$24 sps:$4 sm:$0xff]   ;;  %v9229_v9 = vld [vmem:[#allocation34] sm:$0x7] }
0x1403   : > { %12255 = vmatmul.mubr.msk.bf16.gmra.mrb[144].mxu0 %vm3831_vm13, %v14404_v57  ;;  %v14498_v57 = vld [vmem:[#allocation35 + $0x2d8] ss:$24 sps:$4 sm:$0xff]  }
0x1404   : > { %10379 = vmatpush1.bf16.msra.mxu1 %v14414_v13  ;;  %v9234_v13 = vrot.slane %v9229_v9, %v16439_v61 }
0x1405   : > { %10380 = vmatprep.subr.bf16.mxu1 %v14422_v59  ;;  %10275 = vmatpush1.bf16.msra.mxu0 %v14417_v40  ;;  %v16923_v40 = vrot.slane %v9229_v9, %v16444_v48 }
0x1406   : > { %10276 = vmatprep.subr.bf16.mxu0 %v14425_v17 }
0x1408   : > { %10381 = vmatpush1.bf16.msra.mxu1 %v14420_v16 }
0x1409   : > { %10382 = vmatprep.subr.bf16.mxu1 %v14428_v20  ;;  %10277 = vmatpush1.bf16.msra.mxu0 %v14423_v51  ;;  %v9242_v51 = vrot.slane %v9229_v9, %v16465_v24 }
0x140a   : > { %10278 = vmatprep.subr.bf16.mxu0 %v14431_v26 }
0x140c   : > { %10383 = vmatpush1.bf16.msra.mxu1 %v14426_v29 }
0x140d   : > { %10384 = vmatprep.subr.bf16.mxu1 %v14434_v23  ;;  %10279 = vmatpush1.bf16.msra.mxu0 %v14429_v28 }
0x140e   : > { %10280 = vmatprep.subr.bf16.mxu0 %v14437_v18 }
0x1410   : > { %10385 = vmatpush1.bf16.msra.mxu1 %v14432_v22 }
0x1411   : > { %10386 = vmatprep.subr.bf16.mxu1 %v14440_v39  ;;  %10281 = vmatpush1.bf16.msra.mxu0 %v14435_v37 }
0x1412   : > { %10282 = vmatprep.subr.bf16.mxu0 %v14443_v42 }
0x1414   : > { %10387 = vmatpush1.bf16.msra.mxu1 %v14438_v45 }
0x1415   : > { %10388 = vmatprep.subr.bf16.mxu1 %v14446_v53  ;;  %10283 = vmatpush1.bf16.msra.mxu0 %v14441_v10 }
0x1416   : > { %10284 = vmatprep.subr.bf16.mxu0 %v14449_v7 }
0x1418   : > { %10389 = vmatpush1.bf16.msra.mxu1 %v14444_v63 }
0x1419   : > { %10390 = vmatprep.subr.bf16.mxu1 %v14452_v15  ;;  %10285 = vmatpush1.bf16.msra.mxu0 %v14447_v32 }
0x141a   : > { %10286 = vmatprep.subr.bf16.mxu0 %v14455_v34 }
0x141c   : > { %10391 = vmatpush1.bf16.msra.mxu1 %v14450_v56 }
0x141d   : > { %10392 = vmatprep.subr.bf16.mxu1 %v14458_v58  ;;  %10287 = vmatpush1.bf16.msra.mxu0 %v14453_v25 }
0x141e   : > { %10288 = vmatprep.subr.bf16.mxu0 %v14461_v41  ;;  %v14501_v41 = vld [vmem:[#allocation35 + $0x300] ss:$24 sps:$4 sm:$0xff]  }
0x1420   : > { %10393 = vmatpush1.bf16.msra.mxu1 %v14456_v54 }
0x1421   : > { %10394 = vmatprep.subr.bf16.mxu1 %v14464_v35  ;;  %10289 = vmatpush1.bf16.msra.mxu0 %v14459_v30 }
0x1422   : > { %10290 = vmatprep.subr.bf16.mxu0 %v14467_v2  ;;  %v14504_v2 = vld [vmem:[#allocation35 + $0x308] ss:$24 sps:$4 sm:$0xff]  }
0x1424   : > { %10395 = vmatpush1.bf16.msra.mxu1 %v14462_v38 }
0x1425   : > { %10396 = vmatprep.subr.bf16.mxu1 %v14470_v43  ;;  %10291 = vmatpush1.bf16.msra.mxu0 %v14465_v60 }
0x1426   : > { %10292 = vmatprep.subr.bf16.mxu0 %v14473_v52  ;;  %v14509_v52 = vld [vmem:[#allocation35 + $0x334] ss:$24 sps:$4 sm:$0xff]  }
0x1428   : > { %10397 = vmatpush1.bf16.msra.mxu1 %v14468_v21  ;;  %v14512_v21 = vld [vmem:[#allocation35 + $0x33c] ss:$24 sps:$4 sm:$0xff]  }
0x1429   : > { %10398 = vmatprep.subr.bf16.mxu1 %v14476_v11  ;;  %10293 = vmatpush1.bf16.msra.mxu0 %v14471_v4 }
0x142a   : > { %10294 = vmatprep.subr.bf16.mxu0 %v14479_v14 }
0x142c   : > { %10399 = vmatpush1.bf16.msra.mxu1 %v14474_v19 }
0x142d   : > { %10400 = vmatprep.subr.bf16.mxu1 %v14482_v31  ;;  %10295 = vmatpush1.bf16.msra.mxu0 %v14477_v27  ;;  %v14507_v31 = vld [vmem:[#allocation35 + $0x330] ss:$24 sps:$4 sm:$0xff]  }
0x142e   : > { %10296 = vmatprep.subr.bf16.mxu0 %v14485_v62  ;;  %v14510_v62 = vld [vmem:[#allocation35 + $0x338] ss:$24 sps:$4 sm:$0xff]  }
0x1430   : > { %10401 = vmatpush1.bf16.msra.mxu1 %v14480_v46 }
0x1431   : > { %10402 = vmatprep.subr.bf16.mxu1 %v14488_v49  ;;  %10297 = vmatpush1.bf16.msra.mxu0 %v14483_v36 }
0x1432   : > { %10298 = vmatprep.subr.bf16.mxu0 %v14491_v3  ;;  %v14515_v3 = vld [vmem:[#allocation35 + $0x364] ss:$24 sps:$4 sm:$0xff]  }
0x1434   : > { %10403 = vmatpush1.bf16.msra.mxu1 %v14486_v55 }
0x1435   : > { %10404 = vmatprep.subr.bf16.mxu1 %v14494_v0  ;;  %10299 = vmatpush1.bf16.msra.mxu0 %v14489_v5 }
0x1436   : > { %10300 = vmatprep.subr.bf16.mxu0 %v14497_v47 }
0x1438   : > { %10405 = vmatpush1.bf16.msra.mxu1 %v14492_v6 }
0x1439   : > { %10406 = vmatprep.subr.bf16.mxu1 %v14500_v50  ;;  %10301 = vmatpush1.bf16.msra.mxu0 %v14495_v33  ;;  %v14518_v33 = vld [vmem:[#allocation35 + $0x36c] ss:$24 sps:$4 sm:$0xff]  }
0x143a   : > { %10323 = vmatprep.subr.bf16.mxu0 %v14503_v44 }
0x143c   : > { %10407 = vmatpush1.bf16.msra.mxu1 %v14498_v57 }
0x143d   : > { %10429 = vmatprep.subr.bf16.mxu1 %v14506_v1 }
0x14ce   : > { %v9296_v59 = vpop.f32.mrb[140].mxu0 }
0x14cf   : > { %v9297_v17 = vadd.f32 %v9296_v59, %v9234_v13  ;;  %v9298_v16 = vpop.f32.mrb[141].mxu0 }
0x14d0   : > { %v9299_v20 = vadd.f32 %v9298_v16, %v16923_v40  ;;  %v9300_v26 = vpop.f32.mrb[142].mxu0  ;;  %v14513_v16 = vld [vmem:[#allocation35 + $0x360] ss:$24 sps:$4 sm:$0xff]  }
0x14d1   : > { %vm9364_vm8 = vcmp.ge.f32.partialorder %v9297_v17, 0.0  ;;  %v9376_v29 = vmul.f32 0.01, %v9297_v17  ;;  %v9301_v28 = vadd.f32 %v9300_v26, %v9234_v13  ;;  %v9302_v23 = vpop.f32.mrb[143].mxu0  ;;  %v14521_v26 = vld [vmem:[#allocation35 + $0x394] ss:$24 sps:$4 sm:$0xff]  }
0x14d2   : > { %vm9365_vm9 = vcmp.ge.f32.partialorder %v9299_v20, 0.0  ;;  %v9377_v18 = vmul.f32 0.01, %v9299_v20  ;;  %v9303_v22 = vadd.f32 %v9302_v23, %v16923_v40  ;;  %v12665_v37 = vpop.f32.mrb[112].mxu1  ;;  %v14522_v23 = vld [vmem:[#allocation35 + $0x398] ss:$24 sps:$4 sm:$0xff]  }
0x14d3   : > { %v9388_v39 = vsel %vm9364_vm8, %v9297_v17, %v9376_v29  ;;  %vm9367_vm10 = vcmp.ge.f32.partialorder %v9301_v28, 0.0  ;;  %v9379_v42 = vmul.f32 0.01, %v9301_v28  ;;  %v9358_v45 = vadd.f32 %v12665_v37, %v9242_v51  ;;  %v9349_v10 = vpop.f32.mrb[113].mxu1  ;;  %v14524_v29 = vld [vmem:[#allocation35 + $0x39c] ss:$24 sps:$4 sm:$0xff]  }
0x14d4   : > { %vm9368_vm11 = vcmp.ge.f32.partialorder %v9303_v22, 0.0  ;;  %v9380_v53 = vmul.f32 0.01, %v9303_v22  ;;  %v9389_v24 = vsel %vm9365_vm9, %v9299_v20, %v9377_v18  ;;  %v9350_v7 = vadd.f32 %v9349_v10, %v9242_v51  ;;  %v12666_v63 = vpop.f32.mrb[114].mxu1  ;;  %v14527_v18 = vld [vmem:[#allocation35 + $0x3c4] ss:$24 sps:$4 sm:$0xff]  }
0x14d5   : > { %v9391_v32 = vsel %vm9367_vm10, %v9301_v28, %v9379_v42  ;;  %vm9372_vm12 = vcmp.ge.f32.partialorder %v9358_v45, 0.0  ;;  %v9384_v15 = vmul.f32 0.01, %v9358_v45  ;;  %v9361_v34 = vadd.f32 %v12666_v63, %v9242_v51  ;;  %v9352_v56 = vpop.f32.mrb[115].mxu1  ;;  %v14519_v28 = vld [vmem:[#allocation35 + $0x390] ss:$24 sps:$4 sm:$0xff]  }
0x14d6   : > { %v16928_v25 = vpack.c.bf16 %v9391_v32, %v9388_v39  ;;  %v9392_v58 = vsel %vm9368_vm11, %v9303_v22, %v9380_v53  ;;  %v9306_v54 = vpop.f32.mrb[144].mxu0  ;;  %vm9366_vm14 = vcmp.ge.f32.partialorder %v9350_v7, 0.0  ;;  %v9378_v30 = vmul.f32 0.01, %v9350_v7  ;;  %v14530_v22 = vld [vmem:[#allocation35 + $0x3cc] ss:$24 sps:$4 sm:$0xff]  }
0x14d7   : > { %v16930_v35 = vpack.c.bf16 %v9392_v58, %v9389_v24  ;;  %v9307_v38 = vadd.f32 %v9306_v54, %v9234_v13  ;;  %v9308_v60 = vpop.f32.mrb[145].mxu0  ;;  %vm9375_vm15 = vcmp.ge.f32.partialorder %v9361_v34, 0.0  ;;  %v9387_v43 = vmul.f32 0.01, %v9361_v34  ;;  %v14525_v37 = vld [vmem:[#allocation35 + $0x3c0] ss:$24 sps:$4 sm:$0xff]  }
0x14d8   : > { %v9309_v4 = vadd.f32 %v9308_v60, %v16923_v40  ;;  %v9310_v11 = vpop.f32.mrb[146].mxu0  ;;  %v9390_v14 = vsel %vm9366_vm14, %v9350_v7, %v9378_v30  ;;  %v9353_v19 = vadd.f32 %v9352_v56, %v9242_v51  ;;  %v9396_v27 = vsel %vm9372_vm12, %v9358_v45, %v9384_v15  ;;  %v14516_v51 = vld [vmem:[#allocation35 + $0x368] ss:$24 sps:$4 sm:$0xff]   ;;  %v14533_v42 = vld [vmem:[#allocation35 + $0x3f4] ss:$24 sps:$4 sm:$0xff]  }
0x14d9   : > { %10302 = vmatprep.mubr.bf16.mxu0 %v16930_v35  ;;  %10408 = vmatprep.mubr.bf16.mxu1 %v16930_v35  ;;  %vm9370_vm0 = vcmp.ge.f32.partialorder %v9307_v38, 0.0  ;;  %v9382_v46 = vmul.f32 0.01, %v9307_v38  ;;  %v9311_v36 = vadd.f32 %v9310_v11, %v9234_v13  ;;  %v9312_v49 = vpop.f32.mrb[147].mxu0  ;;  %v9399_v55 = vsel %vm9375_vm15, %v9361_v34, %v9387_v43  ;;  %v14528_v39 = vld [vmem:[#allocation35 + $0x3c8] ss:$24 sps:$4 sm:$0xff]  }
0x14da   : > { %10303 = vmatmul.mubr.bf16.vlgmr.msra.gmra.mrb[148].mxu0 %v16928_v25  ;;  %10409 = vmatmul.mubr.bf16.vlgmr.msra.gmra.mrb[116].mxu1 %v16928_v25  ;;  %vm9371_vm1 = vcmp.ge.f32.partialorder %v9309_v4, 0.0  ;;  %v9383_v0 = vmul.f32 0.01, %v9309_v4  ;;  %v9313_v5 = vadd.f32 %v9312_v49, %v16923_v40  ;;  %vm9369_vm2 = vcmp.ge.f32.partialorder %v9353_v19, 0.0  ;;  %v14536_v45 = vld [vmem:[#allocation35 + $0x3fc] ss:$24 sps:$4 sm:$0xff]  }
0x14db   : > { %10324 = vmatpush1.bf16.msra.mxu0 %v14501_v41  ;;  %10430 = vmatpush1.bf16.msra.mxu1 %v14504_v2  ;;  %vm9373_vm3 = vcmp.ge.f32.partialorder %v9311_v36, 0.0  ;;  %v9385_v6 = vmul.f32 0.01, %v9311_v36  ;;  %v9381_v47 = vmul.f32 0.01, %v9353_v19  ;;  %v9394_v50 = vsel %vm9370_vm0, %v9307_v38, %v9382_v46 }
0x14dc   : > { %10325 = vmatprep.subr.bf16.mxu0 %v14509_v52  ;;  %10431 = vmatprep.subr.bf16.mxu1 %v14512_v21  ;;  %vm9374_vm4 = vcmp.ge.f32.partialorder %v9313_v5, 0.0  ;;  %v9386_v57 = vmul.f32 0.01, %v9313_v5  ;;  %v9395_v44 = vsel %vm9371_vm1, %v9309_v4, %v9383_v0  ;;  %v16941_v1 = vpack.c.bf16 %v9399_v55, %v9396_v27  ;;  %v14531_v10 = vld [vmem:[#allocation35 + $0x3f0] ss:$24 sps:$4 sm:$0xff]  }
0x14dd   : > { %v9393_v9 = vsel %vm9369_vm2, %v9353_v19, %v9381_v47  ;;  %v9397_v13 = vsel %vm9373_vm3, %v9311_v36, %v9385_v6  ;;  %v14534_v53 = vld [vmem:[#allocation35 + $0x3f8] ss:$24 sps:$4 sm:$0xff]   ;;  %v14539_v24 = vld [vmem:[#allocation35 + $0x424] ss:$24 sps:$4 sm:$0xff]   ;;  %v14540_v32 = vld [vmem:[#allocation35 + $0x428] ss:$24 sps:$4 sm:$0xff]  }
0x14de   : > { %v9398_v59 = vsel %vm9374_vm4, %v9313_v5, %v9386_v57  ;;  %v16943_v40 = vpack.c.bf16 %v9393_v9, %v9390_v14  ;;  %v16945_v17 = vpack.c.bf16 %v9397_v13, %v9394_v50  ;;  %v14542_v7 = vld [vmem:[#allocation35 + $0x42c] ss:$24 sps:$4 sm:$0xff]   ;;  %v14537_v63 = vld [vmem:[#allocation35 + $0x420] ss:$24 sps:$4 sm:$0xff]   ;;  %v14548_v34 = vld [vmem:[#allocation35 + $0x45c] ss:$24 sps:$4 sm:$0xff]  }
0x14df   : > { %10326 = vmatpush1.bf16.msra.mxu0 %v14507_v31  ;;  %10432 = vmatpush1.bf16.msra.mxu1 %v14510_v62  ;;  %v16947_v20 = vpack.c.bf16 %v9398_v59, %v9395_v44  ;;  %v14545_v15 = vld [vmem:[#allocation35 + $0x454] ss:$24 sps:$4 sm:$0xff]   ;;  %v14543_v56 = vld [vmem:[#allocation35 + $0x450] ss:$24 sps:$4 sm:$0xff]   ;;  %v14554_v30 = vld [vmem:[#allocation35 + $0x44] ss:$24 sps:$4 sm:$0xff]  }
0x14e0   : > { %10327 = vmatprep.subr.bf16.mxu0 %v14515_v3  ;;  %10433 = vmatprep.subr.bf16.mxu1 %v14518_v33  ;;  %v14546_v58 = vld [vmem:[#allocation35 + $0x458] ss:$24 sps:$4 sm:$0xff]   ;;  %v14551_v41 = vld [vmem:[#allocation35 + $0x14] ss:$24 sps:$4 sm:$0xff]   ;;  %v14560_v43 = vld [vmem:[#allocation35 + $0xa4] ss:$24 sps:$4 sm:$0xff]  }
0x14e1   : > { %10312 = vmatprep.mubr.bf16.mxu0 %v16947_v20  ;;  %10418 = vmatprep.mubr.bf16.mxu1 %v16947_v20  ;;  %v14549_v54 = vld [vmem:[#allocation35 + $0x10] ss:$24 sps:$4 sm:$0xff]   ;;  %v14552_v2 = vld [vmem:[#allocation35 + $0x40] ss:$24 sps:$4 sm:$0xff]   ;;  %v14557_v38 = vld [vmem:[#allocation35 + $0x74] ss:$24 sps:$4 sm:$0xff]  }
0x14e2   : > { %10313 = vmatmul.mubr.bf16.gmra.mrb[152].mxu0 %v16945_v17  ;;  %10419 = vmatmul.mubr.bf16.gmra.mrb[120].mxu1 %v16945_v17  ;;  %v14555_v60 = vld [vmem:[#allocation35 + $0x70] ss:$24 sps:$4 sm:$0xff]   ;;  %v14558_v52 = vld [vmem:[#allocation35 + $0xa0] ss:$24 sps:$4 sm:$0xff]   ;;  %v14563_v21 = vld [vmem:[#allocation35 + $0xd4] ss:$24 sps:$4 sm:$0xff]  }
0x14e3   : > { %10328 = vmatpush1.bf16.msra.mxu0 %v14513_v16  ;;  %10434 = vmatpush1.bf16.msra.mxu1 %v14516_v51  ;;  %v14561_v4 = vld [vmem:[#allocation35 + $0xd0] ss:$24 sps:$4 sm:$0xff]   ;;  %v14566_v11 = vld [vmem:[#allocation35 + $0x104] ss:$24 sps:$4 sm:$0xff]   ;;  %v14564_v14 = vld [vmem:[#allocation35 + $0x100] ss:$24 sps:$4 sm:$0xff]  }
0x14e4   : > { %10329 = vmatprep.subr.bf16.mxu0 %v14521_v26  ;;  %10435 = vmatprep.subr.bf16.mxu1 %v14524_v29  ;;  %v14569_v19 = vld [vmem:[#allocation35 + $0x134] ss:$24 sps:$4 sm:$0xff]   ;;  %v14567_v27 = vld [vmem:[#allocation35 + $0x130] ss:$24 sps:$4 sm:$0xff]   ;;  %v14572_v31 = vld [vmem:[#allocation35 + $0x164] ss:$24 sps:$4 sm:$0xff]  }
0x14e5   : > { %10355 = vmatprep.mubr.bf16.mxu0 %v15518_v8  ;;  %10461 = vmatprep.mubr.bf16.mxu1 %v15518_v8  ;;  %v14570_v62 = vld [vmem:[#allocation35 + $0x160] ss:$24 sps:$4 sm:$0xff]   ;;  %v14573_v46 = vld [vmem:[#allocation35 + $0x190] ss:$24 sps:$4 sm:$0xff]   ;;  %v14578_v36 = vld [vmem:[#allocation35 + $0x1c4] ss:$24 sps:$4 sm:$0xff]  }
0x14e6   : > { %v14576_v49 = vld [vmem:[#allocation35 + $0x1c0] ss:$24 sps:$4 sm:$0xff]   ;;  %v14581_v55 = vld [vmem:[#allocation35 + $0x1f4] ss:$24 sps:$4 sm:$0xff]   ;;  %v14579_v3 = vld [vmem:[#allocation35 + $0x1f0] ss:$24 sps:$4 sm:$0xff]  }
0x14e7   : > { %10330 = vmatpush1.bf16.msra.mxu0 %v14519_v28  ;;  %10436 = vmatpush1.bf16.msra.mxu1 %v14522_v23  ;;  %v14584_v0 = vld [vmem:[#allocation35 + $0x224] ss:$24 sps:$4 sm:$0xff]   ;;  %v14582_v5 = vld [vmem:[#allocation35 + $0x220] ss:$24 sps:$4 sm:$0xff]   ;;  %v14587_v6 = vld [vmem:[#allocation35 + $0x254] ss:$24 sps:$4 sm:$0xff]  }
0x14e8   : > { %10331 = vmatprep.subr.bf16.mxu0 %v14527_v18  ;;  %10437 = vmatprep.subr.bf16.mxu1 %v14530_v22  ;;  %v14585_v47 = vld [vmem:[#allocation35 + $0x250] ss:$24 sps:$4 sm:$0xff]   ;;  %v14590_v50 = vld [vmem:[#allocation35 + $0x284] ss:$24 sps:$4 sm:$0xff]   ;;  %v14588_v33 = vld [vmem:[#allocation35 + $0x280] ss:$24 sps:$4 sm:$0xff]  }
0x14e9   : > { %v14593_v57 = vld [vmem:[#allocation35 + $0x2b4] ss:$24 sps:$4 sm:$0xff]   ;;  %v14591_v44 = vld [vmem:[#allocation35 + $0x2b0] ss:$24 sps:$4 sm:$0xff]   ;;  %v14596_v9 = vld [vmem:[#allocation35 + $0x2e4] ss:$24 sps:$4 sm:$0xff]  }
0x14ea   : > { %v14594_v13 = vld [vmem:[#allocation35 + $0x2e0] ss:$24 sps:$4 sm:$0xff]   ;;  %v14599_v59 = vld [vmem:[#allocation35 + $0x314] ss:$24 sps:$4 sm:$0xff]   ;;  %v14597_v16 = vld [vmem:[#allocation35 + $0x310] ss:$24 sps:$4 sm:$0xff]  }
0x14eb   : > { %10332 = vmatpush1.bf16.msra.mxu0 %v14525_v37  ;;  %10438 = vmatpush1.bf16.msra.mxu1 %v14528_v39  ;;  %v14602_v51 = vld [vmem:[#allocation35 + $0x344] ss:$24 sps:$4 sm:$0xff]   ;;  %v14600_v26 = vld [vmem:[#allocation35 + $0x340] ss:$24 sps:$4 sm:$0xff]   ;;  %v14605_v29 = vld [vmem:[#allocation35 + $0x374] ss:$24 sps:$4 sm:$0xff]  }
0x14ec   : > { %10333 = vmatprep.subr.bf16.mxu0 %v14533_v42  ;;  %10439 = vmatprep.subr.bf16.mxu1 %v14536_v45  ;;  %v14603_v28 = vld [vmem:[#allocation35 + $0x370] ss:$24 sps:$4 sm:$0xff]   ;;  %v14608_v23 = vld [vmem:[#allocation35 + $0x3a4] ss:$24 sps:$4 sm:$0xff]   ;;  %v14606_v18 = vld [vmem:[#allocation35 + $0x3a0] ss:$24 sps:$4 sm:$0xff]  }
0x14ed   : > { %v14611_v22 = vld [vmem:[#allocation35 + $0x3d4] ss:$24 sps:$4 sm:$0xff]   ;;  %v14612_v37 = vld [vmem:[#allocation35 + $0x400] ss:$24 sps:$4 sm:$0xff]   ;;  %v14615_v42 = vld [vmem:[#allocation35 + $0x430] ss:$24 sps:$4 sm:$0xff]  }
0x14ee   : > { %v14617_v39 = vld [vmem:[#allocation35 + $0x434] ss:$24 sps:$4 sm:$0xff]   ;;  %v14620_v45 = vld [vmem:[#allocation35 + $0x464] ss:$24 sps:$4 sm:$0xff]  }
0x14ef   : > { %10334 = vmatpush1.bf16.msra.mxu0 %v14531_v10  ;;  %10440 = vmatpush1.bf16.msra.mxu1 %v14534_v53 }
0x14f0   : > { %10335 = vmatprep.subr.bf16.mxu0 %v14539_v24  ;;  %10441 = vmatprep.subr.bf16.mxu1 %v14542_v7 }
0x14f3   : > { %10336 = vmatpush1.bf16.msra.mxu0 %v14537_v63  ;;  %10442 = vmatpush1.bf16.msra.mxu1 %v14540_v32 }
0x14f4   : > { %10337 = vmatprep.subr.bf16.mxu0 %v14545_v15  ;;  %10443 = vmatprep.subr.bf16.mxu1 %v14548_v34 }
0x14f7   : > { %10338 = vmatpush1.bf16.msra.mxu0 %v14543_v56  ;;  %10444 = vmatpush1.bf16.msra.mxu1 %v14546_v58 }
0x14f8   : > { %10482 = vmatprep.subr.bf16.mxu0 %v14551_v41 }
0x14fa   : > { %10356 = vmatmul.mubr.bf16.vlgmr.msra.gmra.mrb[148].mxu0 %v16943_v40  ;;  %10462 = vmatmul.mubr.bf16.vlgmr.msra.gmra.mrb[116].mxu1 %v16943_v40 }
0x14fb   : > { %10483 = vmatpush1.bf16.msra.mxu0 %v14549_v54  ;;  %10365 = vmatprep.mubr.bf16.mxu0 %v15518_v8 }
0x14fc   : > { %10484 = vmatprep.subr.bf16.mxu0 %v14554_v30  ;;  %10471 = vmatprep.mubr.bf16.mxu1 %v15518_v8 }
0x14ff   : > { %10485 = vmatpush1.bf16.msra.mxu0 %v14552_v2 }
0x1500   : > { %10486 = vmatprep.subr.bf16.mxu0 %v14557_v38 }
0x1502   : > { %10366 = vmatmul.mubr.bf16.gmra.mrb[152].mxu0 %v16941_v1  ;;  %10472 = vmatmul.mubr.bf16.gmra.mrb[120].mxu1 %v16941_v1 }
0x1503   : > { %10487 = vmatpush1.bf16.msra.mxu0 %v14555_v60  ;;  %10514 = vmatprep.mubr.bf16.mxu0 %v16930_v35  ;;  %v14575_v35 = vld [vmem:[#allocation35 + $0x194] ss:$24 sps:$4 sm:$0xff]  }
0x1504   : > { %10488 = vmatprep.subr.bf16.mxu0 %v14560_v43  ;;  %10752 = vmatprep.mubr.bf16.mxu1 %v15518_v8 }
0x1507   : > { %10489 = vmatpush1.bf16.msra.mxu0 %v14558_v52 }
0x1508   : > { %10490 = vmatprep.subr.bf16.mxu0 %v14563_v21 }
0x150b   : > { %10491 = vmatpush1.bf16.msra.mxu0 %v14561_v4 }
0x150c   : > { %10492 = vmatprep.subr.bf16.mxu0 %v14566_v11 }
0x150f   : > { %10493 = vmatpush1.bf16.msra.mxu0 %v14564_v14 }
0x1510   : > { %10494 = vmatprep.subr.bf16.mxu0 %v14569_v19 }
0x1513   : > { %10495 = vmatpush1.bf16.msra.mxu0 %v14567_v27 }
0x1514   : > { %10496 = vmatprep.subr.bf16.mxu0 %v14572_v31 }
0x1517   : > { %10497 = vmatpush1.bf16.msra.mxu0 %v14570_v62 }
0x1518   : > { %10498 = vmatprep.subr.bf16.mxu0 %v14575_v35 }
0x151b   : > { %10499 = vmatpush1.bf16.msra.mxu0 %v14573_v46 }
0x151c   : > { %10500 = vmatprep.subr.bf16.mxu0 %v14578_v36 }
0x151f   : > { %10501 = vmatpush1.bf16.msra.mxu0 %v14576_v49 }
0x1520   : > { %10502 = vmatprep.subr.bf16.mxu0 %v14581_v55 }
0x1523   : > { %10503 = vmatpush1.bf16.msra.mxu0 %v14579_v3 }
0x1524   : > { %10504 = vmatprep.subr.bf16.mxu0 %v14584_v0 }
0x1527   : > { %10505 = vmatpush1.bf16.msra.mxu0 %v14582_v5 }
0x1528   : > { %10506 = vmatprep.subr.bf16.mxu0 %v14587_v6 }
0x152b   : > { %10507 = vmatpush1.bf16.msra.mxu0 %v14585_v47 }
0x152c   : > { %10508 = vmatprep.subr.bf16.mxu0 %v14590_v50 }
0x152f   : > { %10509 = vmatpush1.bf16.msra.mxu0 %v14588_v33 }
0x1530   : > { %10510 = vmatprep.subr.bf16.mxu0 %v14593_v57 }
0x1533   : > { %10511 = vmatpush1.bf16.msra.mxu0 %v14591_v44 }
0x1534   : > { %10512 = vmatprep.subr.bf16.mxu0 %v14596_v9 }
0x1537   : > { %10513 = vmatpush1.bf16.msra.mxu0 %v14594_v13 }
0x1538   : > { %10535 = vmatprep.subr.bf16.mxu0 %v14599_v59 }
0x153a   : > { %10515 = vmatmul.mubr.bf16.vlgmr.msra.gmra.mrb[156].mxu0 %v16928_v25  ;;  %v14609_v25 = vld [vmem:[#allocation35 + $0x3d0] ss:$24 sps:$4 sm:$0xff]  }
0x153b   : > { %10524 = vmatprep.mubr.bf16.mxu0 %v16947_v20  ;;  %10536 = vmatpush1.bf16.msra.mxu0 %v14597_v16  ;;  %v14614_v20 = vld [vmem:[#allocation35 + $0x404] ss:$24 sps:$4 sm:$0xff]  }
0x153c   : > { %10537 = vmatprep.subr.bf16.mxu0 %v14602_v51 }
0x153f   : > { %10538 = vmatpush1.bf16.msra.mxu0 %v14600_v26 }
0x1540   : > { %10539 = vmatprep.subr.bf16.mxu0 %v14605_v29 }
0x1542   : > { %10525 = vmatmul.mubr.bf16.gmra.mrb[160].mxu0 %v16945_v17  ;;  %v14618_v17 = vld [vmem:[#allocation35 + $0x460] ss:$24 sps:$4 sm:$0xff]  }
0x1543   : > { %10540 = vmatpush1.bf16.msra.mxu0 %v14603_v28  ;;  %10567 = vmatprep.mubr.bf16.mxu0 %v15518_v8 }
0x1544   : > { %10541 = vmatprep.subr.bf16.mxu0 %v14608_v23 }
0x1547   : > { %10542 = vmatpush1.bf16.msra.mxu0 %v14606_v18 }
0x1548   : > { %10543 = vmatprep.subr.bf16.mxu0 %v14611_v22 }
0x154b   : > { %10544 = vmatpush1.bf16.msra.mxu0 %v14609_v25 }
0x154c   : > { %10545 = vmatprep.subr.bf16.mxu0 %v14614_v20 }
0x154f   : > { %10546 = vmatpush1.bf16.msra.mxu0 %v14612_v37 }
0x1550   : > { %10547 = vmatprep.subr.bf16.mxu0 %v14617_v39 }
0x1553   : > { %10548 = vmatpush1.bf16.msra.mxu0 %v14615_v42 }
0x1554   : > { %10549 = vmatprep.subr.bf16.mxu0 %v14620_v45 }
0x1557   : > { %10550 = vmatpush1.bf16.msra.mxu0 %v14618_v17 }
0x155a   : > { %10568 = vmatmul.mubr.bf16.vlgmr.msra.gmra.mrb[156].mxu0 %v16943_v40 }
0x155b   : > { %10577 = vmatprep.mubr.bf16.mxu0 %v15518_v8 }
0x1562   : > { %10578 = vmatmul.mubr.bf16.gmra.mrb[160].mxu0 %v16941_v1 }
0x15cd   : > { %v10357_v10 = vpop.f32.mrb[148].mxu0  ;;  %v10463_v53 = vpop.f32.mrb[116].mxu1 }
0x15ce   : > { %v10359_v24 = vpop.f32.mrb[149].mxu0  ;;  %v16970_v7 = vpop.f32.mrb[117].mxu1 }
0x15cf   : > { %v13161_v63 = vpack.i.bf16 %v10463_v53, %v10359_v24  ;;  %v10361_v32 = vpop.f32.mrb[150].mxu0  ;;  %v10467_v15 = vpop.f32.mrb[118].mxu1 }
0x15d0   : > { %v10668_v34 = vpack.c.bf16 %v10361_v32, %v10357_v10  ;;  %v10363_v56 = vpop.f32.mrb[151].mxu0  ;;  %v16972_v58 = vpop.f32.mrb[119].mxu1 }
0x15d1   : > { %v13166_v41 = vpack.i.bf16 %v10467_v15, %v10363_v56  ;;  %v10669_v54 = vpack.c.bf16 %v10363_v56, %v10359_v24  ;;  %v10676_v40 = vpack.c.bf16 %v16972_v58, %v16970_v7  ;;  %13162 = vrot.lane.b32.xlu1 %v13161_v63, %s15519_s12 }
0x15d3   : > { %13167 = vrot.lane.b32.xlu0 %v13166_v41, %s15519_s12  ;;  %10720 = vmatprep.subr.bf16.mxu1 %v10669_v54 }
0x15d4   : > { %10721 = vmatpush1.bf16.msra.mxu1 %v10668_v34 }
0x15d5   : > { %v10367_v1 = vpop.f32.mrb[152].mxu0  ;;  %v10473_v30 = vpop.f32.mrb[120].mxu1 }
0x15d6   : > { %v10369_v2 = vpop.f32.mrb[153].mxu0  ;;  %v10475_v38 = vpop.f32.mrb[121].mxu1 }
0x15d7   : > { %v13171_v60 = vpack.i.bf16 %v10473_v30, %v10369_v2  ;;  %v10371_v43 = vpop.f32.mrb[154].mxu0  ;;  %v10477_v52 = vpop.f32.mrb[122].mxu1 }
0x15d8   : > { %v10670_v21 = vpack.c.bf16 %v10371_v43, %v10367_v1  ;;  %v10373_v4 = vpop.f32.mrb[155].mxu0  ;;  %v10479_v11 = vpop.f32.mrb[123].mxu1 }
0x15d9   : > { %v13176_v14 = vpack.i.bf16 %v10477_v52, %v10373_v4  ;;  %v10671_v19 = vpack.c.bf16 %v10373_v4, %v10369_v2  ;;  %v10678_v27 = vpack.c.bf16 %v10479_v11, %v10475_v38  ;;  %13172 = vrot.lane.b32.xlu1 %v13171_v60, %s15519_s12  ;;  %v14622_v4 = vld [vmem:[#allocation37 + $0x8] sm:$0xff]   ;;  %v14623_v11 = vld [vmem:[#allocation37 + $0x10] sm:$0xff]  }
0x15db   : > { %13177 = vrot.lane.b32.xlu0 %v13176_v14, %s15519_s12  ;;  %10722 = vmatprep.subr.bf16.mxu1 %v10671_v19  ;;  %v14624_v14 = vld [vmem:[#allocation37 + $0x18] sm:$0xff]  }
0x15dc   : > { %10723 = vmatpush1.bf16.msra.mxu1 %v10670_v21  ;;  %v14621_v21 = vld [vmem:[#allocation37] sm:$0xff]  }
0x162d   : > { %v10569_v31 = vpop.f32.mrb[156].mxu0 }
0x162e   : > { %v10571_v62 = vpop.f32.mrb[157].mxu0 }
0x162f   : > { %v13181_v35 = vpack.i.bf16 %v10571_v62, %v10569_v31  ;;  %v10573_v46 = vpop.f32.mrb[158].mxu0 }
0x1630   : > { %v10677_v36 = vpack.c.bf16 %v10573_v46, %v10569_v31  ;;  %v10575_v49 = vpop.f32.mrb[159].mxu0 }
0x1631   : > { %v13186_v55 = vpack.i.bf16 %v10575_v49, %v10573_v46  ;;  %13182 = vrot.lane.b32.xlu1 %v13181_v35, %s15519_s12 }
0x1633   : > { %13187 = vrot.lane.b32.xlu0 %v13186_v55, %s15519_s12 }
0x1635   : > { %v10579_v3 = vpop.f32.mrb[160].mxu0 }
0x1636   : > { %v10581_v0 = vpop.f32.mrb[161].mxu0 }
0x1637   : > { %v13191_v5 = vpack.i.bf16 %v10581_v0, %v10579_v3  ;;  %v10583_v6 = vpop.f32.mrb[162].mxu0 }
0x1638   : > { %v10679_v47 = vpack.c.bf16 %v10583_v6, %v10579_v3  ;;  %v10585_v50 = vpop.f32.mrb[163].mxu0 }
0x1639   : > { %v13196_v33 = vpack.i.bf16 %v10585_v50, %v10583_v6  ;;  %13192 = vrot.lane.b32.xlu1 %v13191_v5, %s15519_s12 }
0x163b   : > { %13197 = vrot.lane.b32.xlu0 %v13196_v33, %s15519_s12  ;;  %s10850_s12 = sshll.u32 %s1251_s23, 4  ;;  %s10851_s12 = int_to_ptr.vmem [resolvable:$true] %s10850_s12 }
0x163c   : > { %s15307_s3 = scalar_lea.vmem %s10851_s12, 16 }
0x163d   : > { %5185 = vrot.lane.b32.xlu1 %v16795_v12, %s15523_s28  ;;  %s10831_s28 = scalar_lea.sflag [#allocation4], %s16110_s5  ;;  %p15308_p3 = scmp.ne.s32.totalorder %s10851_s12, %s15307_s3 }
0x163f   : > { %p15309_p6 = pnand %p15308_p3, %p17233_p4 }
0x1641   : > { %p15310_p11 = pneg %p15309_p6 }
0x1643   : > { %v13163_v57 = vpop.permute.xlu1 %13162 }
0x1644   : > { %v13165_v44 = vunpack.i.h.bf16 %v13163_v57  ;;  %v13164_v9 = vunpack.i.l.bf16 %v13163_v57 }
0x1645   : > { %v13168_v13 = vpop.permute.xlu0 %13167 }
0x1646   : > { %v13170_v59 = vunpack.i.h.bf16 %v13168_v13  ;;  %v13169_v16 = vunpack.i.l.bf16 %v13168_v13  ;;  %v10612_v51 = vsel %vm3831_vm13, %v13164_v9, %v13165_v44 }
0x1648   : > { %v10673_v26 = vpack.c.bf16 %v13170_v59, %v13165_v44  ;;  %v10613_v29 = vsel %vm3831_vm13, %v13169_v16, %v13170_v59 }
0x1649   : > { %v10672_v28 = vpack.c.bf16 %v10613_v29, %v10612_v51 }
0x164a   : > { %10724 = vmatprep.subr.bf16.mxu1 %v10673_v26 }
0x164b   : > { %v13173_v23 = vpop.permute.xlu1 %13172  ;;  %10725 = vmatpush1.bf16.msra.mxu1 %v10672_v28 }
0x164c   : > { %v13175_v18 = vunpack.i.h.bf16 %v13173_v23  ;;  %v13174_v22 = vunpack.i.l.bf16 %v13173_v23 }
0x164d   : > { %v13178_v25 = vpop.permute.xlu0 %13177 }
0x164e   : > { %v13180_v20 = vunpack.i.h.bf16 %v13178_v25  ;;  %v13179_v12 = vunpack.i.l.bf16 %v13178_v25  ;;  %v10614_v37 = vsel %vm3831_vm13, %v13174_v22, %v13175_v18 }
0x1650   : > { %v10675_v39 = vpack.c.bf16 %v13180_v20, %v13175_v18  ;;  %v10615_v42 = vsel %vm3831_vm13, %v13179_v12, %v13180_v20 }
0x1651   : > { %v10674_v45 = vpack.c.bf16 %v10615_v42, %v10614_v37 }
0x1652   : > { %10726 = vmatprep.subr.bf16.mxu1 %v10675_v39 }
0x1653   : > { %10727 = vmatpush1.bf16.msra.mxu1 %v10674_v45 }
0x1654   : > { %10728 = vmatprep.subr.bf16.mxu1 %v10677_v36 }
0x1657   : > { %10729 = vmatpush1.bf16.msra.mxu1 %v10676_v40 }
0x1658   : > { %10730 = vmatprep.subr.bf16.mxu1 %v10679_v47 }
0x165b   : > { %10731 = vmatpush1.bf16.msra.mxu1 %v10678_v27 }
0x16a3   : > { %v13183_v17 = vpop.permute.xlu1 %13182 }
0x16a4   : > { %v13185_v10 = vunpack.i.h.bf16 %v13183_v17  ;;  %v13184_v53 = vunpack.i.l.bf16 %v13183_v17 }
0x16a5   : > { %v13188_v24 = vpop.permute.xlu0 %13187 }
0x16a6   : > { %v13190_v63 = vunpack.i.h.bf16 %v13188_v24  ;;  %v13189_v32 = vunpack.i.l.bf16 %v13188_v24  ;;  %v10648_v15 = vsel %vm3831_vm13, %v13184_v53, %v13185_v10 }
0x16a8   : > { %v10681_v34 = vpack.c.bf16 %v13190_v63, %v13185_v10  ;;  %v10649_v56 = vsel %vm3831_vm13, %v13189_v32, %v13190_v63 }
0x16a9   : > { %v10680_v41 = vpack.c.bf16 %v10649_v56, %v10648_v15 }
0x16aa   : > { %10732 = vmatprep.subr.bf16.mxu1 %v10681_v34 }
0x16ab   : > { %v13193_v54 = vpop.permute.xlu1 %13192  ;;  %10733 = vmatpush1.bf16.msra.mxu1 %v10680_v41 }
0x16ac   : > { %v13195_v7 = vunpack.i.h.bf16 %v13193_v54  ;;  %v13194_v58 = vunpack.i.l.bf16 %v13193_v54 }
0x16ad   : > { %v13198_v40 = vpop.permute.xlu0 %13197 }
0x16ae   : > { %v13200_v1 = vunpack.i.h.bf16 %v13198_v40  ;;  %v13199_v30 = vunpack.i.l.bf16 %v13198_v40  ;;  %v10650_v38 = vsel %vm3831_vm13, %v13194_v58, %v13195_v7 }
0x16af   : > { %v5186_v2 = vpop.permute.xlu1 %5185 }
0x16b0   : > { %v10683_v60 = vpack.c.bf16 %v13200_v1, %v13195_v7  ;;  %v10651_v43 = vsel %vm3831_vm13, %v13199_v30, %v13200_v1  ;;  %5188 = vst.msk [vmem:[%s17139_s6] sm:$0x1] %vm5182_vm6, %v5186_v2  ;;  %s15524_s6 = smov [#allocation40]  }
0x16b1   : > { %v10682_v52 = vpack.c.bf16 %v10651_v43, %v10650_v38  ;;  %s15311_s13 = sshll.u32 %s15524_s6, 4  ;;  %s15312_s13 = int_to_ptr.vmem [resolvable:$false] %s15311_s13 }
0x16b2   : > { %10734 = vmatprep.subr.bf16.mxu1 %v10683_v60  ;;  %s15313_s15 = scalar_lea.vmem %s15312_s13, 32  ;;  %p15314_p0 = scmp.lt.s32.totalorder %s10851_s12, %s15312_s13 }
0x16b3   : > { %10735 = vmatpush1.bf16.msra.mxu1 %v10682_v52  ;;  %p15315_p2 = scmp.lt.s32.totalorder %s15313_s15, %s15307_s3 }
0x16b5   : > { %p15316_p8 = por %p15315_p2, %p15314_p0 }
0x16b6   : > { %10753 = vmatmul.mubr.bf16.vlgmr.msra.gmra.mrb[124].mxu1 %v14621_v21 }
0x16b7   : > { %10762 = vmatprep.mubr.bf16.mxu1 %v15518_v8  ;;  %p15317_p10 = pnand %p15316_p8, %p15310_p11 }
0x16be   : > { %10763 = vmatmul.mubr.bf16.gmra.mrb[128].mxu1 %v14622_v4 }
0x16bf   : > { %10772 = vmatprep.mubr.bf16.mxu1 %v15518_v8 }
0x16c6   : > { %10773 = vmatmul.mubr.bf16.gmra.mrb[132].mxu1 %v14623_v11 }
0x16c7   : > { %10782 = vmatprep.mubr.bf16.mxu1 %v15518_v8 }
0x16ce   : > { %10783 = vmatmul.mubr.bf16.gmra.mrb[136].mxu1 %v14624_v14 }
0x16cf   : > { %15320 = shalt.err (!%p15317_p10)
}
0x16d0   : > { %s15321_s23 = scalar_lea.hbm %s17010_s1, 16  ;;  %s15325_s6 = scalar_lea.hbm %s17232_s9, 32 }
0x16d1   : > { %p15322_p12 = scmp.ne.s32.totalorder %s17010_s1, %s15321_s23  ;;  %p15326_p5 = scmp.lt.u32.totalorder %s17010_s1, %s17232_s9 }
0x16d2   : > { %p15327_p7 = scmp.lt.u32.totalorder %s15325_s6, %s15321_s23  ;;  %p15329_p3 = scmp.lt.u32.totalorder %s15321_s23, %s17010_s1 }
0x16d3   : > { %p15323_p9 = pnand %p15322_p12, %p17233_p4 }
0x16d4   : > { %p15328_p1 = por %p15327_p7, %p15326_p5 }
0x16d5   : > { %p15324_p13 = pneg %p15323_p9 }
0x16d6   : > { %p15330_p6 = por %p15329_p3, %p15328_p1 }
0x16d8   : > { %p15331_p11 = pnand %p15330_p6, %p15324_p13 }
0x16da   : > { %15334 = shalt.err (!%p15331_p11)
}
0x16db   : > { %s17234_s15 = sld [smem:[#allocation82_spill]]  ;;  %s17235_s13 = scalar_lea.vmem [#allocation41], %s16110_s5 }
0x16dc   : > { %12833 = dma.vmem_to_hbm [thread:$0]  (%p17233_p4), %s10851_s12, 16, %s17010_s1, %s10831_s28  }
0x16dd   : > { %s10863_s9 = sshll.u32 %s17235_s13, 4  ;;  %s10835_s6 = scalar_lea.sflag [#allocation42], %s16110_s5  ;;  %s10864_s9 = int_to_ptr.vmem [resolvable:$true] %s10863_s9 }
0x16de   : > { %s15335_s23 = scalar_lea.vmem %s10864_s9, 16  ;;  %s15525_s17 = smov [#allocation41]  }
0x16df   : > { %p15336_p0 = scmp.ne.s32.totalorder %s10864_s9, %s15335_s23  ;;  %s15339_s19 = sshll.u32 %s15525_s17, 4  ;;  %s15340_s19 = int_to_ptr.vmem [resolvable:$false] %s15339_s19 }
0x16e0   : > { %s15341_s20 = scalar_lea.vmem %s15340_s19, 32  ;;  %p15342_p10 = scmp.lt.s32.totalorder %s10864_s9, %s15340_s19 }
0x16e1   : > { %s17029_s3 = scalar_lea.hbm %s17234_s15, %s12406_s4  ;;  %p15337_p2 = pnand %p15336_p0, %p17233_p4 }
0x16e2   : > { %p15343_p12 = scmp.lt.s32.totalorder %s15341_s20, %s15335_s23 }
0x16e3   : > { %p15338_p8 = pneg %p15337_p2 }
0x16e4   : > { %p15344_p9 = por %p15343_p12, %p15342_p10 }
0x16e6   : > { %p15345_p13 = pnand %p15344_p9, %p15338_p8 }
0x16e8   : > { %15348 = shalt.err (!%p15345_p13)
}
0x16e9   : > { %s15349_s18 = scalar_lea.hbm %s17029_s3, 16  ;;  %s15353_s17 = scalar_lea.hbm %s17234_s15, 32 }
0x16ea   : > { %p15350_p5 = scmp.ne.s32.totalorder %s17029_s3, %s15349_s18  ;;  %p15354_p3 = scmp.lt.u32.totalorder %s17029_s3, %s17234_s15 }
0x16eb   : > { %p15355_p6 = scmp.lt.u32.totalorder %s15353_s17, %s15349_s18  ;;  %p15357_p0 = scmp.lt.u32.totalorder %s15349_s18, %s17029_s3 }
0x16ec   : > { %p15351_p7 = pnand %p15350_p5, %p17233_p4 }
0x16ed   : > { %p15356_p11 = por %p15355_p6, %p15354_p3 }
0x16ee   : > { %p15352_p1 = pneg %p15351_p7 }
0x16ef   : > { %p15358_p2 = por %p15357_p0, %p15356_p11 }
0x16f1   : > { %p15359_p8 = pnand %p15358_p2, %p15352_p1 }
0x16f3   : > { %15362 = shalt.err (!%p15359_p8)
}
0x16f4   : > { %s17236_s20 = sld [smem:[#allocation80_spill]]  ;;  %v10684_v8 = vld [vmem:[#allocation38] sm:$0x3]  ;;  %s17237_s19 = sshll.u32 %s16168_s22, 7 }
0x16f5   : > { %12834 = dma.vmem_to_hbm [thread:$0]  (%p17233_p4), %s10864_s9, 16, %s17029_s3, %s10835_s6   ;;  %v10689_v19 = vrot.slane %v10684_v8, %v16439_v61  ;;  %v10693_v27 = vrot.slane %v10684_v8, %v16444_v48 }
0x16fa   : > { %s17052_s5 = scalar_lea.vmem %s17236_s20, %s17237_s19 }
0x1789   : > { %v10754_v31 = vpop.f32.mrb[124].mxu1 }
0x178a   : > { %v10755_v62 = vadd.f32 %v10754_v31, %v10689_v19  ;;  %v10756_v35 = vpop.f32.mrb[125].mxu1 }
0x178b   : > { %v10757_v46 = vadd.f32 %v10756_v35, %v10693_v27  ;;  %v10758_v36 = vpop.f32.mrb[126].mxu1 }
0x178c   : > { %v10793_v49 = vmax.f32 %v10755_v62, 0.0  ;;  %v10759_v55 = vadd.f32 %v10758_v36, %v10689_v19  ;;  %v10760_v3 = vpop.f32.mrb[127].mxu1 }
0x178d   : > { %v10794_v0 = vmax.f32 %v10757_v46, 0.0  ;;  %v10761_v5 = vadd.f32 %v10760_v3, %v10693_v27 }
0x178e   : > { %10809 = vst [vmem:[%s17052_s5] sm:$0xff] %v10793_v49  ;;  %v10795_v61 = vmax.f32 %v10759_v55, 0.0 }
0x178f   : > { %10810 = vst.msk [vmem:[%s17052_s5 + $0x8] sm:$0xff] %vm3831_vm13, %v10794_v0  ;;  %v10796_v48 = vmax.f32 %v10761_v5, 0.0 }
0x1790   : > { %10811 = vst [vmem:[%s17052_s5 + $0x10] sm:$0xff] %v10795_v61 }
0x1791   : > { %10812 = vst.msk [vmem:[%s17052_s5 + $0x18] sm:$0xff] %vm3831_vm13, %v10796_v48  ;;  %v10764_v6 = vpop.f32.mrb[128].mxu1 }
0x1792   : > { %v10765_v47 = vadd.f32 %v10764_v6, %v10689_v19  ;;  %v10766_v50 = vpop.f32.mrb[129].mxu1 }
0x1793   : > { %v10767_v33 = vadd.f32 %v10766_v50, %v10693_v27  ;;  %v10768_v57 = vpop.f32.mrb[130].mxu1 }
0x1794   : > { %v10797_v44 = vmax.f32 %v10765_v47, 0.0  ;;  %v10769_v9 = vadd.f32 %v10768_v57, %v10689_v19  ;;  %v10770_v13 = vpop.f32.mrb[131].mxu1 }
0x1795   : > { %v10798_v59 = vmax.f32 %v10767_v33, 0.0  ;;  %v10771_v16 = vadd.f32 %v10770_v13, %v10693_v27 }
0x1796   : > { %10813 = vst [vmem:[%s17052_s5 + $0x20] sm:$0xff] %v10797_v44  ;;  %v10799_v51 = vmax.f32 %v10769_v9, 0.0 }
0x1797   : > { %10814 = vst.msk [vmem:[%s17052_s5 + $0x28] sm:$0xff] %vm3831_vm13, %v10798_v59  ;;  %v10800_v26 = vmax.f32 %v10771_v16, 0.0 }
0x1798   : > { %10815 = vst [vmem:[%s17052_s5 + $0x30] sm:$0xff] %v10799_v51 }
0x1799   : > { %10816 = vst.msk [vmem:[%s17052_s5 + $0x38] sm:$0xff] %vm3831_vm13, %v10800_v26  ;;  %v10774_v29 = vpop.f32.mrb[132].mxu1 }
0x179a   : > { %v10775_v28 = vadd.f32 %v10774_v29, %v10689_v19  ;;  %v10776_v23 = vpop.f32.mrb[133].mxu1 }
0x179b   : > { %v10777_v18 = vadd.f32 %v10776_v23, %v10693_v27  ;;  %v10778_v22 = vpop.f32.mrb[134].mxu1 }
0x179c   : > { %v10801_v25 = vmax.f32 %v10775_v28, 0.0  ;;  %v10779_v20 = vadd.f32 %v10778_v22, %v10689_v19  ;;  %v10780_v12 = vpop.f32.mrb[135].mxu1 }
0x179d   : > { %v10802_v37 = vmax.f32 %v10777_v18, 0.0  ;;  %v10781_v39 = vadd.f32 %v10780_v12, %v10693_v27 }
0x179e   : > { %10817 = vst [vmem:[%s17052_s5 + $0x40] sm:$0xff] %v10801_v25  ;;  %v10803_v42 = vmax.f32 %v10779_v20, 0.0 }
0x179f   : > { %10818 = vst.msk [vmem:[%s17052_s5 + $0x48] sm:$0xff] %vm3831_vm13, %v10802_v37  ;;  %v10804_v45 = vmax.f32 %v10781_v39, 0.0 }
0x17a0   : > { %10819 = vst [vmem:[%s17052_s5 + $0x50] sm:$0xff] %v10803_v42 }
0x17a1   : > { %10820 = vst.msk [vmem:[%s17052_s5 + $0x58] sm:$0xff] %vm3831_vm13, %v10804_v45  ;;  %v10784_v17 = vpop.f32.mrb[136].mxu1 }
0x17a2   : > { %v10785_v10 = vadd.f32 %v10784_v17, %v10689_v19  ;;  %v10786_v53 = vpop.f32.mrb[137].mxu1 }
0x17a3   : > { %v10787_v24 = vadd.f32 %v10786_v53, %v10693_v27  ;;  %v10788_v63 = vpop.f32.mrb[138].mxu1 }
0x17a4   : > { %v10805_v32 = vmax.f32 %v10785_v10, 0.0  ;;  %v10789_v15 = vadd.f32 %v10788_v63, %v10689_v19  ;;  %v10790_v34 = vpop.f32.mrb[139].mxu1 }
0x17a5   : > { %v10806_v56 = vmax.f32 %v10787_v24, 0.0  ;;  %v10791_v41 = vadd.f32 %v10790_v34, %v10693_v27 }
0x17a6   : > { %10821 = vst [vmem:[%s17052_s5 + $0x60] sm:$0xff] %v10805_v32  ;;  %v10807_v54 = vmax.f32 %v10789_v15, 0.0 }
0x17a7   : > { %10822 = vst.msk [vmem:[%s17052_s5 + $0x68] sm:$0xff] %vm3831_vm13, %v10806_v56  ;;  %v10808_v7 = vmax.f32 %v10791_v41, 0.0 }
0x17a8   : > { %10823 = vst [vmem:[%s17052_s5 + $0x70] sm:$0xff] %v10807_v54 }
0x17a9   : > { %10824 = vst.msk [vmem:[%s17052_s5 + $0x78] sm:$0xff] %vm3831_vm13, %v10808_v7 }
0x17aa PF: > { %s10883_s14 = sand.u32 1, %s15441_s0   ;;  %p17238_p4 = scmp.ne.s32.totalorder %s17202_s8, 0 }
0x17ab   : > { %p17239_p10 = scmp.ge.s32.totalorder %s15453_s11, 2  ;;  %s10884_s22 = scalar_lea.sflag [#allocation4], %s10883_s14 }
0x17ad   : > { %p12912_p12 = pnand %p17239_p10, %p17238_p4 }
0x17af   : > { %15432 = dma.done.wait (!%p12912_p12), %s10884_s22, 16  }
0x17b0   : > { %15434 = vsyncadd (!%p12912_p12), %s10884_s22, 4294967280  ;;  %s10892_s9 = scalar_lea.sflag [#allocation42], %s10883_s14 }
0x17b1   : > { %15436 = dma.done.wait (!%p12912_p12), %s10892_s9, 16  }
0x17b2   : > { %15438 = vsyncadd (!%p12912_p12), %s10892_s9, 4294967280  ;;  %p88_p9 = scmp.ge.s32.totalorder %s16046_s2, 4   ;;  %s17240_s0 = smov %s15445_s7 }
0x17b3   : > { %s17241_s7 = smov %s15449_s10  ;;  %s17242_s10 = smov %s16058_s16 }
0x17b4   : > { %s17243_s11 = smov %s16046_s2  ;;  %90 = sbr.rel (!%p88_p9) target bundleno = 78 (0x4e), region = 333 }
0x17bb   :  { %10896 = vsyncpa [#allocation3], 1 }
0x17bc   :  { %10898 = vsyncpa [#allocation3 + $0x1], 1 }
0x17bd   :  { %10899 = vsyncpa [#allocation6], 1 }
0x17be   :  { %10900 = vsyncpa [#allocation9], 1 }
0x17bf   :  { %10901 = vsyncpa [#allocation12], 1 }
0x17c0   :  { %10902 = vsyncpa [#allocation15], 1 }
0x17c1   :  { %10903 = vsyncpa [#allocation18], 1 }
0x17c2   :  { %10904 = vsyncpa [#allocation21], 1 }
0x17c3   :  { %10905 = vsyncpa [#allocation24], 1 }
0x17c4   :  { %10906 = vsyncpa [#allocation27], 1 }
0x17c5   :  { %10907 = vsyncpa [#allocation30], 1 }
0x17c6   :  { %10908 = vsyncpa [#allocation33], 1 }
0x17c7   :  { %10909 = vsyncpa [#allocation36], 1 }
0x17c8   :  { %10910 = vsyncpa [#allocation39], 1 }
0x17c9   :  { %10911 = vsyncpa [#allocation4], 1 }
0x17ca   :  { %10913 = vsyncpa [#allocation4 + $0x1], 1 }
0x17cb   :  { %10914 = vsyncpa [#allocation42], 1 }
0x17cc   :  { %10916 = vsyncpa [#allocation42 + $0x1], 1 }

</bundles_post_ra>
